<compile_context>
chip_gen: v5e
topology: v5e:2x2
jax: 0.10.0
libtpu: 0.0.40
codegen_flags: <defaults>
</compile_context>

<pallas_src>
import math
import functools

import jax
import jax.numpy as jnp
from jax import lax
from jax.experimental import pallas as pl
from jax.experimental.pallas import tpu as pltpu


# ----------------------------------------------------------------------------
# generation-aware limits
# ----------------------------------------------------------------------------
def _tpu_vmem_capacity():
    try:
        return int(pltpu.get_tpu_info().vmem_capacity_bytes)
    except Exception:
        return 64 * 1024 * 1024      # conservative (v7x-sized) fallback


_VMEM_CAP = _tpu_vmem_capacity()
_VMEM_LIMIT = min(_VMEM_CAP * 3 // 4, 112 * 1024 * 1024)   # 48 MiB on v7x, 96 MiB on v5e/v6e
_ROW_CAP = 1024 if _VMEM_CAP >= 128 * 1024 * 1024 else 512


def _cp(*sem):
    return pltpu.CompilerParams(dimension_semantics=tuple(sem),
                                vmem_limit_bytes=_VMEM_LIMIT)


def _row_tile(r):
    return r if r <= _ROW_CAP else _ROW_CAP


def _act(y, act):
    if act == "none":
        return y
    if act == "relu":
        return jnp.maximum(y, 0.0)
    if act == "silu":
        return y * jax.nn.sigmoid(y)
    if act == "sigmoid":
        return jax.nn.sigmoid(y)
    raise ValueError(act)


def _softplus20(x):
    # torch.nn.functional.softplus with threshold=20 (as used by selective_scan)
    return jnp.where(x > 20.0, x, jnp.log1p(jnp.exp(x)))


# ----------------------------------------------------------------------------
# Pallas kernel: row-tiled linear (bf16 MXU inputs, f32 accumulate) with fused
# bias, activation, optional SiLU gate (x * silu(gate)) and optional residual.
# ----------------------------------------------------------------------------
def linear(x2d, w, b=None, act="none", residual=None, gate=None,
           out_dtype=jnp.bfloat16):
    R, Cin = x2d.shape
    Cout = w.shape[1]
    TR = _row_tile(R)
    wb = w.astype(jnp.bfloat16)
    b2 = (jnp.zeros((Cout,), jnp.float32) if b is None
          else b.astype(jnp.float32)).reshape(1, Cout)
    xb = x2d.astype(jnp.bfloat16)
    has_res = residual is not None
    has_gate = gate is not None

    def kernel(*refs):
        it = iter(refs)
        x_ref = next(it); w_ref = next(it); b_ref = next(it)
        g_ref = next(it) if has_gate else None
        r_ref = next(it) if has_res else None
        o_ref = next(it)
        xv = x_ref[...]
        if has_gate:
            g = g_ref[...].astype(jnp.float32)
            xv = (xv.astype(jnp.float32) * g * jax.nn.sigmoid(g)).astype(jnp.bfloat16)
        y = jnp.dot(xv, w_ref[...], preferred_element_type=jnp.float32) + b_ref[...]
        y = _act(y, act)
        if has_res:
            y = y + r_ref[...].astype(jnp.float32)
        o_ref[...] = y.astype(out_dtype)

    in_specs = [pl.BlockSpec((TR, Cin), lambda i: (i, 0)),
                pl.BlockSpec((Cin, Cout), lambda i: (0, 0)),
                pl.BlockSpec((1, Cout), lambda i: (0, 0))]
    args = [xb, wb, b2]
    if has_gate:
        in_specs.append(pl.BlockSpec((TR, Cin), lambda i: (i, 0)))
        args.append(gate.astype(jnp.bfloat16))
    if has_res:
        in_specs.append(pl.BlockSpec((TR, Cout), lambda i: (i, 0)))
        args.append(residual)

    return pl.pallas_call(
        kernel,
        grid=(pl.cdiv(R, TR),),
        in_specs=in_specs,
        out_specs=pl.BlockSpec((TR, Cout), lambda i: (i, 0)),
        out_shape=jax.ShapeDtypeStruct((R, Cout), out_dtype),
        compiler_params=_cp("parallel"),
    )(*args)


# ----------------------------------------------------------------------------
# Pallas kernel: in_proj (x-half composed with BottConv pw1) + z-half in one
# row-tiled matmul kernel with two lane-aligned outputs.
# ----------------------------------------------------------------------------
def in_proj_split(x2d, w_h, b_h, w_z):
    R, Cd = x2d.shape
    mid = w_h.shape[1]
    E = w_z.shape[1]
    TR = _row_tile(R)
    bh2 = b_h.astype(jnp.float32).reshape(1, mid)

    def kernel(x_ref, wh_ref, bh_ref, wz_ref, h_ref, z_ref):
        xv = x_ref[...]
        h = jnp.dot(xv, wh_ref[...], preferred_element_type=jnp.float32) + bh_ref[...]
        h_ref[...] = h.astype(jnp.bfloat16)
        z_ref[...] = jnp.dot(xv, wz_ref[...],
                             preferred_element_type=jnp.float32).astype(jnp.bfloat16)

    return pl.pallas_call(
        kernel,
        grid=(pl.cdiv(R, TR),),
        in_specs=[pl.BlockSpec((TR, Cd), lambda i: (i, 0)),
                  pl.BlockSpec((Cd, mid), lambda i: (0, 0)),
                  pl.BlockSpec((1, mid), lambda i: (0, 0)),
                  pl.BlockSpec((Cd, E), lambda i: (0, 0))],
        out_specs=(pl.BlockSpec((TR, mid), lambda i: (i, 0)),
                   pl.BlockSpec((TR, E), lambda i: (i, 0))),
        out_shape=(jax.ShapeDtypeStruct((R, mid), jnp.bfloat16),
                   jax.ShapeDtypeStruct((R, E), jnp.bfloat16)),
        compiler_params=_cp("parallel"),
    )(x2d.astype(jnp.bfloat16), w_h.astype(jnp.bfloat16), bh2, w_z.astype(jnp.bfloat16))


# ----------------------------------------------------------------------------
# Pallas kernel: BottConv pw2 + SiLU + (x_proj o dt_proj) fused, emitting
# x_conv (bf16) and dt / B / C (f32) as separate lane-aligned outputs.
# ----------------------------------------------------------------------------
def conv_xproj(h2d, pw2_w, w_dt, b_dt, w_B, w_C):
    R, mid = h2d.shape
    E = pw2_w.shape[1]
    N = w_B.shape[1]
    TR = _row_tile(R)
    bdt2 = b_dt.astype(jnp.float32).reshape(1, E)

    def kernel(h_ref, w2_ref, wdt_ref, bdt_ref, wb_ref, wc_ref,
               xc_ref, dt_ref, bssm_ref, cssm_ref):
        xc = jnp.dot(h_ref[...], w2_ref[...], preferred_element_type=jnp.float32)
        xc = xc * jax.nn.sigmoid(xc)                     # SiLU (after BottConv)
        xcb = xc.astype(jnp.bfloat16)
        xc_ref[...] = xcb
        dt_ref[...] = jnp.dot(xcb, wdt_ref[...],
                              preferred_element_type=jnp.float32) + bdt_ref[...]
        bssm_ref[...] = jnp.dot(xcb, wb_ref[...], preferred_element_type=jnp.float32)
        cssm_ref[...] = jnp.dot(xcb, wc_ref[...], preferred_element_type=jnp.float32)

    return pl.pallas_call(
        kernel,
        grid=(pl.cdiv(R, TR),),
        in_specs=[pl.BlockSpec((TR, mid), lambda i: (i, 0)),
                  pl.BlockSpec((mid, E), lambda i: (0, 0)),
                  pl.BlockSpec((E, E), lambda i: (0, 0)),
                  pl.BlockSpec((1, E), lambda i: (0, 0)),
                  pl.BlockSpec((E, N), lambda i: (0, 0)),
                  pl.BlockSpec((E, N), lambda i: (0, 0))],
        out_specs=(pl.BlockSpec((TR, E), lambda i: (i, 0)),
                   pl.BlockSpec((TR, E), lambda i: (i, 0)),
                   pl.BlockSpec((TR, N), lambda i: (i, 0)),
                   pl.BlockSpec((TR, N), lambda i: (i, 0))),
        out_shape=(jax.ShapeDtypeStruct((R, E), jnp.bfloat16),
                   jax.ShapeDtypeStruct((R, E), jnp.float32),
                   jax.ShapeDtypeStruct((R, N), jnp.float32),
                   jax.ShapeDtypeStruct((R, N), jnp.float32)),
        compiler_params=_cp("parallel"),
    )(h2d.astype(jnp.bfloat16), pw2_w.astype(jnp.bfloat16),
      w_dt.astype(jnp.bfloat16), bdt2,
      w_B.astype(jnp.bfloat16), w_C.astype(jnp.bfloat16))


# ----------------------------------------------------------------------------
# Pallas kernel: LayerNorm over last dim, row-tiled (bf16 in/out, f32 math)
# ----------------------------------------------------------------------------
def layernorm(x, gamma, beta, eps=1e-5):
    shp = x.shape
    C = shp[-1]
    x2 = x.reshape(-1, C).astype(jnp.bfloat16)
    R = x2.shape[0]
    TR = _row_tile(R)
    g2 = gamma.reshape(1, C).astype(jnp.float32)
    b2 = beta.reshape(1, C).astype(jnp.float32)

    def kernel(x_ref, g_ref, b_ref, o_ref):
        xv = x_ref[...].astype(jnp.float32)
        mu = jnp.mean(xv, axis=-1, keepdims=True)
        var = jnp.mean((xv - mu) ** 2, axis=-1, keepdims=True)
        y = (xv - mu) * lax.rsqrt(var + eps) * g_ref[...] + b_ref[...]
        o_ref[...] = y.astype(jnp.bfloat16)

    out = pl.pallas_call(
        kernel,
        grid=(pl.cdiv(R, TR),),
        in_specs=[pl.BlockSpec((TR, C), lambda i: (i, 0)),
                  pl.BlockSpec((1, C), lambda i: (0, 0)),
                  pl.BlockSpec((1, C), lambda i: (0, 0))],
        out_specs=pl.BlockSpec((TR, C), lambda i: (i, 0)),
        out_shape=jax.ShapeDtypeStruct((R, C), jnp.bfloat16),
        compiler_params=_cp("parallel"),
    )(x2, g2, b2)
    return out.reshape(shp)


# ----------------------------------------------------------------------------
# Pallas kernel: GroupNorm on channels-last (B, S, Cin), optionally preceded by
# a fused matmul (Cin -> C), with optional act / mul / add epilogue.  Group
# statistics via one-hot matmuls (centered two-pass variance).
# TODO(synk): switch to a two-pass S-tiled form for v7x (64 MiB VMEM) at
# production S*C; the full-sequence-per-batch block is fine for v5e/v6e.
# ----------------------------------------------------------------------------
def groupnorm_cl(x_bsc, gamma, beta, M, MT, *, w=None, wb=None, eps=1e-5,
                 act="none", mul=None, add=None, out_dtype=jnp.bfloat16):
    B, S, Cin = x_bsc.shape
    C = gamma.shape[0]
    G = M.shape[1]
    inv_cnt = 1.0 / float((C // G) * S)
    g2 = gamma.reshape(1, C).astype(jnp.float32)
    b2 = beta.reshape(1, C).astype(jnp.float32)
    has_w = w is not None
    has_mul = mul is not None
    has_add = add is not None
    if has_w:
        wb2 = (jnp.zeros((C,), jnp.float32) if wb is None
               else wb.astype(jnp.float32)).reshape(1, C)

    def kernel(*refs):
        it = iter(refs)
        x_ref = next(it)
        w_ref = next(it) if has_w else None
        wbias_ref = next(it) if has_w else None
        m_ref = next(it); mt_ref = next(it); g_ref = next(it); bb_ref = next(it)
        mul_ref = next(it) if has_mul else None
        add_ref = next(it) if has_add else None
        o_ref = next(it)

        if has_w:
            xv = jnp.dot(x_ref[0], w_ref[...],
                         preferred_element_type=jnp.float32) + wbias_ref[...]
        else:
            xv = x_ref[0].astype(jnp.float32)
        m = m_ref[...]; mt = mt_ref[...]
        s1 = jnp.sum(xv, axis=0, keepdims=True)
        mean_c = jnp.dot(jnp.dot(s1, m, preferred_element_type=jnp.float32) * inv_cnt,
                         mt, preferred_element_type=jnp.float32)
        xc = xv - mean_c
        s2 = jnp.sum(xc * xc, axis=0, keepdims=True)
        var_c = jnp.dot(jnp.dot(s2, m, preferred_element_type=jnp.float32) * inv_cnt,
                        mt, preferred_element_type=jnp.float32)
        y = _act(xc * lax.rsqrt(var_c + eps) * g_ref[...] + bb_ref[...], act)
        if has_mul:
            y = y * mul_ref[0].astype(jnp.float32)
        if has_add:
            y = y + add_ref[0].astype(jnp.float32)
        o_ref[0] = y.astype(out_dtype)

    in_specs = [pl.BlockSpec((1, S, Cin), lambda b: (b, 0, 0))]
    args = [x_bsc.astype(jnp.bfloat16)]
    if has_w:
        in_specs += [pl.BlockSpec((Cin, C), lambda b: (0, 0)),
                     pl.BlockSpec((1, C), lambda b: (0, 0))]
        args += [w.astype(jnp.bfloat16), wb2]
    in_specs += [pl.BlockSpec((C, G), lambda b: (0, 0)),
                 pl.BlockSpec((G, C), lambda b: (0, 0)),
                 pl.BlockSpec((1, C), lambda b: (0, 0)),
                 pl.BlockSpec((1, C), lambda b: (0, 0))]
    args += [M, MT, g2, b2]
    if has_mul:
        in_specs.append(pl.BlockSpec((1, S, C), lambda b: (b, 0, 0)))
        args.append(mul)
    if has_add:
        in_specs.append(pl.BlockSpec((1, S, C), lambda b: (b, 0, 0)))
        args.append(add)

    return pl.pallas_call(
        kernel,
        grid=(B,),
        in_specs=in_specs,
        out_specs=pl.BlockSpec((1, S, C), lambda b: (b, 0, 0)),
        out_shape=jax.ShapeDtypeStruct((B, S, C), out_dtype),
        compiler_params=_cp("parallel"),
    )(*args)


# ----------------------------------------------------------------------------
# Pallas kernel: the two back-to-back GroupNorms of SAVSS_Layer in one pass
# (returns GN(x) and GN(GN(x))) while reading x from HBM once.
# ----------------------------------------------------------------------------
def double_groupnorm(x_bsc, gamma, beta, M, MT, eps=1e-5):
    B, S, C = x_bsc.shape
    G = M.shape[1]
    inv_cnt = 1.0 / float((C // G) * S)
    g2 = gamma.reshape(1, C).astype(jnp.float32)
    b2 = beta.reshape(1, C).astype(jnp.float32)

    def kernel(x_ref, m_ref, mt_ref, g_ref, b_ref, o1_ref, o2_ref):
        m = m_ref[...]; mt = mt_ref[...]; g = g_ref[...]; bb = b_ref[...]

        def gn(xv):
            s1 = jnp.sum(xv, axis=0, keepdims=True)
            mean_c = jnp.dot(jnp.dot(s1, m, preferred_element_type=jnp.float32) * inv_cnt,
                             mt, preferred_element_type=jnp.float32)
            xc = xv - mean_c
            s2 = jnp.sum(xc * xc, axis=0, keepdims=True)
            var_c = jnp.dot(jnp.dot(s2, m, preferred_element_type=jnp.float32) * inv_cnt,
                            mt, preferred_element_type=jnp.float32)
            return xc * lax.rsqrt(var_c + eps) * g + bb

        y1 = gn(x_ref[0].astype(jnp.float32))
        o1_ref[0] = y1.astype(jnp.bfloat16)
        o2_ref[0] = gn(y1).astype(jnp.bfloat16)

    return pl.pallas_call(
        kernel,
        grid=(B,),
        in_specs=[pl.BlockSpec((1, S, C), lambda b: (b, 0, 0)),
                  pl.BlockSpec((C, G), lambda b: (0, 0)),
                  pl.BlockSpec((G, C), lambda b: (0, 0)),
                  pl.BlockSpec((1, C), lambda b: (0, 0)),
                  pl.BlockSpec((1, C), lambda b: (0, 0))],
        out_specs=(pl.BlockSpec((1, S, C), lambda b: (b, 0, 0)),
                   pl.BlockSpec((1, S, C), lambda b: (b, 0, 0))),
        out_shape=(jax.ShapeDtypeStruct((B, S, C), jnp.bfloat16),
                   jax.ShapeDtypeStruct((B, S, C), jnp.bfloat16)),
        compiler_params=_cp("parallel"),
    )(x_bsc.astype(jnp.bfloat16), M, MT, g2, b2)


# ----------------------------------------------------------------------------
# Pallas kernel: depthwise 3x3 conv, NHWC, pre-padded input, unrolled 9 taps.
# TODO(synk): re-layout so W (or H*W) is on the lane dim and handle the halo
# in-kernel (mid channels on lanes gives poor lane occupancy); small tensor, so
# kept in the known-good form.
# ----------------------------------------------------------------------------
def depthwise_conv3x3(x_nhwc, w9c, act="none"):
    B, H, W, C = x_nhwc.shape
    xp = jnp.pad(x_nhwc.astype(jnp.bfloat16), ((0, 0), (1, 1), (1, 1), (0, 0)))
    wflat = w9c.astype(jnp.float32)

    def kernel(x_ref, w_ref, o_ref):
        xv = x_ref[0].astype(jnp.float32)          # (H+2, W+2, C)
        wk = w_ref[...]                            # (9, C)
        acc = xv[0:H, 0:W, :] * wk[0][None, None, :]
        for t in range(1, 9):
            dh, dw = t // 3, t % 3
            acc = acc + xv[dh:dh + H, dw:dw + W, :] * wk[t][None, None, :]
        o_ref[0] = _act(acc, act).astype(jnp.bfloat16)

    return pl.pallas_call(
        kernel,
        grid=(B,),
        in_specs=[pl.BlockSpec((1, H + 2, W + 2, C), lambda b: (b, 0, 0, 0)),
                  pl.BlockSpec((9, C), lambda b: (0, 0))],
        out_specs=pl.BlockSpec((1, H, W, C), lambda b: (b, 0, 0, 0)),
        out_shape=jax.ShapeDtypeStruct((B, H, W, C), jnp.bfloat16),
        compiler_params=_cp("parallel"),
    )(xp, wflat)


# ----------------------------------------------------------------------------
# Pallas kernel: selective scan (Mamba SSM recurrence).  Grid (batch, direction)
# so dt / B / C / A / D / bias blocks are fetched once per batch; the direction
# bias is added in-kernel (Bm_all never materialized).  The sequence is walked
# in 8-step chunks (static remainder tail): exp(delta*A) is vectorized per
# chunk, the recurrence keeps only the (N,E) state + a (1,E) y row in vregs and
# outputs dense (8,E) bf16 tiles.
# TODO(synk): bf16 exp for dA on v6e/v7x (needs long-L drift validation).
# ----------------------------------------------------------------------------
def ssm_scan(u_dirs, dt, B_ssm, C_ssm, dirB, A_T, D, dt_bias):
    K, Bsz, L, E = u_dirs.shape
    N = A_T.shape[0]
    CHUNK = 8
    nfull = L // CHUNK
    rem = L - nfull * CHUNK
    D2 = D.reshape(1, E).astype(jnp.float32)
    dtb2 = dt_bias.reshape(1, E).astype(jnp.float32)

    def kernel(u_ref, dt_ref, b_ref, c_ref, db_ref, at_ref, d_ref, dtb_ref, o_ref):
        At = at_ref[...]                                    # (N, E)
        Dv = d_ref[...]                                     # (1, E)
        dtb = dtb_ref[...]                                  # (1, E)

        def run_steps(base, nsteps, state):
            u_c = u_ref[0, 0, pl.ds(base, nsteps), :].astype(jnp.float32)   # (n, E)
            dt_c = dt_ref[0, pl.ds(base, nsteps), :]                        # (n, E)
            bm_c = (b_ref[0, pl.ds(base, nsteps), :]
                    + db_ref[0, pl.ds(base, nsteps), :])                    # (n, N)
            cc_c = c_ref[0, pl.ds(base, nsteps), :]                         # (n, N)

            # double dt-bias add is intentional (matches the reference)
            delta = _softplus20(dt_c + dtb)                                 # (n, E)
            dA = jnp.exp(delta[:, None, :] * At[None, :, :])                # (n, N, E)
            du3 = (delta * u_c)[:, None, :]                                 # (n, 1, E)
            bm3 = bm_c[:, :, None]                                          # (n, N, 1)
            cc3 = cc_c[:, :, None]                                          # (n, N, 1)

            y_rows = []
            for j in range(nsteps):                       # unrolled recurrence
                state = dA[j] * state + du3[j] * bm3[j]                     # (N, E)
                y_rows.append(jnp.sum(cc3[j] * state, axis=0, keepdims=True))
            y_c = jnp.concatenate(y_rows, axis=0) + u_c * Dv                # (n, E)
            o_ref[0, 0, pl.ds(base, nsteps), :] = y_c.astype(jnp.bfloat16)
            return state

        def chunk_body(ci, state):
            return run_steps(pl.multiple_of(ci * CHUNK, CHUNK), CHUNK, state)

        state = lax.fori_loop(0, nfull, chunk_body, jnp.zeros((N, E), jnp.float32))
        if rem:
            run_steps(nfull * CHUNK, rem, state)

    return pl.pallas_call(
        kernel,
        grid=(Bsz, K),
        in_specs=[
            pl.BlockSpec((1, 1, L, E), lambda b, k: (k, b, 0, 0)),   # u (scan order)
            pl.BlockSpec((1, L, E), lambda b, k: (b, 0, 0)),         # dt
            pl.BlockSpec((1, L, N), lambda b, k: (b, 0, 0)),         # B
            pl.BlockSpec((1, L, N), lambda b, k: (b, 0, 0)),         # C
            pl.BlockSpec((1, L, N), lambda b, k: (k, 0, 0)),         # direction bias
            pl.BlockSpec((N, E), lambda b, k: (0, 0)),               # A^T
            pl.BlockSpec((1, E), lambda b, k: (0, 0)),               # D
            pl.BlockSpec((1, E), lambda b, k: (0, 0)),               # delta bias
        ],
        out_specs=pl.BlockSpec((1, 1, L, E), lambda b, k: (k, b, 0, 0)),
        out_shape=jax.ShapeDtypeStruct((K, Bsz, L, E), jnp.bfloat16),
        compiler_params=_cp("parallel", "parallel"),
    )(u_dirs.astype(jnp.bfloat16), dt.astype(jnp.float32),
      B_ssm.astype(jnp.float32), C_ssm.astype(jnp.float32),
      dirB.astype(jnp.float32), A_T.astype(jnp.float32), D2, dtb2)


# ----------------------------------------------------------------------------
# Pallas kernel: the whole PAF block (two 1x1 convs -> relu -> 1x1 conv ->
# sigmoid -> gated blend) fused into one row-tiled kernel.
# TODO(synk): PAF definition not in the reference file; gated-attention fusion
# reconstruction.
# ----------------------------------------------------------------------------
def paf_fused(x2d, y2d, p):
    R, C = x2d.shape
    m = p["c1_w"].shape[1]
    TR = _row_tile(R)
    b1 = p["c1_b"].reshape(1, m); b2 = p["c2_b"].reshape(1, m)
    b3 = p["c3_b"].reshape(1, C)

    def kernel(x_ref, y_ref, w1_ref, b1_ref, w2_ref, b2_ref, w3_ref, b3_ref, o_ref):
        xv = x_ref[...]
        yv = y_ref[...]
        h = jnp.dot(xv, w1_ref[...], preferred_element_type=jnp.float32) + b1_ref[...]
        h = h + jnp.dot(yv, w2_ref[...], preferred_element_type=jnp.float32) + b2_ref[...]
        h = jnp.maximum(h, 0.0)
        att = jax.nn.sigmoid(
            jnp.dot(h.astype(jnp.bfloat16), w3_ref[...],
                    preferred_element_type=jnp.float32) + b3_ref[...])
        out = xv.astype(jnp.float32) * att + yv.astype(jnp.float32) * (1.0 - att)
        o_ref[...] = out.astype(jnp.bfloat16)

    return pl.pallas_call(
        kernel,
        grid=(pl.cdiv(R, TR),),
        in_specs=[
            pl.BlockSpec((TR, C), lambda i: (i, 0)),
            pl.BlockSpec((TR, C), lambda i: (i, 0)),
            pl.BlockSpec((C, m), lambda i: (0, 0)),
            pl.BlockSpec((1, m), lambda i: (0, 0)),
            pl.BlockSpec((C, m), lambda i: (0, 0)),
            pl.BlockSpec((1, m), lambda i: (0, 0)),
            pl.BlockSpec((m, C), lambda i: (0, 0)),
            pl.BlockSpec((1, C), lambda i: (0, 0)),
        ],
        out_specs=pl.BlockSpec((TR, C), lambda i: (i, 0)),
        out_shape=jax.ShapeDtypeStruct((R, C), jnp.bfloat16),
        compiler_params=_cp("parallel"),
    )(x2d.astype(jnp.bfloat16), y2d.astype(jnp.bfloat16),
      p["c1_w"], b1, p["c2_w"], b2, p["c3_w"], b3)


# ----------------------------------------------------------------------------
# SASS scan-order generation (straight port of the reference, incl. o3_inverse
# quirk).  Only called once inside prepare_params.
# ----------------------------------------------------------------------------
def sass(hw_shape):
    H, W = hw_shape
    L = H * W
    o1, o2, o3, o4 = [], [], [], []
    d1, d2, d3, d4 = [], [], [], []
    o1_inv = [-1] * L
    o2_inv = [-1] * L
    o3_inv = [-1] * L
    o4_inv = [-1] * L

    if H % 2 == 1:
        i, j = H - 1, W - 1
        j_d = "left"
    else:
        i, j = H - 1, 0
        j_d = "right"
    while i > -1:
        idx = i * W + j
        o1_inv[idx] = len(o1)
        o1.append(idx)
        if j_d == "right":
            if j < W - 1:
                j = j + 1; d1.append(1)
            else:
                i = i - 1; d1.append(3); j_d = "left"
        elif j > 0:
            j = j - 1; d1.append(2)
        else:
            i = i - 1; d1.append(3); j_d = "right"
    d1 = [0] + d1[:-1]

    i, j = 0, 0
    i_d = "down"
    while j < W:
        idx = i * W + j
        o2_inv[idx] = len(o2)
        o2.append(idx)
        if i_d == "down":
            if i < H - 1:
                i = i + 1; d2.append(4)
            else:
                j = j + 1; d2.append(1); i_d = "up"
        elif i > 0:
            i = i - 1; d2.append(3)
        else:
            j = j + 1; d2.append(1); i_d = "down"
    d2 = [0] + d2[:-1]

    for diag in range(H + W - 1):
        if diag % 2 == 0:
            for i in range(min(diag + 1, H)):
                j = diag - i
                if j < W:
                    idx = i * W + j
                    o3.append(idx)
                    o3_inv[idx] = len(o1) - 1  # reproduced as in the reference
                    d3.append(1 if j == diag else 4)
        else:
            for j in range(min(diag + 1, W)):
                i = diag - j
                if i < H:
                    idx = i * W + j
                    o3.append(idx)
                    o3_inv[idx] = len(o1) - 1  # reproduced as in the reference
                    d3.append(4 if i == diag else 1)
    d3 = [0] + d3[:-1]

    for diag in range(H + W - 1):
        if diag % 2 == 0:
            for i in range(min(diag + 1, H)):
                j = diag - i
                if j < W:
                    idx = i * W + (W - j - 1)
                    o4.append(idx)
                    o4_inv[idx] = len(o4) - 1
                    d4.append(1 if j == diag else 4)
        else:
            for j in range(min(diag + 1, W)):
                i = diag - j
                if i < H:
                    idx = i * W + (W - j - 1)
                    o4.append(idx)
                    o4_inv[idx] = len(o4) - 1
                    d4.append(4 if i == diag else 1)
    d4 = [0] + d4[:-1]

    return ((tuple(o1), tuple(o2), tuple(o3), tuple(o4)),
            (tuple(o1_inv), tuple(o2_inv), tuple(o3_inv), tuple(o4_inv)),
            (tuple(d1), tuple(d2), tuple(d3), tuple(d4)))


# ----------------------------------------------------------------------------
# SAVSS_2D forward
# ----------------------------------------------------------------------------
def savss2d_forward(sp, x, hw_shape):
    B, L, Cd = x.shape
    H, W = hw_shape
    E = sp["w_in_z"].shape[1]
    N = sp["w_B"].shape[1]
    mid = sp["w_in_h"].shape[1]

    # in_proj (no bias); x-half composed with BottConv pw1 (TODO(synk): BottConv
    # reconstructed as pw1 -> dw3x3 -> pw2)
    h1, z = in_proj_split(x.reshape(B * L, Cd), sp["w_in_h"], sp["b_in_h"], sp["w_in_z"])
    h2 = depthwise_conv3x3(h1.reshape(B, H, W, mid), sp["dw_w9"])
    # pw2 + SiLU + composed (x_proj o dt_proj) in one kernel
    x_conv, dt, B_ssm, C_ssm = conv_xproj(
        h2.reshape(B * L, mid), sp["pw2_w"], sp["w_dt"], sp["b_dt"], sp["w_B"], sp["w_C"])
    x_conv = x_conv.reshape(B, L, E)
    dt = dt.reshape(B, L, E)
    B_ssm = B_ssm.reshape(B, L, N)
    C_ssm = C_ssm.reshape(B, L, N)

    # forward SASS permutations of u (bf16).
    # TODO(synk): move these (and the inverse below) in-kernel via scalar-
    # prefetched order tables to remove the HBM round trips entirely.
    u_dirs = jnp.stack([jnp.take(x_conv, sp["orders"][k], axis=1) for k in range(4)],
                       axis=0)                                      # (4,B,L,E) bf16

    # selective scan (delta_bias added again inside the kernel + softplus,
    # matching the reference's double use of dt_proj.bias)
    y_all = ssm_scan(u_dirs, dt, B_ssm, C_ssm, sp["dirB"], sp["A_T"],
                     sp["D"], sp["dt_bias"])                        # (4,B,L,E) bf16

    # inverse permutations + sum over directions.  Direction 3 (o3) uses the
    # reference's o3_inverse == L-1 quirk: its contribution is the last scan
    # step's y broadcast over L (identical to take(y_all[2], inv_orders[2])).
    y_sum = (jnp.take(y_all[0], sp["inv_orders"][0], axis=1).astype(jnp.float32)
             + jnp.take(y_all[1], sp["inv_orders"][1], axis=1).astype(jnp.float32)
             + jnp.broadcast_to(y_all[2][:, L - 1:L, :].astype(jnp.float32), (B, L, E))
             + jnp.take(y_all[3], sp["inv_orders"][3], axis=1).astype(jnp.float32)
             ).astype(jnp.bfloat16)

    # y = sum(y_scan) * SiLU(z); out = y @ W_out — one fused matmul kernel
    return linear(y_sum.reshape(B * L, E), sp["out_proj_w"],
                  gate=z).reshape(B, L, Cd)


# ----------------------------------------------------------------------------
# GBC (TODO(synk): definition not provided in the reference file; reconstruction:
# BottConv bottleneck blocks with GroupNorm+ReLU, gated product + residual).
# The pw2 / folded-1x1 matmuls are fused into the GroupNorm kernels.
# ----------------------------------------------------------------------------
def gbc_forward(gp, x_nhwc):
    B, H, W, C = x_nhwc.shape
    S = H * W
    x_bsc = x_nhwc.reshape(B, S, C)
    res = x_bsc

    def bott3(bp, inp_bsc):
        gmid = bp["pw1_w"].shape[1]
        h1 = linear(inp_bsc.reshape(B * S, C), bp["pw1_w"], bp["pw1_b"]
                    ).reshape(B, H, W, gmid)
        h2 = depthwise_conv3x3(h1, bp["dw_w9"])
        return groupnorm_cl(h2.reshape(B, S, gmid), bp["gn_w"], bp["gn_b"],
                            gp["M123"], gp["MT123"], w=bp["pw2_w"], act="relu")

    x1 = bott3(gp["b1"], x_bsc)
    x1 = bott3(gp["b2"], x1)
    xm = groupnorm_cl(x_bsc, gp["b3"]["gn_w"], gp["b3"]["gn_b"], gp["M123"],
                      gp["MT123"], w=gp["b3"]["w_fold"], wb=gp["b3"]["b_fold"],
                      act="relu", mul=x1)
    out = groupnorm_cl(xm, gp["b4"]["gn_w"], gp["b4"]["gn_b"], gp["M4"],
                       gp["MT4"], w=gp["b4"]["w_fold"], wb=gp["b4"]["b_fold"],
                       act="relu", add=res)
    return out.reshape(B, H, W, C)


# ----------------------------------------------------------------------------
# SAVSS_Layer forward
# ----------------------------------------------------------------------------
def savss_layer_forward(pp, x, hw_shape):
    B, L, C = x.shape
    H, W = hw_shape

    # GBC x2 on spatial layout (bf16 activation stream)
    x_nhwc = x.astype(jnp.bfloat16).reshape(B, H, W, C)
    for _ in range(2):
        x_nhwc = gbc_forward(pp["gbc"], x_nhwc)
    x_seq = x_nhwc.reshape(B, L, C)

    # norm -> SAVSS_2D   (TODO(synk): DropPath omitted, drop_prob=0 / eval mode)
    xn = layernorm(x_seq, pp["ln_w"], pp["ln_b"])
    mixed = savss2d_forward(pp["savss"], xn, hw_shape)

    # PAF fusion (single fused kernel), then both GroupNorms in one pass
    fused = paf_fused(x_seq.reshape(B * L, C), mixed.reshape(B * L, C),
                      pp["paf"]).reshape(B, L, C)
    mixed_x, gn2 = double_groupnorm(fused, pp["gn_w"], pp["gn_b"],
                                    pp["Mgn"], pp["MTgn"])

    # with_dwconv = False branch skipped

    # residual linear branch (linear_256 generalized to embed_dims); the final
    # `mixed_x + res` add is fused into the linear epilogue
    out = linear(gn2.reshape(B * L, C), pp["lin_w"], pp["lin_b"],
                 residual=mixed_x.reshape(B * L, C), out_dtype=jnp.float32)
    return out.reshape(B, L, C)


# ----------------------------------------------------------------------------
# deterministic raw parameter init (matches the reference init recipe)
# ----------------------------------------------------------------------------
def init_params(key, C):
    E = 2 * C
    N = 16
    Rk = math.ceil(C / 16)
    mid = E // 16
    keys = jax.random.split(key, 64)
    it = iter(keys)

    def nrm(shape, scale=0.05):
        return (scale * jax.random.normal(next(it), shape)).astype(jnp.float32)

    sp = {}
    sp["in_proj_w"] = nrm((C, 2 * E))
    sp["pw1_w"] = nrm((E, mid)); sp["pw1_b"] = nrm((mid,))
    sp["dw_w"] = nrm((3, 3, mid))
    sp["pw2_w"] = nrm((mid, E))
    sp["x_proj_w"] = nrm((E, Rk + 2 * N))
    dt_std = Rk ** (-0.5)
    sp["dt_proj_w"] = jax.random.uniform(next(it), (Rk, E), minval=-dt_std,
                                         maxval=dt_std).astype(jnp.float32)
    dtv = jnp.exp(jax.random.uniform(next(it), (E,)) *
                  (math.log(0.1) - math.log(0.001)) + math.log(0.001))
    dtv = jnp.maximum(dtv, 1e-4)
    sp["dt_proj_b"] = (dtv + jnp.log(-jnp.expm1(-dtv))).astype(jnp.float32)
    sp["A_log"] = jnp.log(jnp.broadcast_to(
        jnp.arange(1, N + 1, dtype=jnp.float32), (E, N)))
    sp["D"] = jnp.ones((E,), jnp.float32)
    sp["out_proj_w"] = nrm((E, C))
    sp["direction_Bs"] = (0.02 * jax.random.truncated_normal(
        next(it), -2.0, 2.0, (5, N))).astype(jnp.float32)

    p = {"savss": sp}
    p["ln_w"] = jnp.ones((C,), jnp.float32); p["ln_b"] = jnp.zeros((C,), jnp.float32)
    p["gn_w"] = jnp.ones((C,), jnp.float32); p["gn_b"] = jnp.zeros((C,), jnp.float32)
    p["lin_w"] = nrm((C, C)); p["lin_b"] = nrm((C,))

    gmid = max(C // 8, 1)

    def bott(k):
        d = {"pw1_w": nrm((C, gmid)), "pw1_b": nrm((gmid,)), "pw2_w": nrm((gmid, C)),
             "gn_w": jnp.ones((C,), jnp.float32), "gn_b": jnp.zeros((C,), jnp.float32)}
        d["dw_w"] = nrm((3, 3, gmid)) if k == 3 else nrm((gmid,))
        return d

    p["gbc"] = {"b1": bott(3), "b2": bott(3), "b3": bott(1), "b4": bott(1)}

    m2 = C // 2
    p["paf"] = {"c1_w": nrm((C, m2)), "c1_b": nrm((m2,)),
                "c2_w": nrm((C, m2)), "c2_b": nrm((m2,)),
                "c3_w": nrm((m2, C)), "c3_b": nrm((C,))}
    return p


# ----------------------------------------------------------------------------
# one-time parameter preparation: weight compositions, bf16 casts, SASS tables,
# direction-bias tables, one-hot group matrices (hoisted out of the forward).
# ----------------------------------------------------------------------------
def prepare_params(raw, hw_shape):
    bf = lambda a: a.astype(jnp.bfloat16)
    f32 = lambda a: a.astype(jnp.float32)

    sp = raw["savss"]
    E = sp["in_proj_w"].shape[1] // 2
    N = sp["A_log"].shape[1]
    Rk = sp["dt_proj_w"].shape[0]
    mid = sp["pw1_w"].shape[1]

    orders, inv_orders, directions = sass(hw_shape)

    psp = {
        # in_proj x-half composed with BottConv pw1:  x @ (W_in_x @ W_pw1) + b_pw1
        "w_in_h": bf(sp["in_proj_w"][:, :E] @ sp["pw1_w"]),
        "b_in_h": f32(sp["pw1_b"]),
        "w_in_z": bf(sp["in_proj_w"][:, E:]),
        "dw_w9": f32(sp["dw_w"].reshape(9, mid)),
        "pw2_w": bf(sp["pw2_w"]),
        # x_proj's dt-rank slice composed with dt_proj
        "w_dt": bf(sp["x_proj_w"][:, :Rk] @ sp["dt_proj_w"]),
        "b_dt": f32(sp["dt_proj_b"]),
        "w_B": bf(sp["x_proj_w"][:, Rk:Rk + N]),
        "w_C": bf(sp["x_proj_w"][:, Rk + N:]),
        "A_T": (-jnp.exp(f32(sp["A_log"]))).T,          # (N, E)
        "D": f32(sp["D"]),
        "dt_bias": f32(sp["dt_proj_b"]),
        "out_proj_w": bf(sp["out_proj_w"]),
        "orders": [jnp.array(o, jnp.int32) for o in orders],
        "inv_orders": [jnp.array(io, jnp.int32) for io in inv_orders],
        "dirB": jnp.stack([f32(sp["direction_Bs"])[jnp.array(d, jnp.int32)]
                           for d in directions], axis=0),   # (4, L, N)
    }

    C = raw["ln_w"].shape[0]

    def onehot(Cn, G):
        M = (jnp.arange(Cn)[:, None] // (Cn // G) ==
             jnp.arange(G)[None, :]).astype(jnp.float32)
        return M, M.T

    g123 = max(C // 16, 1)
    g4 = 16 if C % 16 == 0 else g123
    M123, MT123 = onehot(C, g123)
    M4, MT4 = onehot(C, g4)
    Mgn, MTgn = onehot(C, 16)

    gr = raw["gbc"]

    def prep_bott3(bp):
        gmid = bp["pw1_w"].shape[1]
        return {"pw1_w": bf(bp["pw1_w"]), "pw1_b": f32(bp["pw1_b"]),
                "dw_w9": f32(bp["dw_w"].reshape(9, gmid)),
                "pw2_w": bf(bp["pw2_w"]),
                "gn_w": f32(bp["gn_w"]), "gn_b": f32(bp["gn_b"])}

    def prep_bott1(bp):
        # pw1 -> per-channel 1x1 depthwise scale -> pw2 folded into ONE matmul
        w2s = bp["dw_w"].reshape(-1, 1) * bp["pw2_w"]
        return {"w_fold": bf(bp["pw1_w"] @ w2s),
                "b_fold": f32(bp["pw1_b"] @ w2s),
                "gn_w": f32(bp["gn_w"]), "gn_b": f32(bp["gn_b"])}

    gbc = {"b1": prep_bott3(gr["b1"]), "b2": prep_bott3(gr["b2"]),
           "b3": prep_bott1(gr["b3"]), "b4": prep_bott1(gr["b4"]),
           "M123": M123, "MT123": MT123, "M4": M4, "MT4": MT4}

    pr = raw["paf"]
    paf = {"c1_w": bf(pr["c1_w"]), "c1_b": f32(pr["c1_b"]),
           "c2_w": bf(pr["c2_w"]), "c2_b": f32(pr["c2_b"]),
           "c3_w": bf(pr["c3_w"]), "c3_b": f32(pr["c3_b"])}

    return {"savss": psp, "gbc": gbc, "paf": paf,
            "ln_w": f32(raw["ln_w"]), "ln_b": f32(raw["ln_b"]),
            "gn_w": f32(raw["gn_w"]), "gn_b": f32(raw["gn_b"]),
            "Mgn": Mgn, "MTgn": MTgn,
            "lin_w": bf(raw["lin_w"]), "lin_b": f32(raw["lin_b"])}


# ----------------------------------------------------------------------------
# main
# ----------------------------------------------------------------------------
if __name__ == "__main__":
    B, H, W, C = 2, 8, 8, 32
    L = H * W
    key = jax.random.PRNGKey(0)
    kx, kp = jax.random.split(key)
    x = jax.random.normal(kx, (B, L, C), jnp.float32)

    raw = init_params(kp, C)
    params = prepare_params(raw, (H, W))

    fwd = jax.jit(functools.partial(savss_layer_forward, params, hw_shape=(H, W)))
    out = fwd(x)
    out = jax.block_until_ready(out)

    assert out.shape == (B, L, C), out.shape
    assert bool(jnp.all(jnp.isfinite(out)))
    print("KERNEL_OK")
</pallas_src>

<mosaic_0001>
module attributes {stable_mosaic.version = 11 : i64} {
  func.func @kernel(%arg0: i32, %arg1: memref<1x10x10x4xbf16, #tpu.memory_space<vmem>>, %arg2: memref<9x4xf32, #tpu.memory_space<vmem>>, %arg3: memref<1x8x8x4xbf16, #tpu.memory_space<vmem>>) attributes {dimension_semantics = [#tpu.dimension_semantics<parallel>], iteration_bounds = array<i64: 2>, scalar_prefetch = 0 : i64, scratch_operands = 0 : i64, tpu.core_type = #tpu.core_type<tc>, window_params = [{transform_indices = @transform_0, window_bounds = array<i64: 1, 10, 10, 4>}, {pipeline_mode = #tpu.pipeline_mode<synchronous>, transform_indices = @transform_1, window_bounds = array<i64: 9, 4>}, {transform_indices = @transform_2, window_bounds = array<i64: 1, 8, 8, 4>}]} {
    %c0 = arith.constant 0 : index
    %c0_0 = arith.constant 0 : index
    %c0_1 = arith.constant 0 : index
    %c0_2 = arith.constant 0 : index
    %0 = vector.load %arg1[%c0, %c0_0, %c0_1, %c0_2] : memref<1x10x10x4xbf16, #tpu.memory_space<vmem>>, vector<1x10x10x4xbf16>
    %1 = vector.shape_cast %0 : vector<1x10x10x4xbf16> to vector<10x10x4xbf16>
    %2 = arith.extf %1 : vector<10x10x4xbf16> to vector<10x10x4xf32>
    %c0_3 = arith.constant 0 : index
    %c0_4 = arith.constant 0 : index
    %3 = vector.load %arg2[%c0_3, %c0_4] : memref<9x4xf32, #tpu.memory_space<vmem>>, vector<9x4xf32>
    %4 = vector.extract_strided_slice %2 {offsets = [0, 0, 0], sizes = [8, 8, 4], strides = [1, 1, 1]} : vector<10x10x4xf32> to vector<8x8x4xf32>
    %5 = vector.extract_strided_slice %3 {offsets = [0, 0], sizes = [1, 4], strides = [1, 1]} : vector<9x4xf32> to vector<1x4xf32>
    %6 = vector.shape_cast %5 : vector<1x4xf32> to vector<4xf32>
    %7 = vector.shape_cast %6 : vector<4xf32> to vector<1x1x4xf32>
    %8 = vector.broadcast %7 : vector<1x1x4xf32> to vector<8x8x4xf32>
    %9 = arith.mulf %4, %8 : vector<8x8x4xf32>
    %10 = vector.extract_strided_slice %2 {offsets = [0, 1, 0], sizes = [8, 8, 4], strides = [1, 1, 1]} : vector<10x10x4xf32> to vector<8x8x4xf32>
    %11 = vector.extract_strided_slice %3 {offsets = [1, 0], sizes = [1, 4], strides = [1, 1]} : vector<9x4xf32> to vector<1x4xf32>
    %12 = vector.shape_cast %11 : vector<1x4xf32> to vector<4xf32>
    %13 = vector.shape_cast %12 : vector<4xf32> to vector<1x1x4xf32>
    %14 = vector.broadcast %13 : vector<1x1x4xf32> to vector<8x8x4xf32>
    %15 = arith.mulf %10, %14 : vector<8x8x4xf32>
    %16 = arith.addf %9, %15 : vector<8x8x4xf32>
    %17 = vector.extract_strided_slice %2 {offsets = [0, 2, 0], sizes = [8, 8, 4], strides = [1, 1, 1]} : vector<10x10x4xf32> to vector<8x8x4xf32>
    %18 = vector.extract_strided_slice %3 {offsets = [2, 0], sizes = [1, 4], strides = [1, 1]} : vector<9x4xf32> to vector<1x4xf32>
    %19 = vector.shape_cast %18 : vector<1x4xf32> to vector<4xf32>
    %20 = vector.shape_cast %19 : vector<4xf32> to vector<1x1x4xf32>
    %21 = vector.broadcast %20 : vector<1x1x4xf32> to vector<8x8x4xf32>
    %22 = arith.mulf %17, %21 : vector<8x8x4xf32>
    %23 = arith.addf %16, %22 : vector<8x8x4xf32>
    %24 = vector.extract_strided_slice %2 {offsets = [1, 0, 0], sizes = [8, 8, 4], strides = [1, 1, 1]} : vector<10x10x4xf32> to vector<8x8x4xf32>
    %25 = vector.extract_strided_slice %3 {offsets = [3, 0], sizes = [1, 4], strides = [1, 1]} : vector<9x4xf32> to vector<1x4xf32>
    %26 = vector.shape_cast %25 : vector<1x4xf32> to vector<4xf32>
    %27 = vector.shape_cast %26 : vector<4xf32> to vector<1x1x4xf32>
    %28 = vector.broadcast %27 : vector<1x1x4xf32> to vector<8x8x4xf32>
    %29 = arith.mulf %24, %28 : vector<8x8x4xf32>
    %30 = arith.addf %23, %29 : vector<8x8x4xf32>
    %31 = vector.extract_strided_slice %2 {offsets = [1, 1, 0], sizes = [8, 8, 4], strides = [1, 1, 1]} : vector<10x10x4xf32> to vector<8x8x4xf32>
    %32 = vector.extract_strided_slice %3 {offsets = [4, 0], sizes = [1, 4], strides = [1, 1]} : vector<9x4xf32> to vector<1x4xf32>
    %33 = vector.shape_cast %32 : vector<1x4xf32> to vector<4xf32>
    %34 = vector.shape_cast %33 : vector<4xf32> to vector<1x1x4xf32>
    %35 = vector.broadcast %34 : vector<1x1x4xf32> to vector<8x8x4xf32>
    %36 = arith.mulf %31, %35 : vector<8x8x4xf32>
    %37 = arith.addf %30, %36 : vector<8x8x4xf32>
    %38 = vector.extract_strided_slice %2 {offsets = [1, 2, 0], sizes = [8, 8, 4], strides = [1, 1, 1]} : vector<10x10x4xf32> to vector<8x8x4xf32>
    %39 = vector.extract_strided_slice %3 {offsets = [5, 0], sizes = [1, 4], strides = [1, 1]} : vector<9x4xf32> to vector<1x4xf32>
    %40 = vector.shape_cast %39 : vector<1x4xf32> to vector<4xf32>
    %41 = vector.shape_cast %40 : vector<4xf32> to vector<1x1x4xf32>
    %42 = vector.broadcast %41 : vector<1x1x4xf32> to vector<8x8x4xf32>
    %43 = arith.mulf %38, %42 : vector<8x8x4xf32>
    %44 = arith.addf %37, %43 : vector<8x8x4xf32>
    %45 = vector.extract_strided_slice %2 {offsets = [2, 0, 0], sizes = [8, 8, 4], strides = [1, 1, 1]} : vector<10x10x4xf32> to vector<8x8x4xf32>
    %46 = vector.extract_strided_slice %3 {offsets = [6, 0], sizes = [1, 4], strides = [1, 1]} : vector<9x4xf32> to vector<1x4xf32>
    %47 = vector.shape_cast %46 : vector<1x4xf32> to vector<4xf32>
    %48 = vector.shape_cast %47 : vector<4xf32> to vector<1x1x4xf32>
    %49 = vector.broadcast %48 : vector<1x1x4xf32> to vector<8x8x4xf32>
    %50 = arith.mulf %45, %49 : vector<8x8x4xf32>
    %51 = arith.addf %44, %50 : vector<8x8x4xf32>
    %52 = vector.extract_strided_slice %2 {offsets = [2, 1, 0], sizes = [8, 8, 4], strides = [1, 1, 1]} : vector<10x10x4xf32> to vector<8x8x4xf32>
    %53 = vector.extract_strided_slice %3 {offsets = [7, 0], sizes = [1, 4], strides = [1, 1]} : vector<9x4xf32> to vector<1x4xf32>
    %54 = vector.shape_cast %53 : vector<1x4xf32> to vector<4xf32>
    %55 = vector.shape_cast %54 : vector<4xf32> to vector<1x1x4xf32>
    %56 = vector.broadcast %55 : vector<1x1x4xf32> to vector<8x8x4xf32>
    %57 = arith.mulf %52, %56 : vector<8x8x4xf32>
    %58 = arith.addf %51, %57 : vector<8x8x4xf32>
    %59 = vector.extract_strided_slice %2 {offsets = [2, 2, 0], sizes = [8, 8, 4], strides = [1, 1, 1]} : vector<10x10x4xf32> to vector<8x8x4xf32>
    %60 = vector.extract_strided_slice %3 {offsets = [8, 0], sizes = [1, 4], strides = [1, 1]} : vector<9x4xf32> to vector<1x4xf32>
    %61 = vector.shape_cast %60 : vector<1x4xf32> to vector<4xf32>
    %62 = vector.shape_cast %61 : vector<4xf32> to vector<1x1x4xf32>
    %63 = vector.broadcast %62 : vector<1x1x4xf32> to vector<8x8x4xf32>
    %64 = arith.mulf %59, %63 : vector<8x8x4xf32>
    %65 = arith.addf %58, %64 : vector<8x8x4xf32>
    %66 = arith.truncf %65 : vector<8x8x4xf32> to vector<8x8x4xbf16>
    %c0_5 = arith.constant 0 : index
    %c0_6 = arith.constant 0 : index
    %c0_7 = arith.constant 0 : index
    %c0_8 = arith.constant 0 : index
    %67 = vector.load %arg3[%c0_5, %c0_6, %c0_7, %c0_8] : memref<1x8x8x4xbf16, #tpu.memory_space<vmem>>, vector<1x8x8x4xbf16>
    %68 = vector.shape_cast %67 : vector<1x8x8x4xbf16> to vector<8x8x4xbf16>
    %69 = vector.shape_cast %66 : vector<8x8x4xbf16> to vector<1x8x8x4xbf16>
    tpu.vector_store %arg3[%c0_5, %c0_6, %c0_7, %c0_8], %69 {strides = array<i32>} : memref<1x8x8x4xbf16, #tpu.memory_space<vmem>>, vector<1x8x8x4xbf16>,
    return
  }
  func.func @transform_0(%arg0: i32) -> (i32, i32, i32, i32) {
    %c0_i32 = arith.constant 0 : i32
    %c0_i32_0 = arith.constant 0 : i32
    %c0_i32_1 = arith.constant 0 : i32
    %c0_i32_2 = arith.constant 0 : i32
    return %arg0, %c0_i32, %c0_i32_0, %c0_i32_1 : i32, i32, i32, i32
  }
  func.func @transform_1(%arg0: i32) -> (i32, i32) {
    %c0_i32 = arith.constant 0 : i32
    %c0_i32_0 = arith.constant 0 : i32
    %c0_i32_1 = arith.constant 0 : i32
    return %c0_i32, %c0_i32_0 : i32, i32
  }
  func.func @transform_2(%arg0: i32) -> (i32, i32, i32, i32) {
    %c0_i32 = arith.constant 0 : i32
    %c0_i32_0 = arith.constant 0 : i32
    %c0_i32_1 = arith.constant 0 : i32
    %c0_i32_2 = arith.constant 0 : i32
    return %arg0, %c0_i32, %c0_i32_0, %c0_i32_1 : i32, i32, i32, i32
  }
}

module attributes {stable_mosaic.version = 11 : i64} {
  func.func @kernel(%arg0: i32, %arg1: memref<128x32xbf16, #tpu.memory_space<vmem>>, %arg2: memref<32x4xbf16, #tpu.memory_space<vmem>>, %arg3: memref<1x4xf32, #tpu.memory_space<vmem>>, %arg4: memref<128x4xbf16, #tpu.memory_space<vmem>>) attributes {dimension_semantics = [#tpu.dimension_semantics<parallel>], iteration_bounds = array<i64: 1>, scalar_prefetch = 0 : i64, scratch_operands = 0 : i64, tpu.core_type = #tpu.core_type<tc>, window_params = [{transform_indices = @transform_0, window_bounds = array<i64: 128, 32>}, {pipeline_mode = #tpu.pipeline_mode<synchronous>, transform_indices = @transform_1, window_bounds = array<i64: 32, 4>}, {pipeline_mode = #tpu.pipeline_mode<synchronous>, transform_indices = @transform_2, window_bounds = array<i64: 1, 4>}, {transform_indices = @transform_3, window_bounds = array<i64: 128, 4>}]} {
    %c0 = arith.constant 0 : index
    %c0_0 = arith.constant 0 : index
    %0 = vector.load %arg1[%c0, %c0_0] : memref<128x32xbf16, #tpu.memory_space<vmem>>, vector<128x32xbf16>
    %c0_1 = arith.constant 0 : index
    %c0_2 = arith.constant 0 : index
    %1 = vector.load %arg2[%c0_1, %c0_2] : memref<32x4xbf16, #tpu.memory_space<vmem>>, vector<32x4xbf16>
    %cst = arith.constant dense<0.000000e+00> : vector<128x4xf32>
    %2 = tpu.matmul %0, %1, %cst {dimension_numbers = #tpu.dot_dimension_numbers<[1], [0], [0], [1], [0, 0, 1, 1], [], []>} : vector<128x32xbf16>, vector<32x4xbf16>, vector<128x4xf32> -> vector<128x4xf32>
    %c0_3 = arith.constant 0 : index
    %c0_4 = arith.constant 0 : index
    %3 = vector.load %arg3[%c0_3, %c0_4] : memref<1x4xf32, #tpu.memory_space<vmem>>, vector<1x4xf32>
    %4 = vector.broadcast %3 : vector<1x4xf32> to vector<128x4xf32>
    %5 = arith.addf %2, %4 : vector<128x4xf32>
    %6 = arith.truncf %5 : vector<128x4xf32> to vector<128x4xbf16>
    %c0_5 = arith.constant 0 : index
    %c0_6 = arith.constant 0 : index
    %7 = vector.load %arg4[%c0_5, %c0_6] : memref<128x4xbf16, #tpu.memory_space<vmem>>, vector<128x4xbf16>
    tpu.vector_store %arg4[%c0_5, %c0_6], %6 {strides = array<i32>} : memref<128x4xbf16, #tpu.memory_space<vmem>>, vector<128x4xbf16>,
    return
  }
  func.func @transform_0(%arg0: i32) -> (i32, i32) {
    %c0_i32 = arith.constant 0 : i32
    %c0_i32_0 = arith.constant 0 : i32
    return %arg0, %c0_i32 : i32, i32
  }
  func.func @transform_1(%arg0: i32) -> (i32, i32) {
    %c0_i32 = arith.constant 0 : i32
    %c0_i32_0 = arith.constant 0 : i32
    %c0_i32_1 = arith.constant 0 : i32
    return %c0_i32, %c0_i32_0 : i32, i32
  }
  func.func @transform_2(%arg0: i32) -> (i32, i32) {
    %c0_i32 = arith.constant 0 : i32
    %c0_i32_0 = arith.constant 0 : i32
    %c0_i32_1 = arith.constant 0 : i32
    return %c0_i32, %c0_i32_0 : i32, i32
  }
  func.func @transform_3(%arg0: i32) -> (i32, i32) {
    %c0_i32 = arith.constant 0 : i32
    %c0_i32_0 = arith.constant 0 : i32
    return %arg0, %c0_i32 : i32, i32
  }
}

module attributes {stable_mosaic.version = 11 : i64} {
  func.func @kernel(%arg0: i32, %arg1: memref<1x64x4xbf16, #tpu.memory_space<vmem>>, %arg2: memref<4x32xbf16, #tpu.memory_space<vmem>>, %arg3: memref<1x32xf32, #tpu.memory_space<vmem>>, %arg4: memref<32x2xf32, #tpu.memory_space<vmem>>, %arg5: memref<2x32xf32, #tpu.memory_space<vmem>>, %arg6: memref<1x32xf32, #tpu.memory_space<vmem>>, %arg7: memref<1x32xf32, #tpu.memory_space<vmem>>, %arg8: memref<1x64x32xbf16, #tpu.memory_space<vmem>>) attributes {dimension_semantics = [#tpu.dimension_semantics<parallel>], iteration_bounds = array<i64: 2>, scalar_prefetch = 0 : i64, scratch_operands = 0 : i64, tpu.core_type = #tpu.core_type<tc>, window_params = [{transform_indices = @transform_0, window_bounds = array<i64: 1, 64, 4>}, {pipeline_mode = #tpu.pipeline_mode<synchronous>, transform_indices = @transform_1, window_bounds = array<i64: 4, 32>}, {pipeline_mode = #tpu.pipeline_mode<synchronous>, transform_indices = @transform_2, window_bounds = array<i64: 1, 32>}, {pipeline_mode = #tpu.pipeline_mode<synchronous>, transform_indices = @transform_3, window_bounds = array<i64: 32, 2>}, {pipeline_mode = #tpu.pipeline_mode<synchronous>, transform_indices = @transform_4, window_bounds = array<i64: 2, 32>}, {pipeline_mode = #tpu.pipeline_mode<synchronous>, transform_indices = @transform_5, window_bounds = array<i64: 1, 32>}, {pipeline_mode = #tpu.pipeline_mode<synchronous>, transform_indices = @transform_6, window_bounds = array<i64: 1, 32>}, {transform_indices = @transform_7, window_bounds = array<i64: 1, 64, 32>}]} {
    %c0 = arith.constant 0 : index
    %c0_0 = arith.constant 0 : index
    %c0_1 = arith.constant 0 : index
    %0 = vector.load %arg1[%c0, %c0_0, %c0_1] : memref<1x64x4xbf16, #tpu.memory_space<vmem>>, vector<1x64x4xbf16>
    %1 = vector.shape_cast %0 : vector<1x64x4xbf16> to vector<64x4xbf16>
    %c0_2 = arith.constant 0 : index
    %c0_3 = arith.constant 0 : index
    %2 = vector.load %arg2[%c0_2, %c0_3] : memref<4x32xbf16, #tpu.memory_space<vmem>>, vector<4x32xbf16>
    %cst = arith.constant dense<0.000000e+00> : vector<64x32xf32>
    %3 = tpu.matmul %1, %2, %cst {dimension_numbers = #tpu.dot_dimension_numbers<[1], [0], [0], [1], [0, 0, 1, 1], [], []>} : vector<64x4xbf16>, vector<4x32xbf16>, vector<64x32xf32> -> vector<64x32xf32>
    %c0_4 = arith.constant 0 : index
    %c0_5 = arith.constant 0 : index
    %4 = vector.load %arg3[%c0_4, %c0_5] : memref<1x32xf32, #tpu.memory_space<vmem>>, vector<1x32xf32>
    %5 = vector.broadcast %4 : vector<1x32xf32> to vector<64x32xf32>
    %6 = arith.addf %3, %5 : vector<64x32xf32>
    %c0_6 = arith.constant 0 : index
    %c0_7 = arith.constant 0 : index
    %7 = vector.load %arg4[%c0_6, %c0_7] : memref<32x2xf32, #tpu.memory_space<vmem>>, vector<32x2xf32>
    %c0_8 = arith.constant 0 : index
    %c0_9 = arith.constant 0 : index
    %8 = vector.load %arg5[%c0_8, %c0_9] : memref<2x32xf32, #tpu.memory_space<vmem>>, vector<2x32xf32>
    %cst_10 = arith.constant dense<0.000000e+00> : vector<32xf32>
    %9 = vector.multi_reduction <add>, %6, %cst_10 [0] : vector<64x32xf32> to vector<32xf32>
    %10 = vector.shape_cast %9 : vector<32xf32> to vector<1x32xf32>
    %cst_11 = arith.constant dense<0.000000e+00> : vector<1x2xf32>
    %11 = tpu.matmul %10, %7, %cst_11 {dimension_numbers = #tpu.dot_dimension_numbers<[1], [0], [0], [1], [0, 0, 1, 1], [], []>} : vector<1x32xf32>, vector<32x2xf32>, vector<1x2xf32> -> vector<1x2xf32>
    %cst_12 = arith.constant 9.765625E-4 : f32
    %12 = vector.broadcast %cst_12 : f32 to vector<1x2xf32>
    %13 = arith.mulf %11, %12 : vector<1x2xf32>
    %cst_13 = arith.constant dense<0.000000e+00> : vector<1x32xf32>
    %14 = tpu.matmul %13, %8, %cst_13 {dimension_numbers = #tpu.dot_dimension_numbers<[1], [0], [0], [1], [0, 0, 1, 1], [], []>} : vector<1x2xf32>, vector<2x32xf32>, vector<1x32xf32> -> vector<1x32xf32>
    %15 = vector.broadcast %14 : vector<1x32xf32> to vector<64x32xf32>
    %16 = arith.subf %6, %15 : vector<64x32xf32>
    %17 = arith.mulf %16, %16 : vector<64x32xf32>
    %cst_14 = arith.constant dense<0.000000e+00> : vector<32xf32>
    %18 = vector.multi_reduction <add>, %17, %cst_14 [0] : vector<64x32xf32> to vector<32xf32>
    %19 = vector.shape_cast %18 : vector<32xf32> to vector<1x32xf32>
    %cst_15 = arith.constant dense<0.000000e+00> : vector<1x2xf32>
    %20 = tpu.matmul %19, %7, %cst_15 {dimension_numbers = #tpu.dot_dimension_numbers<[1], [0], [0], [1], [0, 0, 1, 1], [], []>} : vector<1x32xf32>, vector<32x2xf32>, vector<1x2xf32> -> vector<1x2xf32>
    %cst_16 = arith.constant 9.765625E-4 : f32
    %21 = vector.broadcast %cst_16 : f32 to vector<1x2xf32>
    %22 = arith.mulf %20, %21 : vector<1x2xf32>
    %cst_17 = arith.constant dense<0.000000e+00> : vector<1x32xf32>
    %23 = tpu.matmul %22, %8, %cst_17 {dimension_numbers = #tpu.dot_dimension_numbers<[1], [0], [0], [1], [0, 0, 1, 1], [], []>} : vector<1x2xf32>, vector<2x32xf32>, vector<1x32xf32> -> vector<1x32xf32>
    %cst_18 = arith.constant 9.99999974E-6 : f32
    %24 = vector.broadcast %cst_18 : f32 to vector<1x32xf32>
    %25 = arith.addf %23, %24 : vector<1x32xf32>
    %26 = math.rsqrt %25 : vector<1x32xf32>
    %27 = vector.broadcast %26 : vector<1x32xf32> to vector<64x32xf32>
    %28 = arith.mulf %16, %27 : vector<64x32xf32>
    %c0_19 = arith.constant 0 : index
    %c0_20 = arith.constant 0 : index
    %29 = vector.load %arg6[%c0_19, %c0_20] : memref<1x32xf32, #tpu.memory_space<vmem>>, vector<1x32xf32>
    %30 = vector.broadcast %29 : vector<1x32xf32> to vector<64x32xf32>
    %31 = arith.mulf %28, %30 : vector<64x32xf32>
    %c0_21 = arith.constant 0 : index
    %c0_22 = arith.constant 0 : index
    %32 = vector.load %arg7[%c0_21, %c0_22] : memref<1x32xf32, #tpu.memory_space<vmem>>, vector<1x32xf32>
    %33 = vector.broadcast %32 : vector<1x32xf32> to vector<64x32xf32>
    %34 = arith.addf %31, %33 : vector<64x32xf32>
    %cst_23 = arith.constant 0.000000e+00 : f32
    %35 = vector.broadcast %cst_23 : f32 to vector<64x32xf32>
    %36 = arith.maximumf %34, %35 : vector<64x32xf32>
    %37 = arith.truncf %36 : vector<64x32xf32> to vector<64x32xbf16>
    %c0_24 = arith.constant 0 : index
    %c0_25 = arith.constant 0 : index
    %c0_26 = arith.constant 0 : index
    %38 = vector.load %arg8[%c0_24, %c0_25, %c0_26] : memref<1x64x32xbf16, #tpu.memory_space<vmem>>, vector<1x64x32xbf16>
    %39 = vector.shape_cast %38 : vector<1x64x32xbf16> to vector<64x32xbf16>
    %40 = vector.shape_cast %37 : vector<64x32xbf16> to vector<1x64x32xbf16>
    tpu.vector_store %arg8[%c0_24, %c0_25, %c0_26], %40 {strides = array<i32>} : memref<1x64x32xbf16, #tpu.memory_space<vmem>>, vector<1x64x32xbf16>,
    return
  }
  func.func @transform_0(%arg0: i32) -> (i32, i32, i32) {
    %c0_i32 = arith.constant 0 : i32
    %c0_i32_0 = arith.constant 0 : i32
    %c0_i32_1 = arith.constant 0 : i32
    return %arg0, %c0_i32, %c0_i32_0 : i32, i32, i32
  }
  func.func @transform_1(%arg0: i32) -> (i32, i32) {
    %c0_i32 = arith.constant 0 : i32
    %c0_i32_0 = arith.constant 0 : i32
    %c0_i32_1 = arith.constant 0 : i32
    return %c0_i32, %c0_i32_0 : i32, i32
  }
  func.func @transform_2(%arg0: i32) -> (i32, i32) {
    %c0_i32 = arith.constant 0 : i32
    %c0_i32_0 = arith.constant 0 : i32
    %c0_i32_1 = arith.constant 0 : i32
    return %c0_i32, %c0_i32_0 : i32, i32
  }
  func.func @transform_3(%arg0: i32) -> (i32, i32) {
    %c0_i32 = arith.constant 0 : i32
    %c0_i32_0 = arith.constant 0 : i32
    %c0_i32_1 = arith.constant 0 : i32
    return %c0_i32, %c0_i32_0 : i32, i32
  }
  func.func @transform_4(%arg0: i32) -> (i32, i32) {
    %c0_i32 = arith.constant 0 : i32
    %c0_i32_0 = arith.constant 0 : i32
    %c0_i32_1 = arith.constant 0 : i32
    return %c0_i32, %c0_i32_0 : i32, i32
  }
  func.func @transform_5(%arg0: i32) -> (i32, i32) {
    %c0_i32 = arith.constant 0 : i32
    %c0_i32_0 = arith.constant 0 : i32
    %c0_i32_1 = arith.constant 0 : i32
    return %c0_i32, %c0_i32_0 : i32, i32
  }
  func.func @transform_6(%arg0: i32) -> (i32, i32) {
    %c0_i32 = arith.constant 0 : i32
    %c0_i32_0 = arith.constant 0 : i32
    %c0_i32_1 = arith.constant 0 : i32
    return %c0_i32, %c0_i32_0 : i32, i32
  }
  func.func @transform_7(%arg0: i32) -> (i32, i32, i32) {
    %c0_i32 = arith.constant 0 : i32
    %c0_i32_0 = arith.constant 0 : i32
    %c0_i32_1 = arith.constant 0 : i32
    return %arg0, %c0_i32, %c0_i32_0 : i32, i32, i32
  }
}

module attributes {stable_mosaic.version = 11 : i64} {
  func.func @kernel(%arg0: i32, %arg1: memref<1x64x32xbf16, #tpu.memory_space<vmem>>, %arg2: memref<32x32xbf16, #tpu.memory_space<vmem>>, %arg3: memref<1x32xf32, #tpu.memory_space<vmem>>, %arg4: memref<32x2xf32, #tpu.memory_space<vmem>>, %arg5: memref<2x32xf32, #tpu.memory_space<vmem>>, %arg6: memref<1x32xf32, #tpu.memory_space<vmem>>, %arg7: memref<1x32xf32, #tpu.memory_space<vmem>>, %arg8: memref<1x64x32xbf16, #tpu.memory_space<vmem>>, %arg9: memref<1x64x32xbf16, #tpu.memory_space<vmem>>) attributes {dimension_semantics = [#tpu.dimension_semantics<parallel>], iteration_bounds = array<i64: 2>, scalar_prefetch = 0 : i64, scratch_operands = 0 : i64, tpu.core_type = #tpu.core_type<tc>, window_params = [{transform_indices = @transform_0, window_bounds = array<i64: 1, 64, 32>}, {pipeline_mode = #tpu.pipeline_mode<synchronous>, transform_indices = @transform_1, window_bounds = array<i64: 32, 32>}, {pipeline_mode = #tpu.pipeline_mode<synchronous>, transform_indices = @transform_2, window_bounds = array<i64: 1, 32>}, {pipeline_mode = #tpu.pipeline_mode<synchronous>, transform_indices = @transform_3, window_bounds = array<i64: 32, 2>}, {pipeline_mode = #tpu.pipeline_mode<synchronous>, transform_indices = @transform_4, window_bounds = array<i64: 2, 32>}, {pipeline_mode = #tpu.pipeline_mode<synchronous>, transform_indices = @transform_5, window_bounds = array<i64: 1, 32>}, {pipeline_mode = #tpu.pipeline_mode<synchronous>, transform_indices = @transform_6, window_bounds = array<i64: 1, 32>}, {transform_indices = @transform_7, window_bounds = array<i64: 1, 64, 32>}, {transform_indices = @transform_8, window_bounds = array<i64: 1, 64, 32>}]} {
    %c0 = arith.constant 0 : index
    %c0_0 = arith.constant 0 : index
    %c0_1 = arith.constant 0 : index
    %0 = vector.load %arg1[%c0, %c0_0, %c0_1] : memref<1x64x32xbf16, #tpu.memory_space<vmem>>, vector<1x64x32xbf16>
    %1 = vector.shape_cast %0 : vector<1x64x32xbf16> to vector<64x32xbf16>
    %c0_2 = arith.constant 0 : index
    %c0_3 = arith.constant 0 : index
    %2 = vector.load %arg2[%c0_2, %c0_3] : memref<32x32xbf16, #tpu.memory_space<vmem>>, vector<32x32xbf16>
    %cst = arith.constant dense<0.000000e+00> : vector<64x32xf32>
    %3 = tpu.matmul %1, %2, %cst {dimension_numbers = #tpu.dot_dimension_numbers<[1], [0], [0], [1], [0, 0, 1, 1], [], []>} : vector<64x32xbf16>, vector<32x32xbf16>, vector<64x32xf32> -> vector<64x32xf32>
    %c0_4 = arith.constant 0 : index
    %c0_5 = arith.constant 0 : index
    %4 = vector.load %arg3[%c0_4, %c0_5] : memref<1x32xf32, #tpu.memory_space<vmem>>, vector<1x32xf32>
    %5 = vector.broadcast %4 : vector<1x32xf32> to vector<64x32xf32>
    %6 = arith.addf %3, %5 : vector<64x32xf32>
    %c0_6 = arith.constant 0 : index
    %c0_7 = arith.constant 0 : index
    %7 = vector.load %arg4[%c0_6, %c0_7] : memref<32x2xf32, #tpu.memory_space<vmem>>, vector<32x2xf32>
    %c0_8 = arith.constant 0 : index
    %c0_9 = arith.constant 0 : index
    %8 = vector.load %arg5[%c0_8, %c0_9] : memref<2x32xf32, #tpu.memory_space<vmem>>, vector<2x32xf32>
    %cst_10 = arith.constant dense<0.000000e+00> : vector<32xf32>
    %9 = vector.multi_reduction <add>, %6, %cst_10 [0] : vector<64x32xf32> to vector<32xf32>
    %10 = vector.shape_cast %9 : vector<32xf32> to vector<1x32xf32>
    %cst_11 = arith.constant dense<0.000000e+00> : vector<1x2xf32>
    %11 = tpu.matmul %10, %7, %cst_11 {dimension_numbers = #tpu.dot_dimension_numbers<[1], [0], [0], [1], [0, 0, 1, 1], [], []>} : vector<1x32xf32>, vector<32x2xf32>, vector<1x2xf32> -> vector<1x2xf32>
    %cst_12 = arith.constant 9.765625E-4 : f32
    %12 = vector.broadcast %cst_12 : f32 to vector<1x2xf32>
    %13 = arith.mulf %11, %12 : vector<1x2xf32>
    %cst_13 = arith.constant dense<0.000000e+00> : vector<1x32xf32>
    %14 = tpu.matmul %13, %8, %cst_13 {dimension_numbers = #tpu.dot_dimension_numbers<[1], [0], [0], [1], [0, 0, 1, 1], [], []>} : vector<1x2xf32>, vector<2x32xf32>, vector<1x32xf32> -> vector<1x32xf32>
    %15 = vector.broadcast %14 : vector<1x32xf32> to vector<64x32xf32>
    %16 = arith.subf %6, %15 : vector<64x32xf32>
    %17 = arith.mulf %16, %16 : vector<64x32xf32>
    %cst_14 = arith.constant dense<0.000000e+00> : vector<32xf32>
    %18 = vector.multi_reduction <add>, %17, %cst_14 [0] : vector<64x32xf32> to vector<32xf32>
    %19 = vector.shape_cast %18 : vector<32xf32> to vector<1x32xf32>
    %cst_15 = arith.constant dense<0.000000e+00> : vector<1x2xf32>
    %20 = tpu.matmul %19, %7, %cst_15 {dimension_numbers = #tpu.dot_dimension_numbers<[1], [0], [0], [1], [0, 0, 1, 1], [], []>} : vector<1x32xf32>, vector<32x2xf32>, vector<1x2xf32> -> vector<1x2xf32>
    %cst_16 = arith.constant 9.765625E-4 : f32
    %21 = vector.broadcast %cst_16 : f32 to vector<1x2xf32>
    %22 = arith.mulf %20, %21 : vector<1x2xf32>
    %cst_17 = arith.constant dense<0.000000e+00> : vector<1x32xf32>
    %23 = tpu.matmul %22, %8, %cst_17 {dimension_numbers = #tpu.dot_dimension_numbers<[1], [0], [0], [1], [0, 0, 1, 1], [], []>} : vector<1x2xf32>, vector<2x32xf32>, vector<1x32xf32> -> vector<1x32xf32>
    %cst_18 = arith.constant 9.99999974E-6 : f32
    %24 = vector.broadcast %cst_18 : f32 to vector<1x32xf32>
    %25 = arith.addf %23, %24 : vector<1x32xf32>
    %26 = math.rsqrt %25 : vector<1x32xf32>
    %27 = vector.broadcast %26 : vector<1x32xf32> to vector<64x32xf32>
    %28 = arith.mulf %16, %27 : vector<64x32xf32>
    %c0_19 = arith.constant 0 : index
    %c0_20 = arith.constant 0 : index
    %29 = vector.load %arg6[%c0_19, %c0_20] : memref<1x32xf32, #tpu.memory_space<vmem>>, vector<1x32xf32>
    %30 = vector.broadcast %29 : vector<1x32xf32> to vector<64x32xf32>
    %31 = arith.mulf %28, %30 : vector<64x32xf32>
    %c0_21 = arith.constant 0 : index
    %c0_22 = arith.constant 0 : index
    %32 = vector.load %arg7[%c0_21, %c0_22] : memref<1x32xf32, #tpu.memory_space<vmem>>, vector<1x32xf32>
    %33 = vector.broadcast %32 : vector<1x32xf32> to vector<64x32xf32>
    %34 = arith.addf %31, %33 : vector<64x32xf32>
    %cst_23 = arith.constant 0.000000e+00 : f32
    %35 = vector.broadcast %cst_23 : f32 to vector<64x32xf32>
    %36 = arith.maximumf %34, %35 : vector<64x32xf32>
    %c0_24 = arith.constant 0 : index
    %c0_25 = arith.constant 0 : index
    %c0_26 = arith.constant 0 : index
    %37 = vector.load %arg8[%c0_24, %c0_25, %c0_26] : memref<1x64x32xbf16, #tpu.memory_space<vmem>>, vector<1x64x32xbf16>
    %38 = vector.shape_cast %37 : vector<1x64x32xbf16> to vector<64x32xbf16>
    %39 = arith.extf %38 : vector<64x32xbf16> to vector<64x32xf32>
    %40 = arith.mulf %36, %39 : vector<64x32xf32>
    %41 = arith.truncf %40 : vector<64x32xf32> to vector<64x32xbf16>
    %c0_27 = arith.constant 0 : index
    %c0_28 = arith.constant 0 : index
    %c0_29 = arith.constant 0 : index
    %42 = vector.load %arg9[%c0_27, %c0_28, %c0_29] : memref<1x64x32xbf16, #tpu.memory_space<vmem>>, vector<1x64x32xbf16>
    %43 = vector.shape_cast %42 : vector<1x64x32xbf16> to vector<64x32xbf16>
    %44 = vector.shape_cast %41 : vector<64x32xbf16> to vector<1x64x32xbf16>
    tpu.vector_store %arg9[%c0_27, %c0_28, %c0_29], %44 {strides = array<i32>} : memref<1x64x32xbf16, #tpu.memory_space<vmem>>, vector<1x64x32xbf16>,
    return
  }
  func.func @transform_0(%arg0: i32) -> (i32, i32, i32) {
    %c0_i32 = arith.constant 0 : i32
    %c0_i32_0 = arith.constant 0 : i32
    %c0_i32_1 = arith.constant 0 : i32
    return %arg0, %c0_i32, %c0_i32_0 : i32, i32, i32
  }
  func.func @transform_1(%arg0: i32) -> (i32, i32) {
    %c0_i32 = arith.constant 0 : i32
    %c0_i32_0 = arith.constant 0 : i32
    %c0_i32_1 = arith.constant 0 : i32
    return %c0_i32, %c0_i32_0 : i32, i32
  }
  func.func @transform_2(%arg0: i32) -> (i32, i32) {
    %c0_i32 = arith.constant 0 : i32
    %c0_i32_0 = arith.constant 0 : i32
    %c0_i32_1 = arith.constant 0 : i32
    return %c0_i32, %c0_i32_0 : i32, i32
  }
  func.func @transform_3(%arg0: i32) -> (i32, i32) {
    %c0_i32 = arith.constant 0 : i32
    %c0_i32_0 = arith.constant 0 : i32
    %c0_i32_1 = arith.constant 0 : i32
    return %c0_i32, %c0_i32_0 : i32, i32
  }
  func.func @transform_4(%arg0: i32) -> (i32, i32) {
    %c0_i32 = arith.constant 0 : i32
    %c0_i32_0 = arith.constant 0 : i32
    %c0_i32_1 = arith.constant 0 : i32
    return %c0_i32, %c0_i32_0 : i32, i32
  }
  func.func @transform_5(%arg0: i32) -> (i32, i32) {
    %c0_i32 = arith.constant 0 : i32
    %c0_i32_0 = arith.constant 0 : i32
    %c0_i32_1 = arith.constant 0 : i32
    return %c0_i32, %c0_i32_0 : i32, i32
  }
  func.func @transform_6(%arg0: i32) -> (i32, i32) {
    %c0_i32 = arith.constant 0 : i32
    %c0_i32_0 = arith.constant 0 : i32
    %c0_i32_1 = arith.constant 0 : i32
    return %c0_i32, %c0_i32_0 : i32, i32
  }
  func.func @transform_7(%arg0: i32) -> (i32, i32, i32) {
    %c0_i32 = arith.constant 0 : i32
    %c0_i32_0 = arith.constant 0 : i32
    %c0_i32_1 = arith.constant 0 : i32
    return %arg0, %c0_i32, %c0_i32_0 : i32, i32, i32
  }
  func.func @transform_8(%arg0: i32) -> (i32, i32, i32) {
    %c0_i32 = arith.constant 0 : i32
    %c0_i32_0 = arith.constant 0 : i32
    %c0_i32_1 = arith.constant 0 : i32
    return %arg0, %c0_i32, %c0_i32_0 : i32, i32, i32
  }
}

module attributes {stable_mosaic.version = 11 : i64} {
  func.func @kernel(%arg0: i32, %arg1: memref<128x32xbf16, #tpu.memory_space<vmem>>, %arg2: memref<1x32xf32, #tpu.memory_space<vmem>>, %arg3: memref<1x32xf32, #tpu.memory_space<vmem>>, %arg4: memref<128x32xbf16, #tpu.memory_space<vmem>>) attributes {dimension_semantics = [#tpu.dimension_semantics<parallel>], iteration_bounds = array<i64: 1>, scalar_prefetch = 0 : i64, scratch_operands = 0 : i64, tpu.core_type = #tpu.core_type<tc>, window_params = [{transform_indices = @transform_0, window_bounds = array<i64: 128, 32>}, {pipeline_mode = #tpu.pipeline_mode<synchronous>, transform_indices = @transform_1, window_bounds = array<i64: 1, 32>}, {pipeline_mode = #tpu.pipeline_mode<synchronous>, transform_indices = @transform_2, window_bounds = array<i64: 1, 32>}, {transform_indices = @transform_3, window_bounds = array<i64: 128, 32>}]} {
    %c0 = arith.constant 0 : index
    %c0_0 = arith.constant 0 : index
    %0 = vector.load %arg1[%c0, %c0_0] : memref<128x32xbf16, #tpu.memory_space<vmem>>, vector<128x32xbf16>
    %1 = arith.extf %0 : vector<128x32xbf16> to vector<128x32xf32>
    %cst = arith.constant dense<0.000000e+00> : vector<128xf32>
    %2 = vector.multi_reduction <add>, %1, %cst [1] : vector<128x32xf32> to vector<128xf32>
    %3 = vector.shape_cast %2 : vector<128xf32> to vector<128x1xf32>
    %cst_1 = arith.constant 3.200000e+01 : f32
    %4 = vector.broadcast %cst_1 : f32 to vector<128x1xf32>
    %5 = arith.divf %3, %4 : vector<128x1xf32>
    %6 = vector.broadcast %5 : vector<128x1xf32> to vector<128x32xf32>
    %7 = arith.subf %1, %6 : vector<128x32xf32>
    %8 = arith.mulf %7, %7 : vector<128x32xf32>
    %cst_2 = arith.constant dense<0.000000e+00> : vector<128xf32>
    %9 = vector.multi_reduction <add>, %8, %cst_2 [1] : vector<128x32xf32> to vector<128xf32>
    %10 = vector.shape_cast %9 : vector<128xf32> to vector<128x1xf32>
    %cst_3 = arith.constant 3.200000e+01 : f32
    %11 = vector.broadcast %cst_3 : f32 to vector<128x1xf32>
    %12 = arith.divf %10, %11 : vector<128x1xf32>
    %13 = vector.broadcast %5 : vector<128x1xf32> to vector<128x32xf32>
    %14 = arith.subf %1, %13 : vector<128x32xf32>
    %cst_4 = arith.constant 9.99999974E-6 : f32
    %15 = vector.broadcast %cst_4 : f32 to vector<128x1xf32>
    %16 = arith.addf %12, %15 : vector<128x1xf32>
    %17 = math.rsqrt %16 : vector<128x1xf32>
    %18 = vector.broadcast %17 : vector<128x1xf32> to vector<128x32xf32>
    %19 = arith.mulf %14, %18 : vector<128x32xf32>
    %c0_5 = arith.constant 0 : index
    %c0_6 = arith.constant 0 : index
    %20 = vector.load %arg2[%c0_5, %c0_6] : memref<1x32xf32, #tpu.memory_space<vmem>>, vector<1x32xf32>
    %21 = vector.broadcast %20 : vector<1x32xf32> to vector<128x32xf32>
    %22 = arith.mulf %19, %21 : vector<128x32xf32>
    %c0_7 = arith.constant 0 : index
    %c0_8 = arith.constant 0 : index
    %23 = vector.load %arg3[%c0_7, %c0_8] : memref<1x32xf32, #tpu.memory_space<vmem>>, vector<1x32xf32>
    %24 = vector.broadcast %23 : vector<1x32xf32> to vector<128x32xf32>
    %25 = arith.addf %22, %24 : vector<128x32xf32>
    %26 = arith.truncf %25 : vector<128x32xf32> to vector<128x32xbf16>
    %c0_9 = arith.constant 0 : index
    %c0_10 = arith.constant 0 : index
    %27 = vector.load %arg4[%c0_9, %c0_10] : memref<128x32xbf16, #tpu.memory_space<vmem>>, vector<128x32xbf16>
    tpu.vector_store %arg4[%c0_9, %c0_10], %26 {strides = array<i32>} : memref<128x32xbf16, #tpu.memory_space<vmem>>, vector<128x32xbf16>,
    return
  }
  func.func @transform_0(%arg0: i32) -> (i32, i32) {
    %c0_i32 = arith.constant 0 : i32
    %c0_i32_0 = arith.constant 0 : i32
    return %arg0, %c0_i32 : i32, i32
  }
  func.func @transform_1(%arg0: i32) -> (i32, i32) {
    %c0_i32 = arith.constant 0 : i32
    %c0_i32_0 = arith.constant 0 : i32
    %c0_i32_1 = arith.constant 0 : i32
    return %c0_i32, %c0_i32_0 : i32, i32
  }
  func.func @transform_2(%arg0: i32) -> (i32, i32) {
    %c0_i32 = arith.constant 0 : i32
    %c0_i32_0 = arith.constant 0 : i32
    %c0_i32_1 = arith.constant 0 : i32
    return %c0_i32, %c0_i32_0 : i32, i32
  }
  func.func @transform_3(%arg0: i32) -> (i32, i32) {
    %c0_i32 = arith.constant 0 : i32
    %c0_i32_0 = arith.constant 0 : i32
    return %arg0, %c0_i32 : i32, i32
  }
}

module attributes {stable_mosaic.version = 11 : i64} {
  func.func @kernel(%arg0: i32, %arg1: memref<1x64x32xbf16, #tpu.memory_space<vmem>>, %arg2: memref<32x32xbf16, #tpu.memory_space<vmem>>, %arg3: memref<1x32xf32, #tpu.memory_space<vmem>>, %arg4: memref<32x16xf32, #tpu.memory_space<vmem>>, %arg5: memref<16x32xf32, #tpu.memory_space<vmem>>, %arg6: memref<1x32xf32, #tpu.memory_space<vmem>>, %arg7: memref<1x32xf32, #tpu.memory_space<vmem>>, %arg8: memref<1x64x32xbf16, #tpu.memory_space<vmem>>, %arg9: memref<1x64x32xbf16, #tpu.memory_space<vmem>>) attributes {dimension_semantics = [#tpu.dimension_semantics<parallel>], iteration_bounds = array<i64: 2>, scalar_prefetch = 0 : i64, scratch_operands = 0 : i64, tpu.core_type = #tpu.core_type<tc>, window_params = [{transform_indices = @transform_0, window_bounds = array<i64: 1, 64, 32>}, {pipeline_mode = #tpu.pipeline_mode<synchronous>, transform_indices = @transform_1, window_bounds = array<i64: 32, 32>}, {pipeline_mode = #tpu.pipeline_mode<synchronous>, transform_indices = @transform_2, window_bounds = array<i64: 1, 32>}, {pipeline_mode = #tpu.pipeline_mode<synchronous>, transform_indices = @transform_3, window_bounds = array<i64: 32, 16>}, {pipeline_mode = #tpu.pipeline_mode<synchronous>, transform_indices = @transform_4, window_bounds = array<i64: 16, 32>}, {pipeline_mode = #tpu.pipeline_mode<synchronous>, transform_indices = @transform_5, window_bounds = array<i64: 1, 32>}, {pipeline_mode = #tpu.pipeline_mode<synchronous>, transform_indices = @transform_6, window_bounds = array<i64: 1, 32>}, {transform_indices = @transform_7, window_bounds = array<i64: 1, 64, 32>}, {transform_indices = @transform_8, window_bounds = array<i64: 1, 64, 32>}]} {
    %c0 = arith.constant 0 : index
    %c0_0 = arith.constant 0 : index
    %c0_1 = arith.constant 0 : index
    %0 = vector.load %arg1[%c0, %c0_0, %c0_1] : memref<1x64x32xbf16, #tpu.memory_space<vmem>>, vector<1x64x32xbf16>
    %1 = vector.shape_cast %0 : vector<1x64x32xbf16> to vector<64x32xbf16>
    %c0_2 = arith.constant 0 : index
    %c0_3 = arith.constant 0 : index
    %2 = vector.load %arg2[%c0_2, %c0_3] : memref<32x32xbf16, #tpu.memory_space<vmem>>, vector<32x32xbf16>
    %cst = arith.constant dense<0.000000e+00> : vector<64x32xf32>
    %3 = tpu.matmul %1, %2, %cst {dimension_numbers = #tpu.dot_dimension_numbers<[1], [0], [0], [1], [0, 0, 1, 1], [], []>} : vector<64x32xbf16>, vector<32x32xbf16>, vector<64x32xf32> -> vector<64x32xf32>
    %c0_4 = arith.constant 0 : index
    %c0_5 = arith.constant 0 : index
    %4 = vector.load %arg3[%c0_4, %c0_5] : memref<1x32xf32, #tpu.memory_space<vmem>>, vector<1x32xf32>
    %5 = vector.broadcast %4 : vector<1x32xf32> to vector<64x32xf32>
    %6 = arith.addf %3, %5 : vector<64x32xf32>
    %c0_6 = arith.constant 0 : index
    %c0_7 = arith.constant 0 : index
    %7 = vector.load %arg4[%c0_6, %c0_7] : memref<32x16xf32, #tpu.memory_space<vmem>>, vector<32x16xf32>
    %c0_8 = arith.constant 0 : index
    %c0_9 = arith.constant 0 : index
    %8 = vector.load %arg5[%c0_8, %c0_9] : memref<16x32xf32, #tpu.memory_space<vmem>>, vector<16x32xf32>
    %cst_10 = arith.constant dense<0.000000e+00> : vector<32xf32>
    %9 = vector.multi_reduction <add>, %6, %cst_10 [0] : vector<64x32xf32> to vector<32xf32>
    %10 = vector.shape_cast %9 : vector<32xf32> to vector<1x32xf32>
    %cst_11 = arith.constant dense<0.000000e+00> : vector<1x16xf32>
    %11 = tpu.matmul %10, %7, %cst_11 {dimension_numbers = #tpu.dot_dimension_numbers<[1], [0], [0], [1], [0, 0, 1, 1], [], []>} : vector<1x32xf32>, vector<32x16xf32>, vector<1x16xf32> -> vector<1x16xf32>
    %cst_12 = arith.constant 7.812500e-03 : f32
    %12 = vector.broadcast %cst_12 : f32 to vector<1x16xf32>
    %13 = arith.mulf %11, %12 : vector<1x16xf32>
    %cst_13 = arith.constant dense<0.000000e+00> : vector<1x32xf32>
    %14 = tpu.matmul %13, %8, %cst_13 {dimension_numbers = #tpu.dot_dimension_numbers<[1], [0], [0], [1], [0, 0, 1, 1], [], []>} : vector<1x16xf32>, vector<16x32xf32>, vector<1x32xf32> -> vector<1x32xf32>
    %15 = vector.broadcast %14 : vector<1x32xf32> to vector<64x32xf32>
    %16 = arith.subf %6, %15 : vector<64x32xf32>
    %17 = arith.mulf %16, %16 : vector<64x32xf32>
    %cst_14 = arith.constant dense<0.000000e+00> : vector<32xf32>
    %18 = vector.multi_reduction <add>, %17, %cst_14 [0] : vector<64x32xf32> to vector<32xf32>
    %19 = vector.shape_cast %18 : vector<32xf32> to vector<1x32xf32>
    %cst_15 = arith.constant dense<0.000000e+00> : vector<1x16xf32>
    %20 = tpu.matmul %19, %7, %cst_15 {dimension_numbers = #tpu.dot_dimension_numbers<[1], [0], [0], [1], [0, 0, 1, 1], [], []>} : vector<1x32xf32>, vector<32x16xf32>, vector<1x16xf32> -> vector<1x16xf32>
    %cst_16 = arith.constant 7.812500e-03 : f32
    %21 = vector.broadcast %cst_16 : f32 to vector<1x16xf32>
    %22 = arith.mulf %20, %21 : vector<1x16xf32>
    %cst_17 = arith.constant dense<0.000000e+00> : vector<1x32xf32>
    %23 = tpu.matmul %22, %8, %cst_17 {dimension_numbers = #tpu.dot_dimension_numbers<[1], [0], [0], [1], [0, 0, 1, 1], [], []>} : vector<1x16xf32>, vector<16x32xf32>, vector<1x32xf32> -> vector<1x32xf32>
    %cst_18 = arith.constant 9.99999974E-6 : f32
    %24 = vector.broadcast %cst_18 : f32 to vector<1x32xf32>
    %25 = arith.addf %23, %24 : vector<1x32xf32>
    %26 = math.rsqrt %25 : vector<1x32xf32>
    %27 = vector.broadcast %26 : vector<1x32xf32> to vector<64x32xf32>
    %28 = arith.mulf %16, %27 : vector<64x32xf32>
    %c0_19 = arith.constant 0 : index
    %c0_20 = arith.constant 0 : index
    %29 = vector.load %arg6[%c0_19, %c0_20] : memref<1x32xf32, #tpu.memory_space<vmem>>, vector<1x32xf32>
    %30 = vector.broadcast %29 : vector<1x32xf32> to vector<64x32xf32>
    %31 = arith.mulf %28, %30 : vector<64x32xf32>
    %c0_21 = arith.constant 0 : index
    %c0_22 = arith.constant 0 : index
    %32 = vector.load %arg7[%c0_21, %c0_22] : memref<1x32xf32, #tpu.memory_space<vmem>>, vector<1x32xf32>
    %33 = vector.broadcast %32 : vector<1x32xf32> to vector<64x32xf32>
    %34 = arith.addf %31, %33 : vector<64x32xf32>
    %cst_23 = arith.constant 0.000000e+00 : f32
    %35 = vector.broadcast %cst_23 : f32 to vector<64x32xf32>
    %36 = arith.maximumf %34, %35 : vector<64x32xf32>
    %c0_24 = arith.constant 0 : index
    %c0_25 = arith.constant 0 : index
    %c0_26 = arith.constant 0 : index
    %37 = vector.load %arg8[%c0_24, %c0_25, %c0_26] : memref<1x64x32xbf16, #tpu.memory_space<vmem>>, vector<1x64x32xbf16>
    %38 = vector.shape_cast %37 : vector<1x64x32xbf16> to vector<64x32xbf16>
    %39 = arith.extf %38 : vector<64x32xbf16> to vector<64x32xf32>
    %40 = arith.addf %36, %39 : vector<64x32xf32>
    %41 = arith.truncf %40 : vector<64x32xf32> to vector<64x32xbf16>
    %c0_27 = arith.constant 0 : index
    %c0_28 = arith.constant 0 : index
    %c0_29 = arith.constant 0 : index
    %42 = vector.load %arg9[%c0_27, %c0_28, %c0_29] : memref<1x64x32xbf16, #tpu.memory_space<vmem>>, vector<1x64x32xbf16>
    %43 = vector.shape_cast %42 : vector<1x64x32xbf16> to vector<64x32xbf16>
    %44 = vector.shape_cast %41 : vector<64x32xbf16> to vector<1x64x32xbf16>
    tpu.vector_store %arg9[%c0_27, %c0_28, %c0_29], %44 {strides = array<i32>} : memref<1x64x32xbf16, #tpu.memory_space<vmem>>, vector<1x64x32xbf16>,
    return
  }
  func.func @transform_0(%arg0: i32) -> (i32, i32, i32) {
    %c0_i32 = arith.constant 0 : i32
    %c0_i32_0 = arith.constant 0 : i32
    %c0_i32_1 = arith.constant 0 : i32
    return %arg0, %c0_i32, %c0_i32_0 : i32, i32, i32
  }
  func.func @transform_1(%arg0: i32) -> (i32, i32) {
    %c0_i32 = arith.constant 0 : i32
    %c0_i32_0 = arith.constant 0 : i32
    %c0_i32_1 = arith.constant 0 : i32
    return %c0_i32, %c0_i32_0 : i32, i32
  }
  func.func @transform_2(%arg0: i32) -> (i32, i32) {
    %c0_i32 = arith.constant 0 : i32
    %c0_i32_0 = arith.constant 0 : i32
    %c0_i32_1 = arith.constant 0 : i32
    return %c0_i32, %c0_i32_0 : i32, i32
  }
  func.func @transform_3(%arg0: i32) -> (i32, i32) {
    %c0_i32 = arith.constant 0 : i32
    %c0_i32_0 = arith.constant 0 : i32
    %c0_i32_1 = arith.constant 0 : i32
    return %c0_i32, %c0_i32_0 : i32, i32
  }
  func.func @transform_4(%arg0: i32) -> (i32, i32) {
    %c0_i32 = arith.constant 0 : i32
    %c0_i32_0 = arith.constant 0 : i32
    %c0_i32_1 = arith.constant 0 : i32
    return %c0_i32, %c0_i32_0 : i32, i32
  }
  func.func @transform_5(%arg0: i32) -> (i32, i32) {
    %c0_i32 = arith.constant 0 : i32
    %c0_i32_0 = arith.constant 0 : i32
    %c0_i32_1 = arith.constant 0 : i32
    return %c0_i32, %c0_i32_0 : i32, i32
  }
  func.func @transform_6(%arg0: i32) -> (i32, i32) {
    %c0_i32 = arith.constant 0 : i32
    %c0_i32_0 = arith.constant 0 : i32
    %c0_i32_1 = arith.constant 0 : i32
    return %c0_i32, %c0_i32_0 : i32, i32
  }
  func.func @transform_7(%arg0: i32) -> (i32, i32, i32) {
    %c0_i32 = arith.constant 0 : i32
    %c0_i32_0 = arith.constant 0 : i32
    %c0_i32_1 = arith.constant 0 : i32
    return %arg0, %c0_i32, %c0_i32_0 : i32, i32, i32
  }
  func.func @transform_8(%arg0: i32) -> (i32, i32, i32) {
    %c0_i32 = arith.constant 0 : i32
    %c0_i32_0 = arith.constant 0 : i32
    %c0_i32_1 = arith.constant 0 : i32
    return %arg0, %c0_i32, %c0_i32_0 : i32, i32, i32
  }
}

module attributes {stable_mosaic.version = 11 : i64} {
  func.func @kernel(%arg0: i32, %arg1: memref<128x4xbf16, #tpu.memory_space<vmem>>, %arg2: memref<4x64xbf16, #tpu.memory_space<vmem>>, %arg3: memref<64x64xbf16, #tpu.memory_space<vmem>>, %arg4: memref<1x64xf32, #tpu.memory_space<vmem>>, %arg5: memref<64x16xbf16, #tpu.memory_space<vmem>>, %arg6: memref<64x16xbf16, #tpu.memory_space<vmem>>, %arg7: memref<128x64xbf16, #tpu.memory_space<vmem>>, %arg8: memref<128x64xf32, #tpu.memory_space<vmem>>, %arg9: memref<128x16xf32, #tpu.memory_space<vmem>>, %arg10: memref<128x16xf32, #tpu.memory_space<vmem>>) attributes {dimension_semantics = [#tpu.dimension_semantics<parallel>], iteration_bounds = array<i64: 1>, scalar_prefetch = 0 : i64, scratch_operands = 0 : i64, tpu.core_type = #tpu.core_type<tc>, window_params = [{transform_indices = @transform_0, window_bounds = array<i64: 128, 4>}, {pipeline_mode = #tpu.pipeline_mode<synchronous>, transform_indices = @transform_1, window_bounds = array<i64: 4, 64>}, {pipeline_mode = #tpu.pipeline_mode<synchronous>, transform_indices = @transform_2, window_bounds = array<i64: 64, 64>}, {pipeline_mode = #tpu.pipeline_mode<synchronous>, transform_indices = @transform_3, window_bounds = array<i64: 1, 64>}, {pipeline_mode = #tpu.pipeline_mode<synchronous>, transform_indices = @transform_4, window_bounds = array<i64: 64, 16>}, {pipeline_mode = #tpu.pipeline_mode<synchronous>, transform_indices = @transform_5, window_bounds = array<i64: 64, 16>}, {transform_indices = @transform_6, window_bounds = array<i64: 128, 64>}, {transform_indices = @transform_7, window_bounds = array<i64: 128, 64>}, {transform_indices = @transform_8, window_bounds = array<i64: 128, 16>}, {transform_indices = @transform_9, window_bounds = array<i64: 128, 16>}]} {
    %c0 = arith.constant 0 : index
    %c0_0 = arith.constant 0 : index
    %0 = vector.load %arg1[%c0, %c0_0] : memref<128x4xbf16, #tpu.memory_space<vmem>>, vector<128x4xbf16>
    %c0_1 = arith.constant 0 : index
    %c0_2 = arith.constant 0 : index
    %1 = vector.load %arg2[%c0_1, %c0_2] : memref<4x64xbf16, #tpu.memory_space<vmem>>, vector<4x64xbf16>
    %cst = arith.constant dense<0.000000e+00> : vector<128x64xf32>
    %2 = tpu.matmul %0, %1, %cst {dimension_numbers = #tpu.dot_dimension_numbers<[1], [0], [0], [1], [0, 0, 1, 1], [], []>} : vector<128x4xbf16>, vector<4x64xbf16>, vector<128x64xf32> -> vector<128x64xf32>
    %3 = arith.negf %2 : vector<128x64xf32>
    %4 = math.exp %3 : vector<128x64xf32>
    %cst_3 = arith.constant 1.000000e+00 : f32
    %5 = vector.broadcast %cst_3 : f32 to vector<128x64xf32>
    %6 = arith.addf %5, %4 : vector<128x64xf32>
    %7 = arith.divf %5, %6 : vector<128x64xf32>
    %8 = arith.mulf %2, %7 : vector<128x64xf32>
    %9 = arith.truncf %8 : vector<128x64xf32> to vector<128x64xbf16>
    %c0_4 = arith.constant 0 : index
    %c0_5 = arith.constant 0 : index
    %10 = vector.load %arg7[%c0_4, %c0_5] : memref<128x64xbf16, #tpu.memory_space<vmem>>, vector<128x64xbf16>
    tpu.vector_store %arg7[%c0_4, %c0_5], %9 {strides = array<i32>} : memref<128x64xbf16, #tpu.memory_space<vmem>>, vector<128x64xbf16>,
    %c0_6 = arith.constant 0 : index
    %c0_7 = arith.constant 0 : index
    %11 = vector.load %arg3[%c0_6, %c0_7] : memref<64x64xbf16, #tpu.memory_space<vmem>>, vector<64x64xbf16>
    %cst_8 = arith.constant dense<0.000000e+00> : vector<128x64xf32>
    %12 = tpu.matmul %9, %11, %cst_8 {dimension_numbers = #tpu.dot_dimension_numbers<[1], [0], [0], [1], [0, 0, 1, 1], [], []>} : vector<128x64xbf16>, vector<64x64xbf16>, vector<128x64xf32> -> vector<128x64xf32>
    %c0_9 = arith.constant 0 : index
    %c0_10 = arith.constant 0 : index
    %13 = vector.load %arg4[%c0_9, %c0_10] : memref<1x64xf32, #tpu.memory_space<vmem>>, vector<1x64xf32>
    %14 = vector.broadcast %13 : vector<1x64xf32> to vector<128x64xf32>
    %15 = arith.addf %12, %14 : vector<128x64xf32>
    %c0_11 = arith.constant 0 : index
    %c0_12 = arith.constant 0 : index
    %16 = vector.load %arg8[%c0_11, %c0_12] : memref<128x64xf32, #tpu.memory_space<vmem>>, vector<128x64xf32>
    tpu.vector_store %arg8[%c0_11, %c0_12], %15 {strides = array<i32>} : memref<128x64xf32, #tpu.memory_space<vmem>>, vector<128x64xf32>,
    %c0_13 = arith.constant 0 : index
    %c0_14 = arith.constant 0 : index
    %17 = vector.load %arg5[%c0_13, %c0_14] : memref<64x16xbf16, #tpu.memory_space<vmem>>, vector<64x16xbf16>
    %cst_15 = arith.constant dense<0.000000e+00> : vector<128x16xf32>
    %18 = tpu.matmul %9, %17, %cst_15 {dimension_numbers = #tpu.dot_dimension_numbers<[1], [0], [0], [1], [0, 0, 1, 1], [], []>} : vector<128x64xbf16>, vector<64x16xbf16>, vector<128x16xf32> -> vector<128x16xf32>
    %c0_16 = arith.constant 0 : index
    %c0_17 = arith.constant 0 : index
    %19 = vector.load %arg9[%c0_16, %c0_17] : memref<128x16xf32, #tpu.memory_space<vmem>>, vector<128x16xf32>
    tpu.vector_store %arg9[%c0_16, %c0_17], %18 {strides = array<i32>} : memref<128x16xf32, #tpu.memory_space<vmem>>, vector<128x16xf32>,
    %c0_18 = arith.constant 0 : index
    %c0_19 = arith.constant 0 : index
    %20 = vector.load %arg6[%c0_18, %c0_19] : memref<64x16xbf16, #tpu.memory_space<vmem>>, vector<64x16xbf16>
    %cst_20 = arith.constant dense<0.000000e+00> : vector<128x16xf32>
    %21 = tpu.matmul %9, %20, %cst_20 {dimension_numbers = #tpu.dot_dimension_numbers<[1], [0], [0], [1], [0, 0, 1, 1], [], []>} : vector<128x64xbf16>, vector<64x16xbf16>, vector<128x16xf32> -> vector<128x16xf32>
    %c0_21 = arith.constant 0 : index
    %c0_22 = arith.constant 0 : index
    %22 = vector.load %arg10[%c0_21, %c0_22] : memref<128x16xf32, #tpu.memory_space<vmem>>, vector<128x16xf32>
    tpu.vector_store %arg10[%c0_21, %c0_22], %21 {strides = array<i32>} : memref<128x16xf32, #tpu.memory_space<vmem>>, vector<128x16xf32>,
    return
  }
  func.func @transform_0(%arg0: i32) -> (i32, i32) {
    %c0_i32 = arith.constant 0 : i32
    %c0_i32_0 = arith.constant 0 : i32
    return %arg0, %c0_i32 : i32, i32
  }
  func.func @transform_1(%arg0: i32) -> (i32, i32) {
    %c0_i32 = arith.constant 0 : i32
    %c0_i32_0 = arith.constant 0 : i32
    %c0_i32_1 = arith.constant 0 : i32
    return %c0_i32, %c0_i32_0 : i32, i32
  }
  func.func @transform_2(%arg0: i32) -> (i32, i32) {
    %c0_i32 = arith.constant 0 : i32
    %c0_i32_0 = arith.constant 0 : i32
    %c0_i32_1 = arith.constant 0 : i32
    return %c0_i32, %c0_i32_0 : i32, i32
  }
  func.func @transform_3(%arg0: i32) -> (i32, i32) {
    %c0_i32 = arith.constant 0 : i32
    %c0_i32_0 = arith.constant 0 : i32
    %c0_i32_1 = arith.constant 0 : i32
    return %c0_i32, %c0_i32_0 : i32, i32
  }
  func.func @transform_4(%arg0: i32) -> (i32, i32) {
    %c0_i32 = arith.constant 0 : i32
    %c0_i32_0 = arith.constant 0 : i32
    %c0_i32_1 = arith.constant 0 : i32
    return %c0_i32, %c0_i32_0 : i32, i32
  }
  func.func @transform_5(%arg0: i32) -> (i32, i32) {
    %c0_i32 = arith.constant 0 : i32
    %c0_i32_0 = arith.constant 0 : i32
    %c0_i32_1 = arith.constant 0 : i32
    return %c0_i32, %c0_i32_0 : i32, i32
  }
  func.func @transform_6(%arg0: i32) -> (i32, i32) {
    %c0_i32 = arith.constant 0 : i32
    %c0_i32_0 = arith.constant 0 : i32
    return %arg0, %c0_i32 : i32, i32
  }
  func.func @transform_7(%arg0: i32) -> (i32, i32) {
    %c0_i32 = arith.constant 0 : i32
    %c0_i32_0 = arith.constant 0 : i32
    return %arg0, %c0_i32 : i32, i32
  }
  func.func @transform_8(%arg0: i32) -> (i32, i32) {
    %c0_i32 = arith.constant 0 : i32
    %c0_i32_0 = arith.constant 0 : i32
    return %arg0, %c0_i32 : i32, i32
  }
  func.func @transform_9(%arg0: i32) -> (i32, i32) {
    %c0_i32 = arith.constant 0 : i32
    %c0_i32_0 = arith.constant 0 : i32
    return %arg0, %c0_i32 : i32, i32
  }
}

module attributes {stable_mosaic.version = 11 : i64} {
  func.func @kernel(%arg0: i32, %arg1: memref<128x32xbf16, #tpu.memory_space<vmem>>, %arg2: memref<32x4xbf16, #tpu.memory_space<vmem>>, %arg3: memref<1x4xf32, #tpu.memory_space<vmem>>, %arg4: memref<32x64xbf16, #tpu.memory_space<vmem>>, %arg5: memref<128x4xbf16, #tpu.memory_space<vmem>>, %arg6: memref<128x64xbf16, #tpu.memory_space<vmem>>) attributes {dimension_semantics = [#tpu.dimension_semantics<parallel>], iteration_bounds = array<i64: 1>, scalar_prefetch = 0 : i64, scratch_operands = 0 : i64, tpu.core_type = #tpu.core_type<tc>, window_params = [{transform_indices = @transform_0, window_bounds = array<i64: 128, 32>}, {pipeline_mode = #tpu.pipeline_mode<synchronous>, transform_indices = @transform_1, window_bounds = array<i64: 32, 4>}, {pipeline_mode = #tpu.pipeline_mode<synchronous>, transform_indices = @transform_2, window_bounds = array<i64: 1, 4>}, {pipeline_mode = #tpu.pipeline_mode<synchronous>, transform_indices = @transform_3, window_bounds = array<i64: 32, 64>}, {transform_indices = @transform_4, window_bounds = array<i64: 128, 4>}, {transform_indices = @transform_5, window_bounds = array<i64: 128, 64>}]} {
    %c0 = arith.constant 0 : index
    %c0_0 = arith.constant 0 : index
    %0 = vector.load %arg1[%c0, %c0_0] : memref<128x32xbf16, #tpu.memory_space<vmem>>, vector<128x32xbf16>
    %c0_1 = arith.constant 0 : index
    %c0_2 = arith.constant 0 : index
    %1 = vector.load %arg2[%c0_1, %c0_2] : memref<32x4xbf16, #tpu.memory_space<vmem>>, vector<32x4xbf16>
    %cst = arith.constant dense<0.000000e+00> : vector<128x4xf32>
    %2 = tpu.matmul %0, %1, %cst {dimension_numbers = #tpu.dot_dimension_numbers<[1], [0], [0], [1], [0, 0, 1, 1], [], []>} : vector<128x32xbf16>, vector<32x4xbf16>, vector<128x4xf32> -> vector<128x4xf32>
    %c0_3 = arith.constant 0 : index
    %c0_4 = arith.constant 0 : index
    %3 = vector.load %arg3[%c0_3, %c0_4] : memref<1x4xf32, #tpu.memory_space<vmem>>, vector<1x4xf32>
    %4 = vector.broadcast %3 : vector<1x4xf32> to vector<128x4xf32>
    %5 = arith.addf %2, %4 : vector<128x4xf32>
    %6 = arith.truncf %5 : vector<128x4xf32> to vector<128x4xbf16>
    %c0_5 = arith.constant 0 : index
    %c0_6 = arith.constant 0 : index
    %7 = vector.load %arg5[%c0_5, %c0_6] : memref<128x4xbf16, #tpu.memory_space<vmem>>, vector<128x4xbf16>
    tpu.vector_store %arg5[%c0_5, %c0_6], %6 {strides = array<i32>} : memref<128x4xbf16, #tpu.memory_space<vmem>>, vector<128x4xbf16>,
    %c0_7 = arith.constant 0 : index
    %c0_8 = arith.constant 0 : index
    %8 = vector.load %arg4[%c0_7, %c0_8] : memref<32x64xbf16, #tpu.memory_space<vmem>>, vector<32x64xbf16>
    %cst_9 = arith.constant dense<0.000000e+00> : vector<128x64xf32>
    %9 = tpu.matmul %0, %8, %cst_9 {dimension_numbers = #tpu.dot_dimension_numbers<[1], [0], [0], [1], [0, 0, 1, 1], [], []>} : vector<128x32xbf16>, vector<32x64xbf16>, vector<128x64xf32> -> vector<128x64xf32>
    %10 = arith.truncf %9 : vector<128x64xf32> to vector<128x64xbf16>
    %c0_10 = arith.constant 0 : index
    %c0_11 = arith.constant 0 : index
    %11 = vector.load %arg6[%c0_10, %c0_11] : memref<128x64xbf16, #tpu.memory_space<vmem>>, vector<128x64xbf16>
    tpu.vector_store %arg6[%c0_10, %c0_11], %10 {strides = array<i32>} : memref<128x64xbf16, #tpu.memory_space<vmem>>, vector<128x64xbf16>,
    return
  }
  func.func @transform_0(%arg0: i32) -> (i32, i32) {
    %c0_i32 = arith.constant 0 : i32
    %c0_i32_0 = arith.constant 0 : i32
    return %arg0, %c0_i32 : i32, i32
  }
  func.func @transform_1(%arg0: i32) -> (i32, i32) {
    %c0_i32 = arith.constant 0 : i32
    %c0_i32_0 = arith.constant 0 : i32
    %c0_i32_1 = arith.constant 0 : i32
    return %c0_i32, %c0_i32_0 : i32, i32
  }
  func.func @transform_2(%arg0: i32) -> (i32, i32) {
    %c0_i32 = arith.constant 0 : i32
    %c0_i32_0 = arith.constant 0 : i32
    %c0_i32_1 = arith.constant 0 : i32
    return %c0_i32, %c0_i32_0 : i32, i32
  }
  func.func @transform_3(%arg0: i32) -> (i32, i32) {
    %c0_i32 = arith.constant 0 : i32
    %c0_i32_0 = arith.constant 0 : i32
    %c0_i32_1 = arith.constant 0 : i32
    return %c0_i32, %c0_i32_0 : i32, i32
  }
  func.func @transform_4(%arg0: i32) -> (i32, i32) {
    %c0_i32 = arith.constant 0 : i32
    %c0_i32_0 = arith.constant 0 : i32
    return %arg0, %c0_i32 : i32, i32
  }
  func.func @transform_5(%arg0: i32) -> (i32, i32) {
    %c0_i32 = arith.constant 0 : i32
    %c0_i32_0 = arith.constant 0 : i32
    return %arg0, %c0_i32 : i32, i32
  }
}

module attributes {stable_mosaic.version = 11 : i64} {
  func.func @kernel(%arg0: i32, %arg1: i32, %arg2: memref<1x1x64x64xbf16, #tpu.memory_space<vmem>>, %arg3: memref<1x64x64xf32, #tpu.memory_space<vmem>>, %arg4: memref<1x64x16xf32, #tpu.memory_space<vmem>>, %arg5: memref<1x64x16xf32, #tpu.memory_space<vmem>>, %arg6: memref<1x64x16xf32, #tpu.memory_space<vmem>>, %arg7: memref<16x64xf32, #tpu.memory_space<vmem>>, %arg8: memref<1x64xf32, #tpu.memory_space<vmem>>, %arg9: memref<1x64xf32, #tpu.memory_space<vmem>>, %arg10: memref<1x1x64x64xbf16, #tpu.memory_space<vmem>>) attributes {dimension_semantics = [#tpu.dimension_semantics<parallel>, #tpu.dimension_semantics<parallel>], iteration_bounds = array<i64: 2, 4>, scalar_prefetch = 0 : i64, scratch_operands = 0 : i64, tpu.core_type = #tpu.core_type<tc>, window_params = [{transform_indices = @transform_0, window_bounds = array<i64: 1, 1, 64, 64>}, {transform_indices = @transform_1, window_bounds = array<i64: 1, 64, 64>}, {transform_indices = @transform_2, window_bounds = array<i64: 1, 64, 16>}, {transform_indices = @transform_3, window_bounds = array<i64: 1, 64, 16>}, {transform_indices = @transform_4, window_bounds = array<i64: 1, 64, 16>}, {pipeline_mode = #tpu.pipeline_mode<synchronous>, transform_indices = @transform_5, window_bounds = array<i64: 16, 64>}, {pipeline_mode = #tpu.pipeline_mode<synchronous>, transform_indices = @transform_6, window_bounds = array<i64: 1, 64>}, {pipeline_mode = #tpu.pipeline_mode<synchronous>, transform_indices = @transform_7, window_bounds = array<i64: 1, 64>}, {transform_indices = @transform_8, window_bounds = array<i64: 1, 1, 64, 64>}]} {
    %c0 = arith.constant 0 : index
    %c0_0 = arith.constant 0 : index
    %0 = vector.load %arg7[%c0, %c0_0] : memref<16x64xf32, #tpu.memory_space<vmem>>, vector<16x64xf32>
    %c0_1 = arith.constant 0 : index
    %c0_2 = arith.constant 0 : index
    %1 = vector.load %arg8[%c0_1, %c0_2] : memref<1x64xf32, #tpu.memory_space<vmem>>, vector<1x64xf32>
    %c0_3 = arith.constant 0 : index
    %c0_4 = arith.constant 0 : index
    %2 = vector.load %arg9[%c0_3, %c0_4] : memref<1x64xf32, #tpu.memory_space<vmem>>, vector<1x64xf32>
    %cst = arith.constant 0.000000e+00 : f32
    %3 = vector.broadcast %cst : f32 to vector<16x64xf32>
    %c0_i32 = arith.constant 0 : i32
    %c8_i32 = arith.constant 8 : i32
    %4 = arith.addi %c0_i32, %c8_i32 : i32
    %c1_i32 = arith.constant 1 : i32
    %5 = scf.for %arg11 = %c0_i32 to %4 step %c1_i32 iter_args(%arg12 = %3) -> (vector<16x64xf32>)  : i32 {
      %c8_i32_6 = arith.constant 8 : i32
      %6 = arith.muli %arg11, %c8_i32_6 : i32
      %7 = tpu.assume_multiple %6, 8 : i32
      %c0_7 = arith.constant 0 : index
      %c0_8 = arith.constant 0 : index
      %8 = arith.index_cast %7 : i32 to index
      %c0_9 = arith.constant 0 : index
      %9 = vector.load %arg2[%c0_7, %c0_8, %8, %c0_9] : memref<1x1x64x64xbf16, #tpu.memory_space<vmem>>, vector<1x1x8x64xbf16>
      %10 = vector.shape_cast %9 : vector<1x1x8x64xbf16> to vector<8x64xbf16>
      %11 = arith.extf %10 : vector<8x64xbf16> to vector<8x64xf32>
      %c0_10 = arith.constant 0 : index
      %12 = arith.index_cast %7 : i32 to index
      %c0_11 = arith.constant 0 : index
      %13 = vector.load %arg3[%c0_10, %12, %c0_11] : memref<1x64x64xf32, #tpu.memory_space<vmem>>, vector<1x8x64xf32>
      %14 = vector.shape_cast %13 : vector<1x8x64xf32> to vector<8x64xf32>
      %c0_12 = arith.constant 0 : index
      %15 = arith.index_cast %7 : i32 to index
      %c0_13 = arith.constant 0 : index
      %16 = vector.load %arg4[%c0_12, %15, %c0_13] : memref<1x64x16xf32, #tpu.memory_space<vmem>>, vector<1x8x16xf32>
      %17 = vector.shape_cast %16 : vector<1x8x16xf32> to vector<8x16xf32>
      %c0_14 = arith.constant 0 : index
      %18 = arith.index_cast %7 : i32 to index
      %c0_15 = arith.constant 0 : index
      %19 = vector.load %arg6[%c0_14, %18, %c0_15] : memref<1x64x16xf32, #tpu.memory_space<vmem>>, vector<1x8x16xf32>
      %20 = vector.shape_cast %19 : vector<1x8x16xf32> to vector<8x16xf32>
      %21 = arith.addf %17, %20 : vector<8x16xf32>
      %c0_16 = arith.constant 0 : index
      %22 = arith.index_cast %7 : i32 to index
      %c0_17 = arith.constant 0 : index
      %23 = vector.load %arg5[%c0_16, %22, %c0_17] : memref<1x64x16xf32, #tpu.memory_space<vmem>>, vector<1x8x16xf32>
      %24 = vector.shape_cast %23 : vector<1x8x16xf32> to vector<8x16xf32>
      %25 = vector.broadcast %2 : vector<1x64xf32> to vector<8x64xf32>
      %26 = arith.addf %14, %25 : vector<8x64xf32>
      %cst_18 = arith.constant 2.000000e+01 : f32
      %27 = vector.broadcast %cst_18 : f32 to vector<8x64xf32>
      %28 = arith.cmpf ogt, %26, %27 : vector<8x64xf32>
      %29 = math.exp %26 : vector<8x64xf32>
      %30 = math.log1p %29 : vector<8x64xf32>
      %31 = arith.select %28, %26, %30 : vector<8x64xi1>, vector<8x64xf32>
      %32 = vector.shape_cast %31 : vector<8x64xf32> to vector<8x1x64xf32>
      %33 = vector.shape_cast %0 : vector<16x64xf32> to vector<1x16x64xf32>
      %34 = vector.broadcast %32 : vector<8x1x64xf32> to vector<8x16x64xf32>
      %35 = vector.broadcast %33 : vector<1x16x64xf32> to vector<8x16x64xf32>
      %36 = arith.mulf %34, %35 : vector<8x16x64xf32>
      %37 = math.exp %36 : vector<8x16x64xf32>
      %38 = arith.mulf %31, %11 : vector<8x64xf32>
      %39 = vector.shape_cast %38 : vector<8x64xf32> to vector<8x1x64xf32>
      %40 = vector.shape_cast %21 : vector<8x16xf32> to vector<8x16x1xf32>
      %41 = vector.shape_cast %24 : vector<8x16xf32> to vector<8x16x1xf32>
      %42 = vector.extract_strided_slice %37 {offsets = [0, 0, 0], sizes = [1, 16, 64], strides = [1, 1, 1]} : vector<8x16x64xf32> to vector<1x16x64xf32>
      %43 = vector.shape_cast %42 : vector<1x16x64xf32> to vector<16x64xf32>
      %44 = arith.mulf %43, %arg12 : vector<16x64xf32>
      %45 = vector.extract_strided_slice %39 {offsets = [0, 0, 0], sizes = [1, 1, 64], strides = [1, 1, 1]} : vector<8x1x64xf32> to vector<1x1x64xf32>
      %46 = vector.shape_cast %45 : vector<1x1x64xf32> to vector<1x64xf32>
      %47 = vector.extract_strided_slice %40 {offsets = [0, 0, 0], sizes = [1, 16, 1], strides = [1, 1, 1]} : vector<8x16x1xf32> to vector<1x16x1xf32>
      %48 = vector.shape_cast %47 : vector<1x16x1xf32> to vector<16x1xf32>
      %49 = vector.broadcast %46 : vector<1x64xf32> to vector<16x64xf32>
      %50 = vector.broadcast %48 : vector<16x1xf32> to vector<16x64xf32>
      %51 = arith.mulf %49, %50 : vector<16x64xf32>
      %52 = arith.addf %44, %51 : vector<16x64xf32>
      %53 = vector.extract_strided_slice %41 {offsets = [0, 0, 0], sizes = [1, 16, 1], strides = [1, 1, 1]} : vector<8x16x1xf32> to vector<1x16x1xf32>
      %54 = vector.shape_cast %53 : vector<1x16x1xf32> to vector<16x1xf32>
      %55 = vector.broadcast %54 : vector<16x1xf32> to vector<16x64xf32>
      %56 = arith.mulf %55, %52 : vector<16x64xf32>
      %cst_19 = arith.constant dense<0.000000e+00> : vector<64xf32>
      %57 = vector.multi_reduction <add>, %56, %cst_19 [0] : vector<16x64xf32> to vector<64xf32>
      %58 = vector.shape_cast %57 : vector<64xf32> to vector<1x64xf32>
      %59 = vector.extract_strided_slice %37 {offsets = [1, 0, 0], sizes = [1, 16, 64], strides = [1, 1, 1]} : vector<8x16x64xf32> to vector<1x16x64xf32>
      %60 = vector.shape_cast %59 : vector<1x16x64xf32> to vector<16x64xf32>
      %61 = arith.mulf %60, %52 : vector<16x64xf32>
      %62 = vector.extract_strided_slice %39 {offsets = [1, 0, 0], sizes = [1, 1, 64], strides = [1, 1, 1]} : vector<8x1x64xf32> to vector<1x1x64xf32>
      %63 = vector.shape_cast %62 : vector<1x1x64xf32> to vector<1x64xf32>
      %64 = vector.extract_strided_slice %40 {offsets = [1, 0, 0], sizes = [1, 16, 1], strides = [1, 1, 1]} : vector<8x16x1xf32> to vector<1x16x1xf32>
      %65 = vector.shape_cast %64 : vector<1x16x1xf32> to vector<16x1xf32>
      %66 = vector.broadcast %63 : vector<1x64xf32> to vector<16x64xf32>
      %67 = vector.broadcast %65 : vector<16x1xf32> to vector<16x64xf32>
      %68 = arith.mulf %66, %67 : vector<16x64xf32>
      %69 = arith.addf %61, %68 : vector<16x64xf32>
      %70 = vector.extract_strided_slice %41 {offsets = [1, 0, 0], sizes = [1, 16, 1], strides = [1, 1, 1]} : vector<8x16x1xf32> to vector<1x16x1xf32>
      %71 = vector.shape_cast %70 : vector<1x16x1xf32> to vector<16x1xf32>
      %72 = vector.broadcast %71 : vector<16x1xf32> to vector<16x64xf32>
      %73 = arith.mulf %72, %69 : vector<16x64xf32>
      %cst_20 = arith.constant dense<0.000000e+00> : vector<64xf32>
      %74 = vector.multi_reduction <add>, %73, %cst_20 [0] : vector<16x64xf32> to vector<64xf32>
      %75 = vector.shape_cast %74 : vector<64xf32> to vector<1x64xf32>
      %76 = vector.extract_strided_slice %37 {offsets = [2, 0, 0], sizes = [1, 16, 64], strides = [1, 1, 1]} : vector<8x16x64xf32> to vector<1x16x64xf32>
      %77 = vector.shape_cast %76 : vector<1x16x64xf32> to vector<16x64xf32>
      %78 = arith.mulf %77, %69 : vector<16x64xf32>
      %79 = vector.extract_strided_slice %39 {offsets = [2, 0, 0], sizes = [1, 1, 64], strides = [1, 1, 1]} : vector<8x1x64xf32> to vector<1x1x64xf32>
      %80 = vector.shape_cast %79 : vector<1x1x64xf32> to vector<1x64xf32>
      %81 = vector.extract_strided_slice %40 {offsets = [2, 0, 0], sizes = [1, 16, 1], strides = [1, 1, 1]} : vector<8x16x1xf32> to vector<1x16x1xf32>
      %82 = vector.shape_cast %81 : vector<1x16x1xf32> to vector<16x1xf32>
      %83 = vector.broadcast %80 : vector<1x64xf32> to vector<16x64xf32>
      %84 = vector.broadcast %82 : vector<16x1xf32> to vector<16x64xf32>
      %85 = arith.mulf %83, %84 : vector<16x64xf32>
      %86 = arith.addf %78, %85 : vector<16x64xf32>
      %87 = vector.extract_strided_slice %41 {offsets = [2, 0, 0], sizes = [1, 16, 1], strides = [1, 1, 1]} : vector<8x16x1xf32> to vector<1x16x1xf32>
      %88 = vector.shape_cast %87 : vector<1x16x1xf32> to vector<16x1xf32>
      %89 = vector.broadcast %88 : vector<16x1xf32> to vector<16x64xf32>
      %90 = arith.mulf %89, %86 : vector<16x64xf32>
      %cst_21 = arith.constant dense<0.000000e+00> : vector<64xf32>
      %91 = vector.multi_reduction <add>, %90, %cst_21 [0] : vector<16x64xf32> to vector<64xf32>
      %92 = vector.shape_cast %91 : vector<64xf32> to vector<1x64xf32>
      %93 = vector.extract_strided_slice %37 {offsets = [3, 0, 0], sizes = [1, 16, 64], strides = [1, 1, 1]} : vector<8x16x64xf32> to vector<1x16x64xf32>
      %94 = vector.shape_cast %93 : vector<1x16x64xf32> to vector<16x64xf32>
      %95 = arith.mulf %94, %86 : vector<16x64xf32>
      %96 = vector.extract_strided_slice %39 {offsets = [3, 0, 0], sizes = [1, 1, 64], strides = [1, 1, 1]} : vector<8x1x64xf32> to vector<1x1x64xf32>
      %97 = vector.shape_cast %96 : vector<1x1x64xf32> to vector<1x64xf32>
      %98 = vector.extract_strided_slice %40 {offsets = [3, 0, 0], sizes = [1, 16, 1], strides = [1, 1, 1]} : vector<8x16x1xf32> to vector<1x16x1xf32>
      %99 = vector.shape_cast %98 : vector<1x16x1xf32> to vector<16x1xf32>
      %100 = vector.broadcast %97 : vector<1x64xf32> to vector<16x64xf32>
      %101 = vector.broadcast %99 : vector<16x1xf32> to vector<16x64xf32>
      %102 = arith.mulf %100, %101 : vector<16x64xf32>
      %103 = arith.addf %95, %102 : vector<16x64xf32>
      %104 = vector.extract_strided_slice %41 {offsets = [3, 0, 0], sizes = [1, 16, 1], strides = [1, 1, 1]} : vector<8x16x1xf32> to vector<1x16x1xf32>
      %105 = vector.shape_cast %104 : vector<1x16x1xf32> to vector<16x1xf32>
      %106 = vector.broadcast %105 : vector<16x1xf32> to vector<16x64xf32>
      %107 = arith.mulf %106, %103 : vector<16x64xf32>
      %cst_22 = arith.constant dense<0.000000e+00> : vector<64xf32>
      %108 = vector.multi_reduction <add>, %107, %cst_22 [0] : vector<16x64xf32> to vector<64xf32>
      %109 = vector.shape_cast %108 : vector<64xf32> to vector<1x64xf32>
      %110 = vector.extract_strided_slice %37 {offsets = [4, 0, 0], sizes = [1, 16, 64], strides = [1, 1, 1]} : vector<8x16x64xf32> to vector<1x16x64xf32>
      %111 = vector.shape_cast %110 : vector<1x16x64xf32> to vector<16x64xf32>
      %112 = arith.mulf %111, %103 : vector<16x64xf32>
      %113 = vector.extract_strided_slice %39 {offsets = [4, 0, 0], sizes = [1, 1, 64], strides = [1, 1, 1]} : vector<8x1x64xf32> to vector<1x1x64xf32>
      %114 = vector.shape_cast %113 : vector<1x1x64xf32> to vector<1x64xf32>
      %115 = vector.extract_strided_slice %40 {offsets = [4, 0, 0], sizes = [1, 16, 1], strides = [1, 1, 1]} : vector<8x16x1xf32> to vector<1x16x1xf32>
      %116 = vector.shape_cast %115 : vector<1x16x1xf32> to vector<16x1xf32>
      %117 = vector.broadcast %114 : vector<1x64xf32> to vector<16x64xf32>
      %118 = vector.broadcast %116 : vector<16x1xf32> to vector<16x64xf32>
      %119 = arith.mulf %117, %118 : vector<16x64xf32>
      %120 = arith.addf %112, %119 : vector<16x64xf32>
      %121 = vector.extract_strided_slice %41 {offsets = [4, 0, 0], sizes = [1, 16, 1], strides = [1, 1, 1]} : vector<8x16x1xf32> to vector<1x16x1xf32>
      %122 = vector.shape_cast %121 : vector<1x16x1xf32> to vector<16x1xf32>
      %123 = vector.broadcast %122 : vector<16x1xf32> to vector<16x64xf32>
      %124 = arith.mulf %123, %120 : vector<16x64xf32>
      %cst_23 = arith.constant dense<0.000000e+00> : vector<64xf32>
      %125 = vector.multi_reduction <add>, %124, %cst_23 [0] : vector<16x64xf32> to vector<64xf32>
      %126 = vector.shape_cast %125 : vector<64xf32> to vector<1x64xf32>
      %127 = vector.extract_strided_slice %37 {offsets = [5, 0, 0], sizes = [1, 16, 64], strides = [1, 1, 1]} : vector<8x16x64xf32> to vector<1x16x64xf32>
      %128 = vector.shape_cast %127 : vector<1x16x64xf32> to vector<16x64xf32>
      %129 = arith.mulf %128, %120 : vector<16x64xf32>
      %130 = vector.extract_strided_slice %39 {offsets = [5, 0, 0], sizes = [1, 1, 64], strides = [1, 1, 1]} : vector<8x1x64xf32> to vector<1x1x64xf32>
      %131 = vector.shape_cast %130 : vector<1x1x64xf32> to vector<1x64xf32>
      %132 = vector.extract_strided_slice %40 {offsets = [5, 0, 0], sizes = [1, 16, 1], strides = [1, 1, 1]} : vector<8x16x1xf32> to vector<1x16x1xf32>
      %133 = vector.shape_cast %132 : vector<1x16x1xf32> to vector<16x1xf32>
      %134 = vector.broadcast %131 : vector<1x64xf32> to vector<16x64xf32>
      %135 = vector.broadcast %133 : vector<16x1xf32> to vector<16x64xf32>
      %136 = arith.mulf %134, %135 : vector<16x64xf32>
      %137 = arith.addf %129, %136 : vector<16x64xf32>
      %138 = vector.extract_strided_slice %41 {offsets = [5, 0, 0], sizes = [1, 16, 1], strides = [1, 1, 1]} : vector<8x16x1xf32> to vector<1x16x1xf32>
      %139 = vector.shape_cast %138 : vector<1x16x1xf32> to vector<16x1xf32>
      %140 = vector.broadcast %139 : vector<16x1xf32> to vector<16x64xf32>
      %141 = arith.mulf %140, %137 : vector<16x64xf32>
      %cst_24 = arith.constant dense<0.000000e+00> : vector<64xf32>
      %142 = vector.multi_reduction <add>, %141, %cst_24 [0] : vector<16x64xf32> to vector<64xf32>
      %143 = vector.shape_cast %142 : vector<64xf32> to vector<1x64xf32>
      %144 = vector.extract_strided_slice %37 {offsets = [6, 0, 0], sizes = [1, 16, 64], strides = [1, 1, 1]} : vector<8x16x64xf32> to vector<1x16x64xf32>
      %145 = vector.shape_cast %144 : vector<1x16x64xf32> to vector<16x64xf32>
      %146 = arith.mulf %145, %137 : vector<16x64xf32>
      %147 = vector.extract_strided_slice %39 {offsets = [6, 0, 0], sizes = [1, 1, 64], strides = [1, 1, 1]} : vector<8x1x64xf32> to vector<1x1x64xf32>
      %148 = vector.shape_cast %147 : vector<1x1x64xf32> to vector<1x64xf32>
      %149 = vector.extract_strided_slice %40 {offsets = [6, 0, 0], sizes = [1, 16, 1], strides = [1, 1, 1]} : vector<8x16x1xf32> to vector<1x16x1xf32>
      %150 = vector.shape_cast %149 : vector<1x16x1xf32> to vector<16x1xf32>
      %151 = vector.broadcast %148 : vector<1x64xf32> to vector<16x64xf32>
      %152 = vector.broadcast %150 : vector<16x1xf32> to vector<16x64xf32>
      %153 = arith.mulf %151, %152 : vector<16x64xf32>
      %154 = arith.addf %146, %153 : vector<16x64xf32>
      %155 = vector.extract_strided_slice %41 {offsets = [6, 0, 0], sizes = [1, 16, 1], strides = [1, 1, 1]} : vector<8x16x1xf32> to vector<1x16x1xf32>
      %156 = vector.shape_cast %155 : vector<1x16x1xf32> to vector<16x1xf32>
      %157 = vector.broadcast %156 : vector<16x1xf32> to vector<16x64xf32>
      %158 = arith.mulf %157, %154 : vector<16x64xf32>
      %cst_25 = arith.constant dense<0.000000e+00> : vector<64xf32>
      %159 = vector.multi_reduction <add>, %158, %cst_25 [0] : vector<16x64xf32> to vector<64xf32>
      %160 = vector.shape_cast %159 : vector<64xf32> to vector<1x64xf32>
      %161 = vector.extract_strided_slice %37 {offsets = [7, 0, 0], sizes = [1, 16, 64], strides = [1, 1, 1]} : vector<8x16x64xf32> to vector<1x16x64xf32>
      %162 = vector.shape_cast %161 : vector<1x16x64xf32> to vector<16x64xf32>
      %163 = arith.mulf %162, %154 : vector<16x64xf32>
      %164 = vector.extract_strided_slice %39 {offsets = [7, 0, 0], sizes = [1, 1, 64], strides = [1, 1, 1]} : vector<8x1x64xf32> to vector<1x1x64xf32>
      %165 = vector.shape_cast %164 : vector<1x1x64xf32> to vector<1x64xf32>
      %166 = vector.extract_strided_slice %40 {offsets = [7, 0, 0], sizes = [1, 16, 1], strides = [1, 1, 1]} : vector<8x16x1xf32> to vector<1x16x1xf32>
      %167 = vector.shape_cast %166 : vector<1x16x1xf32> to vector<16x1xf32>
      %168 = vector.broadcast %165 : vector<1x64xf32> to vector<16x64xf32>
      %169 = vector.broadcast %167 : vector<16x1xf32> to vector<16x64xf32>
      %170 = arith.mulf %168, %169 : vector<16x64xf32>
      %171 = arith.addf %163, %170 : vector<16x64xf32>
      %172 = vector.extract_strided_slice %41 {offsets = [7, 0, 0], sizes = [1, 16, 1], strides = [1, 1, 1]} : vector<8x16x1xf32> to vector<1x16x1xf32>
      %173 = vector.shape_cast %172 : vector<1x16x1xf32> to vector<16x1xf32>
      %174 = vector.broadcast %173 : vector<16x1xf32> to vector<16x64xf32>
      %175 = arith.mulf %174, %171 : vector<16x64xf32>
      %cst_26 = arith.constant dense<0.000000e+00> : vector<64xf32>
      %176 = vector.multi_reduction <add>, %175, %cst_26 [0] : vector<16x64xf32> to vector<64xf32>
      %177 = vector.shape_cast %176 : vector<64xf32> to vector<1x64xf32>
      %178 = tpu.concatenate %58, %75, %92, %109, %126, %143, %160, %177 in 0 : vector<1x64xf32>, vector<1x64xf32>, vector<1x64xf32>, vector<1x64xf32>, vector<1x64xf32>, vector<1x64xf32>, vector<1x64xf32>, vector<1x64xf32> -> vector<8x64xf32>
      %179 = vector.broadcast %1 : vector<1x64xf32> to vector<8x64xf32>
      %180 = arith.mulf %11, %179 : vector<8x64xf32>
      %181 = arith.addf %178, %180 : vector<8x64xf32>
      %182 = arith.truncf %181 : vector<8x64xf32> to vector<8x64xbf16>
      %c0_27 = arith.constant 0 : index
      %c0_28 = arith.constant 0 : index
      %183 = arith.index_cast %7 : i32 to index
      %c0_29 = arith.constant 0 : index
      %184 = vector.load %arg10[%c0_27, %c0_28, %183, %c0_29] : memref<1x1x64x64xbf16, #tpu.memory_space<vmem>>, vector<1x1x8x64xbf16>
      %185 = vector.shape_cast %184 : vector<1x1x8x64xbf16> to vector<8x64xbf16>
      %186 = vector.shape_cast %182 : vector<8x64xbf16> to vector<1x1x8x64xbf16>
      tpu.vector_store %arg10[%c0_27, %c0_28, %183, %c0_29], %186 {strides = array<i32>} : memref<1x1x64x64xbf16, #tpu.memory_space<vmem>>, vector<1x1x8x64xbf16>,
      scf.yield %171 : vector<16x64xf32>
    }
    %c8_i32_5 = arith.constant 8 : i32
    return
  }
  func.func @transform_0(%arg0: i32, %arg1: i32) -> (i32, i32, i32, i32) {
    %c0_i32 = arith.constant 0 : i32
    %c0_i32_0 = arith.constant 0 : i32
    %c0_i32_1 = arith.constant 0 : i32
    return %arg1, %arg0, %c0_i32, %c0_i32_0 : i32, i32, i32, i32
  }
  func.func @transform_1(%arg0: i32, %arg1: i32) -> (i32, i32, i32) {
    %c0_i32 = arith.constant 0 : i32
    %c0_i32_0 = arith.constant 0 : i32
    %c0_i32_1 = arith.constant 0 : i32
    return %arg0, %c0_i32, %c0_i32_0 : i32, i32, i32
  }
  func.func @transform_2(%arg0: i32, %arg1: i32) -> (i32, i32, i32) {
    %c0_i32 = arith.constant 0 : i32
    %c0_i32_0 = arith.constant 0 : i32
    %c0_i32_1 = arith.constant 0 : i32
    return %arg0, %c0_i32, %c0_i32_0 : i32, i32, i32
  }
  func.func @transform_3(%arg0: i32, %arg1: i32) -> (i32, i32, i32) {
    %c0_i32 = arith.constant 0 : i32
    %c0_i32_0 = arith.constant 0 : i32
    %c0_i32_1 = arith.constant 0 : i32
    return %arg0, %c0_i32, %c0_i32_0 : i32, i32, i32
  }
  func.func @transform_4(%arg0: i32, %arg1: i32) -> (i32, i32, i32) {
    %c0_i32 = arith.constant 0 : i32
    %c0_i32_0 = arith.constant 0 : i32
    %c0_i32_1 = arith.constant 0 : i32
    return %arg1, %c0_i32, %c0_i32_0 : i32, i32, i32
  }
  func.func @transform_5(%arg0: i32, %arg1: i32) -> (i32, i32) {
    %c0_i32 = arith.constant 0 : i32
    %c0_i32_0 = arith.constant 0 : i32
    %c0_i32_1 = arith.constant 0 : i32
    return %c0_i32, %c0_i32_0 : i32, i32
  }
  func.func @transform_6(%arg0: i32, %arg1: i32) -> (i32, i32) {
    %c0_i32 = arith.constant 0 : i32
    %c0_i32_0 = arith.constant 0 : i32
    %c0_i32_1 = arith.constant 0 : i32
    return %c0_i32, %c0_i32_0 : i32, i32
  }
  func.func @transform_7(%arg0: i32, %arg1: i32) -> (i32, i32) {
    %c0_i32 = arith.constant 0 : i32
    %c0_i32_0 = arith.constant 0 : i32
    %c0_i32_1 = arith.constant 0 : i32
    return %c0_i32, %c0_i32_0 : i32, i32
  }
  func.func @transform_8(%arg0: i32, %arg1: i32) -> (i32, i32, i32, i32) {
    %c0_i32 = arith.constant 0 : i32
    %c0_i32_0 = arith.constant 0 : i32
    %c0_i32_1 = arith.constant 0 : i32
    return %arg1, %arg0, %c0_i32, %c0_i32_0 : i32, i32, i32, i32
  }
}

module attributes {stable_mosaic.version = 11 : i64} {
  func.func @kernel(%arg0: i32, %arg1: memref<128x32xbf16, #tpu.memory_space<vmem>>, %arg2: memref<128x32xbf16, #tpu.memory_space<vmem>>, %arg3: memref<32x16xbf16, #tpu.memory_space<vmem>>, %arg4: memref<1x16xf32, #tpu.memory_space<vmem>>, %arg5: memref<32x16xbf16, #tpu.memory_space<vmem>>, %arg6: memref<1x16xf32, #tpu.memory_space<vmem>>, %arg7: memref<16x32xbf16, #tpu.memory_space<vmem>>, %arg8: memref<1x32xf32, #tpu.memory_space<vmem>>, %arg9: memref<128x32xbf16, #tpu.memory_space<vmem>>) attributes {dimension_semantics = [#tpu.dimension_semantics<parallel>], iteration_bounds = array<i64: 1>, scalar_prefetch = 0 : i64, scratch_operands = 0 : i64, tpu.core_type = #tpu.core_type<tc>, window_params = [{transform_indices = @transform_0, window_bounds = array<i64: 128, 32>}, {transform_indices = @transform_1, window_bounds = array<i64: 128, 32>}, {pipeline_mode = #tpu.pipeline_mode<synchronous>, transform_indices = @transform_2, window_bounds = array<i64: 32, 16>}, {pipeline_mode = #tpu.pipeline_mode<synchronous>, transform_indices = @transform_3, window_bounds = array<i64: 1, 16>}, {pipeline_mode = #tpu.pipeline_mode<synchronous>, transform_indices = @transform_4, window_bounds = array<i64: 32, 16>}, {pipeline_mode = #tpu.pipeline_mode<synchronous>, transform_indices = @transform_5, window_bounds = array<i64: 1, 16>}, {pipeline_mode = #tpu.pipeline_mode<synchronous>, transform_indices = @transform_6, window_bounds = array<i64: 16, 32>}, {pipeline_mode = #tpu.pipeline_mode<synchronous>, transform_indices = @transform_7, window_bounds = array<i64: 1, 32>}, {transform_indices = @transform_8, window_bounds = array<i64: 128, 32>}]} {
    %c0 = arith.constant 0 : index
    %c0_0 = arith.constant 0 : index
    %0 = vector.load %arg1[%c0, %c0_0] : memref<128x32xbf16, #tpu.memory_space<vmem>>, vector<128x32xbf16>
    %c0_1 = arith.constant 0 : index
    %c0_2 = arith.constant 0 : index
    %1 = vector.load %arg2[%c0_1, %c0_2] : memref<128x32xbf16, #tpu.memory_space<vmem>>, vector<128x32xbf16>
    %c0_3 = arith.constant 0 : index
    %c0_4 = arith.constant 0 : index
    %2 = vector.load %arg3[%c0_3, %c0_4] : memref<32x16xbf16, #tpu.memory_space<vmem>>, vector<32x16xbf16>
    %cst = arith.constant dense<0.000000e+00> : vector<128x16xf32>
    %3 = tpu.matmul %0, %2, %cst {dimension_numbers = #tpu.dot_dimension_numbers<[1], [0], [0], [1], [0, 0, 1, 1], [], []>} : vector<128x32xbf16>, vector<32x16xbf16>, vector<128x16xf32> -> vector<128x16xf32>
    %c0_5 = arith.constant 0 : index
    %c0_6 = arith.constant 0 : index
    %4 = vector.load %arg4[%c0_5, %c0_6] : memref<1x16xf32, #tpu.memory_space<vmem>>, vector<1x16xf32>
    %5 = vector.broadcast %4 : vector<1x16xf32> to vector<128x16xf32>
    %6 = arith.addf %3, %5 : vector<128x16xf32>
    %c0_7 = arith.constant 0 : index
    %c0_8 = arith.constant 0 : index
    %7 = vector.load %arg5[%c0_7, %c0_8] : memref<32x16xbf16, #tpu.memory_space<vmem>>, vector<32x16xbf16>
    %cst_9 = arith.constant dense<0.000000e+00> : vector<128x16xf32>
    %8 = tpu.matmul %1, %7, %cst_9 {dimension_numbers = #tpu.dot_dimension_numbers<[1], [0], [0], [1], [0, 0, 1, 1], [], []>} : vector<128x32xbf16>, vector<32x16xbf16>, vector<128x16xf32> -> vector<128x16xf32>
    %9 = arith.addf %6, %8 : vector<128x16xf32>
    %c0_10 = arith.constant 0 : index
    %c0_11 = arith.constant 0 : index
    %10 = vector.load %arg6[%c0_10, %c0_11] : memref<1x16xf32, #tpu.memory_space<vmem>>, vector<1x16xf32>
    %11 = vector.broadcast %10 : vector<1x16xf32> to vector<128x16xf32>
    %12 = arith.addf %9, %11 : vector<128x16xf32>
    %cst_12 = arith.constant 0.000000e+00 : f32
    %13 = vector.broadcast %cst_12 : f32 to vector<128x16xf32>
    %14 = arith.maximumf %12, %13 : vector<128x16xf32>
    %15 = arith.truncf %14 : vector<128x16xf32> to vector<128x16xbf16>
    %c0_13 = arith.constant 0 : index
    %c0_14 = arith.constant 0 : index
    %16 = vector.load %arg7[%c0_13, %c0_14] : memref<16x32xbf16, #tpu.memory_space<vmem>>, vector<16x32xbf16>
    %cst_15 = arith.constant dense<0.000000e+00> : vector<128x32xf32>
    %17 = tpu.matmul %15, %16, %cst_15 {dimension_numbers = #tpu.dot_dimension_numbers<[1], [0], [0], [1], [0, 0, 1, 1], [], []>} : vector<128x16xbf16>, vector<16x32xbf16>, vector<128x32xf32> -> vector<128x32xf32>
    %c0_16 = arith.constant 0 : index
    %c0_17 = arith.constant 0 : index
    %18 = vector.load %arg8[%c0_16, %c0_17] : memref<1x32xf32, #tpu.memory_space<vmem>>, vector<1x32xf32>
    %19 = vector.broadcast %18 : vector<1x32xf32> to vector<128x32xf32>
    %20 = arith.addf %17, %19 : vector<128x32xf32>
    %21 = arith.negf %20 : vector<128x32xf32>
    %22 = math.exp %21 : vector<128x32xf32>
    %cst_18 = arith.constant 1.000000e+00 : f32
    %23 = vector.broadcast %cst_18 : f32 to vector<128x32xf32>
    %24 = arith.addf %23, %22 : vector<128x32xf32>
    %25 = arith.divf %23, %24 : vector<128x32xf32>
    %26 = arith.extf %0 : vector<128x32xbf16> to vector<128x32xf32>
    %27 = arith.mulf %26, %25 : vector<128x32xf32>
    %28 = arith.extf %1 : vector<128x32xbf16> to vector<128x32xf32>
    %cst_19 = arith.constant 1.000000e+00 : f32
    %29 = vector.broadcast %cst_19 : f32 to vector<128x32xf32>
    %30 = arith.subf %29, %25 : vector<128x32xf32>
    %31 = arith.mulf %28, %30 : vector<128x32xf32>
    %32 = arith.addf %27, %31 : vector<128x32xf32>
    %33 = arith.truncf %32 : vector<128x32xf32> to vector<128x32xbf16>
    %c0_20 = arith.constant 0 : index
    %c0_21 = arith.constant 0 : index
    %34 = vector.load %arg9[%c0_20, %c0_21] : memref<128x32xbf16, #tpu.memory_space<vmem>>, vector<128x32xbf16>
    tpu.vector_store %arg9[%c0_20, %c0_21], %33 {strides = array<i32>} : memref<128x32xbf16, #tpu.memory_space<vmem>>, vector<128x32xbf16>,
    return
  }
  func.func @transform_0(%arg0: i32) -> (i32, i32) {
    %c0_i32 = arith.constant 0 : i32
    %c0_i32_0 = arith.constant 0 : i32
    return %arg0, %c0_i32 : i32, i32
  }
  func.func @transform_1(%arg0: i32) -> (i32, i32) {
    %c0_i32 = arith.constant 0 : i32
    %c0_i32_0 = arith.constant 0 : i32
    return %arg0, %c0_i32 : i32, i32
  }
  func.func @transform_2(%arg0: i32) -> (i32, i32) {
    %c0_i32 = arith.constant 0 : i32
    %c0_i32_0 = arith.constant 0 : i32
    %c0_i32_1 = arith.constant 0 : i32
    return %c0_i32, %c0_i32_0 : i32, i32
  }
  func.func @transform_3(%arg0: i32) -> (i32, i32) {
    %c0_i32 = arith.constant 0 : i32
    %c0_i32_0 = arith.constant 0 : i32
    %c0_i32_1 = arith.constant 0 : i32
    return %c0_i32, %c0_i32_0 : i32, i32
  }
  func.func @transform_4(%arg0: i32) -> (i32, i32) {
    %c0_i32 = arith.constant 0 : i32
    %c0_i32_0 = arith.constant 0 : i32
    %c0_i32_1 = arith.constant 0 : i32
    return %c0_i32, %c0_i32_0 : i32, i32
  }
  func.func @transform_5(%arg0: i32) -> (i32, i32) {
    %c0_i32 = arith.constant 0 : i32
    %c0_i32_0 = arith.constant 0 : i32
    %c0_i32_1 = arith.constant 0 : i32
    return %c0_i32, %c0_i32_0 : i32, i32
  }
  func.func @transform_6(%arg0: i32) -> (i32, i32) {
    %c0_i32 = arith.constant 0 : i32
    %c0_i32_0 = arith.constant 0 : i32
    %c0_i32_1 = arith.constant 0 : i32
    return %c0_i32, %c0_i32_0 : i32, i32
  }
  func.func @transform_7(%arg0: i32) -> (i32, i32) {
    %c0_i32 = arith.constant 0 : i32
    %c0_i32_0 = arith.constant 0 : i32
    %c0_i32_1 = arith.constant 0 : i32
    return %c0_i32, %c0_i32_0 : i32, i32
  }
  func.func @transform_8(%arg0: i32) -> (i32, i32) {
    %c0_i32 = arith.constant 0 : i32
    %c0_i32_0 = arith.constant 0 : i32
    return %arg0, %c0_i32 : i32, i32
  }
}

module attributes {stable_mosaic.version = 11 : i64} {
  func.func @kernel(%arg0: i32, %arg1: memref<128x64xbf16, #tpu.memory_space<vmem>>, %arg2: memref<64x32xbf16, #tpu.memory_space<vmem>>, %arg3: memref<1x32xf32, #tpu.memory_space<vmem>>, %arg4: memref<128x64xbf16, #tpu.memory_space<vmem>>, %arg5: memref<128x32xbf16, #tpu.memory_space<vmem>>) attributes {dimension_semantics = [#tpu.dimension_semantics<parallel>], iteration_bounds = array<i64: 1>, scalar_prefetch = 0 : i64, scratch_operands = 0 : i64, tpu.core_type = #tpu.core_type<tc>, window_params = [{transform_indices = @transform_0, window_bounds = array<i64: 128, 64>}, {pipeline_mode = #tpu.pipeline_mode<synchronous>, transform_indices = @transform_1, window_bounds = array<i64: 64, 32>}, {pipeline_mode = #tpu.pipeline_mode<synchronous>, transform_indices = @transform_2, window_bounds = array<i64: 1, 32>}, {transform_indices = @transform_3, window_bounds = array<i64: 128, 64>}, {transform_indices = @transform_4, window_bounds = array<i64: 128, 32>}]} {
    %c0 = arith.constant 0 : index
    %c0_0 = arith.constant 0 : index
    %0 = vector.load %arg1[%c0, %c0_0] : memref<128x64xbf16, #tpu.memory_space<vmem>>, vector<128x64xbf16>
    %c0_1 = arith.constant 0 : index
    %c0_2 = arith.constant 0 : index
    %1 = vector.load %arg4[%c0_1, %c0_2] : memref<128x64xbf16, #tpu.memory_space<vmem>>, vector<128x64xbf16>
    %2 = arith.extf %1 : vector<128x64xbf16> to vector<128x64xf32>
    %3 = arith.extf %0 : vector<128x64xbf16> to vector<128x64xf32>
    %4 = arith.mulf %3, %2 : vector<128x64xf32>
    %5 = arith.negf %2 : vector<128x64xf32>
    %6 = math.exp %5 : vector<128x64xf32>
    %cst = arith.constant 1.000000e+00 : f32
    %7 = vector.broadcast %cst : f32 to vector<128x64xf32>
    %8 = arith.addf %7, %6 : vector<128x64xf32>
    %9 = arith.divf %7, %8 : vector<128x64xf32>
    %10 = arith.mulf %4, %9 : vector<128x64xf32>
    %11 = arith.truncf %10 : vector<128x64xf32> to vector<128x64xbf16>
    %c0_3 = arith.constant 0 : index
    %c0_4 = arith.constant 0 : index
    %12 = vector.load %arg2[%c0_3, %c0_4] : memref<64x32xbf16, #tpu.memory_space<vmem>>, vector<64x32xbf16>
    %cst_5 = arith.constant dense<0.000000e+00> : vector<128x32xf32>
    %13 = tpu.matmul %11, %12, %cst_5 {dimension_numbers = #tpu.dot_dimension_numbers<[1], [0], [0], [1], [0, 0, 1, 1], [], []>} : vector<128x64xbf16>, vector<64x32xbf16>, vector<128x32xf32> -> vector<128x32xf32>
    %c0_6 = arith.constant 0 : index
    %c0_7 = arith.constant 0 : index
    %14 = vector.load %arg3[%c0_6, %c0_7] : memref<1x32xf32, #tpu.memory_space<vmem>>, vector<1x32xf32>
    %15 = vector.broadcast %14 : vector<1x32xf32> to vector<128x32xf32>
    %16 = arith.addf %13, %15 : vector<128x32xf32>
    %17 = arith.truncf %16 : vector<128x32xf32> to vector<128x32xbf16>
    %c0_8 = arith.constant 0 : index
    %c0_9 = arith.constant 0 : index
    %18 = vector.load %arg5[%c0_8, %c0_9] : memref<128x32xbf16, #tpu.memory_space<vmem>>, vector<128x32xbf16>
    tpu.vector_store %arg5[%c0_8, %c0_9], %17 {strides = array<i32>} : memref<128x32xbf16, #tpu.memory_space<vmem>>, vector<128x32xbf16>,
    return
  }
  func.func @transform_0(%arg0: i32) -> (i32, i32) {
    %c0_i32 = arith.constant 0 : i32
    %c0_i32_0 = arith.constant 0 : i32
    return %arg0, %c0_i32 : i32, i32
  }
  func.func @transform_1(%arg0: i32) -> (i32, i32) {
    %c0_i32 = arith.constant 0 : i32
    %c0_i32_0 = arith.constant 0 : i32
    %c0_i32_1 = arith.constant 0 : i32
    return %c0_i32, %c0_i32_0 : i32, i32
  }
  func.func @transform_2(%arg0: i32) -> (i32, i32) {
    %c0_i32 = arith.constant 0 : i32
    %c0_i32_0 = arith.constant 0 : i32
    %c0_i32_1 = arith.constant 0 : i32
    return %c0_i32, %c0_i32_0 : i32, i32
  }
  func.func @transform_3(%arg0: i32) -> (i32, i32) {
    %c0_i32 = arith.constant 0 : i32
    %c0_i32_0 = arith.constant 0 : i32
    return %arg0, %c0_i32 : i32, i32
  }
  func.func @transform_4(%arg0: i32) -> (i32, i32) {
    %c0_i32 = arith.constant 0 : i32
    %c0_i32_0 = arith.constant 0 : i32
    return %arg0, %c0_i32 : i32, i32
  }
}

module attributes {stable_mosaic.version = 11 : i64} {
  func.func @kernel(%arg0: i32, %arg1: memref<1x64x32xbf16, #tpu.memory_space<vmem>>, %arg2: memref<32x16xf32, #tpu.memory_space<vmem>>, %arg3: memref<16x32xf32, #tpu.memory_space<vmem>>, %arg4: memref<1x32xf32, #tpu.memory_space<vmem>>, %arg5: memref<1x32xf32, #tpu.memory_space<vmem>>, %arg6: memref<1x64x32xbf16, #tpu.memory_space<vmem>>, %arg7: memref<1x64x32xbf16, #tpu.memory_space<vmem>>) attributes {dimension_semantics = [#tpu.dimension_semantics<parallel>], iteration_bounds = array<i64: 2>, scalar_prefetch = 0 : i64, scratch_operands = 0 : i64, tpu.core_type = #tpu.core_type<tc>, window_params = [{transform_indices = @transform_0, window_bounds = array<i64: 1, 64, 32>}, {pipeline_mode = #tpu.pipeline_mode<synchronous>, transform_indices = @transform_1, window_bounds = array<i64: 32, 16>}, {pipeline_mode = #tpu.pipeline_mode<synchronous>, transform_indices = @transform_2, window_bounds = array<i64: 16, 32>}, {pipeline_mode = #tpu.pipeline_mode<synchronous>, transform_indices = @transform_3, window_bounds = array<i64: 1, 32>}, {pipeline_mode = #tpu.pipeline_mode<synchronous>, transform_indices = @transform_4, window_bounds = array<i64: 1, 32>}, {transform_indices = @transform_5, window_bounds = array<i64: 1, 64, 32>}, {transform_indices = @transform_6, window_bounds = array<i64: 1, 64, 32>}]} {
    %c0 = arith.constant 0 : index
    %c0_0 = arith.constant 0 : index
    %0 = vector.load %arg2[%c0, %c0_0] : memref<32x16xf32, #tpu.memory_space<vmem>>, vector<32x16xf32>
    %c0_1 = arith.constant 0 : index
    %c0_2 = arith.constant 0 : index
    %1 = vector.load %arg3[%c0_1, %c0_2] : memref<16x32xf32, #tpu.memory_space<vmem>>, vector<16x32xf32>
    %c0_3 = arith.constant 0 : index
    %c0_4 = arith.constant 0 : index
    %2 = vector.load %arg4[%c0_3, %c0_4] : memref<1x32xf32, #tpu.memory_space<vmem>>, vector<1x32xf32>
    %c0_5 = arith.constant 0 : index
    %c0_6 = arith.constant 0 : index
    %3 = vector.load %arg5[%c0_5, %c0_6] : memref<1x32xf32, #tpu.memory_space<vmem>>, vector<1x32xf32>
    %c0_7 = arith.constant 0 : index
    %c0_8 = arith.constant 0 : index
    %c0_9 = arith.constant 0 : index
    %4 = vector.load %arg1[%c0_7, %c0_8, %c0_9] : memref<1x64x32xbf16, #tpu.memory_space<vmem>>, vector<1x64x32xbf16>
    %5 = vector.shape_cast %4 : vector<1x64x32xbf16> to vector<64x32xbf16>
    %6 = arith.extf %5 : vector<64x32xbf16> to vector<64x32xf32>
    %cst = arith.constant dense<0.000000e+00> : vector<32xf32>
    %7 = vector.multi_reduction <add>, %6, %cst [0] : vector<64x32xf32> to vector<32xf32>
    %8 = vector.shape_cast %7 : vector<32xf32> to vector<1x32xf32>
    %cst_10 = arith.constant dense<0.000000e+00> : vector<1x16xf32>
    %9 = tpu.matmul %8, %0, %cst_10 {dimension_numbers = #tpu.dot_dimension_numbers<[1], [0], [0], [1], [0, 0, 1, 1], [], []>} : vector<1x32xf32>, vector<32x16xf32>, vector<1x16xf32> -> vector<1x16xf32>
    %cst_11 = arith.constant 7.812500e-03 : f32
    %10 = vector.broadcast %cst_11 : f32 to vector<1x16xf32>
    %11 = arith.mulf %9, %10 : vector<1x16xf32>
    %cst_12 = arith.constant dense<0.000000e+00> : vector<1x32xf32>
    %12 = tpu.matmul %11, %1, %cst_12 {dimension_numbers = #tpu.dot_dimension_numbers<[1], [0], [0], [1], [0, 0, 1, 1], [], []>} : vector<1x16xf32>, vector<16x32xf32>, vector<1x32xf32> -> vector<1x32xf32>
    %13 = vector.broadcast %12 : vector<1x32xf32> to vector<64x32xf32>
    %14 = arith.subf %6, %13 : vector<64x32xf32>
    %15 = arith.mulf %14, %14 : vector<64x32xf32>
    %cst_13 = arith.constant dense<0.000000e+00> : vector<32xf32>
    %16 = vector.multi_reduction <add>, %15, %cst_13 [0] : vector<64x32xf32> to vector<32xf32>
    %17 = vector.shape_cast %16 : vector<32xf32> to vector<1x32xf32>
    %cst_14 = arith.constant dense<0.000000e+00> : vector<1x16xf32>
    %18 = tpu.matmul %17, %0, %cst_14 {dimension_numbers = #tpu.dot_dimension_numbers<[1], [0], [0], [1], [0, 0, 1, 1], [], []>} : vector<1x32xf32>, vector<32x16xf32>, vector<1x16xf32> -> vector<1x16xf32>
    %cst_15 = arith.constant 7.812500e-03 : f32
    %19 = vector.broadcast %cst_15 : f32 to vector<1x16xf32>
    %20 = arith.mulf %18, %19 : vector<1x16xf32>
    %cst_16 = arith.constant dense<0.000000e+00> : vector<1x32xf32>
    %21 = tpu.matmul %20, %1, %cst_16 {dimension_numbers = #tpu.dot_dimension_numbers<[1], [0], [0], [1], [0, 0, 1, 1], [], []>} : vector<1x16xf32>, vector<16x32xf32>, vector<1x32xf32> -> vector<1x32xf32>
    %cst_17 = arith.constant 9.99999974E-6 : f32
    %22 = vector.broadcast %cst_17 : f32 to vector<1x32xf32>
    %23 = arith.addf %21, %22 : vector<1x32xf32>
    %24 = math.rsqrt %23 : vector<1x32xf32>
    %25 = vector.broadcast %24 : vector<1x32xf32> to vector<64x32xf32>
    %26 = arith.mulf %14, %25 : vector<64x32xf32>
    %27 = vector.broadcast %2 : vector<1x32xf32> to vector<64x32xf32>
    %28 = arith.mulf %26, %27 : vector<64x32xf32>
    %29 = vector.broadcast %3 : vector<1x32xf32> to vector<64x32xf32>
    %30 = arith.addf %28, %29 : vector<64x32xf32>
    %31 = arith.truncf %30 : vector<64x32xf32> to vector<64x32xbf16>
    %c0_18 = arith.constant 0 : index
    %c0_19 = arith.constant 0 : index
    %c0_20 = arith.constant 0 : index
    %32 = vector.load %arg6[%c0_18, %c0_19, %c0_20] : memref<1x64x32xbf16, #tpu.memory_space<vmem>>, vector<1x64x32xbf16>
    %33 = vector.shape_cast %32 : vector<1x64x32xbf16> to vector<64x32xbf16>
    %34 = vector.shape_cast %31 : vector<64x32xbf16> to vector<1x64x32xbf16>
    tpu.vector_store %arg6[%c0_18, %c0_19, %c0_20], %34 {strides = array<i32>} : memref<1x64x32xbf16, #tpu.memory_space<vmem>>, vector<1x64x32xbf16>,
    %cst_21 = arith.constant dense<0.000000e+00> : vector<32xf32>
    %35 = vector.multi_reduction <add>, %30, %cst_21 [0] : vector<64x32xf32> to vector<32xf32>
    %36 = vector.shape_cast %35 : vector<32xf32> to vector<1x32xf32>
    %cst_22 = arith.constant dense<0.000000e+00> : vector<1x16xf32>
    %37 = tpu.matmul %36, %0, %cst_22 {dimension_numbers = #tpu.dot_dimension_numbers<[1], [0], [0], [1], [0, 0, 1, 1], [], []>} : vector<1x32xf32>, vector<32x16xf32>, vector<1x16xf32> -> vector<1x16xf32>
    %cst_23 = arith.constant 7.812500e-03 : f32
    %38 = vector.broadcast %cst_23 : f32 to vector<1x16xf32>
    %39 = arith.mulf %37, %38 : vector<1x16xf32>
    %cst_24 = arith.constant dense<0.000000e+00> : vector<1x32xf32>
    %40 = tpu.matmul %39, %1, %cst_24 {dimension_numbers = #tpu.dot_dimension_numbers<[1], [0], [0], [1], [0, 0, 1, 1], [], []>} : vector<1x16xf32>, vector<16x32xf32>, vector<1x32xf32> -> vector<1x32xf32>
    %41 = vector.broadcast %40 : vector<1x32xf32> to vector<64x32xf32>
    %42 = arith.subf %30, %41 : vector<64x32xf32>
    %43 = arith.mulf %42, %42 : vector<64x32xf32>
    %cst_25 = arith.constant dense<0.000000e+00> : vector<32xf32>
    %44 = vector.multi_reduction <add>, %43, %cst_25 [0] : vector<64x32xf32> to vector<32xf32>
    %45 = vector.shape_cast %44 : vector<32xf32> to vector<1x32xf32>
    %cst_26 = arith.constant dense<0.000000e+00> : vector<1x16xf32>
    %46 = tpu.matmul %45, %0, %cst_26 {dimension_numbers = #tpu.dot_dimension_numbers<[1], [0], [0], [1], [0, 0, 1, 1], [], []>} : vector<1x32xf32>, vector<32x16xf32>, vector<1x16xf32> -> vector<1x16xf32>
    %cst_27 = arith.constant 7.812500e-03 : f32
    %47 = vector.broadcast %cst_27 : f32 to vector<1x16xf32>
    %48 = arith.mulf %46, %47 : vector<1x16xf32>
    %cst_28 = arith.constant dense<0.000000e+00> : vector<1x32xf32>
    %49 = tpu.matmul %48, %1, %cst_28 {dimension_numbers = #tpu.dot_dimension_numbers<[1], [0], [0], [1], [0, 0, 1, 1], [], []>} : vector<1x16xf32>, vector<16x32xf32>, vector<1x32xf32> -> vector<1x32xf32>
    %cst_29 = arith.constant 9.99999974E-6 : f32
    %50 = vector.broadcast %cst_29 : f32 to vector<1x32xf32>
    %51 = arith.addf %49, %50 : vector<1x32xf32>
    %52 = math.rsqrt %51 : vector<1x32xf32>
    %53 = vector.broadcast %52 : vector<1x32xf32> to vector<64x32xf32>
    %54 = arith.mulf %42, %53 : vector<64x32xf32>
    %55 = vector.broadcast %2 : vector<1x32xf32> to vector<64x32xf32>
    %56 = arith.mulf %54, %55 : vector<64x32xf32>
    %57 = vector.broadcast %3 : vector<1x32xf32> to vector<64x32xf32>
    %58 = arith.addf %56, %57 : vector<64x32xf32>
    %59 = arith.truncf %58 : vector<64x32xf32> to vector<64x32xbf16>
    %c0_30 = arith.constant 0 : index
    %c0_31 = arith.constant 0 : index
    %c0_32 = arith.constant 0 : index
    %60 = vector.load %arg7[%c0_30, %c0_31, %c0_32] : memref<1x64x32xbf16, #tpu.memory_space<vmem>>, vector<1x64x32xbf16>
    %61 = vector.shape_cast %60 : vector<1x64x32xbf16> to vector<64x32xbf16>
    %62 = vector.shape_cast %59 : vector<64x32xbf16> to vector<1x64x32xbf16>
    tpu.vector_store %arg7[%c0_30, %c0_31, %c0_32], %62 {strides = array<i32>} : memref<1x64x32xbf16, #tpu.memory_space<vmem>>, vector<1x64x32xbf16>,
    return
  }
  func.func @transform_0(%arg0: i32) -> (i32, i32, i32) {
    %c0_i32 = arith.constant 0 : i32
    %c0_i32_0 = arith.constant 0 : i32
    %c0_i32_1 = arith.constant 0 : i32
    return %arg0, %c0_i32, %c0_i32_0 : i32, i32, i32
  }
  func.func @transform_1(%arg0: i32) -> (i32, i32) {
    %c0_i32 = arith.constant 0 : i32
    %c0_i32_0 = arith.constant 0 : i32
    %c0_i32_1 = arith.constant 0 : i32
    return %c0_i32, %c0_i32_0 : i32, i32
  }
  func.func @transform_2(%arg0: i32) -> (i32, i32) {
    %c0_i32 = arith.constant 0 : i32
    %c0_i32_0 = arith.constant 0 : i32
    %c0_i32_1 = arith.constant 0 : i32
    return %c0_i32, %c0_i32_0 : i32, i32
  }
  func.func @transform_3(%arg0: i32) -> (i32, i32) {
    %c0_i32 = arith.constant 0 : i32
    %c0_i32_0 = arith.constant 0 : i32
    %c0_i32_1 = arith.constant 0 : i32
    return %c0_i32, %c0_i32_0 : i32, i32
  }
  func.func @transform_4(%arg0: i32) -> (i32, i32) {
    %c0_i32 = arith.constant 0 : i32
    %c0_i32_0 = arith.constant 0 : i32
    %c0_i32_1 = arith.constant 0 : i32
    return %c0_i32, %c0_i32_0 : i32, i32
  }
  func.func @transform_5(%arg0: i32) -> (i32, i32, i32) {
    %c0_i32 = arith.constant 0 : i32
    %c0_i32_0 = arith.constant 0 : i32
    %c0_i32_1 = arith.constant 0 : i32
    return %arg0, %c0_i32, %c0_i32_0 : i32, i32, i32
  }
  func.func @transform_6(%arg0: i32) -> (i32, i32, i32) {
    %c0_i32 = arith.constant 0 : i32
    %c0_i32_0 = arith.constant 0 : i32
    %c0_i32_1 = arith.constant 0 : i32
    return %arg0, %c0_i32, %c0_i32_0 : i32, i32, i32
  }
}

module attributes {stable_mosaic.version = 11 : i64} {
  func.func @kernel(%arg0: i32, %arg1: memref<128x32xbf16, #tpu.memory_space<vmem>>, %arg2: memref<32x32xbf16, #tpu.memory_space<vmem>>, %arg3: memref<1x32xf32, #tpu.memory_space<vmem>>, %arg4: memref<128x32xbf16, #tpu.memory_space<vmem>>, %arg5: memref<128x32xf32, #tpu.memory_space<vmem>>) attributes {dimension_semantics = [#tpu.dimension_semantics<parallel>], iteration_bounds = array<i64: 1>, scalar_prefetch = 0 : i64, scratch_operands = 0 : i64, tpu.core_type = #tpu.core_type<tc>, window_params = [{transform_indices = @transform_0, window_bounds = array<i64: 128, 32>}, {pipeline_mode = #tpu.pipeline_mode<synchronous>, transform_indices = @transform_1, window_bounds = array<i64: 32, 32>}, {pipeline_mode = #tpu.pipeline_mode<synchronous>, transform_indices = @transform_2, window_bounds = array<i64: 1, 32>}, {transform_indices = @transform_3, window_bounds = array<i64: 128, 32>}, {transform_indices = @transform_4, window_bounds = array<i64: 128, 32>}]} {
    %c0 = arith.constant 0 : index
    %c0_0 = arith.constant 0 : index
    %0 = vector.load %arg1[%c0, %c0_0] : memref<128x32xbf16, #tpu.memory_space<vmem>>, vector<128x32xbf16>
    %c0_1 = arith.constant 0 : index
    %c0_2 = arith.constant 0 : index
    %1 = vector.load %arg2[%c0_1, %c0_2] : memref<32x32xbf16, #tpu.memory_space<vmem>>, vector<32x32xbf16>
    %cst = arith.constant dense<0.000000e+00> : vector<128x32xf32>
    %2 = tpu.matmul %0, %1, %cst {dimension_numbers = #tpu.dot_dimension_numbers<[1], [0], [0], [1], [0, 0, 1, 1], [], []>} : vector<128x32xbf16>, vector<32x32xbf16>, vector<128x32xf32> -> vector<128x32xf32>
    %c0_3 = arith.constant 0 : index
    %c0_4 = arith.constant 0 : index
    %3 = vector.load %arg3[%c0_3, %c0_4] : memref<1x32xf32, #tpu.memory_space<vmem>>, vector<1x32xf32>
    %4 = vector.broadcast %3 : vector<1x32xf32> to vector<128x32xf32>
    %5 = arith.addf %2, %4 : vector<128x32xf32>
    %c0_5 = arith.constant 0 : index
    %c0_6 = arith.constant 0 : index
    %6 = vector.load %arg4[%c0_5, %c0_6] : memref<128x32xbf16, #tpu.memory_space<vmem>>, vector<128x32xbf16>
    %7 = arith.extf %6 : vector<128x32xbf16> to vector<128x32xf32>
    %8 = arith.addf %5, %7 : vector<128x32xf32>
    %c0_7 = arith.constant 0 : index
    %c0_8 = arith.constant 0 : index
    %9 = vector.load %arg5[%c0_7, %c0_8] : memref<128x32xf32, #tpu.memory_space<vmem>>, vector<128x32xf32>
    tpu.vector_store %arg5[%c0_7, %c0_8], %8 {strides = array<i32>} : memref<128x32xf32, #tpu.memory_space<vmem>>, vector<128x32xf32>,
    return
  }
  func.func @transform_0(%arg0: i32) -> (i32, i32) {
    %c0_i32 = arith.constant 0 : i32
    %c0_i32_0 = arith.constant 0 : i32
    return %arg0, %c0_i32 : i32, i32
  }
  func.func @transform_1(%arg0: i32) -> (i32, i32) {
    %c0_i32 = arith.constant 0 : i32
    %c0_i32_0 = arith.constant 0 : i32
    %c0_i32_1 = arith.constant 0 : i32
    return %c0_i32, %c0_i32_0 : i32, i32
  }
  func.func @transform_2(%arg0: i32) -> (i32, i32) {
    %c0_i32 = arith.constant 0 : i32
    %c0_i32_0 = arith.constant 0 : i32
    %c0_i32_1 = arith.constant 0 : i32
    return %c0_i32, %c0_i32_0 : i32, i32
  }
  func.func @transform_3(%arg0: i32) -> (i32, i32) {
    %c0_i32 = arith.constant 0 : i32
    %c0_i32_0 = arith.constant 0 : i32
    return %arg0, %c0_i32 : i32, i32
  }
  func.func @transform_4(%arg0: i32) -> (i32, i32) {
    %c0_i32 = arith.constant 0 : i32
    %c0_i32_0 = arith.constant 0 : i32
    return %arg0, %c0_i32 : i32, i32
  }
}

</mosaic_0001>

<bundles_post_ra>
// kernel: savss_layer_forward.26
= control target key start
LH: loop header
LB: loop body
LE: loop exit
PB: predicated region body
PF: predicated region fallthrough
CT: control target
= control target key end

     0   :  { %s785_s9 = smov 0   ;;  %s1166_s0 = inlined_call_operand.vmem [shape: bf16[2,10,10,4], index: 0, kind: input, shape index: {}]   ;;  %s1167_s1 = inlined_call_operand.vmem [shape: f32[9,4], index: 1, kind: input, shape index: {}]   ;;  %s1168_s2 = inlined_call_operand.vmem [shape: bf16[2,8,8,4], index: 2, kind: output, shape index: {}]  }
   0x1 LB: > { %s741_s10 = sadd.s32 4294967295, %s768_s9   ;;  %p745_p0 = scmp.ge.s32.totalorder %s768_s9, 1  ;;  %s768_s9 = sphi %s785_s9, %s12_s9  }
   0x2   : > { %p112_p1 = scmp.lt.s32.totalorder %s768_s9, 3 }
   0x4   : > { %p113_p2 = pnand %p745_p0, %p112_p1 }
   0x5   : > { %p134_p3 = scmp.lt.s32.totalorder (!%p113_p2), %s741_s10, 1 }
   0x6   : > { %116 = sbr.rel (%p113_p2) target bundleno = 117 (0x75), region = 28 }
   0xb   : > { %s1170_s10 = smov (!%p134_p3, %s741_s10), 1  ;;  %v184_v0 = vld [vmem:[%s1167_s1] sm:$0xff]  ;;  %vm228_vm0 = vcmask 1046528   ;;  %vm302_vm1 = vcmask 1045504   ;;  %v842_v33 = vld [vmem:[%s1167_s1 + $0x8] ss:$0 sm:$0xff] }
   0xc   : > { %s752_s13 = smul.u32 80, %s1170_s10  ;;  %v799_v1 = vperm.slane %v184_v0, 0  ;;  %v801_v2 = vperm.slane %v184_v0, 1  ;;  %v803_v3 = vperm.slane %v184_v0, 2  ;;  %v805_v4 = vperm.slane %v184_v0, 3  ;;  %s751_s19 = sshll.u32 %s1170_s10, 5 }
   0xd   : > { %v812_v5 = vperm.slane %v184_v0, 4  ;;  %v814_v6 = vperm.slane %v184_v0, 5  ;;  %v816_v7 = vperm.slane %v184_v0, 6  ;;  %v818_v8 = vperm.slane %v184_v0, 7  ;;  %s908_s22 = scalar_lea.vmem %s1168_s2, %s751_s19 }
   0xe   : > { %s810_s16 = scalar_lea.vmem %s1166_s0, %s752_s13  ;;  %vm677_vm2 = vcmask 27648  }
   0xf   : > { %v144_v9 = vld [vmem:[%s810_s16] sm:$0xf]  ;;  %v145_v10 = vld [vmem:[%s810_s16 + $0x4] sm:$0x1]  ;;  %v146_v11 = vld [vmem:[%s810_s16 + $0x8] sm:$0xf] }
  0x10   : > { %v147_v12 = vld [vmem:[%s810_s16 + $0xc] sm:$0x1]  ;;  %v148_v13 = vld [vmem:[%s810_s16 + $0x10] sm:$0xf]  ;;  %v149_v14 = vld [vmem:[%s810_s16 + $0x14] sm:$0x1]  ;;  %v164_v15 = vunpack.c.l.bf16 %v144_v9  ;;  %v165_v16 = vunpack.c.l.bf16 %v145_v10  ;;  %v166_v17 = vunpack.c.l.bf16 %v146_v11 }
  0x11   : > { %v167_v18 = vunpack.c.l.bf16 %v147_v12  ;;  %v826_v19 = vunpack.c.l.bf16 %v148_v13  ;;  %v828_v20 = vunpack.c.l.bf16 %v149_v14  ;;  %v150_v42 = vld [vmem:[%s810_s16 + $0x18] sm:$0xf]  ;;  %v151_v43 = vld [vmem:[%s810_s16 + $0x1c] sm:$0x1] }
  0x12   : > { %v187_v21 = vmul.f32 %v799_v1, %v164_v15  ;;  %v196_v22 = vmul.f32 %v801_v2, %v164_v15  ;;  %v197_v23 = vmul.f32 %v801_v2, %v165_v16  ;;  %v270_v24 = vmul.f32 %v803_v3, %v164_v15 }
  0x13   : > { %v271_v25 = vmul.f32 %v803_v3, %v165_v16  ;;  %v344_v26 = vmul.f32 %v805_v4, %v166_v17  ;;  %v361_v27 = vmul.f32 %v812_v5, %v166_v17  ;;  %v362_v28 = vmul.f32 %v812_v5, %v167_v18 }
  0x14   : > { %v229_v29 = vrot.slane %v196_v22, 1  ;;  %v230_v30 = vrot.slane %v197_v23, 1  ;;  %v303_v31 = vrot.slane %v270_v24, 2  ;;  %v434_v32 = vmul.f32 %v814_v6, %v166_v17 }
  0x15   : > { %v304_v34 = vrot.slane %v271_v25, 2  ;;  %v393_v35 = vrot.slane %v361_v27, 1  ;;  %v394_v36 = vrot.slane %v362_v28, 1  ;;  %v435_v37 = vmul.f32 %v814_v6, %v167_v18 }
  0x16   : > { %v231_v38 = vsel %vm228_vm0, %v229_v29, %v230_v30  ;;  %v466_v39 = vrot.slane %v434_v32, 2  ;;  %v507_v40 = vmul.f32 %v816_v7, %v826_v19  ;;  %v524_v41 = vmul.f32 %v818_v8, %v826_v19 }
  0x17   : > { %v261_v44 = vadd.f32 %v231_v38, %v187_v21  ;;  %v305_v45 = vsel %vm302_vm1, %v303_v31, %v304_v34  ;;  %v395_v46 = vsel %vm228_vm0, %v393_v35, %v394_v36  ;;  %v467_v47 = vrot.slane %v435_v37, 2  ;;  %v152_v35 = vld [vmem:[%s810_s16 + $0x20] sm:$0xf] }
  0x18   : > { %v525_v48 = vmul.f32 %v818_v8, %v828_v20  ;;  %v556_v49 = vrot.slane %v524_v41, 1  ;;  %v597_v50 = vmul.f32 %v842_v33, %v826_v19  ;;  %v598_v51 = vmul.f32 %v842_v33, %v828_v20  ;;  %v153_v41 = vld [vmem:[%s810_s16 + $0x24] sm:$0x1] }
  0x19   : > { %v335_v52 = vadd.f32 %v305_v45, %v261_v44  ;;  %v468_v53 = vsel %vm302_vm1, %v466_v39, %v467_v47  ;;  %v861_v54 = vunpack.c.l.bf16 %v150_v42  ;;  %v863_v55 = vunpack.c.l.bf16 %v151_v43 }
  0x1a   : > { %v557_v56 = vrot.slane %v525_v48, 1  ;;  %v629_v57 = vrot.slane %v597_v50, 2  ;;  %v630_v58 = vrot.slane %v598_v51, 2  ;;  %v188_v59 = vmul.f32 %v799_v1, %v166_v17 }
  0x1b   : > { %v352_v60 = vadd.f32 %v344_v26, %v335_v52  ;;  %v198_v61 = vmul.f32 %v801_v2, %v166_v17  ;;  %v199_v62 = vmul.f32 %v801_v2, %v167_v18  ;;  %v272_v63 = vmul.f32 %v803_v3, %v166_v17 }
  0x1c   : > { %v558_v0 = vsel %vm228_vm0, %v556_v49, %v557_v56  ;;  %v631_v9 = vsel %vm302_vm1, %v629_v57, %v630_v58  ;;  %v273_v10 = vmul.f32 %v803_v3, %v167_v18  ;;  %v345_v11 = vmul.f32 %v805_v4, %v826_v19 }
  0x1d   : > { %v425_v12 = vadd.f32 %v395_v46, %v352_v60  ;;  %v232_v13 = vrot.slane %v198_v61, 1  ;;  %v233_v14 = vrot.slane %v199_v62, 1  ;;  %v306_v15 = vrot.slane %v272_v63, 2 }
  0x1e   : > { %v307_v16 = vrot.slane %v273_v10, 2  ;;  %v363_v21 = vmul.f32 %v812_v5, %v826_v19  ;;  %v364_v17 = vmul.f32 %v812_v5, %v828_v20  ;;  %v436_v22 = vmul.f32 %v814_v6, %v826_v19 }
  0x1f   : > { %v498_v18 = vadd.f32 %v468_v53, %v425_v12  ;;  %v234_v23 = vsel %vm228_vm0, %v232_v13, %v233_v14  ;;  %v437_v24 = vmul.f32 %v814_v6, %v828_v20  ;;  %v508_v25 = vmul.f32 %v816_v7, %v861_v54 }
  0x20   : > { %v262_v26 = vadd.f32 %v234_v23, %v188_v59  ;;  %v308_v27 = vsel %vm302_vm1, %v306_v15, %v307_v16  ;;  %v396_v28 = vrot.slane %v363_v21, 1  ;;  %v397_v29 = vrot.slane %v364_v17, 1 }
  0x21   : > { %v515_v30 = vadd.f32 %v507_v40, %v498_v18  ;;  %v469_v31 = vrot.slane %v436_v22, 2  ;;  %v470_v32 = vrot.slane %v437_v24, 2  ;;  %v526_v34 = vmul.f32 %v818_v8, %v861_v54 }
  0x22   : > { %v336_v36 = vadd.f32 %v308_v27, %v262_v26  ;;  %v398_v37 = vsel %vm228_vm0, %v396_v28, %v397_v29  ;;  %v527_v38 = vmul.f32 %v818_v8, %v863_v55  ;;  %v599_v39 = vmul.f32 %v842_v33, %v861_v54 }
  0x23   : > { %v588_v42 = vadd.f32 %v558_v0, %v515_v30  ;;  %v471_v40 = vsel %vm302_vm1, %v469_v31, %v470_v32  ;;  %v559_v43 = vrot.slane %v526_v34, 1  ;;  %v600_v44 = vmul.f32 %v842_v33, %v863_v55  ;;  %v154_v30 = vld [vmem:[%s810_s16 + $0x28] sm:$0xf] }
  0x24   : > { %v353_v45 = vadd.f32 %v345_v11, %v336_v36  ;;  %v560_v46 = vrot.slane %v527_v38, 1  ;;  %v632_v47 = vrot.slane %v599_v39, 2  ;;  %v899_v48 = vunpack.c.l.bf16 %v152_v35  ;;  %v155_v36 = vld [vmem:[%s810_s16 + $0x2c] sm:$0x1] }
  0x25   : > { %v661_v49 = vadd.f32 %v631_v9, %v588_v42  ;;  %v633_v50 = vrot.slane %v600_v44, 2  ;;  %v901_v51 = vunpack.c.l.bf16 %v153_v41  ;;  %v189_v52 = vmul.f32 %v799_v1, %v826_v19 }
  0x26   : > { %v426_v53 = vadd.f32 %v398_v37, %v353_v45  ;;  %v561_v56 = vsel %vm228_vm0, %v559_v43, %v560_v46  ;;  %v200_v57 = vmul.f32 %v801_v2, %v826_v19  ;;  %v201_v58 = vmul.f32 %v801_v2, %v828_v20 }
  0x27   : > { %v669_v59 = vpack.c.bf16 %v661_v49, %v661_v49  ;;  %v634_v60 = vsel %vm302_vm1, %v632_v47, %v633_v50  ;;  %v274_v61 = vmul.f32 %v803_v3, %v826_v19  ;;  %v275_v62 = vmul.f32 %v803_v3, %v828_v20 }
  0x28   : > { %v499_v63 = vadd.f32 %v471_v40, %v426_v53  ;;  %v235_v0 = vrot.slane %v200_v57, 1  ;;  %v236_v9 = vrot.slane %v201_v58, 1  ;;  %v346_v10 = vmul.f32 %v805_v4, %v861_v54 }
  0x29   : > { %678 = vst.msk [vmem:[%s908_s22] sm:$0xf] %vm677_vm2, %v669_v59  ;;  %v309_v11 = vrot.slane %v274_v61, 2  ;;  %v310_v12 = vrot.slane %v275_v62, 2  ;;  %v365_v13 = vmul.f32 %v812_v5, %v861_v54  ;;  %v366_v14 = vmul.f32 %v812_v5, %v863_v55 }
  0x2a   : > { %v516_v19 = vadd.f32 %v508_v25, %v499_v63  ;;  %v237_v20 = vsel %vm228_vm0, %v235_v0, %v236_v9  ;;  %v438_v15 = vmul.f32 %v814_v6, %v861_v54  ;;  %v439_v16 = vmul.f32 %v814_v6, %v863_v55 }
  0x2b   : > { %v263_v21 = vadd.f32 %v237_v20, %v189_v52  ;;  %v311_v17 = vsel %vm302_vm1, %v309_v11, %v310_v12  ;;  %v399_v22 = vrot.slane %v365_v13, 1  ;;  %v400_v18 = vrot.slane %v366_v14, 1 }
  0x2c   : > { %v589_v23 = vadd.f32 %v561_v56, %v516_v19  ;;  %v472_v24 = vrot.slane %v438_v15, 2  ;;  %v473_v26 = vrot.slane %v439_v16, 2  ;;  %v509_v25 = vmul.f32 %v816_v7, %v899_v48 }
  0x2d   : > { %v337_v27 = vadd.f32 %v311_v17, %v263_v21  ;;  %v528_v28 = vmul.f32 %v818_v8, %v899_v48  ;;  %v529_v29 = vmul.f32 %v818_v8, %v901_v51  ;;  %v401_v32 = vsel %vm228_vm0, %v399_v22, %v400_v18 }
  0x2e   : > { %v662_v31 = vadd.f32 %v634_v60, %v589_v23  ;;  %v601_v34 = vmul.f32 %v842_v33, %v899_v48  ;;  %v602_v35 = vmul.f32 %v842_v33, %v901_v51  ;;  %v474_v38 = vsel %vm302_vm1, %v472_v24, %v473_v26  ;;  %v156_v23 = vld [vmem:[%s810_s16 + $0x30] sm:$0xf] }
  0x2f   : > { %v354_v37 = vadd.f32 %v346_v10, %v337_v27  ;;  %v562_v39 = vrot.slane %v528_v28, 1  ;;  %v563_v41 = vrot.slane %v529_v29, 1  ;;  %v948_v44 = vunpack.c.l.bf16 %v154_v30  ;;  %v157_v28 = vld [vmem:[%s810_s16 + $0x34] sm:$0x1] }
  0x30   : > { %v670_v42 = vpack.c.bf16 %v662_v31, %v662_v31  ;;  %v635_v40 = vrot.slane %v601_v34, 2  ;;  %v636_v43 = vrot.slane %v602_v35, 2  ;;  %v951_v47 = vunpack.c.l.bf16 %v155_v36 }
  0x31   : > { %v427_v45 = vadd.f32 %v401_v32, %v354_v37  ;;  %v564_v46 = vsel %vm228_vm0, %v562_v39, %v563_v41  ;;  %v202_v49 = vmul.f32 %v801_v2, %v861_v54  ;;  %v190_v50 = vmul.f32 %v799_v1, %v861_v54 }
  0x32   : > { %679 = vst.msk [vmem:[%s908_s22 + $0x4] sm:$0xf] %vm677_vm2, %v670_v42  ;;  %v203_v52 = vmul.f32 %v801_v2, %v863_v55  ;;  %v276_v53 = vmul.f32 %v803_v3, %v861_v54  ;;  %v277_v56 = vmul.f32 %v803_v3, %v863_v55  ;;  %v637_v58 = vsel %vm302_vm1, %v635_v40, %v636_v43 }
  0x33   : > { %v500_v57 = vadd.f32 %v474_v38, %v427_v45  ;;  %v238_v59 = vrot.slane %v202_v49, 1  ;;  %v367_v60 = vmul.f32 %v812_v5, %v899_v48  ;;  %v368_v0 = vmul.f32 %v812_v5, %v901_v51 }
  0x34   : > { %v239_v61 = vrot.slane %v203_v52, 1  ;;  %v312_v62 = vrot.slane %v276_v53, 2  ;;  %v313_v63 = vrot.slane %v277_v56, 2  ;;  %v440_v54 = vmul.f32 %v814_v6, %v899_v48 }
  0x35   : > { %v517_v9 = vadd.f32 %v509_v25, %v500_v57  ;;  %v402_v10 = vrot.slane %v367_v60, 1  ;;  %v441_v55 = vmul.f32 %v814_v6, %v901_v51  ;;  %v347_v13 = vmul.f32 %v805_v4, %v899_v48 }
  0x36   : > { %v240_v11 = vsel %vm228_vm0, %v238_v59, %v239_v61  ;;  %v314_v12 = vsel %vm302_vm1, %v312_v62, %v313_v63  ;;  %v403_v14 = vrot.slane %v368_v0, 1  ;;  %v475_v15 = vrot.slane %v440_v54, 2 }
  0x37   : > { %v590_v19 = vadd.f32 %v564_v46, %v517_v9  ;;  %v264_v20 = vadd.f32 %v240_v11, %v190_v50  ;;  %v476_v16 = vrot.slane %v441_v55, 2  ;;  %v510_v21 = vmul.f32 %v816_v7, %v948_v44 }
  0x38   : > { %v530_v17 = vmul.f32 %v818_v8, %v948_v44  ;;  %v531_v22 = vmul.f32 %v818_v8, %v951_v47  ;;  %v603_v18 = vmul.f32 %v842_v33, %v948_v44  ;;  %v404_v27 = vsel %vm228_vm0, %v402_v10, %v403_v14 }
  0x39   : > { %v663_v24 = vadd.f32 %v637_v58, %v590_v19  ;;  %v338_v26 = vadd.f32 %v314_v12, %v264_v20  ;;  %v604_v25 = vmul.f32 %v842_v33, %v951_v47  ;;  %v477_v29 = vsel %vm302_vm1, %v475_v15, %v476_v16  ;;  %v158_v20 = vld [vmem:[%s810_s16 + $0x38] sm:$0xf]  ;;  %v159_v15 = vld [vmem:[%s810_s16 + $0x3c] sm:$0x1] }
  0x3a   : > { %v565_v30 = vrot.slane %v530_v17, 1  ;;  %v566_v31 = vrot.slane %v531_v22, 1  ;;  %v638_v32 = vrot.slane %v603_v18, 2  ;;  %v992_v37 = vunpack.c.l.bf16 %v156_v23 }
  0x3b   : > { %v671_v34 = vpack.c.bf16 %v663_v24, %v663_v24  ;;  %v355_v35 = vadd.f32 %v347_v13, %v338_v26  ;;  %v639_v36 = vrot.slane %v604_v25, 2  ;;  %v995_v39 = vunpack.c.l.bf16 %v157_v28 }
  0x3c   : > { %v567_v38 = vsel %vm228_vm0, %v565_v30, %v566_v31  ;;  %v204_v41 = vmul.f32 %v801_v2, %v899_v48  ;;  %v205_v42 = vmul.f32 %v801_v2, %v901_v51  ;;  %v191_v43 = vmul.f32 %v799_v1, %v899_v48 }
  0x3d   : > { %680 = vst.msk [vmem:[%s908_s22 + $0x8] sm:$0xf] %vm677_vm2, %v671_v34  ;;  %v428_v40 = vadd.f32 %v404_v27, %v355_v35  ;;  %v278_v45 = vmul.f32 %v803_v3, %v899_v48  ;;  %v279_v46 = vmul.f32 %v803_v3, %v901_v51  ;;  %v348_v52 = vmul.f32 %v805_v4, %v948_v44 }
  0x3e   : > { %v241_v49 = vrot.slane %v204_v41, 1  ;;  %v242_v50 = vrot.slane %v205_v42, 1  ;;  %v369_v53 = vmul.f32 %v812_v5, %v948_v44  ;;  %v370_v59 = vmul.f32 %v812_v5, %v951_v47 }
  0x3f   : > { %v501_v56 = vadd.f32 %v477_v29, %v428_v40  ;;  %v315_v57 = vrot.slane %v278_v45, 2  ;;  %v316_v58 = vrot.slane %v279_v46, 2  ;;  %v442_v51 = vmul.f32 %v814_v6, %v948_v44 }
  0x40   : > { %v243_v60 = vsel %vm228_vm0, %v241_v49, %v242_v50  ;;  %v405_v48 = vrot.slane %v369_v53, 1  ;;  %v443_v61 = vmul.f32 %v814_v6, %v951_v47  ;;  %v406_v9 = vrot.slane %v370_v59, 1 }
  0x41   : > { %v518_v62 = vadd.f32 %v510_v21, %v501_v56  ;;  %v265_v63 = vadd.f32 %v243_v60, %v191_v43  ;;  %v317_v0 = vsel %vm302_vm1, %v315_v57, %v316_v58  ;;  %v640_v10 = vsel %vm302_vm1, %v638_v32, %v639_v36 }
  0x42   : > { %v478_v54 = vrot.slane %v442_v51, 2  ;;  %v479_v55 = vrot.slane %v443_v61, 2  ;;  %v532_v11 = vmul.f32 %v818_v8, %v992_v37  ;;  %v511_v14 = vmul.f32 %v816_v7, %v992_v37 }
  0x43   : > { %v591_v12 = vadd.f32 %v567_v38, %v518_v62  ;;  %v339_v13 = vadd.f32 %v317_v0, %v265_v63  ;;  %v533_v19 = vmul.f32 %v818_v8, %v995_v39  ;;  %v407_v16 = vsel %vm228_vm0, %v405_v48, %v406_v9 }
  0x44   : > { %v568_v21 = vrot.slane %v532_v11, 1  ;;  %v605_v17 = vmul.f32 %v842_v33, %v992_v37  ;;  %v606_v22 = vmul.f32 %v842_v33, %v995_v39  ;;  %v480_v24 = vsel %vm302_vm1, %v478_v54, %v479_v55  ;;  %v160_v54 = vld [vmem:[%s810_s16 + $0x40] sm:$0xf] }
  0x45   : > { %v664_v18 = vadd.f32 %v640_v10, %v591_v12  ;;  %v356_v23 = vadd.f32 %v348_v52, %v339_v13  ;;  %v569_v26 = vrot.slane %v533_v19, 1  ;;  %v1036_v28 = vunpack.c.l.bf16 %v158_v20 }
  0x46   : > { %v641_v27 = vrot.slane %v605_v17, 2  ;;  %v642_v25 = vrot.slane %v606_v22, 2  ;;  %v1038_v29 = vunpack.c.l.bf16 %v159_v15  ;;  %v192_v32 = vmul.f32 %v799_v1, %v948_v44 }
  0x47   : > { %v672_v30 = vpack.c.bf16 %v664_v18, %v664_v18  ;;  %v429_v31 = vadd.f32 %v407_v16, %v356_v23  ;;  %v206_v34 = vmul.f32 %v801_v2, %v948_v44  ;;  %v570_v35 = vsel %vm228_vm0, %v568_v21, %v569_v26 }
  0x48   : > { %v207_v36 = vmul.f32 %v801_v2, %v951_v47  ;;  %v280_v38 = vmul.f32 %v803_v3, %v948_v44  ;;  %v281_v41 = vmul.f32 %v803_v3, %v951_v47  ;;  %v643_v40 = vsel %vm302_vm1, %v641_v27, %v642_v25 }
  0x49   : > { %681 = vst.msk [vmem:[%s908_s22 + $0xc] sm:$0xf] %vm677_vm2, %v672_v30  ;;  %v502_v42 = vadd.f32 %v480_v24, %v429_v31  ;;  %v244_v43 = vrot.slane %v206_v34, 1  ;;  %v371_v45 = vmul.f32 %v812_v5, %v992_v37  ;;  %v372_v52 = vmul.f32 %v812_v5, %v995_v39 }
  0x4a   : > { %v245_v46 = vrot.slane %v207_v36, 1  ;;  %v318_v49 = vrot.slane %v280_v38, 2  ;;  %v319_v50 = vrot.slane %v281_v41, 2  ;;  %v444_v47 = vmul.f32 %v814_v6, %v992_v37 }
  0x4b   : > { %v519_v53 = vadd.f32 %v511_v14, %v502_v42  ;;  %v408_v44 = vrot.slane %v371_v45, 1  ;;  %v445_v56 = vmul.f32 %v814_v6, %v995_v39  ;;  %v349_v59 = vmul.f32 %v805_v4, %v992_v37  ;;  %v161_v14 = vld [vmem:[%s810_s16 + $0x44] sm:$0x1] }
  0x4c   : > { %v246_v57 = vsel %vm228_vm0, %v244_v43, %v245_v46  ;;  %v320_v58 = vsel %vm302_vm1, %v318_v49, %v319_v50  ;;  %v409_v60 = vrot.slane %v372_v52, 1  ;;  %v481_v61 = vrot.slane %v444_v47, 2 }
  0x4d   : > { %v592_v48 = vadd.f32 %v570_v35, %v519_v53  ;;  %v266_v51 = vadd.f32 %v246_v57, %v192_v32  ;;  %v482_v62 = vrot.slane %v445_v56, 2  ;;  %v512_v63 = vmul.f32 %v816_v7, %v1036_v28 }
  0x4e   : > { %v534_v0 = vmul.f32 %v818_v8, %v1036_v28  ;;  %v535_v9 = vmul.f32 %v818_v8, %v1038_v29  ;;  %v607_v10 = vmul.f32 %v842_v33, %v1036_v28  ;;  %v410_v12 = vsel %vm228_vm0, %v408_v44, %v409_v60 }
  0x4f   : > { %v665_v55 = vadd.f32 %v643_v40, %v592_v48  ;;  %v340_v11 = vadd.f32 %v320_v58, %v266_v51  ;;  %v608_v13 = vmul.f32 %v842_v33, %v1038_v29  ;;  %v483_v19 = vsel %vm302_vm1, %v481_v61, %v482_v62  ;;  %v162_v48 = vld [vmem:[%s810_s16 + $0x48] sm:$0xf] }
  0x50   : > { %v571_v20 = vrot.slane %v534_v0, 1  ;;  %v572_v15 = vrot.slane %v535_v9, 1  ;;  %v644_v16 = vrot.slane %v607_v10, 2  ;;  %v1080_v18 = vunpack.c.l.bf16 %v160_v54  ;;  %v163_v0 = vld [vmem:[%s810_s16 + $0x4c] sm:$0x1] }
  0x51   : > { %v673_v21 = vpack.c.bf16 %v665_v55, %v665_v55  ;;  %v357_v17 = vadd.f32 %v349_v59, %v340_v11  ;;  %v645_v22 = vrot.slane %v608_v13, 2  ;;  %v1083_v24 = vunpack.c.l.bf16 %v161_v14 }
  0x52   : > { %v573_v23 = vsel %vm228_vm0, %v571_v20, %v572_v15  ;;  %v208_v26 = vmul.f32 %v801_v2, %v992_v37  ;;  %v209_v27 = vmul.f32 %v801_v2, %v995_v39  ;;  %v193_v30 = vmul.f32 %v799_v1, %v992_v37 }
  0x53   : > { %682 = vst.msk [vmem:[%s908_s22 + $0x10] sm:$0xf] %vm677_vm2, %v673_v21  ;;  %v430_v25 = vadd.f32 %v410_v12, %v357_v17  ;;  %v282_v31 = vmul.f32 %v803_v3, %v992_v37  ;;  %v283_v32 = vmul.f32 %v803_v3, %v995_v39  ;;  %v350_v36 = vmul.f32 %v805_v4, %v1036_v28 }
  0x54   : > { %v247_v34 = vrot.slane %v208_v26, 1  ;;  %v248_v35 = vrot.slane %v209_v27, 1  ;;  %v373_v38 = vmul.f32 %v812_v5, %v1036_v28  ;;  %v374_v43 = vmul.f32 %v812_v5, %v1038_v29 }
  0x55   : > { %v503_v41 = vadd.f32 %v483_v19, %v430_v25  ;;  %v321_v42 = vrot.slane %v282_v31, 2  ;;  %v322_v40 = vrot.slane %v283_v32, 2  ;;  %v446_v39 = vmul.f32 %v814_v6, %v1036_v28 }
  0x56   : > { %v249_v37 = vsel %vm228_vm0, %v247_v34, %v248_v35  ;;  %v411_v45 = vrot.slane %v373_v38, 1  ;;  %v447_v46 = vmul.f32 %v814_v6, %v1038_v29  ;;  %v412_v53 = vrot.slane %v374_v43, 1 }
  0x57   : > { %v520_v49 = vadd.f32 %v512_v63, %v503_v41  ;;  %v267_v50 = vadd.f32 %v249_v37, %v193_v30  ;;  %v323_v52 = vsel %vm302_vm1, %v321_v42, %v322_v40  ;;  %v646_v44 = vsel %vm302_vm1, %v644_v16, %v645_v22 }
  0x58   : > { %v484_v47 = vrot.slane %v446_v39, 2  ;;  %v485_v56 = vrot.slane %v447_v46, 2  ;;  %v536_v57 = vmul.f32 %v818_v8, %v1080_v18  ;;  %v537_v60 = vmul.f32 %v818_v8, %v1083_v24 }
  0x59   : > { %v593_v58 = vadd.f32 %v573_v23, %v520_v49  ;;  %v341_v59 = vadd.f32 %v323_v52, %v267_v50  ;;  %v413_v51 = vsel %vm228_vm0, %v411_v45, %v412_v53  ;;  %v513_v61 = vmul.f32 %v816_v7, %v1080_v18 }
  0x5a   : > { %v609_v62 = vmul.f32 %v842_v33, %v1080_v18  ;;  %v610_v63 = vmul.f32 %v842_v33, %v1083_v24  ;;  %v574_v54 = vrot.slane %v536_v57, 1  ;;  %v575_v55 = vrot.slane %v537_v60, 1 }
  0x5b   : > { %v666_v9 = vadd.f32 %v646_v44, %v593_v58  ;;  %v358_v10 = vadd.f32 %v350_v36, %v341_v59  ;;  %v486_v11 = vsel %vm302_vm1, %v484_v47, %v485_v56  ;;  %v182_v14 = vunpack.c.l.bf16 %v162_v48 }
  0x5c   : > { %v647_v12 = vrot.slane %v609_v62, 2  ;;  %v648_v13 = vrot.slane %v610_v63, 2  ;;  %v183_v15 = vunpack.c.l.bf16 %v163_v0  ;;  %v210_v16 = vmul.f32 %v801_v2, %v1036_v28 }
  0x5d   : > { %v674_v19 = vpack.c.bf16 %v666_v9, %v666_v9  ;;  %v431_v20 = vadd.f32 %v413_v51, %v358_v10  ;;  %v194_v21 = vmul.f32 %v799_v1, %v1036_v28  ;;  %v211_v17 = vmul.f32 %v801_v2, %v1038_v29 }
  0x5e   : > { %v284_v22 = vmul.f32 %v803_v3, %v1036_v28  ;;  %v285_v23 = vmul.f32 %v803_v3, %v1038_v29  ;;  %v576_v27 = vsel %vm228_vm0, %v574_v54, %v575_v55  ;;  %v250_v25 = vrot.slane %v210_v16, 1 }
  0x5f   : > { %683 = vst.msk [vmem:[%s908_s22 + $0x14] sm:$0xf] %vm677_vm2, %v674_v19  ;;  %v504_v26 = vadd.f32 %v486_v11, %v431_v20  ;;  %v375_v30 = vmul.f32 %v812_v5, %v1080_v18  ;;  %v251_v31 = vrot.slane %v211_v17, 1  ;;  %v376_v2 = vmul.f32 %v812_v5, %v1083_v24 }
  0x60   : > { %v324_v1 = vrot.slane %v284_v22, 2  ;;  %v325_v32 = vrot.slane %v285_v23, 2  ;;  %v649_v28 = vsel %vm302_vm1, %v647_v12, %v648_v13  ;;  %v448_v3 = vmul.f32 %v814_v6, %v1080_v18 }
  0x61   : > { %v521_v34 = vadd.f32 %v513_v61, %v504_v26  ;;  %v449_v29 = vmul.f32 %v814_v6, %v1083_v24  ;;  %v252_v35 = vsel %vm228_vm0, %v250_v25, %v251_v31  ;;  %v414_v38 = vrot.slane %v375_v30, 1 }
  0x62   : > { %v326_v36 = vsel %vm302_vm1, %v324_v1, %v325_v32  ;;  %v415_v41 = vrot.slane %v376_v2, 1  ;;  %v268_v40 = vadd.f32 %v252_v35, %v194_v21  ;;  %v351_v5 = vmul.f32 %v805_v4, %v1080_v18 }
  0x63   : > { %v594_v42 = vadd.f32 %v576_v27, %v521_v34  ;;  %v487_v43 = vrot.slane %v448_v3, 2  ;;  %v488_v37 = vrot.slane %v449_v29, 2  ;;  %v538_v45 = vmul.f32 %v818_v8, %v182_v14 }
  0x64   : > { %v539_v39 = vmul.f32 %v818_v8, %v183_v15  ;;  %v342_v6 = vadd.f32 %v326_v36, %v268_v40  ;;  %v416_v24 = vsel %vm228_vm0, %v414_v38, %v415_v41  ;;  %v611_v49 = vmul.f32 %v842_v33, %v182_v14 }
  0x65   : > { %v667_v46 = vadd.f32 %v649_v28, %v594_v42  ;;  %v612_v50 = vmul.f32 %v842_v33, %v183_v15  ;;  %v489_v44 = vsel %vm302_vm1, %v487_v43, %v488_v37  ;;  %v577_v4 = vrot.slane %v538_v45, 1 }
  0x66   : > { %v359_v53 = vadd.f32 %v351_v5, %v342_v6  ;;  %v578_v18 = vrot.slane %v539_v39, 1  ;;  %v514_v8 = vmul.f32 %v816_v7, %v182_v14  ;;  %v650_v56 = vrot.slane %v611_v49, 2 }
  0x67   : > { %v675_v52 = vpack.c.bf16 %v667_v46, %v667_v46  ;;  %v651_v57 = vrot.slane %v612_v50, 2 }
  0x68   : > { %v432_v47 = vadd.f32 %v416_v24, %v359_v53  ;;  %v579_v59 = vsel %vm228_vm0, %v577_v4, %v578_v18 }
  0x69   : > { %684 = vst.msk [vmem:[%s908_s22 + $0x18] sm:$0xf] %vm677_vm2, %v675_v52  ;;  %v652_v33 = vsel %vm302_vm1, %v650_v56, %v651_v57 }
  0x6a   : > { %v505_v58 = vadd.f32 %v489_v44, %v432_v47 }
  0x6c   : > { %v522_v60 = vadd.f32 %v514_v8, %v505_v58 }
  0x6e   : > { %v595_v48 = vadd.f32 %v579_v59, %v522_v60 }
  0x70   : > { %v668_v51 = vadd.f32 %v652_v33, %v595_v48 }
  0x72   : > { %v676_v61 = vpack.c.bf16 %v668_v51, %v668_v51 }
  0x74   : > { %685 = vst.msk [vmem:[%s908_s22 + $0x1c] sm:$0xf] %vm677_vm2, %v676_v61 }
  0x75 PF: > { %s12_s9 = sadd.s32 1, %s768_s9  }
  0x76   : > { %p9_p4 = scmp.ge.s32.totalorder %s12_s9, 4  }
  0x78   :  { %11 = sbr.rel (!%p9_p4) target bundleno = 1 (0x1), region = 58 }

// kernel: savss_layer_forward.25
= control target key start
LH: loop header
LB: loop body
LE: loop exit
PB: predicated region body
PF: predicated region fallthrough
CT: control target
= control target key end

     0   :  { %vm91_vm0 = vcmask 261120   ;;  %vm181_vm1 = vcmask 27648   ;;  %s392_s1 = inlined_call_operand.vmem [shape: bf16[32,4], index: 1, kind: input, shape index: {}]   ;;  %s393_s0 = inlined_call_operand.vmem [shape: bf16[128,32], index: 0, kind: input, shape index: {}]   ;;  %s394_s2 = inlined_call_operand.vmem [shape: f32[1,4], index: 2, kind: input, shape index: {}]   ;;  %s395_s3 = inlined_call_operand.vmem [shape: bf16[128,4], index: 3, kind: output, shape index: {}]  }
   0x1   :  { %v259_v0 = vld [vmem:[%s392_s1 + $0x8] sm:$0xff]  ;;  %v258_v1 = vld [vmem:[%s392_s1] sm:$0xff]  ;;  %v252_v3 = vld [vmem:[%s393_s0 + $0x10] sm:$0xff] }
   0x2   :  { %122 = vmatpush.bf16.msra.mxu0 %v259_v0  ;;  %260 = vmatpush.bf16.msra.mxu1 %v259_v0  ;;  %v250_v2 = vld [vmem:[%s393_s0] sm:$0xff]  ;;  %v256_v5 = vld [vmem:[%s393_s0 + $0x30] sm:$0xff]  ;;  %v251_v6 = vld [vmem:[%s393_s0 + $0x8] sm:$0xff] }
   0x3   :  { %261 = vmatpush.bf16.msra.mxu2 %v259_v0  ;;  %262 = vmatpush.bf16.msra.mxu3 %v259_v0  ;;  %v254_v4 = vld [vmem:[%s393_s0 + $0x20] sm:$0xff]  ;;  %v253_v7 = vld [vmem:[%s393_s0 + $0x18] sm:$0xff]  ;;  %v255_v8 = vld [vmem:[%s393_s0 + $0x28] sm:$0xff] }
   0x4   :  { %v257_v9 = vld [vmem:[%s393_s0 + $0x38] sm:$0xff]  ;;  %v266_v10 = vld [vmem:[%s394_s2] ss:$0 sm:$0xff] }
   0x6   :  { %123 = vmatpush.bf16.msra.mxu0 %v258_v1  ;;  %263 = vmatpush.bf16.msra.mxu1 %v258_v1 }
   0x7   :  { %264 = vmatpush.bf16.msra.mxu2 %v258_v1  ;;  %265 = vmatpush.bf16.msra.mxu3 %v258_v1 }
   0x9   :  { %242 = vmatmul.msk.bf16.vlgmr.msra.gmra.mxu0 %vm91_vm0, %v250_v2  ;;  %244 = vmatmul.msk.bf16.vlgmr.msra.gmra.mxu1 %vm91_vm0, %v252_v3 }
   0xa   :  { %246 = vmatmul.msk.bf16.vlgmr.msra.gmra.mxu2 %vm91_vm0, %v254_v4  ;;  %248 = vmatmul.msk.bf16.vlgmr.msra.gmra.mxu3 %vm91_vm0, %v256_v5 }
  0x19   :  { %243 = vmatmul.msk.bf16.gmra.mxu0 %vm91_vm0, %v251_v6  ;;  %245 = vmatmul.msk.bf16.gmra.mxu1 %vm91_vm0, %v253_v7 }
  0x1a   :  { %247 = vmatmul.msk.bf16.gmra.mxu2 %vm91_vm0, %v255_v8  ;;  %249 = vmatmul.msk.bf16.gmra.mxu3 %vm91_vm0, %v257_v9 }
  0x86   :  { %v125_v11 = vpop.f32.mrf.mxu0  ;;  %v135_v12 = vpop.f32.mrf.mxu1 }
  0x87   :  { %v126_v13 = vadd.f32 %v266_v10, %v125_v11  ;;  %v136_v14 = vadd.f32 %v266_v10, %v135_v12 }
  0x89   :  { %v165_v15 = vpack.c.bf16 %v126_v13, %v126_v13  ;;  %v169_v16 = vpack.c.bf16 %v136_v14, %v136_v14 }
  0x8b   :  { %182 = vst.msk [vmem:[%s395_s3] sm:$0xf] %vm181_vm1, %v165_v15 }
  0x8c   :  { %186 = vst.msk [vmem:[%s395_s3 + $0x10] sm:$0xf] %vm181_vm1, %v169_v16 }
  0x8d   :  { %v145_v17 = vpop.f32.mrf.mxu2  ;;  %v155_v18 = vpop.f32.mrf.mxu3 }
  0x8e   :  { %v146_v19 = vadd.f32 %v266_v10, %v145_v17  ;;  %v156_v20 = vadd.f32 %v266_v10, %v155_v18  ;;  %v127_v21 = vpop.f32.mrf.mxu0  ;;  %v137_v22 = vpop.f32.mrf.mxu1 }
  0x8f   :  { %v128_v23 = vadd.f32 %v266_v10, %v127_v21  ;;  %v138_v24 = vadd.f32 %v266_v10, %v137_v22 }
  0x90   :  { %v173_v25 = vpack.c.bf16 %v146_v19, %v146_v19  ;;  %v177_v26 = vpack.c.bf16 %v156_v20, %v156_v20 }
  0x91   :  { %v166_v27 = vpack.c.bf16 %v128_v23, %v128_v23  ;;  %v170_v28 = vpack.c.bf16 %v138_v24, %v138_v24 }
  0x92   :  { %190 = vst.msk [vmem:[%s395_s3 + $0x20] sm:$0xf] %vm181_vm1, %v173_v25 }
  0x93   :  { %194 = vst.msk [vmem:[%s395_s3 + $0x30] sm:$0xf] %vm181_vm1, %v177_v26 }
  0x94   :  { %183 = vst.msk [vmem:[%s395_s3 + $0x4] sm:$0xf] %vm181_vm1, %v166_v27 }
  0x95   :  { %187 = vst.msk [vmem:[%s395_s3 + $0x14] sm:$0xf] %vm181_vm1, %v170_v28  ;;  %v147_v29 = vpop.f32.mrf.mxu2  ;;  %v157_v30 = vpop.f32.mrf.mxu3 }
  0x96   :  { %v148_v31 = vadd.f32 %v266_v10, %v147_v29  ;;  %v158_v32 = vadd.f32 %v266_v10, %v157_v30  ;;  %v130_v33 = vpop.f32.mrf.mxu0  ;;  %v140_v34 = vpop.f32.mrf.mxu1 }
  0x97   :  { %v131_v35 = vadd.f32 %v266_v10, %v130_v33  ;;  %v141_v36 = vadd.f32 %v266_v10, %v140_v34 }
  0x98   :  { %v174_v37 = vpack.c.bf16 %v148_v31, %v148_v31  ;;  %v178_v38 = vpack.c.bf16 %v158_v32, %v158_v32 }
  0x99   :  { %v167_v39 = vpack.c.bf16 %v131_v35, %v131_v35  ;;  %v171_v40 = vpack.c.bf16 %v141_v36, %v141_v36 }
  0x9a   :  { %191 = vst.msk [vmem:[%s395_s3 + $0x24] sm:$0xf] %vm181_vm1, %v174_v37 }
  0x9b   :  { %195 = vst.msk [vmem:[%s395_s3 + $0x34] sm:$0xf] %vm181_vm1, %v178_v38 }
  0x9c   :  { %184 = vst.msk [vmem:[%s395_s3 + $0x8] sm:$0xf] %vm181_vm1, %v167_v39 }
  0x9d   :  { %188 = vst.msk [vmem:[%s395_s3 + $0x18] sm:$0xf] %vm181_vm1, %v171_v40  ;;  %v150_v41 = vpop.f32.mrf.mxu2  ;;  %v160_v42 = vpop.f32.mrf.mxu3 }
  0x9e   :  { %v151_v43 = vadd.f32 %v266_v10, %v150_v41  ;;  %v161_v44 = vadd.f32 %v266_v10, %v160_v42  ;;  %v132_v45 = vpop.f32.mrf.mxu0  ;;  %v142_v46 = vpop.f32.mrf.mxu1 }
  0x9f   :  { %v133_v47 = vadd.f32 %v266_v10, %v132_v45  ;;  %v143_v48 = vadd.f32 %v266_v10, %v142_v46 }
  0xa0   :  { %v175_v49 = vpack.c.bf16 %v151_v43, %v151_v43  ;;  %v179_v50 = vpack.c.bf16 %v161_v44, %v161_v44 }
  0xa1   :  { %v168_v51 = vpack.c.bf16 %v133_v47, %v133_v47  ;;  %v172_v52 = vpack.c.bf16 %v143_v48, %v143_v48 }
  0xa2   :  { %192 = vst.msk [vmem:[%s395_s3 + $0x28] sm:$0xf] %vm181_vm1, %v175_v49 }
  0xa3   :  { %196 = vst.msk [vmem:[%s395_s3 + $0x38] sm:$0xf] %vm181_vm1, %v179_v50 }
  0xa4   :  { %185 = vst.msk [vmem:[%s395_s3 + $0xc] sm:$0xf] %vm181_vm1, %v168_v51 }
  0xa5   :  { %189 = vst.msk [vmem:[%s395_s3 + $0x1c] sm:$0xf] %vm181_vm1, %v172_v52  ;;  %v152_v53 = vpop.f32.mrf.mxu2  ;;  %v162_v54 = vpop.f32.mrf.mxu3 }
  0xa6   :  { %v153_v55 = vadd.f32 %v266_v10, %v152_v53  ;;  %v163_v56 = vadd.f32 %v266_v10, %v162_v54 }
  0xa8   :  { %v176_v57 = vpack.c.bf16 %v153_v55, %v153_v55  ;;  %v180_v58 = vpack.c.bf16 %v163_v56, %v163_v56 }
  0xaa   :  { %193 = vst.msk [vmem:[%s395_s3 + $0x2c] sm:$0xf] %vm181_vm1, %v176_v57 }
  0xab   :  { %197 = vst.msk [vmem:[%s395_s3 + $0x3c] sm:$0xf] %vm181_vm1, %v180_v58 }

// kernel: savss_layer_forward.31
= control target key start
LH: loop header
LB: loop body
LE: loop exit
PB: predicated region body
PF: predicated region fallthrough
CT: control target
= control target key end

     0   :  { %s884_s27 = smov 0   ;;  %s1006_s0 = inlined_call_operand.vmem [shape: bf16[2,64,32], index: 0, kind: input, shape index: {}]   ;;  %s1007_s1 = inlined_call_operand.vmem [shape: bf16[32,32], index: 1, kind: input, shape index: {}]   ;;  %s1008_s2 = inlined_call_operand.vmem [shape: f32[1,32], index: 2, kind: input, shape index: {}]   ;;  %s1009_s3 = inlined_call_operand.vmem [shape: f32[32,2], index: 3, kind: input, shape index: {}]   ;;  %s1010_s4 = inlined_call_operand.vmem [shape: f32[2,32], index: 4, kind: input, shape index: {}]   ;;  %s1011_s5 = inlined_call_operand.vmem [shape: f32[1,32], index: 5, kind: input, shape index: {}]   ;;  %s1012_s6 = inlined_call_operand.vmem [shape: f32[1,32], index: 6, kind: input, shape index: {}]   ;;  %s1013_s7 = inlined_call_operand.vmem [shape: bf16[2,64,32], index: 7, kind: input, shape index: {}]   ;;  %s1014_s8 = inlined_call_operand.vmem [shape: bf16[2,64,32], index: 8, kind: output, shape index: {}]  }
   0x1 LB: > { %s739_s28 = sadd.s32 4294967295, %s837_s27   ;;  %p743_p0 = scmp.ge.s32.totalorder %s837_s27, 1  ;;  %s837_s27 = sphi %s884_s27, %s18_s27  }
   0x2   : > { %p272_p1 = scmp.lt.s32.totalorder %s837_s27, 3 }
   0x4   : > { %p273_p2 = pnand %p743_p0, %p272_p1 }
   0x5   : > { %p311_p3 = scmp.lt.s32.totalorder (!%p273_p2), %s739_s28, 1 }
   0x6   : > { %276 = sbr.rel (%p273_p2) target bundleno = 795 (0x31b), region = 52 }
   0xb   : > { %v794_v0 = vld [vmem:[%s1007_s1 + $0x8] sm:$0xff]  ;;  %v793_v1 = vld [vmem:[%s1007_s1] sm:$0xff]  ;;  %s1016_s28 = smov (!%p311_p3, %s739_s28), 1  ;;  %vm375_vm0 = vcmask 261120   ;;  %v420_v8 = vld [vmem:[%s1009_s3 + $0x18] sm:$0xff]  ;;  %vm471_vm1 = vcmask 1041408  }
   0xc   : > { %394 = vmatpush.bf16.msra.mxu0 %v794_v0  ;;  %815 = vmatpush.bf16.msra.mxu3 %v794_v0  ;;  %s898_s11 = sshll.u32 %s1016_s28, 5  ;;  %v419_v9 = vld [vmem:[%s1009_s3 + $0x10] sm:$0xff]  ;;  %v418_v10 = vld [vmem:[%s1009_s3 + $0x8] sm:$0xff]  ;;  %v417_v12 = vld [vmem:[%s1009_s3] sm:$0xff]  ;;  %vm467_vm2 = vcmask 15360   ;;  %vm663_vm6 = vcmask 257024  }
   0xd   : > { %814 = vmatpush.bf16.msra.mxu1 %v794_v0  ;;  %s315_s14 = scalar_lea.vmem %s1006_s0, %s898_s11  ;;  %v826_v13 = vld [vmem:[%s1008_s2] ss:$0 sm:$0xff]  ;;  %s320_s30 = scalar_lea.vmem %s1013_s7, %s898_s11 }
   0xe   : > { %v789_v2 = vld [vmem:[%s315_s14] sm:$0xff]  ;;  %v792_v3 = vld [vmem:[%s315_s14 + $0x18] sm:$0xff]  ;;  %v791_v4 = vld [vmem:[%s315_s14 + $0x10] sm:$0xff]  ;;  %s325_s16 = scalar_lea.vmem %s1014_s8, %s898_s11 }
   0xf   : > { %v790_v5 = vld [vmem:[%s315_s14 + $0x8] sm:$0xff]  ;;  %v421_v48 = vld [vmem:[%s1010_s4] sm:$0x3] }
  0x10   : > { %395 = vmatpush.bf16.msra.mxu0 %v793_v1  ;;  %817 = vmatpush.bf16.msra.mxu3 %v793_v1 }
  0x11   : > { %816 = vmatpush.bf16.msra.mxu1 %v793_v1  ;;  %779 = vmatpush.msk.msra.mxu2 %vm471_vm1, %v421_v48 }
  0x13   : > { %774 = vmatmul.msk.bf16.vlgmr.msra.gmra.mxu0 %vm375_vm0, %v789_v2  ;;  %777 = vmatmul.msk.bf16.vlgmr.msra.gmra.mxu3 %vm375_vm0, %v792_v3 }
  0x14   : > { %776 = vmatmul.msk.bf16.vlgmr.msra.gmra.mxu1 %vm375_vm0, %v791_v4  ;;  %548 = vmatpush.msrb.mxu3 %v420_v8 }
  0x15   : > { %458 = vmatpush.msrb.mxu1 %v420_v8  ;;  %782 = vmatpush.msk.msrb.mxu2 %vm471_vm1, %v421_v48 }
  0x16   : > { %549 = vmatpush.msrb.mxu3 %v419_v9 }
  0x17   : > { %459 = vmatpush.msrb.mxu1 %v419_v9 }
  0x18   : > { %550 = vmatpush.msrb.mxu3 %v418_v10 }
  0x19   : > { %460 = vmatpush.msrb.mxu1 %v418_v10 }
  0x1a   : > { %551 = vmatpush.msrb.mxu3 %v417_v12 }
  0x1b   : > { %461 = vmatpush.msrb.mxu1 %v417_v12 }
  0x23   : > { %775 = vmatmul.msk.bf16.gmra.mxu0 %vm375_vm0, %v790_v5 }
  0x90   : > { %v397_v6 = vpop.f32.mrf.mxu0 }
  0x91   : > { %v407_v11 = vpop.f32.mrf.mxu1  ;;  %v398_v17 = vadd.f32 %v826_v13, %v397_v6 }
  0x92   : > { %v408_v25 = vadd.f32 %v826_v13, %v407_v11 }
  0x93   : > { %v422_v20 = vsel %vm375_vm0, %v398_v17, 0.0 }
  0x94   : > { %v429_v32 = vsel %vm375_vm0, %v408_v25, 0.0 }
  0x96   : > { %v412_v16 = vpop.f32.mrf.mxu3 }
  0x97   : > { %v413_v33 = vadd.f32 %v826_v13, %v412_v16 }
  0x98   : > { %v399_v7 = vpop.f32.mrf.mxu0 }
  0x99   : > { %v400_v15 = vadd.f32 %v826_v13, %v399_v7  ;;  %v409_v23 = vpop.f32.mrf.mxu1  ;;  %v433_v38 = vsel %vm375_vm0, %v413_v33, 0.0 }
  0x9a   : > { %v410_v28 = vadd.f32 %v826_v13, %v409_v23 }
  0x9b   : > { %v423_v19 = vsel %vm375_vm0, %v400_v15, 0.0 }
  0x9c   : > { %v424_v22 = vadd.f32 %v423_v19, %v422_v20  ;;  %v431_v35 = vsel %vm375_vm0, %v410_v28, 0.0 }
  0x9e   : > { %v414_v31 = vpop.f32.mrf.mxu3 }
  0x9f   : > { %v415_v36 = vadd.f32 %v826_v13, %v414_v31 }
  0xa0   : > { %v402_v14 = vpop.f32.mrf.mxu0 }
  0xa1   : > { %v403_v18 = vadd.f32 %v826_v13, %v402_v14  ;;  %v435_v40 = vsel %vm375_vm0, %v415_v36, 0.0 }
  0xa3   : > { %v425_v21 = vsel %vm375_vm0, %v403_v18, 0.0 }
  0xa4   : > { %v426_v27 = vadd.f32 %v425_v21, %v424_v22 }
  0xa8   : > { %v404_v24 = vpop.f32.mrf.mxu0 }
  0xa9   : > { %v405_v26 = vadd.f32 %v826_v13, %v404_v24 }
  0xab   : > { %v427_v29 = vsel %vm375_vm0, %v405_v26, 0.0 }
  0xac   : > { %v428_v30 = vadd.f32 %v427_v29, %v426_v27 }
  0xae   : > { %v430_v34 = vadd.f32 %v429_v32, %v428_v30 }
  0xb0   : > { %v432_v37 = vadd.f32 %v431_v35, %v430_v34  ;;  %v796_v35 = vld [vmem:[%s320_s30] sm:$0xff]  }
  0xb2   : > { %v434_v39 = vadd.f32 %v433_v38, %v432_v37  ;;  %v812_v38 = vld [vmem:[%s320_s30 + $0x10] sm:$0xff]  }
  0xb3   : > { %v806_v48 = vunpack.c.h.bf16 %v812_v38 }
  0xb4   : > { %v436_v41 = vadd.f32 %v435_v40, %v434_v39  ;;  %v813_v39 = vld [vmem:[%s320_s30 + $0x18] sm:$0xff]   ;;  %v797_v40 = vunpack.c.l.bf16 %v796_v35 }
  0xb6   : > { %v437_v42 = vrot.slane %v436_v41, 4 }
  0xb8   : > { %v438_v43 = vadd.f32 %v437_v42, %v436_v41  ;;  %v798_v42 = vunpack.c.h.bf16 %v796_v35 }
  0xba   : > { %v439_v44 = vrot.slane %v438_v43, 2 }
  0xbc   : > { %v440_v45 = vadd.f32 %v439_v44, %v438_v43 }
  0xbe   : > { %v441_v46 = vrot.slane %v440_v45, 1 }
  0xc0   : > { %v442_v47 = vadd.f32 %v441_v46, %v440_v45  ;;  %v827_v46 = vld [vmem:[%s1011_s5] ss:$0 sm:$0xff] }
  0xc2   : > { %778 = vmatmul.msk.f32.vlgmr.msrb.gmra.mxu1 %vm375_vm0, %v442_v47  ;;  %v805_v47 = vunpack.c.l.bf16 %v812_v38 }
 0x13f   : > { %v463_v49 = vpop.f32.mrf.mxu1 }
 0x140   : > { %v466_v50 = vmul.f32 0.0009765625, %v463_v49  ;;  %v809_v49 = vunpack.c.l.bf16 %v813_v39 }
 0x142   : > { %780 = vmatmul.msk.f32.vlgmr.msra.gmra.mxu2 %vm467_vm2, %v466_v50  ;;  %v810_v50 = vunpack.c.h.bf16 %v813_v39 }
 0x1c5   : > { %v492_v51 = vpop.f32.mrf.mxu2 }
 0x1c6   : > { %v495_v52 = vperm.slane %v492_v51, 0 }
 0x1c8   : > { %v936_v53 = vsub.f32 %v398_v17, %v495_v52  ;;  %v938_v54 = vsub.f32 %v400_v15, %v495_v52  ;;  %v940_v55 = vsub.f32 %v403_v18, %v495_v52  ;;  %v942_v56 = vsub.f32 %v405_v26, %v495_v52 }
 0x1c9   : > { %v944_v57 = vsub.f32 %v408_v25, %v495_v52  ;;  %v952_v61 = vsub.f32 %v410_v28, %v495_v52  ;;  %v958_v2 = vsub.f32 %v413_v33, %v495_v52  ;;  %v503_v6 = vsub.f32 %v415_v36, %v495_v52  ;;  %v811_v36 = vld [vmem:[%s320_s30 + $0x8] sm:$0xff]  }
 0x1ca   : > { %v504_v58 = vmul.f32 %v936_v53, %v936_v53  ;;  %v505_v59 = vmul.f32 %v938_v54, %v938_v54  ;;  %v506_v60 = vmul.f32 %v940_v55, %v940_v55  ;;  %v507_v62 = vmul.f32 %v942_v56, %v942_v56 }
 0x1cb   : > { %v508_v3 = vmul.f32 %v944_v57, %v944_v57  ;;  %v509_v7 = vmul.f32 %v952_v61, %v952_v61  ;;  %v510_v10 = vmul.f32 %v958_v2, %v958_v2  ;;  %v511_v13 = vmul.f32 %v503_v6, %v503_v6 }
 0x1cc   : > { %v512_v63 = vsel %vm375_vm0, %v504_v58, 0.0  ;;  %v513_v0 = vsel %vm375_vm0, %v505_v59, 0.0  ;;  %v515_v4 = vsel %vm375_vm0, %v506_v60, 0.0  ;;  %v517_v8 = vsel %vm375_vm0, %v507_v62, 0.0  ;;  %v828_v60 = vld [vmem:[%s1012_s6] ss:$0 sm:$0xff] }
 0x1cd   : > { %v514_v1 = vadd.f32 %v513_v0, %v512_v63  ;;  %v519_v11 = vsel %vm375_vm0, %v508_v3, 0.0  ;;  %v521_v14 = vsel %vm375_vm0, %v509_v7, 0.0  ;;  %v523_v16 = vsel %vm375_vm0, %v510_v10, 0.0 }
 0x1ce   : > { %v525_v18 = vsel %vm375_vm0, %v511_v13, 0.0  ;;  %v801_v43 = vunpack.c.l.bf16 %v811_v36  ;;  %v802_v44 = vunpack.c.h.bf16 %v811_v36 }
 0x1cf   : > { %v516_v5 = vadd.f32 %v515_v4, %v514_v1 }
 0x1d1   : > { %v518_v9 = vadd.f32 %v517_v8, %v516_v5 }
 0x1d3   : > { %v520_v12 = vadd.f32 %v519_v11, %v518_v9 }
 0x1d5   : > { %v522_v15 = vadd.f32 %v521_v14, %v520_v12 }
 0x1d7   : > { %v524_v17 = vadd.f32 %v523_v16, %v522_v15 }
 0x1d9   : > { %v526_v19 = vadd.f32 %v525_v18, %v524_v17 }
 0x1db   : > { %v527_v20 = vrot.slane %v526_v19, 4 }
 0x1dd   : > { %v528_v21 = vadd.f32 %v527_v20, %v526_v19 }
 0x1df   : > { %v529_v22 = vrot.slane %v528_v21, 2 }
 0x1e1   : > { %v530_v23 = vadd.f32 %v529_v22, %v528_v21 }
 0x1e3   : > { %v531_v24 = vrot.slane %v530_v23, 1 }
 0x1e5   : > { %v532_v25 = vadd.f32 %v531_v24, %v530_v23 }
 0x1e7   : > { %781 = vmatmul.msk.f32.vlgmr.msrb.gmra.mxu3 %vm375_vm0, %v532_v25 }
 0x26a   : > { %v553_v26 = vpop.f32.mrf.mxu3 }
 0x26b   : > { %v556_v27 = vmul.f32 0.0009765625, %v553_v26 }
 0x26d   : > { %783 = vmatmul.msk.f32.vlgmr.msrb.gmra.mxu2 %vm467_vm2, %v556_v27 }
 0x2f0   : > { %v577_v28 = vpop.f32.mrf.mxu2 }
 0x2f1   : > { %v578_v29 = vadd.f32 1e-05, %v577_v28 }
 0x2f3   : > { %829 = vrsqrt.f32 %v578_v29  ;;  %vm586_vm4 = vweird.f32 %v578_v29 }
 0x2f9   : > { %v830_v30 = vpop.eup %829 }
 0x2fa   : > { %v581_v31 = vmul.f32 %v830_v30, %v578_v29  ;;  %vm587_vm3 = vweird.f32 %v830_v30 }
 0x2fb   : > { %vm588_vm5 = vmor %vm586_vm4, %vm587_vm3 }
 0x2fc   : > { %v582_v32 = vmul.f32 %v830_v30, %v581_v31 }
 0x2fe   : > { %v583_v33 = vmul.f32 0.5, %v582_v32 }
 0x300   : > { %v584_v34 = vsub.f32 1.5, %v583_v33 }
 0x302   : > { %v585_v37 = vmul.f32 %v830_v30, %v584_v34 }
 0x304   : > { %v589_v41 = vsel %vm588_vm5, %v830_v30, %v585_v37 }
 0x305   : > { %v590_v45 = vperm.slane %v589_v41, 0 }
 0x307   : > { %v591_v51 = vmul.f32 %v590_v45, %v936_v53  ;;  %v592_v52 = vmul.f32 %v590_v45, %v938_v54  ;;  %v593_v58 = vmul.f32 %v590_v45, %v940_v55  ;;  %v594_v59 = vmul.f32 %v590_v45, %v942_v56 }
 0x308   : > { %v595_v62 = vmul.f32 %v590_v45, %v944_v57  ;;  %v596_v63 = vmul.f32 %v590_v45, %v952_v61  ;;  %v597_v0 = vmul.f32 %v590_v45, %v958_v2  ;;  %v598_v1 = vmul.f32 %v590_v45, %v503_v6 }
 0x309   : > { %v603_v3 = vmul.f32 %v827_v46, %v591_v51  ;;  %v604_v4 = vmul.f32 %v827_v46, %v592_v52  ;;  %v605_v53 = vmul.f32 %v827_v46, %v593_v58  ;;  %v606_v5 = vmul.f32 %v827_v46, %v594_v59 }
 0x30a   : > { %v607_v54 = vmul.f32 %v827_v46, %v595_v62  ;;  %v608_v7 = vmul.f32 %v827_v46, %v596_v63  ;;  %v609_v55 = vmul.f32 %v827_v46, %v597_v0  ;;  %v610_v8 = vmul.f32 %v827_v46, %v598_v1 }
 0x30b   : > { %v615_v56 = vadd.f32 %v828_v60, %v603_v3  ;;  %v616_v9 = vadd.f32 %v828_v60, %v604_v4  ;;  %v617_v10 = vadd.f32 %v828_v60, %v605_v53  ;;  %v618_v11 = vadd.f32 %v828_v60, %v606_v5 }
 0x30c   : > { %v619_v12 = vadd.f32 %v828_v60, %v607_v54  ;;  %v620_v57 = vadd.f32 %v828_v60, %v608_v7  ;;  %v621_v13 = vadd.f32 %v828_v60, %v609_v55  ;;  %v622_v61 = vadd.f32 %v828_v60, %v610_v8 }
 0x30d   : > { %v623_v14 = vmax.f32 %v615_v56, 0.0  ;;  %v624_v2 = vmax.f32 %v616_v9, 0.0  ;;  %v625_v6 = vmax.f32 %v617_v10, 0.0  ;;  %v626_v15 = vmax.f32 %v618_v11, 0.0 }
 0x30e   : > { %v627_v16 = vmax.f32 %v619_v12, 0.0  ;;  %v628_v17 = vmax.f32 %v620_v57, 0.0  ;;  %v629_v18 = vmax.f32 %v621_v13, 0.0  ;;  %v630_v19 = vmax.f32 %v622_v61, 0.0 }
 0x30f   : > { %v647_v20 = vmul.f32 %v797_v40, %v623_v14  ;;  %v648_v21 = vmul.f32 %v798_v42, %v624_v2  ;;  %v649_v22 = vmul.f32 %v801_v43, %v625_v6  ;;  %v650_v23 = vmul.f32 %v802_v44, %v626_v15 }
 0x310   : > { %v651_v24 = vmul.f32 %v805_v47, %v627_v16  ;;  %v652_v25 = vmul.f32 %v806_v48, %v628_v17  ;;  %v653_v26 = vmul.f32 %v809_v49, %v629_v18  ;;  %v654_v30 = vmul.f32 %v810_v50, %v630_v19 }
 0x311   : > { %v655_v27 = vpack.c.bf16 %v647_v20, %v647_v20  ;;  %v656_v28 = vpack.c.bf16 %v648_v21, %v648_v21  ;;  %v657_v29 = vpack.c.bf16 %v649_v22, %v649_v22  ;;  %v658_v31 = vpack.c.bf16 %v650_v23, %v650_v23 }
 0x312   : > { %v659_v32 = vpack.c.bf16 %v651_v24, %v651_v24  ;;  %v660_v33 = vpack.c.bf16 %v652_v25, %v652_v25  ;;  %v661_v34 = vpack.c.bf16 %v653_v26, %v653_v26  ;;  %v662_v35 = vpack.c.bf16 %v654_v30, %v654_v30 }
 0x313   : > { %664 = vst.msk [vmem:[%s325_s16] sm:$0xf] %vm663_vm6, %v655_v27 }
 0x314   : > { %665 = vst.msk [vmem:[%s325_s16 + $0x4] sm:$0xf] %vm663_vm6, %v656_v28 }
 0x315   : > { %666 = vst.msk [vmem:[%s325_s16 + $0x8] sm:$0xf] %vm663_vm6, %v657_v29 }
 0x316   : > { %667 = vst.msk [vmem:[%s325_s16 + $0xc] sm:$0xf] %vm663_vm6, %v658_v31 }
 0x317   : > { %668 = vst.msk [vmem:[%s325_s16 + $0x10] sm:$0xf] %vm663_vm6, %v659_v32 }
 0x318   : > { %669 = vst.msk [vmem:[%s325_s16 + $0x14] sm:$0xf] %vm663_vm6, %v660_v33 }
 0x319   : > { %670 = vst.msk [vmem:[%s325_s16 + $0x18] sm:$0xf] %vm663_vm6, %v661_v34 }
 0x31a   : > { %671 = vst.msk [vmem:[%s325_s16 + $0x1c] sm:$0xf] %vm663_vm6, %v662_v35 }
 0x31b PF: > { %s18_s27 = sadd.s32 1, %s837_s27  }
 0x31c   : > { %p15_p4 = scmp.ge.s32.totalorder %s18_s27, 4  }
 0x31e   :  { %17 = sbr.rel (!%p15_p4) target bundleno = 1 (0x1), region = 85 }

// kernel: savss_layer_forward.27
= control target key start
LH: loop header
LB: loop body
LE: loop exit
PB: predicated region body
PF: predicated region fallthrough
CT: control target
= control target key end

     0   :  { %s751_s24 = smov 0   ;;  %s833_s0 = inlined_call_operand.vmem [shape: bf16[2,64,4], index: 0, kind: input, shape index: {}]   ;;  %s834_s1 = inlined_call_operand.vmem [shape: bf16[4,32], index: 1, kind: input, shape index: {}]   ;;  %s835_s2 = inlined_call_operand.vmem [shape: f32[1,32], index: 2, kind: input, shape index: {}, may-alias: {2,6}]   ;;  %s836_s3 = inlined_call_operand.vmem [shape: f32[32,2], index: 3, kind: input, shape index: {}]   ;;  %s837_s4 = inlined_call_operand.vmem [shape: f32[2,32], index: 4, kind: input, shape index: {}]   ;;  %s838_s5 = inlined_call_operand.vmem [shape: f32[1,32], index: 5, kind: input, shape index: {}]   ;;  %s839_s6 = inlined_call_operand.vmem [shape: f32[1,32], index: 6, kind: input, shape index: {}, may-alias: {2,6}]   ;;  %s840_s7 = inlined_call_operand.vmem [shape: bf16[2,64,32], index: 7, kind: output, shape index: {}]  }
   0x1 LB: > { %s645_s25 = sadd.s32 4294967295, %s709_s24   ;;  %p649_p0 = scmp.ge.s32.totalorder %s709_s24, 1  ;;  %s709_s24 = sphi %s751_s24, %s17_s24  }
   0x2   : > { %p237_p1 = scmp.lt.s32.totalorder %s709_s24, 3 }
   0x4   : > { %p238_p2 = pnand %p649_p0, %p237_p1 }
   0x5   : > { %p269_p3 = scmp.lt.s32.totalorder (!%p238_p2), %s645_s25, 1 }
   0x6   : > { %241 = sbr.rel (%p238_p2) target bundleno = 790 (0x316), region = 48 }
   0xb   : > { %v288_v0 = vld [vmem:[%s834_s1] sm:$0x3]  ;;  %vm326_vm0 = vcmask 1041408   ;;  %s842_s25 = smov (!%p269_p3, %s645_s25), 1  ;;  %vm313_vm1 = vcmask 31744   ;;  %v362_v8 = vld [vmem:[%s836_s3 + $0x18] sm:$0xff] }
   0xc   : > { %v328_v1 = vsel %vm326_vm0, %v288_v0, 0  ;;  %s682_s28 = sshll.u32 %s842_s25, 5  ;;  %v361_v9 = vld [vmem:[%s836_s3 + $0x10] sm:$0xff]  ;;  %v360_v10 = vld [vmem:[%s836_s3 + $0x8] sm:$0xff]  ;;  %v359_v12 = vld [vmem:[%s836_s3] sm:$0xff]  ;;  %vm364_vm2 = vcmask 261120  }
   0xd   : > { %337 = vmatpush.bf16.msra.mxu0 %v328_v1  ;;  %689 = vmatpush.bf16.msra.mxu3 %v328_v1  ;;  %s273_s8 = scalar_lea.vmem %s833_s0, %s682_s28  ;;  %v698_v13 = vld [vmem:[%s835_s2] ss:$0 sm:$0xff]  ;;  %vm410_vm3 = vcmask 15360   ;;  %s278_s30 = scalar_lea.vmem %s840_s7, %s682_s28  ;;  %vm581_vm7 = vcmask 257024  }
   0xe   : > { %688 = vmatpush.bf16.msra.mxu1 %v328_v1  ;;  %v684_v2 = vld [vmem:[%s273_s8] sm:$0xff]  ;;  %v687_v3 = vld [vmem:[%s273_s8 + $0x18] sm:$0xff]  ;;  %v686_v4 = vld [vmem:[%s273_s8 + $0x10] sm:$0xff] }
   0xf   : > { %v685_v5 = vld [vmem:[%s273_s8 + $0x8] sm:$0xff]  ;;  %v363_v48 = vld [vmem:[%s837_s4] sm:$0x3] }
  0x10   : > { %670 = vmatmul.msk.bf16.vlgmr.msra.gmra.mxu0 %vm313_vm1, %v684_v2  ;;  %673 = vmatmul.msk.bf16.vlgmr.msra.gmra.mxu3 %vm313_vm1, %v687_v3 }
  0x11   : > { %672 = vmatmul.msk.bf16.vlgmr.msra.gmra.mxu1 %vm313_vm1, %v686_v4  ;;  %490 = vmatpush.msrb.mxu3 %v362_v8 }
  0x12   : > { %401 = vmatpush.msrb.mxu1 %v362_v8  ;;  %675 = vmatpush.msk.msra.mxu2 %vm326_vm0, %v363_v48 }
  0x13   : > { %491 = vmatpush.msrb.mxu3 %v361_v9 }
  0x14   : > { %402 = vmatpush.msrb.mxu1 %v361_v9  ;;  %678 = vmatpush.msk.msrb.mxu2 %vm326_vm0, %v363_v48 }
  0x15   : > { %492 = vmatpush.msrb.mxu3 %v360_v10 }
  0x16   : > { %403 = vmatpush.msrb.mxu1 %v360_v10 }
  0x17   : > { %493 = vmatpush.msrb.mxu3 %v359_v12 }
  0x18   : > { %404 = vmatpush.msrb.mxu1 %v359_v12 }
  0x20   : > { %671 = vmatmul.msk.bf16.gmra.mxu0 %vm313_vm1, %v685_v5 }
  0x8d   : > { %v339_v6 = vpop.f32.mrf.mxu0 }
  0x8e   : > { %v349_v11 = vpop.f32.mrf.mxu1  ;;  %v340_v17 = vadd.f32 %v698_v13, %v339_v6 }
  0x8f   : > { %v350_v25 = vadd.f32 %v698_v13, %v349_v11 }
  0x90   : > { %v365_v20 = vsel %vm364_vm2, %v340_v17, 0.0 }
  0x91   : > { %v372_v32 = vsel %vm364_vm2, %v350_v25, 0.0 }
  0x93   : > { %v354_v16 = vpop.f32.mrf.mxu3 }
  0x94   : > { %v355_v33 = vadd.f32 %v698_v13, %v354_v16 }
  0x95   : > { %v341_v7 = vpop.f32.mrf.mxu0 }
  0x96   : > { %v342_v15 = vadd.f32 %v698_v13, %v341_v7  ;;  %v351_v23 = vpop.f32.mrf.mxu1  ;;  %v376_v38 = vsel %vm364_vm2, %v355_v33, 0.0 }
  0x97   : > { %v352_v28 = vadd.f32 %v698_v13, %v351_v23 }
  0x98   : > { %v366_v19 = vsel %vm364_vm2, %v342_v15, 0.0 }
  0x99   : > { %v367_v22 = vadd.f32 %v366_v19, %v365_v20  ;;  %v374_v35 = vsel %vm364_vm2, %v352_v28, 0.0 }
  0x9b   : > { %v356_v31 = vpop.f32.mrf.mxu3 }
  0x9c   : > { %v357_v36 = vadd.f32 %v698_v13, %v356_v31 }
  0x9d   : > { %v344_v14 = vpop.f32.mrf.mxu0 }
  0x9e   : > { %v345_v18 = vadd.f32 %v698_v13, %v344_v14  ;;  %v378_v40 = vsel %vm364_vm2, %v357_v36, 0.0 }
  0xa0   : > { %v368_v21 = vsel %vm364_vm2, %v345_v18, 0.0 }
  0xa1   : > { %v369_v27 = vadd.f32 %v368_v21, %v367_v22 }
  0xa5   : > { %v346_v24 = vpop.f32.mrf.mxu0 }
  0xa6   : > { %v347_v26 = vadd.f32 %v698_v13, %v346_v24 }
  0xa8   : > { %v370_v29 = vsel %vm364_vm2, %v347_v26, 0.0 }
  0xa9   : > { %v371_v30 = vadd.f32 %v370_v29, %v369_v27 }
  0xab   : > { %v373_v34 = vadd.f32 %v372_v32, %v371_v30 }
  0xad   : > { %v375_v37 = vadd.f32 %v374_v35, %v373_v34 }
  0xaf   : > { %v377_v39 = vadd.f32 %v376_v38, %v375_v37  ;;  %v699_v38 = vld [vmem:[%s838_s5] ss:$0 sm:$0xff] }
  0xb1   : > { %v379_v41 = vadd.f32 %v378_v40, %v377_v39 }
  0xb3   : > { %v380_v42 = vrot.slane %v379_v41, 4 }
  0xb5   : > { %v381_v43 = vadd.f32 %v380_v42, %v379_v41 }
  0xb7   : > { %v382_v44 = vrot.slane %v381_v43, 2 }
  0xb9   : > { %v383_v45 = vadd.f32 %v382_v44, %v381_v43  ;;  %v700_v43 = vld [vmem:[%s839_s6] ss:$0 sm:$0xff] }
  0xbb   : > { %v384_v46 = vrot.slane %v383_v45, 1 }
  0xbd   : > { %v385_v47 = vadd.f32 %v384_v46, %v383_v45 }
  0xbf   : > { %674 = vmatmul.msk.f32.vlgmr.msrb.gmra.mxu1 %vm364_vm2, %v385_v47 }
 0x13c   : > { %v406_v49 = vpop.f32.mrf.mxu1 }
 0x13d   : > { %v409_v50 = vmul.f32 0.0009765625, %v406_v49 }
 0x13f   : > { %676 = vmatmul.msk.f32.vlgmr.msra.gmra.mxu2 %vm410_vm3, %v409_v50 }
 0x1c2   : > { %v434_v51 = vpop.f32.mrf.mxu2 }
 0x1c3   : > { %v437_v52 = vperm.slane %v434_v51, 0 }
 0x1c5   : > { %v438_v53 = vsub.f32 %v340_v17, %v437_v52  ;;  %v439_v54 = vsub.f32 %v342_v15, %v437_v52  ;;  %v440_v55 = vsub.f32 %v345_v18, %v437_v52  ;;  %v441_v56 = vsub.f32 %v347_v26, %v437_v52 }
 0x1c6   : > { %v442_v57 = vsub.f32 %v350_v25, %v437_v52  ;;  %v443_v61 = vsub.f32 %v352_v28, %v437_v52  ;;  %v444_v2 = vsub.f32 %v355_v33, %v437_v52  ;;  %v445_v6 = vsub.f32 %v357_v36, %v437_v52 }
 0x1c7   : > { %v446_v58 = vmul.f32 %v438_v53, %v438_v53  ;;  %v447_v59 = vmul.f32 %v439_v54, %v439_v54  ;;  %v448_v60 = vmul.f32 %v440_v55, %v440_v55  ;;  %v449_v62 = vmul.f32 %v441_v56, %v441_v56 }
 0x1c8   : > { %v450_v3 = vmul.f32 %v442_v57, %v442_v57  ;;  %v451_v7 = vmul.f32 %v443_v61, %v443_v61  ;;  %v452_v10 = vmul.f32 %v444_v2, %v444_v2  ;;  %v453_v13 = vmul.f32 %v445_v6, %v445_v6 }
 0x1c9   : > { %v454_v63 = vsel %vm364_vm2, %v446_v58, 0.0  ;;  %v455_v0 = vsel %vm364_vm2, %v447_v59, 0.0  ;;  %v457_v4 = vsel %vm364_vm2, %v448_v60, 0.0  ;;  %v459_v8 = vsel %vm364_vm2, %v449_v62, 0.0 }
 0x1ca   : > { %v456_v1 = vadd.f32 %v455_v0, %v454_v63  ;;  %v461_v11 = vsel %vm364_vm2, %v450_v3, 0.0  ;;  %v463_v14 = vsel %vm364_vm2, %v451_v7, 0.0  ;;  %v465_v16 = vsel %vm364_vm2, %v452_v10, 0.0 }
 0x1cb   : > { %v467_v18 = vsel %vm364_vm2, %v453_v13, 0.0 }
 0x1cc   : > { %v458_v5 = vadd.f32 %v457_v4, %v456_v1 }
 0x1ce   : > { %v460_v9 = vadd.f32 %v459_v8, %v458_v5 }
 0x1d0   : > { %v462_v12 = vadd.f32 %v461_v11, %v460_v9 }
 0x1d2   : > { %v464_v15 = vadd.f32 %v463_v14, %v462_v12 }
 0x1d4   : > { %v466_v17 = vadd.f32 %v465_v16, %v464_v15 }
 0x1d6   : > { %v468_v19 = vadd.f32 %v467_v18, %v466_v17 }
 0x1d8   : > { %v469_v20 = vrot.slane %v468_v19, 4 }
 0x1da   : > { %v470_v21 = vadd.f32 %v469_v20, %v468_v19 }
 0x1dc   : > { %v471_v22 = vrot.slane %v470_v21, 2 }
 0x1de   : > { %v472_v23 = vadd.f32 %v471_v22, %v470_v21 }
 0x1e0   : > { %v473_v24 = vrot.slane %v472_v23, 1 }
 0x1e2   : > { %v474_v25 = vadd.f32 %v473_v24, %v472_v23 }
 0x1e4   : > { %677 = vmatmul.msk.f32.vlgmr.msrb.gmra.mxu3 %vm364_vm2, %v474_v25 }
 0x267   : > { %v495_v26 = vpop.f32.mrf.mxu3 }
 0x268   : > { %v498_v27 = vmul.f32 0.0009765625, %v495_v26 }
 0x26a   : > { %679 = vmatmul.msk.f32.vlgmr.msrb.gmra.mxu2 %vm410_vm3, %v498_v27 }
 0x2ed   : > { %v519_v28 = vpop.f32.mrf.mxu2 }
 0x2ee   : > { %v520_v29 = vadd.f32 1e-05, %v519_v28 }
 0x2f0   : > { %701 = vrsqrt.f32 %v520_v29  ;;  %vm528_vm5 = vweird.f32 %v520_v29 }
 0x2f6   : > { %v702_v30 = vpop.eup %701 }
 0x2f7   : > { %v523_v31 = vmul.f32 %v702_v30, %v520_v29  ;;  %vm529_vm4 = vweird.f32 %v702_v30 }
 0x2f8   : > { %vm530_vm6 = vmor %vm528_vm5, %vm529_vm4 }
 0x2f9   : > { %v524_v32 = vmul.f32 %v702_v30, %v523_v31 }
 0x2fb   : > { %v525_v33 = vmul.f32 0.5, %v524_v32 }
 0x2fd   : > { %v526_v34 = vsub.f32 1.5, %v525_v33 }
 0x2ff   : > { %v527_v35 = vmul.f32 %v702_v30, %v526_v34 }
 0x301   : > { %v531_v36 = vsel %vm530_vm6, %v702_v30, %v527_v35 }
 0x302   : > { %v532_v37 = vperm.slane %v531_v36, 0 }
 0x304   : > { %v533_v39 = vmul.f32 %v532_v37, %v438_v53  ;;  %v534_v40 = vmul.f32 %v532_v37, %v439_v54  ;;  %v535_v41 = vmul.f32 %v532_v37, %v440_v55  ;;  %v536_v42 = vmul.f32 %v532_v37, %v441_v56 }
 0x305   : > { %v537_v44 = vmul.f32 %v532_v37, %v442_v57  ;;  %v538_v45 = vmul.f32 %v532_v37, %v443_v61  ;;  %v539_v46 = vmul.f32 %v532_v37, %v444_v2  ;;  %v540_v47 = vmul.f32 %v532_v37, %v445_v6 }
 0x306   : > { %v545_v48 = vmul.f32 %v699_v38, %v533_v39  ;;  %v546_v49 = vmul.f32 %v699_v38, %v534_v40  ;;  %v547_v50 = vmul.f32 %v699_v38, %v535_v41  ;;  %v548_v51 = vmul.f32 %v699_v38, %v536_v42 }
 0x307   : > { %v549_v52 = vmul.f32 %v699_v38, %v537_v44  ;;  %v550_v58 = vmul.f32 %v699_v38, %v538_v45  ;;  %v551_v59 = vmul.f32 %v699_v38, %v539_v46  ;;  %v552_v53 = vmul.f32 %v699_v38, %v540_v47 }
 0x308   : > { %v557_v54 = vadd.f32 %v700_v43, %v545_v48  ;;  %v558_v55 = vadd.f32 %v700_v43, %v546_v49  ;;  %v559_v56 = vadd.f32 %v700_v43, %v547_v50  ;;  %v560_v60 = vadd.f32 %v700_v43, %v548_v51 }
 0x309   : > { %v561_v62 = vadd.f32 %v700_v43, %v549_v52  ;;  %v562_v63 = vadd.f32 %v700_v43, %v550_v58  ;;  %v563_v0 = vadd.f32 %v700_v43, %v551_v59  ;;  %v564_v57 = vadd.f32 %v700_v43, %v552_v53 }
 0x30a   : > { %v565_v61 = vmax.f32 %v557_v54, 0.0  ;;  %v566_v1 = vmax.f32 %v558_v55, 0.0  ;;  %v567_v2 = vmax.f32 %v559_v56, 0.0  ;;  %v568_v3 = vmax.f32 %v560_v60, 0.0 }
 0x30b   : > { %v569_v4 = vmax.f32 %v561_v62, 0.0  ;;  %v570_v5 = vmax.f32 %v562_v63, 0.0  ;;  %v571_v6 = vmax.f32 %v563_v0, 0.0  ;;  %v572_v10 = vmax.f32 %v564_v57, 0.0 }
 0x30c   : > { %v573_v7 = vpack.c.bf16 %v565_v61, %v565_v61  ;;  %v574_v8 = vpack.c.bf16 %v566_v1, %v566_v1  ;;  %v575_v9 = vpack.c.bf16 %v567_v2, %v567_v2  ;;  %v576_v11 = vpack.c.bf16 %v568_v3, %v568_v3 }
 0x30d   : > { %v577_v12 = vpack.c.bf16 %v569_v4, %v569_v4  ;;  %v578_v13 = vpack.c.bf16 %v570_v5, %v570_v5  ;;  %v579_v14 = vpack.c.bf16 %v571_v6, %v571_v6  ;;  %v580_v15 = vpack.c.bf16 %v572_v10, %v572_v10 }
 0x30e   : > { %582 = vst.msk [vmem:[%s278_s30] sm:$0xf] %vm581_vm7, %v573_v7 }
 0x30f   : > { %583 = vst.msk [vmem:[%s278_s30 + $0x4] sm:$0xf] %vm581_vm7, %v574_v8 }
 0x310   : > { %584 = vst.msk [vmem:[%s278_s30 + $0x8] sm:$0xf] %vm581_vm7, %v575_v9 }
 0x311   : > { %585 = vst.msk [vmem:[%s278_s30 + $0xc] sm:$0xf] %vm581_vm7, %v576_v11 }
 0x312   : > { %586 = vst.msk [vmem:[%s278_s30 + $0x10] sm:$0xf] %vm581_vm7, %v577_v12 }
 0x313   : > { %587 = vst.msk [vmem:[%s278_s30 + $0x14] sm:$0xf] %vm581_vm7, %v578_v13 }
 0x314   : > { %588 = vst.msk [vmem:[%s278_s30 + $0x18] sm:$0xf] %vm581_vm7, %v579_v14 }
 0x315   : > { %589 = vst.msk [vmem:[%s278_s30 + $0x1c] sm:$0xf] %vm581_vm7, %v580_v15 }
 0x316 PF: > { %s17_s24 = sadd.s32 1, %s709_s24  }
 0x317   : > { %p14_p4 = scmp.ge.s32.totalorder %s17_s24, 4  }
 0x319   :  { %16 = sbr.rel (!%p14_p4) target bundleno = 1 (0x1), region = 78 }

// kernel: savss_layer_forward.41
= control target key start
LH: loop header
LB: loop body
LE: loop exit
PB: predicated region body
PF: predicated region fallthrough
CT: control target
= control target key end

     0   :  { %vm46_vm0 = vcmask 261120   ;;  %v559_v40 = vmov 32.0   ;;  %vm462_vm5 = vcmask 257024   ;;  %s1104_s0 = inlined_call_operand.vmem [shape: bf16[128,32], index: 0, kind: input, shape index: {}]   ;;  %s1105_s1 = inlined_call_operand.vmem [shape: f32[1,32], index: 1, kind: input, shape index: {}]   ;;  %s1106_s2 = inlined_call_operand.vmem [shape: f32[1,32], index: 2, kind: input, shape index: {}]   ;;  %s1107_s3 = inlined_call_operand.vmem [shape: bf16[128,32], index: 3, kind: output, shape index: {}]  }
   0x1   :  { %v583_v0 = vld [vmem:[%s1104_s0 + $0x10] sm:$0xff]   ;;  %v588_v1 = vld [vmem:[%s1104_s0 + $0x8] sm:$0xff]   ;;  %v593_v2 = vld [vmem:[%s1104_s0] sm:$0xff]   ;;  %525 = vrcp.f32 %v559_v40 }
   0x2   :  { %v493_v3 = vunpack.c.l.bf16 %v583_v0  ;;  %v489_v4 = vunpack.c.l.bf16 %v588_v1  ;;  %v485_v5 = vunpack.c.l.bf16 %v593_v2  ;;  %v494_v9 = vunpack.c.h.bf16 %v583_v0  ;;  %v622_v15 = vld [vmem:[%s1104_s0 + $0x20] sm:$0xff]   ;;  %v627_v16 = vld [vmem:[%s1104_s0 + $0x18] sm:$0xff]   ;;  %v644_v23 = vld [vmem:[%s1104_s0 + $0x28] sm:$0xff]  }
   0x3   :  { %v490_v10 = vunpack.c.h.bf16 %v588_v1  ;;  %v486_v11 = vunpack.c.h.bf16 %v593_v2  ;;  %v501_v17 = vunpack.c.l.bf16 %v622_v15  ;;  %v498_v18 = vunpack.c.h.bf16 %v627_v16  ;;  %v661_v30 = vld [vmem:[%s1104_s0 + $0x38] sm:$0xff]   ;;  %v666_v31 = vld [vmem:[%s1104_s0 + $0x30] sm:$0xff]  }
   0x4   :  { %v59_v6 = vsel %vm46_vm0, %v493_v3, 0.0  ;;  %v53_v7 = vsel %vm46_vm0, %v489_v4, 0.0  ;;  %v47_v8 = vsel %vm46_vm0, %v485_v5, 0.0  ;;  %v62_v12 = vsel %vm46_vm0, %v494_v9, 0.0 }
   0x5   :  { %60 = vadd.xlane.f32.xlu2 %v59_v6  ;;  %54 = vadd.xlane.f32.xlu1 %v53_v7  ;;  %v56_v13 = vsel %vm46_vm0, %v490_v10, 0.0  ;;  %v50_v14 = vsel %vm46_vm0, %v486_v11, 0.0  ;;  %v497_v19 = vunpack.c.l.bf16 %v627_v16  ;;  %v71_v20 = vsel %vm46_vm0, %v501_v17, 0.0 }
   0x6   :  { %48 = vadd.xlane.f32.xlu0 %v47_v8  ;;  %v68_v21 = vsel %vm46_vm0, %v498_v18, 0.0  ;;  %v506_v24 = vunpack.c.h.bf16 %v644_v23  ;;  %v505_v25 = vunpack.c.l.bf16 %v644_v23  ;;  %v502_v26 = vunpack.c.h.bf16 %v622_v15 }
   0x7   :  { %v65_v22 = vsel %vm46_vm0, %v497_v19, 0.0  ;;  %v513_v32 = vunpack.c.l.bf16 %v661_v30  ;;  %v510_v33 = vunpack.c.h.bf16 %v666_v31  ;;  %v509_v34 = vunpack.c.l.bf16 %v666_v31  ;;  %v526_v41 = vpop.eup %525 }
   0x8   :  { %v80_v27 = vsel %vm46_vm0, %v506_v24, 0.0  ;;  %v77_v28 = vsel %vm46_vm0, %v505_v25, 0.0  ;;  %v74_v29 = vsel %vm46_vm0, %v502_v26, 0.0  ;;  %v514_v38 = vunpack.c.h.bf16 %v661_v30 }
   0x9   :  { %v89_v35 = vsel %vm46_vm0, %v513_v32, 0.0  ;;  %v86_v36 = vsel %vm46_vm0, %v510_v33, 0.0  ;;  %v83_v37 = vsel %vm46_vm0, %v509_v34, 0.0  ;;  %v96_v42 = vmul.f32 32.0, %v526_v41 }
   0xa   :  { %v92_v39 = vsel %vm46_vm0, %v514_v38, 0.0  ;;  %vm100_vm1 = vweird.f32 %v526_v41 }
   0xb   :  { %v97_v43 = vsub.f32 1.0, %v96_v42 }
   0xd   :  { %63 = vadd.xlane.f32.xlu2 %v62_v12  ;;  %57 = vadd.xlane.f32.xlu1 %v56_v13  ;;  %v98_v44 = vmul.f32 %v526_v41, %v97_v43 }
   0xe   :  { %51 = vadd.xlane.f32.xlu0 %v50_v14 }
   0xf   :  { %v99_v45 = vadd.f32 %v526_v41, %v98_v44 }
  0x11   :  { %v684_v46 = vsel %vm100_vm1, %v526_v41, %v99_v45 }
  0x15   :  { %72 = vadd.xlane.f32.xlu2 %v71_v20  ;;  %69 = vadd.xlane.f32.xlu1 %v68_v21 }
  0x16   :  { %66 = vadd.xlane.f32.xlu0 %v65_v22 }
  0x1d   :  { %81 = vadd.xlane.f32.xlu2 %v80_v27  ;;  %78 = vadd.xlane.f32.xlu1 %v77_v28 }
  0x1e   :  { %75 = vadd.xlane.f32.xlu0 %v74_v29 }
  0x25   :  { %90 = vadd.xlane.f32.xlu2 %v89_v35  ;;  %87 = vadd.xlane.f32.xlu1 %v86_v36 }
  0x26   :  { %84 = vadd.xlane.f32.xlu0 %v83_v37 }
  0x2e   :  { %93 = vadd.xlane.f32.xlu0 %v92_v39 }
  0x78   :  { %v61_v47 = vpop.xlane.xlu2 %60  ;;  %v55_v48 = vpop.xlane.xlu1 %54 }
  0x79   :  { %v104_v49 = vmul.f32 %v684_v46, %v55_v48  ;;  %v49_v50 = vpop.xlane.xlu0 %48  ;;  %v106_v6 = vmul.f32 %v684_v46, %v61_v47 }
  0x7a   :  { %v102_v51 = vmul.f32 %v684_v46, %v49_v50 }
  0x7b   :  { %v690_v52 = vsub.f32 %v489_v4, %v104_v49 }
  0x7c   :  { %v694_v53 = vsub.f32 %v485_v5, %v102_v51 }
  0x7d   :  { %v136_v54 = vmul.f32 %v690_v52, %v690_v52 }
  0x7e   :  { %v134_v55 = vmul.f32 %v694_v53, %v694_v53 }
  0x7f   :  { %v156_v56 = vsel %vm46_vm0, %v136_v54, 0.0 }
  0x80   :  { %v64_v57 = vpop.xlane.xlu2 %63  ;;  %v58_v58 = vpop.xlane.xlu1 %57  ;;  %157 = vadd.xlane.f32.xlu0 %v156_v56  ;;  %v150_v59 = vsel %vm46_vm0, %v134_v55, 0.0 }
  0x81   :  { %v107_v60 = vmul.f32 %v684_v46, %v64_v57  ;;  %v105_v61 = vmul.f32 %v684_v46, %v58_v58  ;;  %151 = vadd.xlane.f32.xlu1 %v150_v59  ;;  %v52_v62 = vpop.xlane.xlu0 %51 }
  0x82   :  { %v103_v63 = vmul.f32 %v684_v46, %v52_v62 }
  0x83   :  { %v707_v4 = vsub.f32 %v494_v9, %v107_v60  ;;  %v711_v5 = vsub.f32 %v490_v10, %v105_v61  ;;  %v728_v10 = vsub.f32 %v493_v3, %v106_v6 }
  0x84   :  { %v716_v7 = vsub.f32 %v486_v11, %v103_v63 }
  0x85   :  { %v139_v8 = vmul.f32 %v707_v4, %v707_v4  ;;  %v137_v12 = vmul.f32 %v711_v5, %v711_v5  ;;  %v138_v3 = vmul.f32 %v728_v10, %v728_v10 }
  0x86   :  { %v135_v9 = vmul.f32 %v716_v7, %v716_v7 }
  0x87   :  { %v165_v13 = vsel %vm46_vm0, %v139_v8, 0.0  ;;  %v159_v1 = vsel %vm46_vm0, %v137_v12, 0.0 }
  0x88   :  { %v73_v2 = vpop.xlane.xlu2 %72  ;;  %166 = vadd.xlane.f32.xlu0 %v165_v13  ;;  %v153_v11 = vsel %vm46_vm0, %v135_v9, 0.0  ;;  %v70_v14 = vpop.xlane.xlu1 %69 }
  0x89   :  { %v110_v20 = vmul.f32 %v684_v46, %v73_v2  ;;  %160 = vadd.xlane.f32.xlu1 %v159_v1  ;;  %154 = vadd.xlane.f32.xlu2 %v153_v11  ;;  %v67_v21 = vpop.xlane.xlu0 %66  ;;  %v109_v27 = vmul.f32 %v684_v46, %v70_v14 }
  0x8a   :  { %v108_v22 = vmul.f32 %v684_v46, %v67_v21 }
  0x8b   :  { %v736_v28 = vsub.f32 %v501_v17, %v110_v20  ;;  %v748_v35 = vsub.f32 %v498_v18, %v109_v27 }
  0x8c   :  { %v740_v0 = vsub.f32 %v497_v19, %v108_v22  ;;  %v162_v19 = vsel %vm46_vm0, %v138_v3, 0.0 }
  0x8d   :  { %v142_v29 = vmul.f32 %v736_v28, %v736_v28  ;;  %v141_v43 = vmul.f32 %v748_v35, %v748_v35 }
  0x8e   :  { %v140_v36 = vmul.f32 %v740_v0, %v740_v0 }
  0x8f   :  { %v174_v17 = vsel %vm46_vm0, %v142_v29, 0.0  ;;  %v171_v49 = vsel %vm46_vm0, %v141_v43, 0.0 }
  0x90   :  { %v82_v37 = vpop.xlane.xlu2 %81  ;;  %175 = vadd.xlane.f32.xlu0 %v174_v17  ;;  %v168_v39 = vsel %vm46_vm0, %v140_v36, 0.0  ;;  %v79_v40 = vpop.xlane.xlu1 %78 }
  0x91   :  { %v113_v41 = vmul.f32 %v684_v46, %v82_v37  ;;  %163 = vadd.xlane.f32.xlu2 %v162_v19  ;;  %169 = vadd.xlane.f32.xlu1 %v168_v39  ;;  %v76_v42 = vpop.xlane.xlu0 %75  ;;  %v112_v18 = vmul.f32 %v684_v46, %v79_v40 }
  0x92   :  { %v111_v16 = vmul.f32 %v684_v46, %v76_v42 }
  0x93   :  { %v762_v44 = vsub.f32 %v506_v24, %v113_v41  ;;  %v772_v48 = vsub.f32 %v505_v25, %v112_v18 }
  0x94   :  { %v766_v45 = vsub.f32 %v502_v26, %v111_v16 }
  0x95   :  { %v145_v47 = vmul.f32 %v762_v44, %v762_v44  ;;  %v144_v56 = vmul.f32 %v772_v48, %v772_v48 }
  0x96   :  { %v143_v50 = vmul.f32 %v766_v45, %v766_v45 }
  0x97   :  { %v183_v51 = vsel %vm46_vm0, %v145_v47, 0.0  ;;  %v180_v61 = vsel %vm46_vm0, %v144_v56, 0.0 }
  0x98   :  { %v91_v24 = vpop.xlane.xlu2 %90  ;;  %184 = vadd.xlane.f32.xlu0 %v183_v51  ;;  %v177_v15 = vsel %vm46_vm0, %v143_v50, 0.0  ;;  %v88_v26 = vpop.xlane.xlu1 %87 }
  0x99   :  { %v116_v54 = vmul.f32 %v684_v46, %v91_v24  ;;  %172 = vadd.xlane.f32.xlu2 %v171_v49  ;;  %178 = vadd.xlane.f32.xlu1 %v177_v15  ;;  %v85_v55 = vpop.xlane.xlu0 %84  ;;  %v115_v25 = vmul.f32 %v684_v46, %v88_v26 }
  0x9a   :  { %v114_v23 = vmul.f32 %v684_v46, %v85_v55 }
  0x9b   :  { %v786_v57 = vsub.f32 %v513_v32, %v116_v54  ;;  %v796_v60 = vsub.f32 %v510_v33, %v115_v25 }
  0x9c   :  { %v790_v58 = vsub.f32 %v509_v34, %v114_v23 }
  0x9d   :  { %v148_v59 = vmul.f32 %v786_v57, %v786_v57  ;;  %v147_v31 = vmul.f32 %v796_v60, %v796_v60 }
  0x9e   :  { %v146_v62 = vmul.f32 %v790_v58, %v790_v58 }
  0x9f   :  { %v192_v63 = vsel %vm46_vm0, %v148_v59, 0.0  ;;  %v189_v8 = vsel %vm46_vm0, %v147_v31, 0.0 }
  0xa0   :  { %193 = vadd.xlane.f32.xlu0 %v192_v63  ;;  %v186_v32 = vsel %vm46_vm0, %v146_v62, 0.0 }
  0xa1   :  { %181 = vadd.xlane.f32.xlu2 %v180_v61  ;;  %187 = vadd.xlane.f32.xlu1 %v186_v32  ;;  %v94_v34 = vpop.xlane.xlu0 %93  ;;  %v844_v61 = vld [vmem:[%s1105_s1] ss:$0 sm:$0xff] }
  0xa2   :  { %v117_v6 = vmul.f32 %v684_v46, %v94_v34 }
  0xa4   :  { %v808_v33 = vsub.f32 %v514_v38, %v117_v6 }
  0xa6   :  { %v149_v12 = vmul.f32 %v808_v33, %v808_v33 }
  0xa8   :  { %v195_v9 = vsel %vm46_vm0, %v149_v12, 0.0  ;;  %v861_v12 = vld [vmem:[%s1106_s2] ss:$0 sm:$0xff] }
  0xa9   :  { %190 = vadd.xlane.f32.xlu2 %v189_v8  ;;  %196 = vadd.xlane.f32.xlu1 %v195_v9 }
  0xf3   :  { %v158_v13 = vpop.xlane.xlu0 %157 }
  0xf4   :  { %v152_v1 = vpop.xlane.xlu1 %151  ;;  %v200_v2 = vmul.f32 %v158_v13, %v684_v46 }
  0xf5   :  { %v198_v11 = vmul.f32 %v152_v1, %v684_v46 }
  0xf6   :  { %v216_v14 = vadd.f32 1e-05, %v200_v2 }
  0xf7   :  { %v214_v20 = vadd.f32 1e-05, %v198_v11 }
  0xf8   :  { %527 = vrsqrt.f32 %v216_v14  ;;  %vm256_vm4 = vweird.f32 %v216_v14 }
  0xf9   :  { %529 = vrsqrt.f32 %v214_v20  ;;  %vm236_vm6 = vweird.f32 %v214_v20 }
  0xfb   :  { %v167_v30 = vpop.xlane.xlu0 %166 }
  0xfc   :  { %v161_v38 = vpop.xlane.xlu1 %160  ;;  %v155_v21 = vpop.xlane.xlu2 %154  ;;  %v203_v22 = vmul.f32 %v167_v30, %v684_v46 }
  0xfd   :  { %v201_v27 = vmul.f32 %v161_v38, %v684_v46  ;;  %v199_v3 = vmul.f32 %v155_v21, %v684_v46 }
  0xfe   :  { %v528_v29 = vpop.eup %527  ;;  %v819_v36 = vadd.f32 1e-05, %v203_v22 }
  0xff   :  { %v530_v17 = vpop.eup %529  ;;  %v251_v37 = vmul.f32 %v528_v29, %v216_v14  ;;  %v821_v19 = vadd.f32 1e-05, %v201_v27  ;;  %v823_v39 = vadd.f32 1e-05, %v199_v3  ;;  %vm257_vm2 = vweird.f32 %v528_v29 }
 0x100   :  { %v231_v40 = vmul.f32 %v530_v17, %v214_v20  ;;  %531 = vrsqrt.f32 %v819_v36  ;;  %vm237_vm3 = vweird.f32 %v530_v17  ;;  %vm258_vm7 = vmor %vm256_vm4, %vm257_vm2  ;;  %vm286_vm8 = vweird.f32 %v819_v36 }
 0x101   :  { %v252_v41 = vmul.f32 %v528_v29, %v251_v37  ;;  %533 = vrsqrt.f32 %v821_v19  ;;  %vm238_vm9 = vmor %vm236_vm6, %vm237_vm3  ;;  %vm266_vm10 = vweird.f32 %v821_v19  ;;  %vm246_vm14 = vweird.f32 %v823_v39 }
 0x102   :  { %v232_v42 = vmul.f32 %v530_v17, %v231_v40  ;;  %535 = vrsqrt.f32 %v823_v39 }
 0x103   :  { %v253_v16 = vmul.f32 0.5, %v252_v41  ;;  %v176_v18 = vpop.xlane.xlu0 %175 }
 0x104   :  { %v233_v43 = vmul.f32 0.5, %v232_v42  ;;  %v164_v47 = vpop.xlane.xlu2 %163  ;;  %v170_v49 = vpop.xlane.xlu1 %169  ;;  %v206_v15 = vmul.f32 %v176_v18, %v684_v46 }
 0x105   :  { %v254_v50 = vsub.f32 1.5, %v253_v16  ;;  %v202_v51 = vmul.f32 %v164_v47, %v684_v46  ;;  %v204_v24 = vmul.f32 %v170_v49, %v684_v46 }
 0x106   :  { %v831_v26 = vpop.eup %531  ;;  %v234_v54 = vsub.f32 1.5, %v233_v43  ;;  %v856_v8 = vadd.f32 1e-05, %v206_v15 }
 0x107   :  { %v833_v55 = vpop.eup %533  ;;  %v255_v23 = vmul.f32 %v528_v29, %v254_v50  ;;  %v281_v25 = vmul.f32 %v831_v26, %v819_v36  ;;  %v837_v56 = vadd.f32 1e-05, %v202_v51  ;;  %v850_v32 = vadd.f32 1e-05, %v204_v24 }
 0x108   :  { %v839_v59 = vpop.eup %535  ;;  %v235_v62 = vmul.f32 %v530_v17, %v234_v54  ;;  %v261_v63 = vmul.f32 %v833_v55, %v821_v19  ;;  %vm287_vm11 = vweird.f32 %v831_v26  ;;  %vm267_vm12 = vweird.f32 %v833_v55 }
 0x109   :  { %v259_v34 = vsel %vm258_vm7, %v528_v29, %v255_v23  ;;  %v241_v6 = vmul.f32 %v839_v59, %v823_v39  ;;  %v282_v31 = vmul.f32 %v831_v26, %v281_v25  ;;  %537 = vrsqrt.f32 %v837_v56  ;;  %vm288_vm15 = vmor %vm286_vm8, %vm287_vm11 }
 0x10a   :  { %v239_v9 = vsel %vm238_vm9, %v530_v17, %v235_v62  ;;  %v392_v13 = vmul.f32 %v259_v34, %v690_v52  ;;  %v262_v1 = vmul.f32 %v833_v55, %v261_v63  ;;  %539 = vrsqrt.f32 %v850_v32  ;;  %vm894_vm0 = vmor %vm266_vm10, %vm267_vm12 }
 0x10b   :  { %v390_v2 = vmul.f32 %v239_v9, %v694_v53  ;;  %v242_v11 = vmul.f32 %v839_v59, %v241_v6  ;;  %v283_v14 = vmul.f32 0.5, %v282_v31  ;;  %541 = vrsqrt.f32 %v856_v8  ;;  %v185_v36 = vpop.xlane.xlu0 %184 }
 0x10c   :  { %v412_v20 = vmul.f32 %v844_v61, %v392_v13  ;;  %v263_v30 = vmul.f32 0.5, %v262_v1  ;;  %v173_v38 = vpop.xlane.xlu2 %172  ;;  %vm247_vm13 = vweird.f32 %v839_v59  ;;  %v179_v40 = vpop.xlane.xlu1 %178  ;;  %vm276_vm1 = vweird.f32 %v837_v56 }
 0x10d   :  { %v410_v52 = vmul.f32 %v844_v61, %v390_v2  ;;  %v243_v21 = vmul.f32 0.5, %v242_v11  ;;  %v284_v22 = vsub.f32 1.5, %v283_v14  ;;  %v205_v3 = vmul.f32 %v173_v38, %v684_v46  ;;  %vm248_vm2 = vmor %vm246_vm14, %vm247_vm13 }
 0x10e   :  { %v432_v53 = vadd.f32 %v861_v12, %v412_v20  ;;  %v264_v27 = vsub.f32 1.5, %v263_v30  ;;  %vm316_vm3 = vweird.f32 %v856_v8  ;;  %v207_v15 = vmul.f32 %v179_v40, %v684_v46 }
 0x10f   :  { %v430_v29 = vadd.f32 %v861_v12, %v410_v52  ;;  %v244_v17 = vsub.f32 1.5, %v243_v21  ;;  %v285_v37 = vmul.f32 %v831_v26, %v284_v22  ;;  %v880_v41 = vpop.eup %537  ;;  %v888_v18 = vadd.f32 1e-05, %v205_v3 }
 0x110   :  { %v448_v42 = vpack.c.bf16 %v432_v53, %v432_v53  ;;  %v265_v16 = vmul.f32 %v833_v55, %v264_v27  ;;  %v271_v50 = vmul.f32 %v880_v41, %v837_v56  ;;  %v903_v51 = vpop.eup %539  ;;  %v209_v34 = vmul.f32 %v185_v36, %v684_v46 }
 0x111   :  { %v446_v43 = vpack.c.bf16 %v430_v29, %v430_v29  ;;  %v245_v49 = vmul.f32 %v839_v59, %v244_v17  ;;  %v289_v39 = vsel %vm288_vm15, %v831_v26, %v285_v37  ;;  %543 = vrsqrt.f32 %v888_v18  ;;  %v542_v26 = vpop.eup %541 }
 0x112   :  { %465 = vst.msk [vmem:[%s1107_s3 + $0x8] sm:$0xf] %vm462_vm5, %v448_v42  ;;  %v269_v19 = vsel %vm894_vm0, %v833_v55, %v265_v16  ;;  %v395_v24 = vmul.f32 %v289_v39, %v707_v4  ;;  %v272_v23 = vmul.f32 %v880_v41, %v271_v50  ;;  %v291_v4 = vmul.f32 %v903_v51, %v850_v32 }
 0x113   :  { %463 = vst.msk [vmem:[%s1107_s3] sm:$0xf] %vm462_vm5, %v446_v43  ;;  %v393_v54 = vmul.f32 %v269_v19, %v711_v5  ;;  %v249_v55 = vsel %vm248_vm2, %v839_v59, %v245_v49  ;;  %v311_v63 = vmul.f32 %v542_v26, %v856_v8  ;;  %vm277_vm4 = vweird.f32 %v880_v41  ;;  %v194_v56 = vpop.xlane.xlu0 %193 }
 0x114   :  { %v391_v25 = vmul.f32 %v249_v55, %v716_v7  ;;  %v415_v62 = vmul.f32 %v844_v61, %v395_v24  ;;  %v273_v31 = vmul.f32 0.5, %v272_v23  ;;  %v292_v5 = vmul.f32 %v903_v51, %v291_v4  ;;  %v182_v59 = vpop.xlane.xlu2 %181  ;;  %vm278_vm7 = vmor %vm276_vm1, %vm277_vm4  ;;  %v188_v37 = vpop.xlane.xlu1 %187 }
 0x115   :  { %v413_v6 = vmul.f32 %v844_v61, %v393_v54  ;;  %vm297_vm6 = vweird.f32 %v903_v51  ;;  %v312_v7 = vmul.f32 %v542_v26, %v311_v63  ;;  %v938_v14 = vadd.f32 1e-05, %v207_v15 }
 0x116   :  { %v411_v9 = vmul.f32 %v844_v61, %v391_v25  ;;  %v435_v13 = vadd.f32 %v861_v12, %v415_v62  ;;  %v274_v2 = vsub.f32 1.5, %v273_v31  ;;  %v293_v11 = vmul.f32 0.5, %v292_v5 }
 0x117   :  { %v433_v1 = vadd.f32 %v861_v12, %v413_v6  ;;  %v940_v20 = vpop.eup %543  ;;  %v313_v52 = vmul.f32 0.5, %v312_v7  ;;  %v943_v21 = vadd.f32 1e-05, %v209_v34  ;;  %vm317_vm8 = vweird.f32 %v542_v26 }
 0x118   :  { %v431_v30 = vadd.f32 %v861_v12, %v411_v9  ;;  %v451_v38 = vpack.c.bf16 %v435_v13, %v435_v13  ;;  %v275_v53 = vmul.f32 %v880_v41, %v274_v2  ;;  %v294_v27 = vsub.f32 1.5, %v293_v11  ;;  %vm318_vm11 = vmor %vm316_vm3, %vm317_vm8 }
 0x119   :  { %v449_v22 = vpack.c.bf16 %v433_v1, %v433_v1  ;;  %v301_v3 = vmul.f32 %v940_v20, %v888_v18  ;;  %v314_v17 = vsub.f32 1.5, %v313_v52  ;;  %545 = vrsqrt.f32 %v938_v14 }
 0x11a   :  { %v447_v29 = vpack.c.bf16 %v431_v30, %v431_v30  ;;  %468 = vst.msk [vmem:[%s1107_s3 + $0x14] sm:$0xf] %vm462_vm5, %v451_v38  ;;  %v279_v40 = vsel %vm278_vm7, %v880_v41, %v275_v53  ;;  %v295_v42 = vmul.f32 %v903_v51, %v294_v27  ;;  %vm296_vm9 = vweird.f32 %v850_v32 }
 0x11b   :  { %466 = vst.msk [vmem:[%s1107_s3 + $0xc] sm:$0xf] %vm462_vm5, %v449_v22  ;;  %v302_v16 = vmul.f32 %v940_v20, %v301_v3  ;;  %v394_v43 = vmul.f32 %v279_v40, %v728_v10  ;;  %vm298_vm10 = vmor %vm296_vm9, %vm297_vm6  ;;  %v315_v47 = vmul.f32 %v542_v26, %v314_v17  ;;  %547 = vrsqrt.f32 %v943_v21 }
 0x11c   :  { %464 = vst.msk [vmem:[%s1107_s3 + $0x4] sm:$0xf] %vm462_vm5, %v447_v29  ;;  %v299_v41 = vsel %vm298_vm10, %v903_v51, %v295_v42  ;;  %v208_v49 = vmul.f32 %v182_v59, %v684_v46  ;;  %v210_v39 = vmul.f32 %v188_v37, %v684_v46  ;;  %v212_v19 = vmul.f32 %v194_v56, %v684_v46  ;;  %v191_v8 = vpop.xlane.xlu2 %190  ;;  %v197_v7 = vpop.xlane.xlu1 %196 }
 0x11d   :  { %v303_v32 = vmul.f32 0.5, %v302_v16  ;;  %v414_v50 = vmul.f32 %v844_v61, %v394_v43  ;;  %v396_v10 = vmul.f32 %v299_v41, %v740_v0  ;;  %v319_v36 = vsel %vm318_vm11, %v542_v26, %v315_v47 }
 0x11e   :  { %v398_v24 = vmul.f32 %v319_v36, %v736_v28  ;;  %vm307_vm12 = vweird.f32 %v940_v20  ;;  %v984_v51 = vadd.f32 1e-05, %v208_v49  ;;  %vm306_vm13 = vweird.f32 %v888_v18 }
 0x11f   :  { %v304_v15 = vsub.f32 1.5, %v303_v32  ;;  %v546_v54 = vpop.eup %545  ;;  %v434_v55 = vadd.f32 %v861_v12, %v414_v50  ;;  %v416_v23 = vmul.f32 %v844_v61, %v396_v10  ;;  %v989_v4 = vadd.f32 1e-05, %v210_v39  ;;  %vm308_vm14 = vmor %vm306_vm13, %vm307_vm12 }
 0x120   :  { %v418_v0 = vmul.f32 %v844_v61, %v398_v24  ;;  %v321_v28 = vmul.f32 %v546_v54, %v938_v14  ;;  %v994_v25 = vadd.f32 1e-05, %v212_v19  ;;  %549 = vrsqrt.f32 %v984_v51 }
 0x121   :  { %v305_v26 = vmul.f32 %v940_v20, %v304_v15  ;;  %v548_v62 = vpop.eup %547  ;;  %v450_v63 = vpack.c.bf16 %v434_v55, %v434_v55  ;;  %v436_v34 = vadd.f32 %v861_v12, %v416_v23  ;;  %v211_v18 = vmul.f32 %v191_v8, %v684_v46 }
 0x122   :  { %v438_v6 = vadd.f32 %v861_v12, %v418_v0  ;;  %v322_v5 = vmul.f32 %v546_v54, %v321_v28  ;;  %v341_v59 = vmul.f32 %v548_v62, %v943_v21  ;;  %551 = vrsqrt.f32 %v989_v4 }
 0x123   :  { %v309_v31 = vsel %vm308_vm14, %v940_v20, %v305_v26  ;;  %467 = vst.msk [vmem:[%s1107_s3 + $0x10] sm:$0xf] %vm462_vm5, %v450_v63  ;;  %v452_v9 = vpack.c.bf16 %v436_v34, %v436_v34  ;;  %553 = vrsqrt.f32 %v994_v25  ;;  %v1016_v30 = vadd.f32 1e-05, %v211_v18 }
 0x124   :  { %v397_v13 = vmul.f32 %v309_v31, %v748_v35  ;;  %v454_v1 = vpack.c.bf16 %v438_v6, %v438_v6  ;;  %v323_v2 = vmul.f32 0.5, %v322_v5  ;;  %v342_v11 = vmul.f32 %v548_v62, %v341_v59 }
 0x125   :  { %469 = vst.msk [vmem:[%s1107_s3 + $0x18] sm:$0xf] %vm462_vm5, %v452_v9  ;;  %vm327_vm15 = vweird.f32 %v546_v54  ;;  %v213_v52 = vmul.f32 %v197_v7, %v684_v46  ;;  %vm326_vm0 = vweird.f32 %v938_v14  ;;  %vm346_vm1 = vweird.f32 %v943_v21 }
 0x126   :  { %v417_v20 = vmul.f32 %v844_v61, %v397_v13  ;;  %471 = vst.msk [vmem:[%s1107_s3 + $0x20] sm:$0xf] %vm462_vm5, %v454_v1  ;;  %v324_v35 = vsub.f32 1.5, %v323_v2  ;;  %v343_v38 = vmul.f32 0.5, %v342_v11  ;;  %v550_v22 = vpop.eup %549  ;;  %555 = vrsqrt.f32 %v1016_v30  ;;  %vm328_vm3 = vmor %vm326_vm0, %vm327_vm15 }
 0x127   :  { %vm347_vm2 = vweird.f32 %v548_v62  ;;  %v331_v29 = vmul.f32 %v550_v22, %v984_v51  ;;  %v1028_v40 = vadd.f32 1e-05, %v213_v52  ;;  %vm336_vm6 = vweird.f32 %v984_v51 }
 0x128   :  { %v437_v53 = vadd.f32 %v861_v12, %v417_v20  ;;  %v325_v27 = vmul.f32 %v546_v54, %v324_v35  ;;  %v344_v3 = vsub.f32 1.5, %v343_v38  ;;  %v552_v17 = vpop.eup %551  ;;  %vm348_vm4 = vmor %vm346_vm1, %vm347_vm2  ;;  %vm337_vm7 = vweird.f32 %v550_v22 }
 0x129   :  { %v332_v16 = vmul.f32 %v550_v22, %v331_v29  ;;  %v351_v56 = vmul.f32 %v552_v17, %v989_v4  ;;  %v554_v14 = vpop.eup %553  ;;  %557 = vrsqrt.f32 %v1028_v40  ;;  %vm356_vm8 = vweird.f32 %v989_v4  ;;  %vm338_vm10 = vmor %vm336_vm6, %vm337_vm7 }
 0x12a   :  { %v453_v37 = vpack.c.bf16 %v437_v53, %v437_v53  ;;  %v329_v46 = vsel %vm328_vm3, %v546_v54, %v325_v27  ;;  %v345_v42 = vmul.f32 %v548_v62, %v344_v3  ;;  %v371_v49 = vmul.f32 %v554_v14, %v994_v25 }
 0x12b   :  { %v399_v43 = vmul.f32 %v329_v46, %v766_v45  ;;  %v333_v41 = vmul.f32 0.5, %v332_v16  ;;  %v352_v32 = vmul.f32 %v552_v17, %v351_v56  ;;  %vm357_vm9 = vweird.f32 %v552_v17 }
 0x12c   :  { %470 = vst.msk [vmem:[%s1107_s3 + $0x1c] sm:$0xf] %vm462_vm5, %v453_v37  ;;  %v349_v47 = vsel %vm348_vm4, %v548_v62, %v345_v42  ;;  %v556_v39 = vpop.eup %555  ;;  %v372_v19 = vmul.f32 %v554_v14, %v371_v49  ;;  %vm376_vm11 = vweird.f32 %v994_v25  ;;  %vm377_vm12 = vweird.f32 %v554_v14  ;;  %vm358_vm13 = vmor %vm356_vm8, %vm357_vm9 }
 0x12d   :  { %v419_v50 = vmul.f32 %v844_v61, %v399_v43  ;;  %v401_v10 = vmul.f32 %v349_v47, %v762_v44  ;;  %v334_v36 = vsub.f32 1.5, %v333_v41  ;;  %v353_v45 = vmul.f32 0.5, %v352_v32  ;;  %vm378_vm15 = vmor %vm376_vm11, %vm377_vm12 }
 0x12e   :  { %v361_v21 = vmul.f32 %v556_v39, %v1016_v30  ;;  %v373_v55 = vmul.f32 0.5, %v372_v19  ;;  %vm367_vm14 = vweird.f32 %v556_v39  ;;  %vm366_vm0 = vweird.f32 %v1016_v30 }
 0x12f   :  { %v439_v24 = vadd.f32 %v861_v12, %v419_v50  ;;  %v421_v15 = vmul.f32 %v844_v61, %v401_v10  ;;  %v335_v8 = vmul.f32 %v550_v22, %v334_v36  ;;  %v354_v54 = vsub.f32 1.5, %v353_v45  ;;  %v558_v44 = vpop.eup %557  ;;  %vm368_vm1 = vmor %vm366_vm0, %vm367_vm14 }
 0x130   :  { %v362_v23 = vmul.f32 %v556_v39, %v361_v21  ;;  %v374_v63 = vsub.f32 1.5, %v373_v55  ;;  %v381_v51 = vmul.f32 %v558_v44, %v1028_v40  ;;  %vm387_vm2 = vweird.f32 %v558_v44 }
 0x131   :  { %v455_v0 = vpack.c.bf16 %v439_v24, %v439_v24  ;;  %v441_v26 = vadd.f32 %v861_v12, %v421_v15  ;;  %v339_v28 = vsel %vm338_vm10, %v550_v22, %v335_v8  ;;  %v355_v62 = vmul.f32 %v552_v17, %v354_v54 }
 0x132   :  { %v363_v34 = vmul.f32 0.5, %v362_v23  ;;  %v400_v6 = vmul.f32 %v339_v28, %v772_v48  ;;  %v375_v5 = vmul.f32 %v554_v14, %v374_v63  ;;  %v382_v48 = vmul.f32 %v558_v44, %v381_v51 }
 0x133   :  { %472 = vst.msk [vmem:[%s1107_s3 + $0x24] sm:$0xf] %vm462_vm5, %v455_v0  ;;  %v457_v18 = vpack.c.bf16 %v441_v26, %v441_v26  ;;  %v359_v31 = vsel %vm358_vm13, %v552_v17, %v355_v62  ;;  %vm386_vm3 = vweird.f32 %v1028_v40 }
 0x134   :  { %v364_v59 = vsub.f32 1.5, %v363_v34  ;;  %v420_v9 = vmul.f32 %v844_v61, %v400_v6  ;;  %v402_v13 = vmul.f32 %v359_v31, %v790_v58  ;;  %v379_v4 = vsel %vm378_vm15, %v554_v14, %v375_v5  ;;  %vm388_vm4 = vmor %vm386_vm3, %vm387_vm2 }
 0x135   :  { %474 = vst.msk [vmem:[%s1107_s3 + $0x2c] sm:$0xf] %vm462_vm5, %v457_v18  ;;  %v404_v11 = vmul.f32 %v379_v4, %v786_v57  ;;  %v383_v20 = vmul.f32 0.5, %v382_v48 }
 0x136   :  { %v365_v7 = vmul.f32 %v556_v39, %v364_v59  ;;  %v440_v1 = vadd.f32 %v861_v12, %v420_v9  ;;  %v422_v2 = vmul.f32 %v844_v61, %v402_v13 }
 0x137   :  { %v424_v25 = vmul.f32 %v844_v61, %v404_v11  ;;  %v384_v22 = vsub.f32 1.5, %v383_v20 }
 0x138   :  { %v369_v35 = vsel %vm368_vm1, %v556_v39, %v365_v7  ;;  %v456_v38 = vpack.c.bf16 %v440_v1, %v440_v1  ;;  %v442_v58 = vadd.f32 %v861_v12, %v422_v2 }
 0x139   :  { %v403_v52 = vmul.f32 %v369_v35, %v796_v60  ;;  %v444_v57 = vadd.f32 %v861_v12, %v424_v25  ;;  %v385_v27 = vmul.f32 %v558_v44, %v384_v22 }
 0x13a   :  { %473 = vst.msk [vmem:[%s1107_s3 + $0x28] sm:$0xf] %vm462_vm5, %v456_v38  ;;  %v458_v30 = vpack.c.bf16 %v442_v58, %v442_v58 }
 0x13b   :  { %v423_v53 = vmul.f32 %v844_v61, %v403_v52  ;;  %v460_v60 = vpack.c.bf16 %v444_v57, %v444_v57  ;;  %v389_v29 = vsel %vm388_vm4, %v558_v44, %v385_v27 }
 0x13c   :  { %475 = vst.msk [vmem:[%s1107_s3 + $0x30] sm:$0xf] %vm462_vm5, %v458_v30  ;;  %v405_v37 = vmul.f32 %v389_v29, %v808_v33 }
 0x13d   :  { %v443_v3 = vadd.f32 %v861_v12, %v423_v53  ;;  %477 = vst.msk [vmem:[%s1107_s3 + $0x38] sm:$0xf] %vm462_vm5, %v460_v60 }
 0x13e   :  { %v425_v40 = vmul.f32 %v844_v61, %v405_v37 }
 0x13f   :  { %v459_v17 = vpack.c.bf16 %v443_v3, %v443_v3 }
 0x140   :  { %v445_v46 = vadd.f32 %v861_v12, %v425_v40 }
 0x141   :  { %476 = vst.msk [vmem:[%s1107_s3 + $0x34] sm:$0xf] %vm462_vm5, %v459_v17 }
 0x142   :  { %v461_v42 = vpack.c.bf16 %v445_v46, %v445_v46 }
 0x144   :  { %478 = vst.msk [vmem:[%s1107_s3 + $0x3c] sm:$0xf] %vm462_vm5, %v461_v42 }

// kernel: savss_layer_forward.32
= control target key start
LH: loop header
LB: loop body
LE: loop exit
PB: predicated region body
PF: predicated region fallthrough
CT: control target
= control target key end

     0   :  { %s879_s27 = smov 0   ;;  %s1004_s0 = inlined_call_operand.vmem [shape: bf16[2,64,32], index: 0, kind: input, shape index: {}]   ;;  %s1005_s1 = inlined_call_operand.vmem [shape: bf16[32,32], index: 1, kind: input, shape index: {}]   ;;  %s1006_s2 = inlined_call_operand.vmem [shape: f32[1,32], index: 2, kind: input, shape index: {}]   ;;  %s1007_s3 = inlined_call_operand.vmem [shape: f32[32,16], index: 3, kind: input, shape index: {}]   ;;  %s1008_s4 = inlined_call_operand.vmem [shape: f32[16,32], index: 4, kind: input, shape index: {}]   ;;  %s1009_s5 = inlined_call_operand.vmem [shape: f32[1,32], index: 5, kind: input, shape index: {}]   ;;  %s1010_s6 = inlined_call_operand.vmem [shape: f32[1,32], index: 6, kind: input, shape index: {}]   ;;  %s1011_s7 = inlined_call_operand.vmem [shape: bf16[2,64,32], index: 7, kind: input, shape index: {}]   ;;  %s1012_s8 = inlined_call_operand.vmem [shape: bf16[2,64,32], index: 8, kind: output, shape index: {}]  }
   0x1 LB: > { %s736_s28 = sadd.s32 4294967295, %s832_s27   ;;  %p740_p0 = scmp.ge.s32.totalorder %s832_s27, 1  ;;  %s832_s27 = sphi %s879_s27, %s18_s27  }
   0x2   : > { %p272_p1 = scmp.lt.s32.totalorder %s832_s27, 3 }
   0x4   : > { %p273_p2 = pnand %p740_p0, %p272_p1 }
   0x5   : > { %p311_p3 = scmp.lt.s32.totalorder (!%p273_p2), %s736_s28, 1 }
   0x6   : > { %276 = sbr.rel (%p273_p2) target bundleno = 795 (0x31b), region = 52 }
   0xb   : > { %v789_v0 = vld [vmem:[%s1005_s1 + $0x8] sm:$0xff]  ;;  %v788_v1 = vld [vmem:[%s1005_s1] sm:$0xff]  ;;  %s1014_s28 = smov (!%p311_p3, %s736_s28), 1  ;;  %vm375_vm0 = vcmask 261120   ;;  %v420_v8 = vld [vmem:[%s1007_s3 + $0x18] sm:$0xff]  ;;  %vm468_vm1 = vcmask 130048  }
   0xc   : > { %394 = vmatpush.bf16.msra.mxu0 %v789_v0  ;;  %810 = vmatpush.bf16.msra.mxu3 %v789_v0  ;;  %s893_s11 = sshll.u32 %s1014_s28, 5  ;;  %v419_v9 = vld [vmem:[%s1007_s3 + $0x10] sm:$0xff]  ;;  %v418_v10 = vld [vmem:[%s1007_s3 + $0x8] sm:$0xff]  ;;  %v417_v12 = vld [vmem:[%s1007_s3] sm:$0xff]  ;;  %vm660_vm5 = vcmask 257024  }
   0xd   : > { %809 = vmatpush.bf16.msra.mxu1 %v789_v0  ;;  %s315_s14 = scalar_lea.vmem %s1004_s0, %s893_s11  ;;  %v821_v13 = vld [vmem:[%s1006_s2] ss:$0 sm:$0xff]  ;;  %v422_v48 = vld [vmem:[%s1008_s4 + $0x8] sm:$0xff]  ;;  %s320_s10 = scalar_lea.vmem %s1011_s7, %s893_s11 }
   0xe   : > { %v784_v2 = vld [vmem:[%s315_s14] sm:$0xff]  ;;  %v787_v3 = vld [vmem:[%s315_s14 + $0x18] sm:$0xff]  ;;  %v786_v4 = vld [vmem:[%s315_s14 + $0x10] sm:$0xff]  ;;  %486 = vmatpush.msra.mxu2 %v422_v48  ;;  %s325_s18 = scalar_lea.vmem %s1012_s8, %s893_s11 }
   0xf   : > { %v785_v5 = vld [vmem:[%s315_s14 + $0x8] sm:$0xff]  ;;  %v421_v49 = vld [vmem:[%s1008_s4] sm:$0xff] }
  0x10   : > { %395 = vmatpush.bf16.msra.mxu0 %v788_v1  ;;  %812 = vmatpush.bf16.msra.mxu3 %v788_v1 }
  0x11   : > { %811 = vmatpush.bf16.msra.mxu1 %v788_v1  ;;  %487 = vmatpush.msra.mxu2 %v421_v49 }
  0x13   : > { %771 = vmatmul.msk.bf16.vlgmr.msra.gmra.mxu0 %vm375_vm0, %v784_v2  ;;  %774 = vmatmul.msk.bf16.vlgmr.msra.gmra.mxu3 %vm375_vm0, %v787_v3 }
  0x14   : > { %773 = vmatmul.msk.bf16.vlgmr.msra.gmra.mxu1 %vm375_vm0, %v786_v4  ;;  %545 = vmatpush.msrb.mxu3 %v420_v8 }
  0x15   : > { %459 = vmatpush.msrb.mxu1 %v420_v8  ;;  %571 = vmatpush.msrb.mxu2 %v422_v48 }
  0x16   : > { %546 = vmatpush.msrb.mxu3 %v419_v9 }
  0x17   : > { %460 = vmatpush.msrb.mxu1 %v419_v9  ;;  %572 = vmatpush.msrb.mxu2 %v421_v49 }
  0x18   : > { %547 = vmatpush.msrb.mxu3 %v418_v10 }
  0x19   : > { %461 = vmatpush.msrb.mxu1 %v418_v10 }
  0x1a   : > { %548 = vmatpush.msrb.mxu3 %v417_v12 }
  0x1b   : > { %462 = vmatpush.msrb.mxu1 %v417_v12 }
  0x23   : > { %772 = vmatmul.msk.bf16.gmra.mxu0 %vm375_vm0, %v785_v5 }
  0x90   : > { %v397_v6 = vpop.f32.mrf.mxu0 }
  0x91   : > { %v407_v11 = vpop.f32.mrf.mxu1  ;;  %v398_v17 = vadd.f32 %v821_v13, %v397_v6 }
  0x92   : > { %v408_v25 = vadd.f32 %v821_v13, %v407_v11 }
  0x93   : > { %v423_v20 = vsel %vm375_vm0, %v398_v17, 0.0 }
  0x94   : > { %v430_v32 = vsel %vm375_vm0, %v408_v25, 0.0 }
  0x96   : > { %v412_v16 = vpop.f32.mrf.mxu3 }
  0x97   : > { %v413_v33 = vadd.f32 %v821_v13, %v412_v16 }
  0x98   : > { %v399_v7 = vpop.f32.mrf.mxu0 }
  0x99   : > { %v400_v15 = vadd.f32 %v821_v13, %v399_v7  ;;  %v409_v23 = vpop.f32.mrf.mxu1  ;;  %v434_v38 = vsel %vm375_vm0, %v413_v33, 0.0 }
  0x9a   : > { %v410_v28 = vadd.f32 %v821_v13, %v409_v23 }
  0x9b   : > { %v424_v19 = vsel %vm375_vm0, %v400_v15, 0.0 }
  0x9c   : > { %v425_v22 = vadd.f32 %v424_v19, %v423_v20  ;;  %v432_v35 = vsel %vm375_vm0, %v410_v28, 0.0 }
  0x9e   : > { %v414_v31 = vpop.f32.mrf.mxu3 }
  0x9f   : > { %v415_v36 = vadd.f32 %v821_v13, %v414_v31 }
  0xa0   : > { %v402_v14 = vpop.f32.mrf.mxu0 }
  0xa1   : > { %v403_v18 = vadd.f32 %v821_v13, %v402_v14  ;;  %v436_v40 = vsel %vm375_vm0, %v415_v36, 0.0 }
  0xa3   : > { %v426_v21 = vsel %vm375_vm0, %v403_v18, 0.0 }
  0xa4   : > { %v427_v27 = vadd.f32 %v426_v21, %v425_v22 }
  0xa8   : > { %v404_v24 = vpop.f32.mrf.mxu0 }
  0xa9   : > { %v405_v26 = vadd.f32 %v821_v13, %v404_v24 }
  0xab   : > { %v428_v29 = vsel %vm375_vm0, %v405_v26, 0.0 }
  0xac   : > { %v429_v30 = vadd.f32 %v428_v29, %v427_v27 }
  0xae   : > { %v431_v34 = vadd.f32 %v430_v32, %v429_v30 }
  0xb0   : > { %v433_v37 = vadd.f32 %v432_v35, %v431_v34 }
  0xb2   : > { %v435_v39 = vadd.f32 %v434_v38, %v433_v37  ;;  %v806_v37 = vld [vmem:[%s320_s10 + $0x8] sm:$0xff]  }
  0xb4   : > { %v437_v41 = vadd.f32 %v436_v40, %v435_v39  ;;  %v807_v39 = vld [vmem:[%s320_s10 + $0x10] sm:$0xff]   ;;  %v808_v40 = vld [vmem:[%s320_s10 + $0x18] sm:$0xff]  }
  0xb5   : > { %v800_v48 = vunpack.c.l.bf16 %v807_v39  ;;  %v801_v49 = vunpack.c.h.bf16 %v807_v39 }
  0xb6   : > { %v438_v42 = vrot.slane %v437_v41, 4 }
  0xb8   : > { %v439_v43 = vadd.f32 %v438_v42, %v437_v41 }
  0xba   : > { %v440_v44 = vrot.slane %v439_v43, 2 }
  0xbc   : > { %v441_v45 = vadd.f32 %v440_v44, %v439_v43  ;;  %v796_v44 = vunpack.c.l.bf16 %v806_v37 }
  0xbe   : > { %v442_v46 = vrot.slane %v441_v45, 1 }
  0xc0   : > { %v443_v47 = vadd.f32 %v442_v46, %v441_v45  ;;  %v797_v45 = vunpack.c.h.bf16 %v806_v37 }
  0xc2   : > { %775 = vmatmul.msk.f32.vlgmr.msrb.gmra.mxu1 %vm375_vm0, %v443_v47  ;;  %v822_v47 = vld [vmem:[%s1009_s5] ss:$0 sm:$0xff] }
 0x13f   : > { %v464_v50 = vpop.f32.mrf.mxu1 }
 0x140   : > { %v467_v51 = vmul.f32 0.0078125, %v464_v50  ;;  %v804_v50 = vunpack.c.l.bf16 %v808_v40 }
 0x142   : > { %776 = vmatmul.msk.f32.vlgmr.msra.gmra.mxu2 %vm468_vm1, %v467_v51  ;;  %v805_v51 = vunpack.c.h.bf16 %v808_v40 }
 0x1c5   : > { %v489_v52 = vpop.f32.mrf.mxu2 }
 0x1c6   : > { %v492_v53 = vperm.slane %v489_v52, 0 }
 0x1c8   : > { %v934_v54 = vsub.f32 %v398_v17, %v492_v53  ;;  %v936_v55 = vsub.f32 %v400_v15, %v492_v53  ;;  %v938_v56 = vsub.f32 %v403_v18, %v492_v53  ;;  %v940_v57 = vsub.f32 %v405_v26, %v492_v53 }
 0x1c9   : > { %v942_v58 = vsub.f32 %v408_v25, %v492_v53  ;;  %v950_v62 = vsub.f32 %v410_v28, %v492_v53  ;;  %v956_v3 = vsub.f32 %v413_v33, %v492_v53  ;;  %v500_v7 = vsub.f32 %v415_v36, %v492_v53  ;;  %v791_v36 = vld [vmem:[%s320_s10] sm:$0xff]  }
 0x1ca   : > { %v501_v59 = vmul.f32 %v934_v54, %v934_v54  ;;  %v502_v60 = vmul.f32 %v936_v55, %v936_v55  ;;  %v503_v61 = vmul.f32 %v938_v56, %v938_v56  ;;  %v504_v63 = vmul.f32 %v940_v57, %v940_v57 }
 0x1cb   : > { %v505_v4 = vmul.f32 %v942_v58, %v942_v58  ;;  %v506_v8 = vmul.f32 %v950_v62, %v950_v62  ;;  %v507_v11 = vmul.f32 %v956_v3, %v956_v3  ;;  %v508_v14 = vmul.f32 %v500_v7, %v500_v7 }
 0x1cc   : > { %v509_v0 = vsel %vm375_vm0, %v501_v59, 0.0  ;;  %v510_v1 = vsel %vm375_vm0, %v502_v60, 0.0  ;;  %v512_v5 = vsel %vm375_vm0, %v503_v61, 0.0  ;;  %v514_v9 = vsel %vm375_vm0, %v504_v63, 0.0  ;;  %v823_v61 = vld [vmem:[%s1010_s6] ss:$0 sm:$0xff] }
 0x1cd   : > { %v511_v2 = vadd.f32 %v510_v1, %v509_v0  ;;  %v516_v12 = vsel %vm375_vm0, %v505_v4, 0.0  ;;  %v518_v15 = vsel %vm375_vm0, %v506_v8, 0.0  ;;  %v520_v17 = vsel %vm375_vm0, %v507_v11, 0.0 }
 0x1ce   : > { %v522_v19 = vsel %vm375_vm0, %v508_v14, 0.0  ;;  %v792_v41 = vunpack.c.l.bf16 %v791_v36  ;;  %v793_v43 = vunpack.c.h.bf16 %v791_v36 }
 0x1cf   : > { %v513_v6 = vadd.f32 %v512_v5, %v511_v2 }
 0x1d1   : > { %v515_v10 = vadd.f32 %v514_v9, %v513_v6 }
 0x1d3   : > { %v517_v13 = vadd.f32 %v516_v12, %v515_v10 }
 0x1d5   : > { %v519_v16 = vadd.f32 %v518_v15, %v517_v13 }
 0x1d7   : > { %v521_v18 = vadd.f32 %v520_v17, %v519_v16 }
 0x1d9   : > { %v523_v20 = vadd.f32 %v522_v19, %v521_v18 }
 0x1db   : > { %v524_v21 = vrot.slane %v523_v20, 4 }
 0x1dd   : > { %v525_v22 = vadd.f32 %v524_v21, %v523_v20 }
 0x1df   : > { %v526_v23 = vrot.slane %v525_v22, 2 }
 0x1e1   : > { %v527_v24 = vadd.f32 %v526_v23, %v525_v22 }
 0x1e3   : > { %v528_v25 = vrot.slane %v527_v24, 1 }
 0x1e5   : > { %v529_v26 = vadd.f32 %v528_v25, %v527_v24 }
 0x1e7   : > { %777 = vmatmul.msk.f32.vlgmr.msrb.gmra.mxu3 %vm375_vm0, %v529_v26 }
 0x26a   : > { %v550_v27 = vpop.f32.mrf.mxu3 }
 0x26b   : > { %v553_v28 = vmul.f32 0.0078125, %v550_v27 }
 0x26d   : > { %778 = vmatmul.msk.f32.vlgmr.msrb.gmra.mxu2 %vm468_vm1, %v553_v28 }
 0x2f0   : > { %v574_v29 = vpop.f32.mrf.mxu2 }
 0x2f1   : > { %v575_v30 = vadd.f32 1e-05, %v574_v29 }
 0x2f3   : > { %824 = vrsqrt.f32 %v575_v30  ;;  %vm583_vm3 = vweird.f32 %v575_v30 }
 0x2f9   : > { %v825_v31 = vpop.eup %824 }
 0x2fa   : > { %v578_v32 = vmul.f32 %v825_v31, %v575_v30  ;;  %vm584_vm2 = vweird.f32 %v825_v31 }
 0x2fb   : > { %vm585_vm4 = vmor %vm583_vm3, %vm584_vm2 }
 0x2fc   : > { %v579_v33 = vmul.f32 %v825_v31, %v578_v32 }
 0x2fe   : > { %v580_v34 = vmul.f32 0.5, %v579_v33 }
 0x300   : > { %v581_v35 = vsub.f32 1.5, %v580_v34 }
 0x302   : > { %v582_v38 = vmul.f32 %v825_v31, %v581_v35 }
 0x304   : > { %v586_v42 = vsel %vm585_vm4, %v825_v31, %v582_v38 }
 0x305   : > { %v587_v46 = vperm.slane %v586_v42, 0 }
 0x307   : > { %v588_v52 = vmul.f32 %v587_v46, %v934_v54  ;;  %v589_v53 = vmul.f32 %v587_v46, %v936_v55  ;;  %v590_v59 = vmul.f32 %v587_v46, %v938_v56  ;;  %v591_v60 = vmul.f32 %v587_v46, %v940_v57 }
 0x308   : > { %v592_v63 = vmul.f32 %v587_v46, %v942_v58  ;;  %v593_v0 = vmul.f32 %v587_v46, %v950_v62  ;;  %v594_v1 = vmul.f32 %v587_v46, %v956_v3  ;;  %v595_v2 = vmul.f32 %v587_v46, %v500_v7 }
 0x309   : > { %v600_v4 = vmul.f32 %v822_v47, %v588_v52  ;;  %v601_v5 = vmul.f32 %v822_v47, %v589_v53  ;;  %v602_v54 = vmul.f32 %v822_v47, %v590_v59  ;;  %v603_v6 = vmul.f32 %v822_v47, %v591_v60 }
 0x30a   : > { %v604_v55 = vmul.f32 %v822_v47, %v592_v63  ;;  %v605_v8 = vmul.f32 %v822_v47, %v593_v0  ;;  %v606_v56 = vmul.f32 %v822_v47, %v594_v1  ;;  %v607_v9 = vmul.f32 %v822_v47, %v595_v2 }
 0x30b   : > { %v612_v57 = vadd.f32 %v823_v61, %v600_v4  ;;  %v613_v10 = vadd.f32 %v823_v61, %v601_v5  ;;  %v614_v11 = vadd.f32 %v823_v61, %v602_v54  ;;  %v615_v12 = vadd.f32 %v823_v61, %v603_v6 }
 0x30c   : > { %v616_v13 = vadd.f32 %v823_v61, %v604_v55  ;;  %v617_v58 = vadd.f32 %v823_v61, %v605_v8  ;;  %v618_v14 = vadd.f32 %v823_v61, %v606_v56  ;;  %v619_v62 = vadd.f32 %v823_v61, %v607_v9 }
 0x30d   : > { %v620_v15 = vmax.f32 %v612_v57, 0.0  ;;  %v621_v3 = vmax.f32 %v613_v10, 0.0  ;;  %v622_v7 = vmax.f32 %v614_v11, 0.0  ;;  %v623_v16 = vmax.f32 %v615_v12, 0.0 }
 0x30e   : > { %v624_v17 = vmax.f32 %v616_v13, 0.0  ;;  %v625_v18 = vmax.f32 %v617_v58, 0.0  ;;  %v626_v19 = vmax.f32 %v618_v14, 0.0  ;;  %v627_v20 = vmax.f32 %v619_v62, 0.0 }
 0x30f   : > { %v644_v21 = vadd.f32 %v792_v41, %v620_v15  ;;  %v645_v22 = vadd.f32 %v793_v43, %v621_v3  ;;  %v646_v23 = vadd.f32 %v796_v44, %v622_v7  ;;  %v647_v24 = vadd.f32 %v797_v45, %v623_v16 }
 0x310   : > { %v648_v25 = vadd.f32 %v800_v48, %v624_v17  ;;  %v649_v26 = vadd.f32 %v801_v49, %v625_v18  ;;  %v650_v27 = vadd.f32 %v804_v50, %v626_v19  ;;  %v651_v31 = vadd.f32 %v805_v51, %v627_v20 }
 0x311   : > { %v652_v28 = vpack.c.bf16 %v644_v21, %v644_v21  ;;  %v653_v29 = vpack.c.bf16 %v645_v22, %v645_v22  ;;  %v654_v30 = vpack.c.bf16 %v646_v23, %v646_v23  ;;  %v655_v32 = vpack.c.bf16 %v647_v24, %v647_v24 }
 0x312   : > { %v656_v33 = vpack.c.bf16 %v648_v25, %v648_v25  ;;  %v657_v34 = vpack.c.bf16 %v649_v26, %v649_v26  ;;  %v658_v35 = vpack.c.bf16 %v650_v27, %v650_v27  ;;  %v659_v36 = vpack.c.bf16 %v651_v31, %v651_v31 }
 0x313   : > { %661 = vst.msk [vmem:[%s325_s18] sm:$0xf] %vm660_vm5, %v652_v28 }
 0x314   : > { %662 = vst.msk [vmem:[%s325_s18 + $0x4] sm:$0xf] %vm660_vm5, %v653_v29 }
 0x315   : > { %663 = vst.msk [vmem:[%s325_s18 + $0x8] sm:$0xf] %vm660_vm5, %v654_v30 }
 0x316   : > { %664 = vst.msk [vmem:[%s325_s18 + $0xc] sm:$0xf] %vm660_vm5, %v655_v32 }
 0x317   : > { %665 = vst.msk [vmem:[%s325_s18 + $0x10] sm:$0xf] %vm660_vm5, %v656_v33 }
 0x318   : > { %666 = vst.msk [vmem:[%s325_s18 + $0x14] sm:$0xf] %vm660_vm5, %v657_v34 }
 0x319   : > { %667 = vst.msk [vmem:[%s325_s18 + $0x18] sm:$0xf] %vm660_vm5, %v658_v35 }
 0x31a   : > { %668 = vst.msk [vmem:[%s325_s18 + $0x1c] sm:$0xf] %vm660_vm5, %v659_v36 }
 0x31b PF: > { %s18_s27 = sadd.s32 1, %s832_s27  }
 0x31c   : > { %p15_p4 = scmp.ge.s32.totalorder %s18_s27, 4  }
 0x31e   :  { %17 = sbr.rel (!%p15_p4) target bundleno = 1 (0x1), region = 85 }

// kernel: savss_layer_forward.44
= control target key start
LH: loop header
LB: loop body
LE: loop exit
PB: predicated region body
PF: predicated region fallthrough
CT: control target
= control target key end

     0   :  { %vm110_vm0 = vcmask 1041408   ;;  %vm85_vm1 = vcmask 31744   ;;  %vm499_vm6 = vcmask 519168   ;;  %vm592_vm15 = vcmask 523264   ;;  %s1580_s1 = inlined_call_operand.vmem [shape: bf16[4,64], index: 1, kind: input, shape index: {}]   ;;  %s1581_s0 = inlined_call_operand.vmem [shape: bf16[128,4], index: 0, kind: input, shape index: {}]   ;;  %s1582_s2 = inlined_call_operand.vmem [shape: bf16[64,64], index: 2, kind: input, shape index: {}]   ;;  %s1583_s4 = inlined_call_operand.vmem [shape: bf16[64,16], index: 4, kind: input, shape index: {}]   ;;  %s1584_s5 = inlined_call_operand.vmem [shape: bf16[64,16], index: 5, kind: input, shape index: {}]   ;;  %s1585_s6 = inlined_call_operand.vmem [shape: bf16[128,64], index: 6, kind: output, shape index: {0}]   ;;  %s1586_s3 = inlined_call_operand.vmem [shape: f32[1,64], index: 3, kind: input, shape index: {}]   ;;  %s1587_s7 = inlined_call_operand.vmem [shape: f32[128,64], index: 7, kind: output, shape index: {1}]   ;;  %s1588_s8 = inlined_call_operand.vmem [shape: f32[128,16], index: 8, kind: output, shape index: {2}]   ;;  %s1589_s9 = inlined_call_operand.vmem [shape: f32[128,16], index: 9, kind: output, shape index: {3}]  }
   0x1   :  { %v44_v0 = vld [vmem:[%s1580_s1] sm:$0x3]  ;;  %v1022_v3 = vld [vmem:[%s1581_s0 + $0x8] sm:$0xff]  ;;  %v1023_v4 = vld [vmem:[%s1581_s0 + $0x10] sm:$0xff] }
   0x2   :  { %v112_v1 = vsel %vm110_vm0, %v44_v0, 0  ;;  %v1021_v2 = vld [vmem:[%s1581_s0] sm:$0xff]  ;;  %v1024_v5 = vld [vmem:[%s1581_s0 + $0x18] sm:$0xff]  ;;  %v1026_v7 = vld [vmem:[%s1581_s0 + $0x28] sm:$0xff] }
   0x3   :  { %121 = vmatpush.bf16.msra.mxu0 %v112_v1  ;;  %v1025_v6 = vld [vmem:[%s1581_s0 + $0x20] sm:$0xff]  ;;  %v1027_v8 = vld [vmem:[%s1581_s0 + $0x30] sm:$0xff]  ;;  %v1028_v9 = vld [vmem:[%s1581_s0 + $0x38] sm:$0xff] }
   0x4   :  { %v1032_v10 = vld [vmem:[%s1582_s2 + $0x18] sm:$0xff]  ;;  %v1031_v15 = vld [vmem:[%s1582_s2 + $0x10] sm:$0xff]  ;;  %v1030_v18 = vld [vmem:[%s1582_s2 + $0x8] sm:$0xff] }
   0x5   :  { %v1036_v11 = vld [vmem:[%s1583_s4 + $0x18] sm:$0xff]  ;;  %621 = vmatpush.bf16.msra.mxu1 %v1032_v10  ;;  %v1035_v16 = vld [vmem:[%s1583_s4 + $0x10] sm:$0xff]  ;;  %v1034_v19 = vld [vmem:[%s1583_s4 + $0x8] sm:$0xff] }
   0x6   :  { %925 = vmatmul.msk.bf16.vlgmr.msra.gmra.mxu0 %vm85_vm1, %v1021_v2  ;;  %v1040_v12 = vld [vmem:[%s1584_s5 + $0x18] sm:$0xff]  ;;  %718 = vmatpush.bf16.msra.mxu2 %v1036_v11  ;;  %v1039_v17 = vld [vmem:[%s1584_s5 + $0x10] sm:$0xff]  ;;  %v1038_v20 = vld [vmem:[%s1584_s5 + $0x8] sm:$0xff] }
   0x7   :  { %816 = vmatpush.bf16.msra.mxu3 %v1040_v12  ;;  %v1029_v24 = vld [vmem:[%s1582_s2] sm:$0xff] }
   0x8   :  { %v1033_v25 = vld [vmem:[%s1583_s4] sm:$0xff] }
   0x9   :  { %622 = vmatpush.bf16.msra.mxu1 %v1031_v15  ;;  %v1037_v26 = vld [vmem:[%s1584_s5] sm:$0xff] }
   0xa   :  { %719 = vmatpush.bf16.msra.mxu2 %v1035_v16 }
   0xb   :  { %817 = vmatpush.bf16.msra.mxu3 %v1039_v17 }
   0xd   :  { %623 = vmatpush.bf16.msra.mxu1 %v1030_v18 }
   0xe   :  { %720 = vmatpush.bf16.msra.mxu2 %v1034_v19 }
   0xf   :  { %818 = vmatpush.bf16.msra.mxu3 %v1038_v20 }
  0x11   :  { %624 = vmatpush.bf16.msra.mxu1 %v1029_v24 }
  0x12   :  { %721 = vmatpush.bf16.msra.mxu2 %v1033_v25 }
  0x13   :  { %819 = vmatpush.bf16.msra.mxu3 %v1037_v26 }
  0x16   :  { %926 = vmatmul.msk.bf16.gmra.mxu0 %vm85_vm1, %v1022_v3 }
  0x26   :  { %927 = vmatmul.msk.bf16.gmra.mxu0 %vm85_vm1, %v1023_v4 }
  0x36   :  { %928 = vmatmul.msk.bf16.gmra.mxu0 %vm85_vm1, %v1024_v5 }
  0x46   :  { %929 = vmatmul.msk.bf16.gmra.mxu0 %vm85_vm1, %v1025_v6 }
  0x56   :  { %930 = vmatmul.msk.bf16.gmra.mxu0 %vm85_vm1, %v1026_v7 }
  0x66   :  { %931 = vmatmul.msk.bf16.gmra.mxu0 %vm85_vm1, %v1027_v8 }
  0x76   :  { %932 = vmatmul.msk.bf16.gmra.mxu0 %vm85_vm1, %v1028_v9 }
  0x83   :  { %v123_v13 = vpop.f32.mrf.mxu0 }
  0x84   :  { %v933_v14 = vmul.f32 -1.442695, %v123_v13 }
  0x86   :  { %1042 = vpow2.f32 %v933_v14 }
  0x8b   :  { %v1210_v21 = vpop.f32.mrf.mxu0 }
  0x8c   :  { %v1043_v22 = vpop.eup %1042  ;;  %v934_v23 = vmul.f32 -1.442695, %v1210_v21 }
  0x8d   :  { %v211_v27 = vadd.f32 1.0, %v1043_v22 }
  0x8e   :  { %1044 = vpow2.f32 %v934_v23 }
  0x8f   :  { %1046 = vrcp.f32 %v211_v27  ;;  %v238_v35 = vand.u32 2147483648, %v211_v27  ;;  %v236_v37 = vand.u32 2147483647, %v211_v27  ;;  %vm232_vm3 = vweird.f32 %v211_v27 }
  0x91   :  { %v239_v43 = vor.u32 1.1754944e-38, %v238_v35  ;;  %vm237_vm5 = vcmp.eq.f32.partialorder %v236_v37, 8.507059e+37 }
  0x93   :  { %v1222_v28 = vpop.f32.mrf.mxu0 }
  0x94   :  { %v1045_v29 = vpop.eup %1044  ;;  %v935_v30 = vmul.f32 -1.442695, %v1222_v28 }
  0x95   :  { %v1047_v31 = vpop.eup %1046  ;;  %v212_v32 = vadd.f32 1.0, %v1045_v29 }
  0x96   :  { %v228_v33 = vmul.f32 %v1047_v31, %v211_v27  ;;  %1048 = vpow2.f32 %v935_v30  ;;  %vm233_vm2 = vweird.f32 %v1047_v31 }
  0x97   :  { %1050 = vrcp.f32 %v212_v32  ;;  %vm234_vm4 = vmor %vm232_vm3, %vm233_vm2  ;;  %v253_v50 = vand.u32 2147483648, %v212_v32  ;;  %v251_v53 = vand.u32 2147483647, %v212_v32  ;;  %vm247_vm8 = vweird.f32 %v212_v32 }
  0x98   :  { %v229_v34 = vsub.f32 1.0, %v228_v33 }
  0x99   :  { %v254_v59 = vor.u32 1.1754944e-38, %v253_v50  ;;  %vm252_vm10 = vcmp.eq.f32.partialorder %v251_v53, 8.507059e+37 }
  0x9a   :  { %v230_v36 = vmul.f32 %v1047_v31, %v229_v34 }
  0x9b   :  { %v1225_v38 = vpop.f32.mrf.mxu0 }
  0x9c   :  { %v1049_v39 = vpop.eup %1048  ;;  %v231_v40 = vadd.f32 %v1047_v31, %v230_v36  ;;  %v936_v41 = vmul.f32 -1.442695, %v1225_v38 }
  0x9d   :  { %v1051_v42 = vpop.eup %1050  ;;  %v213_v44 = vadd.f32 1.0, %v1049_v39 }
  0x9e   :  { %v235_v45 = vsel %vm234_vm4, %v1047_v31, %v231_v40  ;;  %v243_v46 = vmul.f32 %v1051_v42, %v212_v32  ;;  %1052 = vpow2.f32 %v936_v41  ;;  %vm248_vm7 = vweird.f32 %v1051_v42 }
  0x9f   :  { %v240_v47 = vsel %vm237_vm5, %v239_v43, %v235_v45  ;;  %1054 = vrcp.f32 %v213_v44  ;;  %vm249_vm9 = vmor %vm247_vm8, %vm248_vm7  ;;  %v266_v2 = vand.u32 2147483647, %v213_v44  ;;  %v268_v3 = vand.u32 2147483648, %v213_v44 }
  0xa0   :  { %v467_v48 = vmul.f32 %v240_v47, %v123_v13  ;;  %v244_v49 = vsub.f32 1.0, %v243_v46  ;;  %vm262_vm12 = vweird.f32 %v213_v44 }
  0xa1   :  { %vm267_vm14 = vcmp.eq.f32.partialorder %v266_v2, 8.507059e+37  ;;  %v269_v12 = vor.u32 1.1754944e-38, %v268_v3 }
  0xa2   :  { %v483_v51 = vpack.c.bf16 %v467_v48, %v467_v48  ;;  %v245_v52 = vmul.f32 %v1051_v42, %v244_v49 }
  0xa3   :  { %v1228_v54 = vpop.f32.mrf.mxu0 }
  0xa4   :  { %v1053_v55 = vpop.eup %1052  ;;  %500 = vst.msk [vmem:[%s1585_s6] sm:$0xf] %vm499_vm6, %v483_v51  ;;  %v246_v56 = vadd.f32 %v1051_v42, %v245_v52  ;;  %v937_v57 = vmul.f32 -1.442695, %v1228_v54  ;;  %v544_v14 = vunpack.c.l.b16 %v483_v51 }
  0xa5   :  { %v1055_v58 = vpop.eup %1054  ;;  %v214_v60 = vadd.f32 1.0, %v1053_v55 }
  0xa6   :  { %v250_v61 = vsel %vm249_vm9, %v1051_v42, %v246_v56  ;;  %v258_v62 = vmul.f32 %v1055_v58, %v213_v44  ;;  %1056 = vpow2.f32 %v937_v57  ;;  %vm263_vm11 = vweird.f32 %v1055_v58 }
  0xa7   :  { %v255_v63 = vsel %vm252_vm10, %v254_v59, %v250_v61  ;;  %1058 = vrcp.f32 %v214_v60  ;;  %vm264_vm13 = vmor %vm262_vm12, %vm263_vm11  ;;  %v281_v24 = vand.u32 2147483647, %v214_v60  ;;  %vm277_vm1 = vweird.f32 %v214_v60 }
  0xa8   :  { %v468_v0 = vmul.f32 %v255_v63, %v1210_v21  ;;  %v259_v1 = vsub.f32 1.0, %v258_v62  ;;  %v283_v21 = vand.u32 2147483648, %v214_v60 }
  0xa9   :  { %vm282_vm3 = vcmp.eq.f32.partialorder %v281_v24, 8.507059e+37 }
  0xaa   :  { %v484_v4 = vpack.c.bf16 %v468_v0, %v468_v0  ;;  %v260_v5 = vmul.f32 %v1055_v58, %v259_v1  ;;  %v284_v30 = vor.u32 1.1754944e-38, %v283_v21 }
  0xab   :  { %v1236_v6 = vpop.f32.mrf.mxu0 }
  0xac   :  { %v1057_v7 = vpop.eup %1056  ;;  %501 = vst.msk [vmem:[%s1585_s6 + $0x4] sm:$0xf] %vm499_vm6, %v484_v4  ;;  %v545_v8 = vunpack.c.l.b16 %v484_v4  ;;  %v261_v9 = vadd.f32 %v1055_v58, %v260_v5  ;;  %v938_v10 = vmul.f32 -1.442695, %v1236_v6 }
  0xad   :  { %v1059_v11 = vpop.eup %1058  ;;  %v215_v13 = vadd.f32 1.0, %v1057_v7 }
  0xae   :  { %v265_v15 = vsel %vm264_vm13, %v1055_v58, %v261_v9  ;;  %v273_v16 = vmul.f32 %v1059_v11, %v214_v60  ;;  %1060 = vpow2.f32 %v938_v10  ;;  %v560_v20 = vpack.c.b16 %v545_v8, %v544_v14 }
  0xaf   :  { %v270_v17 = vsel %vm267_vm14, %v269_v12, %v265_v15  ;;  %1062 = vrcp.f32 %v215_v13  ;;  %vm278_vm0 = vweird.f32 %v1059_v11  ;;  %v296_v37 = vand.u32 2147483647, %v215_v13 }
  0xb0   :  { %v469_v18 = vmul.f32 %v270_v17, %v1222_v28  ;;  %v274_v19 = vsub.f32 1.0, %v273_v16  ;;  %965 = vmatmul.msk.bf16.vlgmr.msra.gmra.mxu1 %vm592_vm15, %v560_v20  ;;  %989 = vmatmul.msk.bf16.vlgmr.msra.gmra.mxu2 %vm592_vm15, %v560_v20  ;;  %vm279_vm2 = vmor %vm277_vm1, %vm278_vm0  ;;  %v298_v39 = vand.u32 2147483648, %v215_v13  ;;  %vm292_vm5 = vweird.f32 %v215_v13 }
  0xb1   :  { %1013 = vmatmul.msk.bf16.vlgmr.msra.gmra.mxu3 %vm592_vm15, %v560_v20  ;;  %vm297_vm8 = vcmp.eq.f32.partialorder %v296_v37, 8.507059e+37 }
  0xb2   :  { %v485_v22 = vpack.c.bf16 %v469_v18, %v469_v18  ;;  %v275_v23 = vmul.f32 %v1059_v11, %v274_v19  ;;  %v299_v47 = vor.u32 1.1754944e-38, %v298_v39 }
  0xb3   :  { %v1247_v25 = vpop.f32.mrf.mxu0 }
  0xb4   :  { %v1061_v26 = vpop.eup %1060  ;;  %502 = vst.msk [vmem:[%s1585_s6 + $0x8] sm:$0xf] %vm499_vm6, %v485_v22  ;;  %v276_v27 = vadd.f32 %v1059_v11, %v275_v23  ;;  %v939_v28 = vmul.f32 -1.442695, %v1247_v25  ;;  %v546_v49 = vunpack.c.l.b16 %v485_v22 }
  0xb5   :  { %v1063_v29 = vpop.eup %1062  ;;  %v216_v31 = vadd.f32 1.0, %v1061_v26 }
  0xb6   :  { %v280_v32 = vsel %vm279_vm2, %v1059_v11, %v276_v27  ;;  %v288_v33 = vmul.f32 %v1063_v29, %v215_v13  ;;  %1064 = vpow2.f32 %v939_v28  ;;  %vm293_vm4 = vweird.f32 %v1063_v29 }
  0xb7   :  { %v285_v34 = vsel %vm282_vm3, %v284_v30, %v280_v32  ;;  %1066 = vrcp.f32 %v216_v31  ;;  %vm294_vm7 = vmor %vm292_vm5, %vm293_vm4  ;;  %v313_v57 = vand.u32 2147483648, %v216_v31  ;;  %v311_v60 = vand.u32 2147483647, %v216_v31 }
  0xb8   :  { %v470_v35 = vmul.f32 %v285_v34, %v1225_v38  ;;  %v289_v36 = vsub.f32 1.0, %v288_v33  ;;  %vm307_vm10 = vweird.f32 %v216_v31 }
  0xb9   :  { %v314_v1 = vor.u32 1.1754944e-38, %v313_v57  ;;  %vm312_vm12 = vcmp.eq.f32.partialorder %v311_v60, 8.507059e+37 }
  0xba   :  { %v486_v40 = vpack.c.bf16 %v470_v35, %v470_v35  ;;  %v290_v41 = vmul.f32 %v1063_v29, %v289_v36 }
  0xbb   :  { %v1255_v42 = vpop.f32.mrf.mxu0 }
  0xbc   :  { %v1065_v43 = vpop.eup %1064  ;;  %503 = vst.msk [vmem:[%s1585_s6 + $0xc] sm:$0xf] %vm499_vm6, %v486_v40  ;;  %v547_v44 = vunpack.c.l.b16 %v486_v40  ;;  %v291_v45 = vadd.f32 %v1063_v29, %v290_v41  ;;  %v940_v46 = vmul.f32 -1.442695, %v1255_v42 }
  0xbd   :  { %v1067_v38 = vpop.eup %1066  ;;  %v217_v48 = vadd.f32 1.0, %v1065_v43 }
  0xbe   :  { %v295_v50 = vsel %vm294_vm7, %v1063_v29, %v291_v45  ;;  %v303_v51 = vmul.f32 %v1067_v38, %v216_v31  ;;  %1068 = vpow2.f32 %v940_v46  ;;  %v561_v56 = vpack.c.b16 %v547_v44, %v546_v49 }
  0xbf   :  { %v300_v52 = vsel %vm297_vm8, %v299_v47, %v295_v50  ;;  %1070 = vrcp.f32 %v217_v48  ;;  %vm308_vm9 = vweird.f32 %v1067_v38  ;;  %v326_v9 = vand.u32 2147483647, %v217_v48 }
  0xc0   :  { %v471_v53 = vmul.f32 %v300_v52, %v1228_v54  ;;  %v304_v55 = vsub.f32 1.0, %v303_v51  ;;  %966 = vmatmul.msk.bf16.gmra.mxu1 %vm592_vm15, %v561_v56  ;;  %990 = vmatmul.msk.bf16.gmra.mxu2 %vm592_vm15, %v561_v56  ;;  %vm309_vm11 = vmor %vm307_vm10, %vm308_vm9  ;;  %v328_v10 = vand.u32 2147483648, %v217_v48  ;;  %vm322_vm14 = vweird.f32 %v217_v48 }
  0xc1   :  { %1014 = vmatmul.msk.bf16.gmra.mxu3 %vm592_vm15, %v561_v56  ;;  %vm327_vm1 = vcmp.eq.f32.partialorder %v326_v9, 8.507059e+37 }
  0xc2   :  { %v487_v58 = vpack.c.bf16 %v471_v53, %v471_v53  ;;  %v305_v59 = vmul.f32 %v1067_v38, %v304_v55  ;;  %v329_v18 = vor.u32 1.1754944e-38, %v328_v10 }
  0xc3   :  { %v1266_v61 = vpop.f32.mrf.mxu0 }
  0xc4   :  { %v1069_v62 = vpop.eup %1068  ;;  %504 = vst.msk [vmem:[%s1585_s6 + $0x10] sm:$0xf] %vm499_vm6, %v487_v58  ;;  %v306_v54 = vadd.f32 %v1067_v38, %v305_v59  ;;  %v941_v63 = vmul.f32 -1.442695, %v1266_v61  ;;  %v548_v20 = vunpack.c.l.b16 %v487_v58 }
  0xc5   :  { %v1071_v0 = vpop.eup %1070  ;;  %v218_v2 = vadd.f32 1.0, %v1069_v62 }
  0xc6   :  { %v310_v3 = vsel %vm309_vm11, %v1067_v38, %v306_v54  ;;  %v318_v4 = vmul.f32 %v1071_v0, %v217_v48  ;;  %1072 = vpow2.f32 %v941_v63  ;;  %vm323_vm13 = vweird.f32 %v1071_v0 }
  0xc7   :  { %v315_v5 = vsel %vm312_vm12, %v314_v1, %v310_v3  ;;  %1074 = vrcp.f32 %v218_v2  ;;  %vm324_vm0 = vmor %vm322_vm14, %vm323_vm13  ;;  %v343_v28 = vand.u32 2147483648, %v218_v2  ;;  %v341_v31 = vand.u32 2147483647, %v218_v2 }
  0xc8   :  { %v472_v7 = vmul.f32 %v315_v5, %v1236_v6  ;;  %v319_v8 = vsub.f32 1.0, %v318_v4  ;;  %vm337_vm3 = vweird.f32 %v218_v2 }
  0xc9   :  { %v344_v36 = vor.u32 1.1754944e-38, %v343_v28  ;;  %vm342_vm5 = vcmp.eq.f32.partialorder %v341_v31, 8.507059e+37 }
  0xca   :  { %v488_v11 = vpack.c.bf16 %v472_v7, %v472_v7  ;;  %v320_v12 = vmul.f32 %v1071_v0, %v319_v8 }
  0xcb   :  { %v1274_v13 = vpop.f32.mrf.mxu0 }
  0xcc   :  { %v1073_v14 = vpop.eup %1072  ;;  %505 = vst.msk [vmem:[%s1585_s6 + $0x14] sm:$0xf] %vm499_vm6, %v488_v11  ;;  %v549_v15 = vunpack.c.l.b16 %v488_v11  ;;  %v321_v16 = vadd.f32 %v1071_v0, %v320_v12  ;;  %v942_v17 = vmul.f32 -1.442695, %v1274_v13 }
  0xcd   :  { %v1075_v6 = vpop.eup %1074  ;;  %v219_v19 = vadd.f32 1.0, %v1073_v14 }
  0xce   :  { %v325_v21 = vsel %vm324_vm0, %v1071_v0, %v321_v16  ;;  %v333_v22 = vmul.f32 %v1075_v6, %v218_v2  ;;  %1076 = vpow2.f32 %v942_v17  ;;  %v562_v27 = vpack.c.b16 %v549_v15, %v548_v20 }
  0xcf   :  { %v330_v23 = vsel %vm327_vm1, %v329_v18, %v325_v21  ;;  %1078 = vrcp.f32 %v219_v19  ;;  %vm338_vm2 = vweird.f32 %v1075_v6  ;;  %v356_v45 = vand.u32 2147483647, %v219_v19 }
  0xd0   :  { %v473_v24 = vmul.f32 %v330_v23, %v1247_v25  ;;  %v334_v26 = vsub.f32 1.0, %v333_v22  ;;  %967 = vmatmul.msk.bf16.gmra.mxu1 %vm592_vm15, %v562_v27  ;;  %991 = vmatmul.msk.bf16.gmra.mxu2 %vm592_vm15, %v562_v27  ;;  %vm339_vm4 = vmor %vm337_vm3, %vm338_vm2  ;;  %v358_v46 = vand.u32 2147483648, %v219_v19  ;;  %vm352_vm8 = vweird.f32 %v219_v19 }
  0xd1   :  { %1015 = vmatmul.msk.bf16.gmra.mxu3 %vm592_vm15, %v562_v27  ;;  %vm357_vm10 = vcmp.eq.f32.partialorder %v356_v45, 8.507059e+37 }
  0xd2   :  { %v489_v29 = vpack.c.bf16 %v473_v24, %v473_v24  ;;  %v335_v30 = vmul.f32 %v1075_v6, %v334_v26  ;;  %v359_v53 = vor.u32 1.1754944e-38, %v358_v46 }
  0xd3   :  { %v1285_v32 = vpop.f32.mrf.mxu0 }
  0xd4   :  { %v1077_v33 = vpop.eup %1076  ;;  %506 = vst.msk [vmem:[%s1585_s6 + $0x18] sm:$0xf] %vm499_vm6, %v489_v29  ;;  %v336_v25 = vadd.f32 %v1075_v6, %v335_v30  ;;  %v943_v34 = vmul.f32 -1.442695, %v1285_v32  ;;  %v550_v56 = vunpack.c.l.b16 %v489_v29 }
  0xd5   :  { %v1079_v35 = vpop.eup %1078  ;;  %v220_v37 = vadd.f32 1.0, %v1077_v33 }
  0xd6   :  { %v340_v39 = vsel %vm339_vm4, %v1075_v6, %v336_v25  ;;  %v348_v40 = vmul.f32 %v1079_v35, %v219_v19  ;;  %1080 = vpow2.f32 %v943_v34  ;;  %vm353_vm7 = vweird.f32 %v1079_v35 }
  0xd7   :  { %v345_v41 = vsel %vm342_vm5, %v344_v36, %v340_v39  ;;  %1082 = vrcp.f32 %v220_v37  ;;  %vm354_vm9 = vmor %vm352_vm8, %vm353_vm7  ;;  %v373_v63 = vand.u32 2147483648, %v220_v37  ;;  %v371_v2 = vand.u32 2147483647, %v220_v37 }
  0xd8   :  { %v474_v43 = vmul.f32 %v345_v41, %v1255_v42  ;;  %v349_v44 = vsub.f32 1.0, %v348_v40  ;;  %vm367_vm12 = vweird.f32 %v220_v37 }
  0xd9   :  { %v374_v8 = vor.u32 1.1754944e-38, %v373_v63  ;;  %vm372_vm14 = vcmp.eq.f32.partialorder %v371_v2, 8.507059e+37 }
  0xda   :  { %v490_v38 = vpack.c.bf16 %v474_v43, %v474_v43  ;;  %v350_v47 = vmul.f32 %v1079_v35, %v349_v44 }
  0xdb   :  { %v1293_v48 = vpop.f32.mrf.mxu0 }
  0xdc   :  { %v1081_v49 = vpop.eup %1080  ;;  %507 = vst.msk [vmem:[%s1585_s6 + $0x1c] sm:$0xf] %vm499_vm6, %v490_v38  ;;  %v551_v50 = vunpack.c.l.b16 %v490_v38  ;;  %v351_v51 = vadd.f32 %v1079_v35, %v350_v47  ;;  %v944_v52 = vmul.f32 -1.442695, %v1293_v48 }
  0xdd   :  { %v1083_v42 = vpop.eup %1082  ;;  %v221_v55 = vadd.f32 1.0, %v1081_v49 }
  0xde   :  { %v355_v57 = vsel %vm354_vm9, %v1079_v35, %v351_v51  ;;  %v363_v58 = vmul.f32 %v1083_v42, %v220_v37  ;;  %1084 = vpow2.f32 %v944_v52  ;;  %v563_v54 = vpack.c.b16 %v551_v50, %v550_v56 }
  0xdf   :  { %v360_v59 = vsel %vm357_vm10, %v359_v53, %v355_v57  ;;  %1086 = vrcp.f32 %v221_v55  ;;  %vm368_vm11 = vweird.f32 %v1083_v42  ;;  %v386_v16 = vand.u32 2147483647, %v221_v55 }
  0xe0   :  { %v475_v60 = vmul.f32 %v360_v59, %v1266_v61  ;;  %v364_v62 = vsub.f32 1.0, %v363_v58  ;;  %968 = vmatmul.msk.bf16.gmra.mxu1 %vm592_vm15, %v563_v54  ;;  %992 = vmatmul.msk.bf16.gmra.mxu2 %vm592_vm15, %v563_v54  ;;  %vm369_vm13 = vmor %vm367_vm12, %vm368_vm11  ;;  %v388_v17 = vand.u32 2147483648, %v221_v55  ;;  %vm382_vm1 = vweird.f32 %v221_v55 }
  0xe1   :  { %1016 = vmatmul.msk.bf16.gmra.mxu3 %vm592_vm15, %v563_v54  ;;  %vm387_vm3 = vcmp.eq.f32.partialorder %v386_v16, 8.507059e+37 }
  0xe2   :  { %v491_v0 = vpack.c.bf16 %v475_v60, %v475_v60  ;;  %v365_v1 = vmul.f32 %v1083_v42, %v364_v62  ;;  %v389_v24 = vor.u32 1.1754944e-38, %v388_v17 }
  0xe3   :  { %v1304_v3 = vpop.f32.mrf.mxu0 }
  0xe4   :  { %v1085_v4 = vpop.eup %1084  ;;  %508 = vst.msk [vmem:[%s1585_s6 + $0x20] sm:$0xf] %vm499_vm6, %v491_v0  ;;  %v366_v61 = vadd.f32 %v1083_v42, %v365_v1  ;;  %v945_v5 = vmul.f32 -1.442695, %v1304_v3  ;;  %v552_v27 = vunpack.c.l.b16 %v491_v0 }
  0xe5   :  { %v1087_v7 = vpop.eup %1086  ;;  %v222_v9 = vadd.f32 1.0, %v1085_v4 }
  0xe6   :  { %v370_v10 = vsel %vm369_vm13, %v1083_v42, %v366_v61  ;;  %v378_v11 = vmul.f32 %v1087_v7, %v221_v55  ;;  %1088 = vpow2.f32 %v945_v5  ;;  %vm383_vm0 = vweird.f32 %v1087_v7 }
  0xe7   :  { %v375_v12 = vsel %vm372_vm14, %v374_v8, %v370_v10  ;;  %1090 = vrcp.f32 %v222_v9  ;;  %vm384_vm2 = vmor %vm382_vm1, %vm383_vm0  ;;  %v403_v34 = vand.u32 2147483648, %v222_v9  ;;  %v401_v37 = vand.u32 2147483647, %v222_v9 }
  0xe8   :  { %v476_v14 = vmul.f32 %v375_v12, %v1274_v13  ;;  %v379_v15 = vsub.f32 1.0, %v378_v11  ;;  %vm397_vm5 = vweird.f32 %v222_v9 }
  0xe9   :  { %v404_v44 = vor.u32 1.1754944e-38, %v403_v34  ;;  %vm402_vm8 = vcmp.eq.f32.partialorder %v401_v37, 8.507059e+37 }
  0xea   :  { %v492_v6 = vpack.c.bf16 %v476_v14, %v476_v14  ;;  %v380_v18 = vmul.f32 %v1087_v7, %v379_v15 }
  0xeb   :  { %v1312_v19 = vpop.f32.mrf.mxu0 }
  0xec   :  { %v1089_v20 = vpop.eup %1088  ;;  %509 = vst.msk [vmem:[%s1585_s6 + $0x24] sm:$0xf] %vm499_vm6, %v492_v6  ;;  %v553_v21 = vunpack.c.l.b16 %v492_v6  ;;  %v381_v22 = vadd.f32 %v1087_v7, %v380_v18  ;;  %v946_v23 = vmul.f32 -1.442695, %v1312_v19 }
  0xed   :  { %v1091_v13 = vpop.eup %1090  ;;  %v223_v26 = vadd.f32 1.0, %v1089_v20 }
  0xee   :  { %v385_v28 = vsel %vm384_vm2, %v1087_v7, %v381_v22  ;;  %v393_v29 = vmul.f32 %v1091_v13, %v222_v9  ;;  %1092 = vpow2.f32 %v946_v23  ;;  %v564_v25 = vpack.c.b16 %v553_v21, %v552_v27 }
  0xef   :  { %v390_v30 = vsel %vm387_vm3, %v389_v24, %v385_v28  ;;  %1094 = vrcp.f32 %v223_v26  ;;  %vm398_vm4 = vweird.f32 %v1091_v13  ;;  %v416_v51 = vand.u32 2147483647, %v223_v26 }
  0xf0   :  { %v477_v31 = vmul.f32 %v390_v30, %v1285_v32  ;;  %v394_v33 = vsub.f32 1.0, %v393_v29  ;;  %969 = vmatmul.msk.bf16.gmra.mxu1 %vm592_vm15, %v564_v25  ;;  %993 = vmatmul.msk.bf16.gmra.mxu2 %vm592_vm15, %v564_v25  ;;  %vm399_vm7 = vmor %vm397_vm5, %vm398_vm4  ;;  %v418_v52 = vand.u32 2147483648, %v223_v26  ;;  %vm412_vm10 = vweird.f32 %v223_v26 }
  0xf1   :  { %1017 = vmatmul.msk.bf16.gmra.mxu3 %vm592_vm15, %v564_v25  ;;  %vm417_vm12 = vcmp.eq.f32.partialorder %v416_v51, 8.507059e+37 }
  0xf2   :  { %v493_v35 = vpack.c.bf16 %v477_v31, %v477_v31  ;;  %v395_v36 = vmul.f32 %v1091_v13, %v394_v33  ;;  %v419_v60 = vor.u32 1.1754944e-38, %v418_v52 }
  0xf3   :  { %v1323_v39 = vpop.f32.mrf.mxu0 }
  0xf4   :  { %v1093_v40 = vpop.eup %1092  ;;  %510 = vst.msk [vmem:[%s1585_s6 + $0x28] sm:$0xf] %vm499_vm6, %v493_v35  ;;  %v396_v32 = vadd.f32 %v1091_v13, %v395_v36  ;;  %v947_v41 = vmul.f32 -1.442695, %v1323_v39  ;;  %v554_v54 = vunpack.c.l.b16 %v493_v35 }
  0xf5   :  { %v1095_v43 = vpop.eup %1094  ;;  %v224_v45 = vadd.f32 1.0, %v1093_v40 }
  0xf6   :  { %v400_v46 = vsel %vm399_vm7, %v1091_v13, %v396_v32  ;;  %v408_v38 = vmul.f32 %v1095_v43, %v223_v26  ;;  %1096 = vpow2.f32 %v947_v41  ;;  %vm413_vm9 = vweird.f32 %v1095_v43 }
  0xf7   :  { %v405_v47 = vsel %vm402_vm8, %v404_v44, %v400_v46  ;;  %1098 = vrcp.f32 %v224_v45  ;;  %vm414_vm11 = vmor %vm412_vm10, %vm413_vm9  ;;  %v433_v5 = vand.u32 2147483648, %v224_v45  ;;  %v431_v9 = vand.u32 2147483647, %v224_v45 }
  0xf8   :  { %v478_v49 = vmul.f32 %v405_v47, %v1293_v48  ;;  %v409_v50 = vsub.f32 1.0, %v408_v38  ;;  %vm427_vm14 = vweird.f32 %v224_v45  ;;  %v1370_v47 = vld [vmem:[%s1586_s3] ss:$0 sm:$0xff] }
  0xf9   :  { %v434_v12 = vor.u32 1.1754944e-38, %v433_v5  ;;  %vm432_vm1 = vcmp.eq.f32.partialorder %v431_v9, 8.507059e+37 }
  0xfa   :  { %v494_v42 = vpack.c.bf16 %v478_v49, %v478_v49  ;;  %v410_v53 = vmul.f32 %v1095_v43, %v409_v50 }
  0xfb   :  { %v1331_v55 = vpop.f32.mrf.mxu0 }
  0xfc   :  { %v1097_v56 = vpop.eup %1096  ;;  %511 = vst.msk [vmem:[%s1585_s6 + $0x2c] sm:$0xf] %vm499_vm6, %v494_v42  ;;  %v555_v57 = vunpack.c.l.b16 %v494_v42  ;;  %v411_v58 = vadd.f32 %v1095_v43, %v410_v53  ;;  %v948_v59 = vmul.f32 -1.442695, %v1331_v55 }
  0xfd   :  { %v1099_v48 = vpop.eup %1098  ;;  %v225_v62 = vadd.f32 1.0, %v1097_v56 }
  0xfe   :  { %v415_v63 = vsel %vm414_vm11, %v1095_v43, %v411_v58  ;;  %v423_v0 = vmul.f32 %v1099_v48, %v224_v45  ;;  %1100 = vpow2.f32 %v948_v59  ;;  %v565_v61 = vpack.c.b16 %v555_v57, %v554_v54 }
  0xff   :  { %v420_v1 = vsel %vm417_vm12, %v419_v60, %v415_v63  ;;  %1102 = vrcp.f32 %v225_v62  ;;  %vm428_vm13 = vweird.f32 %v1099_v48  ;;  %v448_v20 = vand.u32 2147483648, %v225_v62 }
 0x100   :  { %v479_v2 = vmul.f32 %v420_v1, %v1304_v3  ;;  %v424_v4 = vsub.f32 1.0, %v423_v0  ;;  %970 = vmatmul.msk.bf16.gmra.mxu1 %vm592_vm15, %v565_v61  ;;  %994 = vmatmul.msk.bf16.gmra.mxu2 %vm592_vm15, %v565_v61  ;;  %vm429_vm0 = vmor %vm427_vm14, %vm428_vm13  ;;  %v446_v23 = vand.u32 2147483647, %v225_v62  ;;  %vm442_vm3 = vweird.f32 %v225_v62 }
 0x101   :  { %1018 = vmatmul.msk.bf16.gmra.mxu3 %vm592_vm15, %v565_v61  ;;  %v449_v28 = vor.u32 1.1754944e-38, %v448_v20 }
 0x102   :  { %v495_v7 = vpack.c.bf16 %v479_v2, %v479_v2  ;;  %v425_v8 = vmul.f32 %v1099_v48, %v424_v4  ;;  %vm447_vm5 = vcmp.eq.f32.partialorder %v446_v23, 8.507059e+37 }
 0x104   :  { %v1101_v10 = vpop.eup %1100  ;;  %512 = vst.msk [vmem:[%s1585_s6 + $0x30] sm:$0xf] %vm499_vm6, %v495_v7  ;;  %v426_v3 = vadd.f32 %v1099_v48, %v425_v8  ;;  %v556_v13 = vunpack.c.l.b16 %v495_v7 }
 0x105   :  { %v1103_v11 = vpop.eup %1102  ;;  %v226_v14 = vadd.f32 1.0, %v1101_v10 }
 0x106   :  { %v430_v15 = vsel %vm429_vm0, %v1099_v48, %v426_v3  ;;  %v438_v16 = vmul.f32 %v1103_v11, %v225_v62  ;;  %vm443_vm2 = vweird.f32 %v1103_v11 }
 0x107   :  { %v435_v17 = vsel %vm432_vm1, %v434_v12, %v430_v15  ;;  %1104 = vrcp.f32 %v226_v14  ;;  %vm444_vm4 = vmor %vm442_vm3, %vm443_vm2  ;;  %v463_v34 = vand.u32 2147483648, %v226_v14  ;;  %v461_v37 = vand.u32 2147483647, %v226_v14 }
 0x108   :  { %v480_v6 = vmul.f32 %v435_v17, %v1312_v19  ;;  %v439_v18 = vsub.f32 1.0, %v438_v16  ;;  %vm457_vm8 = vweird.f32 %v226_v14 }
 0x109   :  { %vm462_vm10 = vcmp.eq.f32.partialorder %v461_v37, 8.507059e+37 }
 0x10a   :  { %v496_v21 = vpack.c.bf16 %v480_v6, %v480_v6  ;;  %v440_v22 = vmul.f32 %v1103_v11, %v439_v18 }
 0x10c   :  { %513 = vst.msk [vmem:[%s1585_s6 + $0x34] sm:$0xf] %vm499_vm6, %v496_v21  ;;  %v557_v24 = vunpack.c.l.b16 %v496_v21  ;;  %v441_v26 = vadd.f32 %v1103_v11, %v440_v22 }
 0x10d   :  { %v1105_v27 = vpop.eup %1104 }
 0x10e   :  { %v445_v29 = vsel %vm444_vm4, %v1103_v11, %v441_v26  ;;  %v453_v19 = vmul.f32 %v1105_v27, %v226_v14  ;;  %v566_v30 = vpack.c.b16 %v557_v24, %v556_v13  ;;  %vm458_vm7 = vweird.f32 %v1105_v27 }
 0x10f   :  { %v450_v31 = vsel %vm447_vm5, %v449_v28, %v445_v29  ;;  %vm459_vm9 = vmor %vm457_vm8, %vm458_vm7 }
 0x110   :  { %v481_v33 = vmul.f32 %v450_v31, %v1323_v39  ;;  %v454_v25 = vsub.f32 1.0, %v453_v19  ;;  %971 = vmatmul.msk.bf16.gmra.mxu1 %vm592_vm15, %v566_v30  ;;  %995 = vmatmul.msk.bf16.gmra.mxu2 %vm592_vm15, %v566_v30  ;;  %v464_v39 = vor.u32 1.1754944e-38, %v463_v34 }
 0x111   :  { %1019 = vmatmul.msk.bf16.gmra.mxu3 %vm592_vm15, %v566_v30 }
 0x112   :  { %v497_v35 = vpack.c.bf16 %v481_v33, %v481_v33  ;;  %v455_v36 = vmul.f32 %v1105_v27, %v454_v25 }
 0x114   :  { %514 = vst.msk [vmem:[%s1585_s6 + $0x38] sm:$0xf] %vm499_vm6, %v497_v35  ;;  %v456_v40 = vadd.f32 %v1105_v27, %v455_v36  ;;  %v558_v45 = vunpack.c.l.b16 %v497_v35 }
 0x116   :  { %v460_v32 = vsel %vm459_vm9, %v1105_v27, %v456_v40 }
 0x117   :  { %v465_v41 = vsel %vm462_vm10, %v464_v39, %v460_v32 }
 0x118   :  { %v482_v43 = vmul.f32 %v465_v41, %v1331_v55 }
 0x11a   :  { %v498_v44 = vpack.c.bf16 %v482_v43, %v482_v43 }
 0x11c   :  { %515 = vst.msk [vmem:[%s1585_s6 + $0x3c] sm:$0xf] %vm499_vm6, %v498_v44  ;;  %v559_v46 = vunpack.c.l.b16 %v498_v44  ;;  %vm763_vm6 = vcmask 130048  }
 0x11e   :  { %v567_v38 = vpack.c.b16 %v559_v46, %v558_v45 }
 0x120   :  { %972 = vmatmul.msk.bf16.gmra.mxu1 %vm592_vm15, %v567_v38  ;;  %996 = vmatmul.msk.bf16.gmra.mxu2 %vm592_vm15, %v567_v38 }
 0x121   :  { %1020 = vmatmul.msk.bf16.gmra.mxu3 %vm592_vm15, %v567_v38 }
 0x12d   :  { %v626_v49 = vpop.f32.mrf.mxu1 }
 0x12e   :  { %v627_v50 = vadd.f32 %v1370_v47, %v626_v49 }
 0x130   :  { %666 = vst.msk [vmem:[%s1587_s7] sm:$0xff] %vm592_vm15, %v627_v50 }
 0x133   :  { %v723_v51 = vpop.f32.mrf.mxu2 }
 0x134   :  { %764 = vst.msk [vmem:[%s1588_s8] sm:$0xff] %vm763_vm6, %v723_v51  ;;  %v821_v52 = vpop.f32.mrf.mxu3 }
 0x135   :  { %861 = vst.msk [vmem:[%s1589_s9] sm:$0xff] %vm763_vm6, %v821_v52  ;;  %v628_v42 = vpop.f32.mrf.mxu1 }
 0x136   :  { %v629_v53 = vadd.f32 %v1370_v47, %v628_v42 }
 0x138   :  { %667 = vst.msk [vmem:[%s1587_s7 + $0x8] sm:$0xff] %vm592_vm15, %v629_v53 }
 0x13b   :  { %v725_v55 = vpop.f32.mrf.mxu2 }
 0x13c   :  { %765 = vst.msk [vmem:[%s1588_s8 + $0x8] sm:$0xff] %vm763_vm6, %v725_v55  ;;  %v823_v56 = vpop.f32.mrf.mxu3 }
 0x13d   :  { %862 = vst.msk [vmem:[%s1589_s9 + $0x8] sm:$0xff] %vm763_vm6, %v823_v56  ;;  %v631_v57 = vpop.f32.mrf.mxu1 }
 0x13e   :  { %v632_v58 = vadd.f32 %v1370_v47, %v631_v57 }
 0x140   :  { %668 = vst.msk [vmem:[%s1587_s7 + $0x10] sm:$0xff] %vm592_vm15, %v632_v58 }
 0x143   :  { %v728_v59 = vpop.f32.mrf.mxu2 }
 0x144   :  { %766 = vst.msk [vmem:[%s1588_s8 + $0x10] sm:$0xff] %vm763_vm6, %v728_v59  ;;  %v826_v48 = vpop.f32.mrf.mxu3 }
 0x145   :  { %863 = vst.msk [vmem:[%s1589_s9 + $0x10] sm:$0xff] %vm763_vm6, %v826_v48  ;;  %v633_v60 = vpop.f32.mrf.mxu1 }
 0x146   :  { %v634_v62 = vadd.f32 %v1370_v47, %v633_v60 }
 0x148   :  { %669 = vst.msk [vmem:[%s1587_s7 + $0x18] sm:$0xff] %vm592_vm15, %v634_v62 }
 0x14b   :  { %v730_v54 = vpop.f32.mrf.mxu2 }
 0x14c   :  { %767 = vst.msk [vmem:[%s1588_s8 + $0x18] sm:$0xff] %vm763_vm6, %v730_v54  ;;  %v828_v63 = vpop.f32.mrf.mxu3 }
 0x14d   :  { %864 = vst.msk [vmem:[%s1589_s9 + $0x18] sm:$0xff] %vm763_vm6, %v828_v63  ;;  %v636_v0 = vpop.f32.mrf.mxu1 }
 0x14e   :  { %v637_v1 = vadd.f32 %v1370_v47, %v636_v0 }
 0x150   :  { %670 = vst.msk [vmem:[%s1587_s7 + $0x20] sm:$0xff] %vm592_vm15, %v637_v1 }
 0x153   :  { %v733_v2 = vpop.f32.mrf.mxu2 }
 0x154   :  { %768 = vst.msk [vmem:[%s1588_s8 + $0x20] sm:$0xff] %vm763_vm6, %v733_v2  ;;  %v831_v4 = vpop.f32.mrf.mxu3 }
 0x155   :  { %865 = vst.msk [vmem:[%s1589_s9 + $0x20] sm:$0xff] %vm763_vm6, %v831_v4  ;;  %v638_v61 = vpop.f32.mrf.mxu1 }
 0x156   :  { %v639_v5 = vadd.f32 %v1370_v47, %v638_v61 }
 0x158   :  { %671 = vst.msk [vmem:[%s1587_s7 + $0x28] sm:$0xff] %vm592_vm15, %v639_v5 }
 0x15b   :  { %v735_v7 = vpop.f32.mrf.mxu2 }
 0x15c   :  { %769 = vst.msk [vmem:[%s1588_s8 + $0x28] sm:$0xff] %vm763_vm6, %v735_v7  ;;  %v833_v8 = vpop.f32.mrf.mxu3 }
 0x15d   :  { %866 = vst.msk [vmem:[%s1589_s9 + $0x28] sm:$0xff] %vm763_vm6, %v833_v8  ;;  %v641_v9 = vpop.f32.mrf.mxu1 }
 0x15e   :  { %v642_v10 = vadd.f32 %v1370_v47, %v641_v9 }
 0x160   :  { %672 = vst.msk [vmem:[%s1587_s7 + $0x30] sm:$0xff] %vm592_vm15, %v642_v10 }
 0x163   :  { %v738_v3 = vpop.f32.mrf.mxu2 }
 0x164   :  { %770 = vst.msk [vmem:[%s1588_s8 + $0x30] sm:$0xff] %vm763_vm6, %v738_v3  ;;  %v836_v11 = vpop.f32.mrf.mxu3 }
 0x165   :  { %867 = vst.msk [vmem:[%s1589_s9 + $0x30] sm:$0xff] %vm763_vm6, %v836_v11  ;;  %v643_v12 = vpop.f32.mrf.mxu1 }
 0x166   :  { %v644_v14 = vadd.f32 %v1370_v47, %v643_v12 }
 0x168   :  { %673 = vst.msk [vmem:[%s1587_s7 + $0x38] sm:$0xff] %vm592_vm15, %v644_v14 }
 0x16b   :  { %v740_v15 = vpop.f32.mrf.mxu2 }
 0x16c   :  { %771 = vst.msk [vmem:[%s1588_s8 + $0x38] sm:$0xff] %vm763_vm6, %v740_v15  ;;  %v838_v16 = vpop.f32.mrf.mxu3 }
 0x16d   :  { %868 = vst.msk [vmem:[%s1589_s9 + $0x38] sm:$0xff] %vm763_vm6, %v838_v16  ;;  %v646_v17 = vpop.f32.mrf.mxu1 }
 0x16e   :  { %v647_v6 = vadd.f32 %v1370_v47, %v646_v17 }
 0x170   :  { %674 = vst.msk [vmem:[%s1587_s7 + $0x40] sm:$0xff] %vm592_vm15, %v647_v6 }
 0x173   :  { %v743_v18 = vpop.f32.mrf.mxu2 }
 0x174   :  { %772 = vst.msk [vmem:[%s1588_s8 + $0x40] sm:$0xff] %vm763_vm6, %v743_v18  ;;  %v841_v20 = vpop.f32.mrf.mxu3 }
 0x175   :  { %869 = vst.msk [vmem:[%s1589_s9 + $0x40] sm:$0xff] %vm763_vm6, %v841_v20  ;;  %v648_v21 = vpop.f32.mrf.mxu1 }
 0x176   :  { %v649_v22 = vadd.f32 %v1370_v47, %v648_v21 }
 0x178   :  { %675 = vst.msk [vmem:[%s1587_s7 + $0x48] sm:$0xff] %vm592_vm15, %v649_v22 }
 0x17b   :  { %v745_v23 = vpop.f32.mrf.mxu2 }
 0x17c   :  { %773 = vst.msk [vmem:[%s1588_s8 + $0x48] sm:$0xff] %vm763_vm6, %v745_v23  ;;  %v843_v13 = vpop.f32.mrf.mxu3 }
 0x17d   :  { %870 = vst.msk [vmem:[%s1589_s9 + $0x48] sm:$0xff] %vm763_vm6, %v843_v13  ;;  %v651_v24 = vpop.f32.mrf.mxu1 }
 0x17e   :  { %v652_v26 = vadd.f32 %v1370_v47, %v651_v24 }
 0x180   :  { %676 = vst.msk [vmem:[%s1587_s7 + $0x50] sm:$0xff] %vm592_vm15, %v652_v26 }
 0x183   :  { %v748_v27 = vpop.f32.mrf.mxu2 }
 0x184   :  { %774 = vst.msk [vmem:[%s1588_s8 + $0x50] sm:$0xff] %vm763_vm6, %v748_v27  ;;  %v846_v28 = vpop.f32.mrf.mxu3 }
 0x185   :  { %871 = vst.msk [vmem:[%s1589_s9 + $0x50] sm:$0xff] %vm763_vm6, %v846_v28  ;;  %v653_v29 = vpop.f32.mrf.mxu1 }
 0x186   :  { %v654_v19 = vadd.f32 %v1370_v47, %v653_v29 }
 0x188   :  { %677 = vst.msk [vmem:[%s1587_s7 + $0x58] sm:$0xff] %vm592_vm15, %v654_v19 }
 0x18b   :  { %v750_v30 = vpop.f32.mrf.mxu2 }
 0x18c   :  { %775 = vst.msk [vmem:[%s1588_s8 + $0x58] sm:$0xff] %vm763_vm6, %v750_v30  ;;  %v848_v31 = vpop.f32.mrf.mxu3 }
 0x18d   :  { %872 = vst.msk [vmem:[%s1589_s9 + $0x58] sm:$0xff] %vm763_vm6, %v848_v31  ;;  %v656_v33 = vpop.f32.mrf.mxu1 }
 0x18e   :  { %v657_v25 = vadd.f32 %v1370_v47, %v656_v33 }
 0x190   :  { %678 = vst.msk [vmem:[%s1587_s7 + $0x60] sm:$0xff] %vm592_vm15, %v657_v25 }
 0x193   :  { %v753_v34 = vpop.f32.mrf.mxu2 }
 0x194   :  { %776 = vst.msk [vmem:[%s1588_s8 + $0x60] sm:$0xff] %vm763_vm6, %v753_v34  ;;  %v851_v35 = vpop.f32.mrf.mxu3 }
 0x195   :  { %873 = vst.msk [vmem:[%s1589_s9 + $0x60] sm:$0xff] %vm763_vm6, %v851_v35  ;;  %v658_v36 = vpop.f32.mrf.mxu1 }
 0x196   :  { %v659_v37 = vadd.f32 %v1370_v47, %v658_v36 }
 0x198   :  { %679 = vst.msk [vmem:[%s1587_s7 + $0x68] sm:$0xff] %vm592_vm15, %v659_v37 }
 0x19b   :  { %v755_v40 = vpop.f32.mrf.mxu2 }
 0x19c   :  { %777 = vst.msk [vmem:[%s1588_s8 + $0x68] sm:$0xff] %vm763_vm6, %v755_v40  ;;  %v853_v39 = vpop.f32.mrf.mxu3 }
 0x19d   :  { %874 = vst.msk [vmem:[%s1589_s9 + $0x68] sm:$0xff] %vm763_vm6, %v853_v39  ;;  %v661_v32 = vpop.f32.mrf.mxu1 }
 0x19e   :  { %v662_v41 = vadd.f32 %v1370_v47, %v661_v32 }
 0x1a0   :  { %680 = vst.msk [vmem:[%s1587_s7 + $0x70] sm:$0xff] %vm592_vm15, %v662_v41 }
 0x1a3   :  { %v758_v43 = vpop.f32.mrf.mxu2 }
 0x1a4   :  { %778 = vst.msk [vmem:[%s1588_s8 + $0x70] sm:$0xff] %vm763_vm6, %v758_v43  ;;  %v856_v44 = vpop.f32.mrf.mxu3 }
 0x1a5   :  { %875 = vst.msk [vmem:[%s1589_s9 + $0x70] sm:$0xff] %vm763_vm6, %v856_v44  ;;  %v663_v45 = vpop.f32.mrf.mxu1 }
 0x1a6   :  { %v664_v46 = vadd.f32 %v1370_v47, %v663_v45 }
 0x1a8   :  { %681 = vst.msk [vmem:[%s1587_s7 + $0x78] sm:$0xff] %vm592_vm15, %v664_v46 }
 0x1ab   :  { %v760_v38 = vpop.f32.mrf.mxu2 }
 0x1ac   :  { %779 = vst.msk [vmem:[%s1588_s8 + $0x78] sm:$0xff] %vm763_vm6, %v760_v38  ;;  %v858_v49 = vpop.f32.mrf.mxu3 }
 0x1ad   :  { %876 = vst.msk [vmem:[%s1589_s9 + $0x78] sm:$0xff] %vm763_vm6, %v858_v49 }

// kernel: savss_layer_forward.42
= control target key start
LH: loop header
LB: loop body
LE: loop exit
PB: predicated region body
PF: predicated region fallthrough
CT: control target
= control target key end

     0   :  { %vm96_vm0 = vcmask 261120   ;;  %vm284_vm1 = vcmask 519168   ;;  %vm186_vm2 = vcmask 27648   ;;  %s621_s1 = inlined_call_operand.vmem [shape: bf16[32,4], index: 1, kind: input, shape index: {}]   ;;  %s622_s3 = inlined_call_operand.vmem [shape: bf16[32,64], index: 3, kind: input, shape index: {}]   ;;  %s623_s0 = inlined_call_operand.vmem [shape: bf16[128,32], index: 0, kind: input, shape index: {}]   ;;  %s624_s2 = inlined_call_operand.vmem [shape: f32[1,4], index: 2, kind: input, shape index: {}]   ;;  %s625_s5 = inlined_call_operand.vmem [shape: bf16[128,64], index: 5, kind: output, shape index: {1}]   ;;  %s626_s4 = inlined_call_operand.vmem [shape: bf16[128,4], index: 4, kind: output, shape index: {0}]  }
   0x1   :  { %v382_v0 = vld [vmem:[%s621_s1 + $0x8] sm:$0xff]  ;;  %v381_v2 = vld [vmem:[%s621_s1] sm:$0xff]  ;;  %v375_v8 = vld [vmem:[%s623_s0 + $0x10] sm:$0xff] }
   0x2   :  { %v384_v1 = vld [vmem:[%s622_s3 + $0x8] sm:$0xff]  ;;  %127 = vmatpush.bf16.msra.mxu0 %v382_v0  ;;  %385 = vmatpush.bf16.msra.mxu2 %v382_v0  ;;  %v383_v3 = vld [vmem:[%s622_s3] sm:$0xff]  ;;  %v379_v9 = vld [vmem:[%s623_s0 + $0x30] sm:$0xff] }
   0x3   :  { %225 = vmatpush.bf16.msra.mxu1 %v384_v1  ;;  %387 = vmatpush.bf16.msra.mxu3 %v384_v1  ;;  %v373_v4 = vld [vmem:[%s623_s0] sm:$0xff]  ;;  %v374_v6 = vld [vmem:[%s623_s0 + $0x8] sm:$0xff]  ;;  %v376_v10 = vld [vmem:[%s623_s0 + $0x18] sm:$0xff] }
   0x4   :  { %v377_v5 = vld [vmem:[%s623_s0 + $0x20] sm:$0xff]  ;;  %v378_v7 = vld [vmem:[%s623_s0 + $0x28] sm:$0xff]  ;;  %v380_v11 = vld [vmem:[%s623_s0 + $0x38] sm:$0xff] }
   0x5   :  { %v475_v12 = vld [vmem:[%s624_s2] ss:$0 sm:$0xff] }
   0x6   :  { %128 = vmatpush.bf16.msra.mxu0 %v381_v2  ;;  %386 = vmatpush.bf16.msra.mxu2 %v381_v2 }
   0x7   :  { %226 = vmatpush.bf16.msra.mxu1 %v383_v3  ;;  %388 = vmatpush.bf16.msra.mxu3 %v383_v3 }
   0x9   :  { %349 = vmatmul.msk.bf16.vlgmr.msra.gmra.mxu0 %vm96_vm0, %v373_v4  ;;  %353 = vmatmul.msk.bf16.vlgmr.msra.gmra.mxu2 %vm96_vm0, %v377_v5 }
   0xa   :  { %365 = vmatmul.msk.bf16.vlgmr.msra.gmra.mxu1 %vm96_vm0, %v373_v4  ;;  %369 = vmatmul.msk.bf16.vlgmr.msra.gmra.mxu3 %vm96_vm0, %v377_v5 }
  0x19   :  { %350 = vmatmul.msk.bf16.gmra.mxu0 %vm96_vm0, %v374_v6  ;;  %354 = vmatmul.msk.bf16.gmra.mxu2 %vm96_vm0, %v378_v7 }
  0x1a   :  { %366 = vmatmul.msk.bf16.gmra.mxu1 %vm96_vm0, %v374_v6  ;;  %370 = vmatmul.msk.bf16.gmra.mxu3 %vm96_vm0, %v378_v7 }
  0x29   :  { %351 = vmatmul.msk.bf16.gmra.mxu0 %vm96_vm0, %v375_v8  ;;  %355 = vmatmul.msk.bf16.gmra.mxu2 %vm96_vm0, %v379_v9 }
  0x2a   :  { %367 = vmatmul.msk.bf16.gmra.mxu1 %vm96_vm0, %v375_v8  ;;  %371 = vmatmul.msk.bf16.gmra.mxu3 %vm96_vm0, %v379_v9 }
  0x39   :  { %352 = vmatmul.msk.bf16.gmra.mxu0 %vm96_vm0, %v376_v10  ;;  %356 = vmatmul.msk.bf16.gmra.mxu2 %vm96_vm0, %v380_v11 }
  0x3a   :  { %368 = vmatmul.msk.bf16.gmra.mxu1 %vm96_vm0, %v376_v10  ;;  %372 = vmatmul.msk.bf16.gmra.mxu3 %vm96_vm0, %v380_v11 }
  0x86   :  { %v130_v13 = vpop.f32.mrf.mxu0 }
  0x87   :  { %v131_v14 = vadd.f32 %v475_v12, %v130_v13  ;;  %v228_v15 = vpop.f32.mrf.mxu1 }
  0x88   :  { %v268_v16 = vpack.c.bf16 %v228_v15, %v228_v15 }
  0x89   :  { %v170_v17 = vpack.c.bf16 %v131_v14, %v131_v14 }
  0x8a   :  { %285 = vst.msk [vmem:[%s625_s5] sm:$0xf] %vm284_vm1, %v268_v16 }
  0x8b   :  { %187 = vst.msk [vmem:[%s626_s4] sm:$0xf] %vm186_vm2, %v170_v17 }
  0x8c   :  { %v150_v18 = vpop.f32.mrf.mxu2 }
  0x8d   :  { %v151_v19 = vadd.f32 %v475_v12, %v150_v18  ;;  %v248_v20 = vpop.f32.mrf.mxu3 }
  0x8e   :  { %v276_v21 = vpack.c.bf16 %v248_v20, %v248_v20  ;;  %v132_v22 = vpop.f32.mrf.mxu0 }
  0x8f   :  { %v178_v23 = vpack.c.bf16 %v151_v19, %v151_v19  ;;  %v133_v24 = vadd.f32 %v475_v12, %v132_v22  ;;  %v230_v25 = vpop.f32.mrf.mxu1 }
  0x90   :  { %293 = vst.msk [vmem:[%s625_s5 + $0x20] sm:$0xf] %vm284_vm1, %v276_v21  ;;  %v269_v26 = vpack.c.bf16 %v230_v25, %v230_v25 }
  0x91   :  { %195 = vst.msk [vmem:[%s626_s4 + $0x20] sm:$0xf] %vm186_vm2, %v178_v23  ;;  %v171_v27 = vpack.c.bf16 %v133_v24, %v133_v24 }
  0x92   :  { %286 = vst.msk [vmem:[%s625_s5 + $0x4] sm:$0xf] %vm284_vm1, %v269_v26 }
  0x93   :  { %188 = vst.msk [vmem:[%s626_s4 + $0x4] sm:$0xf] %vm186_vm2, %v171_v27 }
  0x94   :  { %v152_v28 = vpop.f32.mrf.mxu2 }
  0x95   :  { %v153_v29 = vadd.f32 %v475_v12, %v152_v28  ;;  %v250_v30 = vpop.f32.mrf.mxu3 }
  0x96   :  { %v277_v31 = vpack.c.bf16 %v250_v30, %v250_v30  ;;  %v135_v32 = vpop.f32.mrf.mxu0 }
  0x97   :  { %v179_v33 = vpack.c.bf16 %v153_v29, %v153_v29  ;;  %v136_v34 = vadd.f32 %v475_v12, %v135_v32  ;;  %v233_v35 = vpop.f32.mrf.mxu1 }
  0x98   :  { %294 = vst.msk [vmem:[%s625_s5 + $0x24] sm:$0xf] %vm284_vm1, %v277_v31  ;;  %v270_v36 = vpack.c.bf16 %v233_v35, %v233_v35 }
  0x99   :  { %196 = vst.msk [vmem:[%s626_s4 + $0x24] sm:$0xf] %vm186_vm2, %v179_v33  ;;  %v172_v37 = vpack.c.bf16 %v136_v34, %v136_v34 }
  0x9a   :  { %287 = vst.msk [vmem:[%s625_s5 + $0x8] sm:$0xf] %vm284_vm1, %v270_v36 }
  0x9b   :  { %189 = vst.msk [vmem:[%s626_s4 + $0x8] sm:$0xf] %vm186_vm2, %v172_v37 }
  0x9c   :  { %v155_v38 = vpop.f32.mrf.mxu2 }
  0x9d   :  { %v156_v39 = vadd.f32 %v475_v12, %v155_v38  ;;  %v253_v40 = vpop.f32.mrf.mxu3 }
  0x9e   :  { %v278_v41 = vpack.c.bf16 %v253_v40, %v253_v40  ;;  %v137_v42 = vpop.f32.mrf.mxu0 }
  0x9f   :  { %v180_v43 = vpack.c.bf16 %v156_v39, %v156_v39  ;;  %v138_v44 = vadd.f32 %v475_v12, %v137_v42  ;;  %v235_v45 = vpop.f32.mrf.mxu1 }
  0xa0   :  { %295 = vst.msk [vmem:[%s625_s5 + $0x28] sm:$0xf] %vm284_vm1, %v278_v41  ;;  %v271_v46 = vpack.c.bf16 %v235_v45, %v235_v45 }
  0xa1   :  { %197 = vst.msk [vmem:[%s626_s4 + $0x28] sm:$0xf] %vm186_vm2, %v180_v43  ;;  %v173_v47 = vpack.c.bf16 %v138_v44, %v138_v44 }
  0xa2   :  { %288 = vst.msk [vmem:[%s625_s5 + $0xc] sm:$0xf] %vm284_vm1, %v271_v46 }
  0xa3   :  { %190 = vst.msk [vmem:[%s626_s4 + $0xc] sm:$0xf] %vm186_vm2, %v173_v47 }
  0xa4   :  { %v157_v48 = vpop.f32.mrf.mxu2 }
  0xa5   :  { %v158_v49 = vadd.f32 %v475_v12, %v157_v48  ;;  %v255_v50 = vpop.f32.mrf.mxu3 }
  0xa6   :  { %v279_v51 = vpack.c.bf16 %v255_v50, %v255_v50  ;;  %v140_v52 = vpop.f32.mrf.mxu0 }
  0xa7   :  { %v181_v53 = vpack.c.bf16 %v158_v49, %v158_v49  ;;  %v141_v54 = vadd.f32 %v475_v12, %v140_v52  ;;  %v238_v55 = vpop.f32.mrf.mxu1 }
  0xa8   :  { %296 = vst.msk [vmem:[%s625_s5 + $0x2c] sm:$0xf] %vm284_vm1, %v279_v51  ;;  %v272_v56 = vpack.c.bf16 %v238_v55, %v238_v55 }
  0xa9   :  { %198 = vst.msk [vmem:[%s626_s4 + $0x2c] sm:$0xf] %vm186_vm2, %v181_v53  ;;  %v174_v57 = vpack.c.bf16 %v141_v54, %v141_v54 }
  0xaa   :  { %289 = vst.msk [vmem:[%s625_s5 + $0x10] sm:$0xf] %vm284_vm1, %v272_v56 }
  0xab   :  { %191 = vst.msk [vmem:[%s626_s4 + $0x10] sm:$0xf] %vm186_vm2, %v174_v57 }
  0xac   :  { %v160_v58 = vpop.f32.mrf.mxu2 }
  0xad   :  { %v161_v59 = vadd.f32 %v475_v12, %v160_v58  ;;  %v258_v60 = vpop.f32.mrf.mxu3 }
  0xae   :  { %v280_v61 = vpack.c.bf16 %v258_v60, %v258_v60  ;;  %v142_v62 = vpop.f32.mrf.mxu0 }
  0xaf   :  { %v182_v63 = vpack.c.bf16 %v161_v59, %v161_v59  ;;  %v143_v0 = vadd.f32 %v475_v12, %v142_v62  ;;  %v240_v1 = vpop.f32.mrf.mxu1 }
  0xb0   :  { %297 = vst.msk [vmem:[%s625_s5 + $0x30] sm:$0xf] %vm284_vm1, %v280_v61  ;;  %v273_v2 = vpack.c.bf16 %v240_v1, %v240_v1 }
  0xb1   :  { %199 = vst.msk [vmem:[%s626_s4 + $0x30] sm:$0xf] %vm186_vm2, %v182_v63  ;;  %v175_v3 = vpack.c.bf16 %v143_v0, %v143_v0 }
  0xb2   :  { %290 = vst.msk [vmem:[%s625_s5 + $0x14] sm:$0xf] %vm284_vm1, %v273_v2 }
  0xb3   :  { %192 = vst.msk [vmem:[%s626_s4 + $0x14] sm:$0xf] %vm186_vm2, %v175_v3 }
  0xb4   :  { %v162_v4 = vpop.f32.mrf.mxu2 }
  0xb5   :  { %v163_v5 = vadd.f32 %v475_v12, %v162_v4  ;;  %v260_v6 = vpop.f32.mrf.mxu3 }
  0xb6   :  { %v281_v7 = vpack.c.bf16 %v260_v6, %v260_v6  ;;  %v145_v8 = vpop.f32.mrf.mxu0 }
  0xb7   :  { %v183_v9 = vpack.c.bf16 %v163_v5, %v163_v5  ;;  %v146_v10 = vadd.f32 %v475_v12, %v145_v8  ;;  %v243_v11 = vpop.f32.mrf.mxu1 }
  0xb8   :  { %298 = vst.msk [vmem:[%s625_s5 + $0x34] sm:$0xf] %vm284_vm1, %v281_v7  ;;  %v274_v13 = vpack.c.bf16 %v243_v11, %v243_v11 }
  0xb9   :  { %200 = vst.msk [vmem:[%s626_s4 + $0x34] sm:$0xf] %vm186_vm2, %v183_v9  ;;  %v176_v14 = vpack.c.bf16 %v146_v10, %v146_v10 }
  0xba   :  { %291 = vst.msk [vmem:[%s625_s5 + $0x18] sm:$0xf] %vm284_vm1, %v274_v13 }
  0xbb   :  { %193 = vst.msk [vmem:[%s626_s4 + $0x18] sm:$0xf] %vm186_vm2, %v176_v14 }
  0xbc   :  { %v165_v15 = vpop.f32.mrf.mxu2 }
  0xbd   :  { %v166_v16 = vadd.f32 %v475_v12, %v165_v15  ;;  %v263_v17 = vpop.f32.mrf.mxu3 }
  0xbe   :  { %v282_v18 = vpack.c.bf16 %v263_v17, %v263_v17  ;;  %v147_v19 = vpop.f32.mrf.mxu0 }
  0xbf   :  { %v184_v20 = vpack.c.bf16 %v166_v16, %v166_v16  ;;  %v148_v21 = vadd.f32 %v475_v12, %v147_v19  ;;  %v245_v22 = vpop.f32.mrf.mxu1 }
  0xc0   :  { %299 = vst.msk [vmem:[%s625_s5 + $0x38] sm:$0xf] %vm284_vm1, %v282_v18  ;;  %v275_v23 = vpack.c.bf16 %v245_v22, %v245_v22 }
  0xc1   :  { %201 = vst.msk [vmem:[%s626_s4 + $0x38] sm:$0xf] %vm186_vm2, %v184_v20  ;;  %v177_v24 = vpack.c.bf16 %v148_v21, %v148_v21 }
  0xc2   :  { %292 = vst.msk [vmem:[%s625_s5 + $0x1c] sm:$0xf] %vm284_vm1, %v275_v23 }
  0xc3   :  { %194 = vst.msk [vmem:[%s626_s4 + $0x1c] sm:$0xf] %vm186_vm2, %v177_v24 }
  0xc4   :  { %v167_v25 = vpop.f32.mrf.mxu2 }
  0xc5   :  { %v168_v26 = vadd.f32 %v475_v12, %v167_v25  ;;  %v265_v27 = vpop.f32.mrf.mxu3 }
  0xc6   :  { %v283_v28 = vpack.c.bf16 %v265_v27, %v265_v27 }
  0xc7   :  { %v185_v29 = vpack.c.bf16 %v168_v26, %v168_v26 }
  0xc8   :  { %300 = vst.msk [vmem:[%s625_s5 + $0x3c] sm:$0xf] %vm284_vm1, %v283_v28 }
  0xc9   :  { %202 = vst.msk [vmem:[%s626_s4 + $0x3c] sm:$0xf] %vm186_vm2, %v185_v29 }

// kernel: savss_layer_forward.45
= control target key start
LH: loop header
LB: loop body
LE: loop exit
PB: predicated region body
PF: predicated region fallthrough
CT: control target
= control target key end

     0   :  { %s1339_s27 = smov 0   ;;  %s1341_s28 = smov 0   ;;  %s1689_s0 = inlined_call_operand.vmem [shape: bf16[4,2,64,64], index: 0, kind: input, shape index: {}]   ;;  %s1690_s1 = inlined_call_operand.vmem [shape: f32[2,64,64], index: 1, kind: input, shape index: {}]   ;;  %s1691_s2 = inlined_call_operand.vmem [shape: f32[2,64,16], index: 2, kind: input, shape index: {}]   ;;  %s1692_s3 = inlined_call_operand.vmem [shape: f32[2,64,16], index: 3, kind: input, shape index: {}]   ;;  %s1693_s4 = inlined_call_operand.vmem [shape: f32[4,64,16], index: 4, kind: input, shape index: {}]   ;;  %s1694_s5 = inlined_call_operand.vmem [shape: f32[16,64], index: 5, kind: input, shape index: {}]   ;;  %s1695_s6 = inlined_call_operand.vmem [shape: f32[1,64], index: 6, kind: input, shape index: {}]   ;;  %s1696_s7 = inlined_call_operand.vmem [shape: f32[1,64], index: 7, kind: input, shape index: {}]   ;;  %s1697_s8 = inlined_call_operand.vmem [shape: bf16[4,2,64,64], index: 8, kind: output, shape index: {}]  }
   0x1   :  { %1698 = sst [smem:[#allocation2_spill]] %s1694_s5  ;;  %s1343_s29 = smov 0  }
   0x2   :  { %1699 = sst [smem:[#allocation3_spill]] %s1695_s6  ;;  %s1345_s30 = smov 0  }
   0x3   :  { %s1347_s9 = smov 0  }
   0x4 LB: > { %s27_s10 = sadd.s32 1, %s1272_s29  ;;  %s30_s11 = sadd.s32 1, %s1276_s30  ;;  %s1280_s9 = sphi %s1347_s9, %s18_s9   ;;  %s1276_s30 = sphi %s1345_s30, %s1705_s30   ;;  %s1272_s29 = sphi %s1343_s29, %s1704_s29   ;;  %s1268_s28 = sphi %s1341_s28, %s1703_s28   ;;  %s1264_s27 = sphi %s1339_s27, %s1702_s27  }
   0x5   : > { %p28_p0 = scmp.ge.s32.totalorder %s27_s10, 4  ;;  %p1087_p1 = scmp.ge.s32.totalorder %s1280_s9, 1 }
   0x6   : > { %p322_p2 = scmp.lt.s32.totalorder %s1280_s9, 9 }
   0x7   : > { %s1707_s10 = smov (%p28_p0, %s27_s10), 0  ;;  %s1709_s11 = smov (!%p28_p0, %s30_s11), %s1276_s30 }
   0x8   : > { %p323_p3 = pnand %p1087_p1, %p322_p2  ;;  %p32_p4 = scmp.ge.s32.totalorder %s1709_s11, 2 }
   0x9   : > { %p384_p5 = scmp.lt.s32.totalorder (!%p323_p3), %s1264_s27, 3  ;;  %p386_p6 = scmp.lt.s32.totalorder (!%p323_p3), %s1268_s28, 1 }
   0xa   : > { %s1711_s11 = smov (%p32_p4, %s1709_s11), 0  ;;  %326 = sbr.rel (%p323_p3) target bundleno = 324 (0x144), region = 52 }
   0xb   : > { %s1700_s5 = sld [smem:[#allocation2_spill]] (!%p323_p3)  ;;  %s1422_s14 = smov (!%p323_p3), 0  }
   0xc   : > { %s1701_s6 = sld [smem:[#allocation3_spill]] (!%p323_p3) }
   0xf   : > { %v1387_v3 = vld [vmem:[%s1696_s7] sm:$0x1]  ;;  %s1713_s27 = smov (!%p384_p5, %s1264_s27), 3  ;;  %s1715_s28 = smov (!%p386_p6, %s1268_s28), 1  ;;  %v1418_v4 = vmov 0.0   ;;  %v1420_v5 = vmov 0.0  }
  0x10   : > { %s1089_s20 = sshll.u32 %s1713_s27, 4  ;;  %s1110_s21 = sshll.u32 %s1713_s27, 6 }
  0x11   : > { %v1372_v0 = vld [vmem:[%s1700_s5] sm:$0xff]  ;;  %v1377_v1 = vld [vmem:[%s1700_s5 + $0x8] sm:$0xff]  ;;  %s1088_s22 = sshll.u32 %s1715_s28, 3  ;;  %s1389_s23 = sshll.u32 %s1715_s28, 6 }
  0x12   : > { %v1382_v2 = vld [vmem:[%s1701_s6] sm:$0x1]  ;;  %s390_s24 = sadd.s32 %s1089_s20, %s1088_s22  ;;  %s397_s12 = scalar_lea.vmem %s1690_s1, %s1389_s23 }
  0x13   : > { %s1090_s13 = sshll.u32 %s390_s24, 2  ;;  %s402_s16 = scalar_lea.vmem %s1691_s2, %s1389_s23 }
  0x14   : > { %s1402_s27 = scalar_lea.vmem %s1689_s0, %s1090_s13  ;;  %s407_s5 = scalar_lea.vmem %s1692_s3, %s1389_s23 }
  0x15   : > { %s1411_s22 = scalar_lea.vmem %s1693_s4, %s1110_s21  ;;  %s1416_s26 = scalar_lea.vmem %s1697_s8, %s1090_s13 }
  0x16 LB: >> { %v541_v6 = vlaneseq  ;;  %s1436_s6 = sshll.u32 %s1292_s14, 3  ;;  %v451_v21 = vperm.slane %v1387_v3, 0  ;;  %vm757_vm2 = vcmask 523264   ;;  %vm893_vm3 = vcmask 1040384   ;;  %s431_s14 = sadd.s32 1, %s1292_s14   ;;  %s1292_s14 = sphi %s1422_s14, %s431_s14   ;;  %v1288_v5 = vphi %v1420_v5, %v1618_v5   ;;  %v1284_v4 = vphi %v1418_v4, %v881_v4  }
  0x17   : >> { %s443_s15 = scalar_lea.vmem %s402_s16, %s1436_s6  ;;  %s445_s17 = scalar_lea.vmem %s1411_s22, %s1436_s6  ;;  %vm895_vm4 = vcmask 1041408   ;;  %vm897_vm5 = vcmask 1042432   ;;  %vm899_vm6 = vcmask 1043456   ;;  %vm901_vm7 = vcmask 1044480  }
  0x18   : >> { %v1433_v7 = vshrl.u32 %v541_v6, 7  ;;  %v444_v8 = vld [vmem:[%s443_s15] sm:$0xff]  ;;  %s448_s19 = scalar_lea.vmem %s407_s5, %s1436_s6  ;;  %s441_s24 = scalar_lea.vmem %s397_s12, %s1436_s6  ;;  %vm903_vm8 = vcmask 1045504   ;;  %vm905_vm9 = vcmask 1046528   ;;  %vm915_vm10 = vcmask 519168  }
  0x19   : >> { %v446_v9 = vld [vmem:[%s445_s17] sm:$0xff]  ;;  %s435_s21 = sshra.s32 %s1436_s6, 3  ;;  %p428_p7 = scmp.ge.s32.totalorder %s431_s14, 8  }
  0x1a   : >> { %1178 = vset.pattern.permute.xlu2 %v1433_v7  ;;  %1177 = vset.pattern.permute.xlu1 %v1433_v7  ;;  %v447_v10 = vadd.f32 %v446_v9, %v444_v8  ;;  %v1450_v14 = vadd.s32 8, %v1433_v7  ;;  %v1462_v17 = vld [vmem:[%s448_s19] sm:$0xff]  ;;  %s1484_s13 = sshll.u32 %s435_s21, 2 }
  0x1b   : >> { %1175 = vset.pattern.permute.xlu0 %v1433_v7  ;;  %v683_v18 = vperm.slane %v1462_v17, 3  ;;  %v442_v22 = vld [vmem:[%s441_s24] sm:$0xff]  ;;  %v657_v24 = vperm.slane %v1462_v17, 1  ;;  %v722_v27 = vperm.slane %v1462_v17, 6  ;;  %v644_v30 = vperm.slane %v1462_v17, 0  ;;  %s438_s15 = scalar_lea.vmem %s1402_s27, %s1484_s13  ;;  %s914_s6 = scalar_lea.vmem %s1416_s26, %s1484_s13 }
  0x1c   : >> { %v566_v11 = vperm.slane %v447_v10, 2  ;;  %v553_v12 = vperm.slane %v447_v10, 1  ;;  %v540_v13 = vperm.slane %v447_v10, 0  ;;  %v579_v15 = vperm.slane %v447_v10, 3  ;;  %v1489_v37 = vld [vmem:[%s438_s15] sm:$0xf] }
  0x1d   : >> { %v618_v16 = vperm.slane %v447_v10, 6  ;;  %v605_v19 = vperm.slane %v447_v10, 5  ;;  %v592_v20 = vperm.slane %v447_v10, 4  ;;  %v453_v23 = vadd.f32 %v451_v21, %v442_v22 }
  0x1e   : >> { %v631_v26 = vperm.slane %v447_v10, 7  ;;  %v670_v38 = vperm.slane %v1462_v17, 2  ;;  %v440_v39 = vunpack.c.l.bf16 %v1489_v37  ;;  %v696_v58 = vperm.slane %v1462_v17, 4 }
  0x1f   : >> { %v455_v25 = vmul.f32 1.442695, %v453_v23  ;;  %vm454_vm1 = vcmp.gt.f32.partialorder %v453_v23, 20.0 }
  0x21   : >> { %1194 = vpow2.f32 %v455_v25 }
  0x22   : >> { %571 = vperm.xlu2 %1178, %v566_v11   ;;  %558 = vperm.xlu1 %1177, %v553_v12  }
  0x23   : >> { %545 = vperm.xlu0 %1175, %v540_v13  }
  0x27   : >> { %v1195_v28 = vpop.eup %1194 }
  0x28   : >> { %v457_v29 = vadd.f32 1.0, %v1195_v28  ;;  %v460_v31 = vmul.f32 -0.5, %v1195_v28  ;;  %v463_v34 = vand.u32 2147483647, %v1195_v28 }
  0x2a   : >> { %1181 = vset.pattern.permute.xlu2 %v1450_v14  ;;  %1179 = vset.pattern.permute.xlu1 %v1450_v14  ;;  %1196 = vlog2.f32 %v457_v29  ;;  %v461_v32 = vadd.f32 1.0, %v460_v31  ;;  %vm464_vm0 = vcmp.lt.f32.partialorder %v463_v34, 0.0004427343 }
  0x2b   : >> { %1176 = vset.pattern.permute.xlu0 %v1450_v14 }
  0x2c   : >> { %v462_v36 = vmul.f32 %v1195_v28, %v461_v32  ;;  %v735_v28 = vperm.slane %v1462_v17, 7 }
  0x30   : >> { %v1197_v33 = vpop.eup %1196 }
  0x31   : >> { %v459_v35 = vmul.f32 0.6931472, %v1197_v33 }
  0x32   : >> { %577 = vperm.xlu2 %1181, %v566_v11   ;;  %564 = vperm.xlu1 %1179, %v553_v12  }
  0x33   : >> { %551 = vperm.xlu0 %1176, %v540_v13   ;;  %v465_v40 = vsel %vm464_vm0, %v462_v36, %v459_v35 }
  0x34   : >> { %v1493_v41 = vsel %vm454_vm1, %v453_v23, %v465_v40 }
  0x35   : >> { %v1499_v42 = vmul.f32 %v1493_v41, %v440_v39  ;;  %v475_v46 = vperm.slane %v1493_v41, 0  ;;  %v468_v47 = vrot.slane %v1493_v41, 1  ;;  %v469_v50 = vrot.slane %v1493_v41, 2 }
  0x36   : >> { %v470_v54 = vrot.slane %v1493_v41, 3  ;;  %v472_v36 = vrot.slane %v1493_v41, 5 }
  0x37   : >> { %v787_v44 = vperm.slane %v1499_v42, 2  ;;  %v491_v48 = vmul.f32 %v475_v46, %v1372_v0  ;;  %v476_v49 = vperm.slane %v468_v47, 0  ;;  %v1509_v53 = vperm.slane %v469_v50, 0 }
  0x38   : >> { %v1515_v57 = vperm.slane %v470_v54, 0  ;;  %v769_v60 = vperm.slane %v1499_v42, 1  ;;  %v750_v63 = vperm.slane %v1499_v42, 0  ;;  %v492_v32 = vmul.f32 %v475_v46, %v1377_v1 }
  0x39   : >> { %v507_v51 = vmul.f32 1.442695, %v491_v48  ;;  %v493_v52 = vmul.f32 %v476_v49, %v1372_v0  ;;  %v495_v56 = vmul.f32 %v1509_v53, %v1372_v0  ;;  %v805_v40 = vperm.slane %v1499_v42, 3 }
  0x3a   : >> { %590 = vperm.xlu2 %1181, %v579_v15   ;;  %1180 = vset.pattern.permute.xlu1 %v1433_v7  ;;  %v497_v62 = vmul.f32 %v1515_v57, %v1372_v0  ;;  %v509_v35 = vmul.f32 1.442695, %v492_v32  ;;  %v1558_v46 = vperm.slane %v472_v36, 0  ;;  %v473_v47 = vrot.slane %v1493_v41, 6 }
  0x3b   : >> { %629 = vperm.xlu0 %1176, %v618_v16   ;;  %1198 = vpow2.f32 %v507_v51  ;;  %v511_v55 = vmul.f32 1.442695, %v493_v52  ;;  %v515_v61 = vmul.f32 1.442695, %v495_v56  ;;  %v496_v56 = vmul.f32 %v1509_v53, %v1377_v1 }
  0x3c   : >> { %v519_v11 = vmul.f32 1.442695, %v497_v62  ;;  %v1566_v54 = vperm.slane %v473_v47, 0 }
  0x3d   : >> { %1200 = vpow2.f32 %v511_v55  ;;  %v474_v55 = vrot.slane %v1493_v41, 7 }
  0x3e   : >> { %1202 = vpow2.f32 %v515_v61 }
  0x3f   : >> { %1204 = vpow2.f32 %v519_v11 }
  0x41   : >> { %v1199_v59 = vpop.eup %1198 }
  0x42   : >> { %1183 = vset.pattern.permute.xlu2 %v1433_v7  ;;  %584 = vperm.xlu1 %1180, %v579_v15   ;;  %v748_v8 = vmul.f32 %v1288_v5, %v1199_v59  ;;  %v709_v15 = vperm.slane %v1462_v17, 5  ;;  %v501_v17 = vmul.f32 %v1558_v46, %v1372_v0 }
  0x43   : >> { %694 = vperm.xlu0 %1176, %v683_v18   ;;  %v1201_v12 = vpop.eup %1200 }
  0x44   : >> { %v1203_v5 = vpop.eup %1202  ;;  %v527_v62 = vmul.f32 1.442695, %v501_v17 }
  0x45   : >> { %v1205_v22 = vpop.eup %1204 }
  0x4a   : >> { %610 = vperm.xlu2 %1183, %v605_v19   ;;  %1182 = vset.pattern.permute.xlu1 %v1450_v14 }
  0x4b   : >> { %1188 = vset.pattern.permute.xlu0 %v1433_v7 }
  0x52   : >> { %623 = vperm.xlu2 %1183, %v618_v16   ;;  %603 = vperm.xlu1 %1182, %v592_v20  }
  0x53   : >> { %597 = vperm.xlu0 %1188, %v592_v20  }
  0x5a   : >> { %1185 = vset.pattern.permute.xlu2 %v1450_v14  ;;  %616 = vperm.xlu1 %1182, %v605_v19  }
  0x5b   : >> { %662 = vperm.xlu0 %1188, %v657_v24  }
  0x62   : >> { %642 = vperm.xlu2 %1185, %v631_v26   ;;  %1184 = vset.pattern.permute.xlu1 %v1433_v7 }
  0x63   : >> { %727 = vperm.xlu0 %1188, %v722_v27  }
  0x6a   : >> { %655 = vperm.xlu2 %1185, %v644_v30   ;;  %636 = vperm.xlu1 %1184, %v631_v26   ;;  %v471_v26 = vrot.slane %v1493_v41, 4 }
  0x6b   : >> { %1193 = vset.pattern.permute.xlu0 %v1450_v14 }
  0x6c   : >> { %v1543_v29 = vperm.slane %v471_v26, 0 }
  0x72   : >> { %1187 = vset.pattern.permute.xlu2 %v1433_v7  ;;  %649 = vperm.xlu1 %1184, %v644_v30   ;;  %v499_v30 = vmul.f32 %v1543_v29, %v1372_v0 }
  0x74   : >> { %v523_v34 = vmul.f32 1.442695, %v499_v30 }
  0x76   : >> { %1206 = vpow2.f32 %v523_v34 }
  0x77   : >> { %1208 = vpow2.f32 %v509_v35 }
  0x7a   : >> { %675 = vperm.xlu2 %1187, %v670_v38   ;;  %1186 = vset.pattern.permute.xlu1 %v1450_v14 }
  0x7c   : >> { %v572_v43 = vpop.permute.xlu2 %571  ;;  %v1207_v48 = vpop.eup %1206 }
  0x7d   : >> { %v788_v45 = vmul.f32 %v787_v44, %v572_v43  ;;  %v1209_v52 = vpop.eup %1208 }
  0x82   : >> { %688 = vperm.xlu2 %1187, %v683_v18   ;;  %668 = vperm.xlu1 %1186, %v657_v24  }
  0x8a   : >> { %1190 = vset.pattern.permute.xlu2 %v1450_v14  ;;  %681 = vperm.xlu1 %1186, %v670_v38   ;;  %v494_v38 = vmul.f32 %v476_v49, %v1377_v1 }
  0x8c   : >> { %v1529_v18 = vpop.permute.xlu2 %577  ;;  %v513_v50 = vmul.f32 1.442695, %v494_v38 }
  0x8d   : >> { %v789_v36 = vmul.f32 %v787_v44, %v1529_v18 }
  0x8e   : >> { %1210 = vpow2.f32 %v513_v50 }
  0x8f   : >> { %1212 = vpow2.f32 %v527_v62 }
  0x92   : >> { %707 = vperm.xlu2 %1190, %v696_v58   ;;  %1189 = vset.pattern.permute.xlu1 %v1433_v7 }
  0x94   : >> { %v559_v6 = vpop.permute.xlu1 %558  ;;  %v1538_v24 = vpop.permute.xlu2 %590 }
  0x95   : >> { %v770_v9 = vmul.f32 %v769_v60, %v559_v6  ;;  %v546_v10 = vpop.permute.xlu0 %545  ;;  %v503_v6 = vmul.f32 %v1566_v54, %v1372_v0  ;;  %v1211_v11 = vpop.eup %1210 }
  0x96   : >> { %v751_v13 = vmul.f32 %v750_v63, %v546_v10  ;;  %v1213_v26 = vpop.eup %1212 }
  0x97   : >> { %v531_v41 = vmul.f32 1.442695, %v503_v6 }
  0x98   : >> { %v1527_v16 = vadd.f32 %v751_v13, %v748_v8  ;;  %v1574_v8 = vperm.slane %v474_v55, 0 }
  0x9a   : >> { %v767_v19 = vmul.f32 %v1201_v12, %v1527_v16  ;;  %720 = vperm.xlu2 %1190, %v709_v15   ;;  %701 = vperm.xlu1 %1189, %v696_v58   ;;  %v749_v58 = vmul.f32 %v1284_v4, %v1209_v52  ;;  %v505_v53 = vmul.f32 %v1574_v8, %v1372_v0 }
  0x9b   : >> { %v498_v4 = vmul.f32 %v1515_v57, %v1377_v1  ;;  %v859_v57 = vperm.slane %v1499_v42, 6 }
  0x9c   : >> { %v1532_v20 = vadd.f32 %v770_v9, %v767_v19  ;;  %v517_v9 = vmul.f32 1.442695, %v496_v56 }
  0x9e   : >> { %v785_v21 = vmul.f32 %v1203_v5, %v1532_v20  ;;  %1214 = vpow2.f32 %v517_v9 }
  0x9f   : >> { %1216 = vpow2.f32 %v531_v41 }
  0xa0   : >> { %v1535_v23 = vadd.f32 %v788_v45, %v785_v21  ;;  %v535_v21 = vmul.f32 1.442695, %v505_v53 }
  0xa2   : >> { %1192 = vset.pattern.permute.xlu2 %v1433_v7  ;;  %714 = vperm.xlu1 %1189, %v709_v15   ;;  %v803_v25 = vmul.f32 %v1205_v22, %v1535_v23  ;;  %v841_v15 = vperm.slane %v1499_v42, 5  ;;  %v521_v22 = vmul.f32 1.442695, %v498_v4  ;;  %1218 = vpow2.f32 %v535_v21 }
  0xa4   : >> { %v565_v7 = vpop.permute.xlu1 %564  ;;  %v611_v33 = vpop.permute.xlu2 %610  ;;  %1220 = vpow2.f32 %v521_v22 }
  0xa5   : >> { %v552_v31 = vpop.permute.xlu0 %551  ;;  %v771_v19 = vmul.f32 %v769_v60, %v565_v7  ;;  %v1215_v30 = vpop.eup %1214 }
  0xa6   : >> { %v752_v59 = vmul.f32 %v750_v63, %v552_v31  ;;  %v823_v63 = vperm.slane %v1499_v42, 4  ;;  %v842_v31 = vmul.f32 %v841_v15, %v611_v33  ;;  %v1217_v35 = vpop.eup %1216 }
  0xa8   : >> { %v754_v10 = vadd.f32 %v752_v59, %v749_v58  ;;  %v1219_v47 = vpop.eup %1218  ;;  %v877_v58 = vperm.slane %v1499_v42, 7 }
  0xaa   : >> { %740 = vperm.xlu2 %1192, %v735_v28   ;;  %1191 = vset.pattern.permute.xlu1 %v1450_v14  ;;  %v768_v13 = vmul.f32 %v1211_v11, %v754_v10  ;;  %v1221_v50 = vpop.eup %1220 }
  0xac   : >> { %v624_v51 = vpop.permute.xlu2 %623 }
  0xad   : >> { %v1554_v43 = vpop.permute.xlu0 %629 }
  0xb2   : >> { %733 = vperm.xlu1 %1191, %v722_v27  }
  0xb4   : >> { %v585_v45 = vpop.permute.xlu1 %584 }
  0xb5   : >> { %v806_v14 = vmul.f32 %v805_v40, %v585_v45  ;;  %v695_v61 = vpop.permute.xlu0 %694  ;;  %v860_v45 = vmul.f32 %v859_v57, %v624_v51 }
  0xb7   : >> { %v1561_v49 = vadd.f32 %v806_v14, %v803_v25 }
  0xb9   : >> { %v821_v27 = vmul.f32 %v1207_v48, %v1561_v49 }
  0xba   : >> { %746 = vperm.xlu1 %1191, %v735_v28   ;;  %v773_v28 = vadd.f32 %v771_v19, %v768_v13 }
  0xbc   : >> { %v1576_v12 = vpop.permute.xlu2 %642  ;;  %v786_v38 = vmul.f32 %v1215_v30, %v773_v28 }
  0xbe   : >> { %v791_v48 = vadd.f32 %v789_v36, %v786_v38 }
  0xc0   : >> { %v804_v44 = vmul.f32 %v1221_v50, %v791_v48 }
  0xc4   : >> { %v1593_v60 = vpop.permute.xlu1 %603  ;;  %v656_v34 = vpop.permute.xlu2 %655 }
  0xc5   : >> { %v598_v5 = vpop.permute.xlu0 %597  ;;  %v756_v53 = vmul.f32 %v754_v10, %v656_v34 }
  0xc6   : >> { %v824_v25 = vmul.f32 %v823_v63, %v598_v5 }
  0xc7   : >> { %v759_v4 = vsel %vm757_vm2, %v756_v53, 0.0 }
  0xc8   : >> { %v1591_v32 = vadd.f32 %v824_v25, %v821_v27  ;;  %v807_v27 = vmul.f32 %v805_v40, %v1538_v24 }
  0xca   : >> { %v839_v7 = vmul.f32 %v1213_v26, %v1591_v32  ;;  %v809_v51 = vadd.f32 %v807_v27, %v804_v44 }
  0xcc   : >> { %v1601_v14 = vadd.f32 %v842_v31, %v839_v7  ;;  %v1610_v18 = vpop.permute.xlu1 %616  ;;  %v811_v56 = vmul.f32 %v809_v51, %v695_v61  ;;  %v500_v31 = vmul.f32 %v1543_v29, %v1377_v1  ;;  %v502_v29 = vmul.f32 %v1558_v46, %v1377_v1 }
  0xcd   : >> { %v825_v46 = vmul.f32 %v823_v63, %v1593_v60  ;;  %v843_v63 = vmul.f32 %v841_v15, %v1610_v18 }
  0xce   : >> { %v857_v33 = vmul.f32 %v1217_v35, %v1601_v14  ;;  %v813_v11 = vsel %vm757_vm2, %v811_v56, 0.0  ;;  %v525_v36 = vmul.f32 1.442695, %v500_v31 }
  0xd0   : >> { %v1604_v52 = vadd.f32 %v860_v45, %v857_v33  ;;  %1222 = vpow2.f32 %v525_v36 }
  0xd2   : >> { %v875_v17 = vmul.f32 %v1219_v47, %v1604_v52 }
  0xd4   : >> { %v676_v55 = vpop.permute.xlu2 %675 }
  0xd5   : >> { %v792_v45 = vmul.f32 %v1535_v23, %v676_v55 }
  0xd7   : >> { %v794_v27 = vsel %vm757_vm2, %v792_v45, 0.0 }
  0xdc   : >> { %v689_v59 = vpop.permute.xlu2 %688  ;;  %v637_v62 = vpop.permute.xlu1 %636 }
  0xdd   : >> { %v810_v6 = vmul.f32 %v1561_v49, %v689_v59  ;;  %v878_v9 = vmul.f32 %v877_v58, %v637_v62  ;;  %v663_v49 = vpop.permute.xlu0 %662 }
  0xde   : >> { %v774_v22 = vmul.f32 %v1532_v20, %v663_v49 }
  0xdf   : >> { %v812_v24 = vsel %vm757_vm2, %v810_v6, 0.0  ;;  %v1618_v5 = vadd.f32 %v878_v9, %v875_v17   ;;  %v529_v9 = vmul.f32 1.442695, %v502_v29 }
  0xe0   : >> { %v814_v40 = vadd.f32 %v813_v11, %v812_v24  ;;  %v776_v7 = vsel %vm757_vm2, %v774_v22, 0.0  ;;  %v1223_v11 = vpop.eup %1222 }
  0xe1   : >> { %1224 = vpow2.f32 %v529_v9 }
  0xe2   : >> { %v815_v35 = vrot.slane %v814_v40, 4 }
  0xe4   : >> { %v650_v41 = vpop.permute.xlu1 %649  ;;  %v816_v50 = vadd.f32 %v815_v35, %v814_v40 }
  0xe5   : >> { %v755_v61 = vmul.f32 %v1527_v16, %v650_v41 }
  0xe6   : >> { %v817_v6 = vrot.slane %v816_v50, 2 }
  0xe7   : >> { %v758_v13 = vsel %vm757_vm2, %v755_v61, 0.0 }
  0xe8   : >> { %v760_v19 = vadd.f32 %v759_v4, %v758_v13  ;;  %v818_v41 = vadd.f32 %v817_v6, %v816_v50  ;;  %v822_v13 = vmul.f32 %v1223_v11, %v809_v51  ;;  %v504_v51 = vmul.f32 %v1566_v54, %v1377_v1 }
  0xe9   : >> { %v506_v54 = vmul.f32 %v1574_v8, %v1377_v1  ;;  %v861_v8 = vmul.f32 %v859_v57, %v1554_v43 }
  0xea   : >> { %v761_v21 = vrot.slane %v760_v19, 4  ;;  %v819_v49 = vrot.slane %v818_v41, 1 }
  0xec   : >> { %v762_v25 = vadd.f32 %v761_v21, %v760_v19  ;;  %v708_v53 = vpop.permute.xlu2 %707  ;;  %v827_v21 = vadd.f32 %v825_v46, %v822_v13  ;;  %v820_v60 = vadd.f32 %v819_v49, %v818_v41  ;;  %v879_v49 = vmul.f32 %v877_v58, %v1576_v12 }
  0xee   : >> { %v763_v16 = vrot.slane %v762_v25, 2 }
  0xf0   : >> { %v764_v33 = vadd.f32 %v763_v16, %v762_v25  ;;  %v829_v25 = vmul.f32 %v827_v21, %v708_v53 }
  0xf2   : >> { %v765_v56 = vrot.slane %v764_v33, 1  ;;  %v831_v16 = vsel %vm757_vm2, %v829_v25, 0.0 }
  0xf4   : >> { %v669_v26 = vpop.permute.xlu1 %668  ;;  %v766_v24 = vadd.f32 %v765_v56, %v764_v33 }
  0xf5   : >> { %v775_v30 = vmul.f32 %v773_v28, %v669_v26  ;;  %v1225_v26 = vpop.eup %1224 }
  0xf7   : >> { %v777_v10 = vsel %vm757_vm2, %v775_v30, 0.0 }
  0xf8   : >> { %v778_v34 = vadd.f32 %v777_v10, %v776_v7 }
  0xfa   : >> { %v779_v38 = vrot.slane %v778_v34, 4 }
  0xfc   : >> { %v780_v47 = vadd.f32 %v779_v38, %v778_v34  ;;  %v682_v20 = vpop.permute.xlu1 %681  ;;  %v840_v34 = vmul.f32 %v1225_v26, %v827_v21  ;;  %v721_v38 = vpop.permute.xlu2 %720 }
  0xfd   : >> { %v793_v17 = vmul.f32 %v791_v48, %v682_v20  ;;  %v533_v20 = vmul.f32 1.442695, %v504_v51 }
  0xfe   : >> { %v781_v28 = vrot.slane %v780_v47, 2  ;;  %v845_v33 = vadd.f32 %v843_v63, %v840_v34 }
  0xff   : >> { %v795_v44 = vsel %vm757_vm2, %v793_v17, 0.0  ;;  %1226 = vpow2.f32 %v533_v20 }
 0x100   : >> { %v782_v59 = vadd.f32 %v781_v28, %v780_v47  ;;  %v796_v62 = vadd.f32 %v795_v44, %v794_v27  ;;  %v847_v50 = vmul.f32 %v845_v33, %v721_v38  ;;  %v908_v38 = vperm.slane %v1382_v2, 0 }
 0x102   : >> { %v783_v23 = vrot.slane %v782_v59, 1  ;;  %v797_v55 = vrot.slane %v796_v62, 4  ;;  %v849_v29 = vsel %vm757_vm2, %v847_v50, 0.0 }
 0x104   : >> { %v784_v48 = vadd.f32 %v783_v23, %v782_v59  ;;  %v798_v40 = vadd.f32 %v797_v55, %v796_v62  ;;  %v537_v62 = vmul.f32 1.442695, %v506_v54 }
 0x105   : >> { %v1227_v6 = vpop.eup %1226 }
 0x106   : >> { %v894_v61 = vsel %vm893_vm3, %v766_v24, %v784_v48  ;;  %v799_v4 = vrot.slane %v798_v40, 2  ;;  %1228 = vpow2.f32 %v537_v62  ;;  %v858_v11 = vmul.f32 %v1227_v6, %v845_v33  ;;  %v728_v24 = vpop.permute.xlu0 %727 }
 0x107   : >> { %v864_v46 = vmul.f32 %v1604_v52, %v728_v24 }
 0x108   : >> { %v800_v19 = vadd.f32 %v799_v4, %v798_v40  ;;  %v863_v41 = vadd.f32 %v861_v8, %v858_v11 }
 0x109   : >> { %v866_v21 = vsel %vm757_vm2, %v864_v46, 0.0 }
 0x10a   : >> { %v801_v22 = vrot.slane %v800_v19, 1 }
 0x10c   : >> { %v802_v30 = vadd.f32 %v801_v22, %v800_v19  ;;  %v702_v31 = vpop.permute.xlu1 %701  ;;  %v1229_v53 = vpop.eup %1228 }
 0x10d   : >> { %v828_v7 = vmul.f32 %v1591_v32, %v702_v31  ;;  %v876_v57 = vmul.f32 %v1229_v53, %v863_v41  ;;  %v741_v22 = vpop.permute.xlu2 %740 }
 0x10e   : >> { %v896_v10 = vsel %vm895_vm4, %v894_v61, %v802_v30  ;;  %v882_v52 = vmul.f32 %v1618_v5, %v741_v22 }
 0x10f   : >> { %v830_v35 = vsel %vm757_vm2, %v828_v7, 0.0  ;;  %v898_v36 = vsel %vm897_vm5, %v896_v10, %v820_v60 }
 0x110   : >> { %v832_v45 = vadd.f32 %v831_v16, %v830_v35  ;;  %v884_v7 = vsel %vm757_vm2, %v882_v52, 0.0 }
 0x112   : >> { %v833_v47 = vrot.slane %v832_v45, 4 }
 0x114   : >> { %v834_v15 = vadd.f32 %v833_v47, %v832_v45  ;;  %v715_v18 = vpop.permute.xlu1 %714  ;;  %v910_v47 = vmul.f32 %v908_v38, %v440_v39 }
 0x115   : >> { %v846_v32 = vmul.f32 %v1601_v14, %v715_v18 }
 0x116   : >> { %v835_v17 = vrot.slane %v834_v15, 2 }
 0x117   : >> { %v848_v28 = vsel %vm757_vm2, %v846_v32, 0.0 }
 0x118   : >> { %v836_v27 = vadd.f32 %v835_v17, %v834_v15  ;;  %v850_v44 = vadd.f32 %v849_v29, %v848_v28 }
 0x11a   : >> { %v837_v56 = vrot.slane %v836_v27, 1  ;;  %v851_v59 = vrot.slane %v850_v44, 4 }
 0x11c   : >> { %v838_v9 = vadd.f32 %v837_v56, %v836_v27  ;;  %v852_v23 = vadd.f32 %v851_v59, %v850_v44 }
 0x11e   : >> { %v900_v55 = vsel %vm899_vm6, %v898_v36, %v838_v9  ;;  %v853_v14 = vrot.slane %v852_v23, 2 }
 0x120   : >> { %v854_v48 = vadd.f32 %v853_v14, %v852_v23 }
 0x122   : >> { %v855_v40 = vrot.slane %v854_v48, 1 }
 0x124   : >> { %v856_v61 = vadd.f32 %v855_v40, %v854_v48  ;;  %v734_v4 = vpop.permute.xlu1 %733 }
 0x125   : >> { %v865_v13 = vmul.f32 %v863_v41, %v734_v4  ;;  %v881_v4 = vadd.f32 %v879_v49, %v876_v57  }
 0x126   : >> { %v902_v19 = vsel %vm901_vm7, %v900_v55, %v856_v61 }
 0x127   : >> { %v867_v43 = vsel %vm757_vm2, %v865_v13, 0.0 }
 0x128   : >> { %v868_v25 = vadd.f32 %v867_v43, %v866_v21 }
 0x12a   : >> { %v869_v26 = vrot.slane %v868_v25, 4 }
 0x12c   : >> { %v870_v30 = vadd.f32 %v869_v26, %v868_v25  ;;  %v747_v31 = vpop.permute.xlu1 %746 }
 0x12d   : >> { %v883_v63 = vmul.f32 %v881_v4, %v747_v31 }
 0x12e   : >> { %v871_v60 = vrot.slane %v870_v30, 2 }
 0x12f   : >> { %v885_v42 = vsel %vm757_vm2, %v883_v63, 0.0 }
 0x130   : >> { %v872_v12 = vadd.f32 %v871_v60, %v870_v30  ;;  %v886_v58 = vadd.f32 %v885_v42, %v884_v7 }
 0x132   : >> { %v873_v10 = vrot.slane %v872_v12, 1  ;;  %v887_v51 = vrot.slane %v886_v58, 4 }
 0x134   : >> { %v874_v16 = vadd.f32 %v873_v10, %v872_v12  ;;  %v888_v34 = vadd.f32 %v887_v51, %v886_v58 }
 0x136   : >> { %v904_v35 = vsel %vm903_vm8, %v902_v19, %v874_v16  ;;  %v889_v36 = vrot.slane %v888_v34, 2 }
 0x138   : >> { %v890_v45 = vadd.f32 %v889_v36, %v888_v34 }
 0x13a   : >> { %v891_v33 = vrot.slane %v890_v45, 1 }
 0x13c   : >> { %v892_v20 = vadd.f32 %v891_v33, %v890_v45 }
 0x13e   : >> { %v906_v50 = vsel %vm905_vm9, %v904_v35, %v892_v20 }
 0x13f   : >> { %v911_v15 = vadd.f32 %v910_v47, %v906_v50  ;;  %430 = sbr.rel (!%p428_p7) target bundleno = 22 (0x16), region = 107 }
 0x141   : >> { %v912_v18 = vpack.c.bf16 %v911_v15, %v911_v15 }
 0x143   : >> { %916 = vst.msk [vmem:[%s914_s6] sm:$0xf] %vm915_vm10, %v912_v18 }
 0x144 PF: > { %s18_s9 = sadd.s32 1, %s1280_s9   ;;  %s1702_s27 = smov %s1272_s29 }
 0x145   : > { %p15_p8 = scmp.ge.s32.totalorder %s18_s9, 10   ;;  %s1703_s28 = smov %s1276_s30 }
 0x146   : > { %s1704_s29 = smov %s1707_s10  ;;  %s1705_s30 = smov %s1711_s11 }
 0x147   :  { %17 = sbr.rel (!%p15_p8) target bundleno = 4 (0x4), region = 118 }

// kernel: savss_layer_forward.48
= control target key start
LH: loop header
LB: loop body
LE: loop exit
PB: predicated region body
PF: predicated region fallthrough
CT: control target
= control target key end

     0   :  { %s894_s21 = smov 0   ;;  %s1057_s0 = inlined_call_operand.vmem [shape: bf16[2,64,32], index: 0, kind: input, shape index: {}]   ;;  %s1058_s1 = inlined_call_operand.vmem [shape: f32[32,16], index: 1, kind: input, shape index: {}]   ;;  %s1059_s2 = inlined_call_operand.vmem [shape: f32[16,32], index: 2, kind: input, shape index: {}]   ;;  %s1060_s3 = inlined_call_operand.vmem [shape: f32[1,32], index: 3, kind: input, shape index: {}]   ;;  %s1061_s4 = inlined_call_operand.vmem [shape: f32[1,32], index: 4, kind: input, shape index: {}]   ;;  %s1062_s5 = inlined_call_operand.vmem [shape: bf16[2,64,32], index: 5, kind: output, shape index: {0}]   ;;  %s1063_s6 = inlined_call_operand.vmem [shape: bf16[2,64,32], index: 6, kind: output, shape index: {1}]  }
   0x1 LB: > { %s794_s22 = sadd.s32 4294967295, %s857_s21   ;;  %p798_p0 = scmp.ge.s32.totalorder %s857_s21, 1  ;;  %s857_s21 = sphi %s894_s21, %s17_s21  }
   0x2   : > { %p215_p1 = scmp.lt.s32.totalorder %s857_s21, 3 }
   0x4   : > { %p216_p2 = pnand %p798_p0, %p215_p1 }
   0x5   : > { %p250_p3 = scmp.lt.s32.totalorder (!%p216_p2), %s794_s22, 1 }
   0x6   : > { %219 = sbr.rel (%p216_p2) target bundleno = 1244 (0x4dc), region = 40 }
   0xb   : > { %v268_v0 = vld [vmem:[%s1058_s1 + $0x18] sm:$0xff]  ;;  %v908_v1 = vld [vmem:[%s1058_s1 + $0x10] sm:$0xff]  ;;  %v266_v2 = vld [vmem:[%s1058_s1 + $0x8] sm:$0xff]  ;;  %s1065_s22 = smov (!%p250_p3, %s794_s22), 1  ;;  %vm289_vm0 = vcmask 261120   ;;  %vm335_vm1 = vcmask 130048  }
   0xc   : > { %326 = vmatpush.msra.mxu0 %v268_v0  ;;  %412 = vmatpush.msra.mxu2 %v268_v0  ;;  %v265_v3 = vld [vmem:[%s1058_s1] sm:$0xff]  ;;  %s918_s7 = sshll.u32 %s1065_s22, 5  ;;  %v270_v37 = vld [vmem:[%s1059_s2 + $0x8] sm:$0xff]  ;;  %vm493_vm5 = vcmask 257024  }
   0xd   : > { %s254_s10 = scalar_lea.vmem %s1057_s0, %s918_s7  ;;  %353 = vmatpush.msra.mxu1 %v270_v37  ;;  %438 = vmatpush.msra.mxu3 %v270_v37  ;;  %v269_v38 = vld [vmem:[%s1059_s2] sm:$0xff]  ;;  %s259_s22 = scalar_lea.vmem %s1062_s5, %s918_s7 }
   0xe   : > { %327 = vmatpush.msra.mxu0 %v908_v1  ;;  %413 = vmatpush.msra.mxu2 %v908_v1  ;;  %v924_v4 = vld [vmem:[%s254_s10] sm:$0xff]   ;;  %v926_v5 = vld [vmem:[%s254_s10 + $0x8] sm:$0xff]   ;;  %v928_v6 = vld [vmem:[%s254_s10 + $0x10] sm:$0xff]   ;;  %s264_s25 = scalar_lea.vmem %s1063_s6, %s918_s7 }
   0xf   : > { %v820_v7 = vunpack.c.l.bf16 %v924_v4  ;;  %v821_v8 = vunpack.c.h.bf16 %v924_v4  ;;  %v824_v9 = vunpack.c.l.bf16 %v926_v5  ;;  %v825_v10 = vunpack.c.h.bf16 %v926_v5  ;;  %v938_v15 = vld [vmem:[%s254_s10 + $0x18] sm:$0xff]   ;;  %354 = vmatpush.msra.mxu1 %v269_v38  ;;  %439 = vmatpush.msra.mxu3 %v269_v38 }
  0x10   : > { %328 = vmatpush.msra.mxu0 %v266_v2  ;;  %414 = vmatpush.msra.mxu2 %v266_v2  ;;  %v828_v11 = vunpack.c.l.bf16 %v928_v6  ;;  %v829_v17 = vunpack.c.h.bf16 %v928_v6  ;;  %v832_v20 = vunpack.c.l.bf16 %v938_v15  ;;  %v833_v23 = vunpack.c.h.bf16 %v938_v15 }
  0x11   : > { %v290_v12 = vsel %vm289_vm0, %v820_v7, 0.0  ;;  %v291_v13 = vsel %vm289_vm0, %v821_v8, 0.0  ;;  %v293_v14 = vsel %vm289_vm0, %v824_v9, 0.0  ;;  %v295_v18 = vsel %vm289_vm0, %v825_v10, 0.0  ;;  %538 = vmatpush.msrb.mxu1 %v268_v0  ;;  %564 = vmatpush.msrb.mxu3 %v270_v37 }
  0x12   : > { %329 = vmatpush.msra.mxu0 %v265_v3  ;;  %415 = vmatpush.msra.mxu2 %v265_v3  ;;  %v292_v16 = vadd.f32 %v291_v13, %v290_v12  ;;  %v297_v21 = vsel %vm289_vm0, %v828_v11, 0.0  ;;  %v299_v24 = vsel %vm289_vm0, %v829_v17, 0.0  ;;  %v301_v26 = vsel %vm289_vm0, %v832_v20, 0.0 }
  0x13   : > { %v303_v28 = vsel %vm289_vm0, %v833_v23, 0.0  ;;  %539 = vmatpush.msrb.mxu1 %v908_v1  ;;  %565 = vmatpush.msrb.mxu3 %v269_v38 }
  0x14   : > { %623 = vmatpush.msrb.mxu0 %v268_v0  ;;  %v294_v19 = vadd.f32 %v293_v14, %v292_v16  ;;  %649 = vmatpush.msrb.mxu2 %v270_v37 }
  0x15   : > { %540 = vmatpush.msrb.mxu1 %v266_v2 }
  0x16   : > { %624 = vmatpush.msrb.mxu0 %v908_v1  ;;  %v296_v22 = vadd.f32 %v295_v18, %v294_v19  ;;  %650 = vmatpush.msrb.mxu2 %v269_v38 }
  0x17   : > { %541 = vmatpush.msrb.mxu1 %v265_v3 }
  0x18   : > { %625 = vmatpush.msrb.mxu0 %v266_v2  ;;  %v298_v25 = vadd.f32 %v297_v21, %v296_v22 }
  0x1a   : > { %626 = vmatpush.msrb.mxu0 %v265_v3  ;;  %v300_v27 = vadd.f32 %v299_v24, %v298_v25 }
  0x1c   : > { %v302_v29 = vadd.f32 %v301_v26, %v300_v27 }
  0x1e   : > { %v304_v30 = vadd.f32 %v303_v28, %v302_v29  ;;  %v971_v28 = vld [vmem:[%s1060_s3] ss:$0 sm:$0xff] }
  0x20   : > { %v305_v31 = vrot.slane %v304_v30, 4 }
  0x22   : > { %v306_v32 = vadd.f32 %v305_v31, %v304_v30 }
  0x24   : > { %v307_v33 = vrot.slane %v306_v32, 2 }
  0x26   : > { %v308_v34 = vadd.f32 %v307_v33, %v306_v32  ;;  %v976_v33 = vld [vmem:[%s1061_s4] ss:$0 sm:$0xff] }
  0x28   : > { %v309_v35 = vrot.slane %v308_v34, 1 }
  0x2a   : > { %v310_v36 = vadd.f32 %v309_v35, %v308_v34 }
  0x2c   : > { %805 = vmatmul.msk.f32.vlgmr.msra.gmra.mxu0 %vm289_vm0, %v310_v36 }
  0xa9   : > { %v331_v39 = vpop.f32.mrf.mxu0 }
  0xaa   : > { %v334_v40 = vmul.f32 0.0078125, %v331_v39 }
  0xac   : > { %806 = vmatmul.msk.f32.vlgmr.msra.gmra.mxu1 %vm335_vm1, %v334_v40 }
 0x129   : > { %v356_v41 = vpop.f32.mrf.mxu1 }
 0x12a   : > { %v359_v42 = vperm.slane %v356_v41, 0 }
 0x12c   : > { %v360_v43 = vsub.f32 %v820_v7, %v359_v42  ;;  %v361_v44 = vsub.f32 %v821_v8, %v359_v42  ;;  %v362_v45 = vsub.f32 %v824_v9, %v359_v42  ;;  %v363_v46 = vsub.f32 %v825_v10, %v359_v42 }
 0x12d   : > { %v364_v47 = vsub.f32 %v828_v11, %v359_v42  ;;  %v365_v51 = vsub.f32 %v829_v17, %v359_v42  ;;  %v366_v56 = vsub.f32 %v832_v20, %v359_v42  ;;  %v367_v60 = vsub.f32 %v833_v23, %v359_v42 }
 0x12e   : > { %v368_v48 = vmul.f32 %v360_v43, %v360_v43  ;;  %v369_v49 = vmul.f32 %v361_v44, %v361_v44  ;;  %v370_v50 = vmul.f32 %v362_v45, %v362_v45  ;;  %v371_v52 = vmul.f32 %v363_v46, %v363_v46 }
 0x12f   : > { %v372_v57 = vmul.f32 %v364_v47, %v364_v47  ;;  %v373_v61 = vmul.f32 %v365_v51, %v365_v51  ;;  %v374_v0 = vmul.f32 %v366_v56, %v366_v56  ;;  %v375_v3 = vmul.f32 %v367_v60, %v367_v60 }
 0x130   : > { %v376_v53 = vsel %vm289_vm0, %v368_v48, 0.0  ;;  %v377_v54 = vsel %vm289_vm0, %v369_v49, 0.0  ;;  %v379_v58 = vsel %vm289_vm0, %v370_v50, 0.0  ;;  %v381_v62 = vsel %vm289_vm0, %v371_v52, 0.0 }
 0x131   : > { %v378_v55 = vadd.f32 %v377_v54, %v376_v53  ;;  %v383_v1 = vsel %vm289_vm0, %v372_v57, 0.0  ;;  %v385_v4 = vsel %vm289_vm0, %v373_v61, 0.0  ;;  %v387_v6 = vsel %vm289_vm0, %v374_v0, 0.0 }
 0x132   : > { %v389_v8 = vsel %vm289_vm0, %v375_v3, 0.0 }
 0x133   : > { %v380_v59 = vadd.f32 %v379_v58, %v378_v55 }
 0x135   : > { %v382_v63 = vadd.f32 %v381_v62, %v380_v59 }
 0x137   : > { %v384_v2 = vadd.f32 %v383_v1, %v382_v63 }
 0x139   : > { %v386_v5 = vadd.f32 %v385_v4, %v384_v2 }
 0x13b   : > { %v388_v7 = vadd.f32 %v387_v6, %v386_v5 }
 0x13d   : > { %v390_v9 = vadd.f32 %v389_v8, %v388_v7 }
 0x13f   : > { %v391_v10 = vrot.slane %v390_v9, 4 }
 0x141   : > { %v392_v11 = vadd.f32 %v391_v10, %v390_v9 }
 0x143   : > { %v393_v12 = vrot.slane %v392_v11, 2 }
 0x145   : > { %v394_v13 = vadd.f32 %v393_v12, %v392_v11 }
 0x147   : > { %v395_v14 = vrot.slane %v394_v13, 1 }
 0x149   : > { %v396_v15 = vadd.f32 %v395_v14, %v394_v13 }
 0x14b   : > { %807 = vmatmul.msk.f32.vlgmr.msra.gmra.mxu2 %vm289_vm0, %v396_v15 }
 0x1ce   : > { %v417_v16 = vpop.f32.mrf.mxu2 }
 0x1cf   : > { %v420_v17 = vmul.f32 0.0078125, %v417_v16 }
 0x1d1   : > { %808 = vmatmul.msk.f32.vlgmr.msra.gmra.mxu3 %vm335_vm1, %v420_v17 }
 0x254   : > { %v441_v18 = vpop.f32.mrf.mxu3 }
 0x255   : > { %v442_v19 = vadd.f32 1e-05, %v441_v18 }
 0x257   : > { %847 = vrsqrt.f32 %v442_v19  ;;  %vm450_vm3 = vweird.f32 %v442_v19 }
 0x25d   : > { %v848_v20 = vpop.eup %847 }
 0x25e   : > { %v445_v21 = vmul.f32 %v848_v20, %v442_v19  ;;  %vm451_vm2 = vweird.f32 %v848_v20 }
 0x25f   : > { %vm452_vm4 = vmor %vm450_vm3, %vm451_vm2 }
 0x260   : > { %v446_v22 = vmul.f32 %v848_v20, %v445_v21 }
 0x262   : > { %v447_v23 = vmul.f32 0.5, %v446_v22 }
 0x264   : > { %v448_v24 = vsub.f32 1.5, %v447_v23 }
 0x266   : > { %v449_v25 = vmul.f32 %v848_v20, %v448_v24 }
 0x268   : > { %v453_v26 = vsel %vm452_vm4, %v848_v20, %v449_v25 }
 0x269   : > { %v454_v27 = vperm.slane %v453_v26, 0 }
 0x26b   : > { %v455_v29 = vmul.f32 %v454_v27, %v360_v43  ;;  %v456_v30 = vmul.f32 %v454_v27, %v361_v44  ;;  %v457_v31 = vmul.f32 %v454_v27, %v362_v45  ;;  %v458_v32 = vmul.f32 %v454_v27, %v363_v46 }
 0x26c   : > { %v459_v34 = vmul.f32 %v454_v27, %v364_v47  ;;  %v460_v35 = vmul.f32 %v454_v27, %v365_v51  ;;  %v461_v36 = vmul.f32 %v454_v27, %v366_v56  ;;  %v462_v37 = vmul.f32 %v454_v27, %v367_v60 }
 0x26d   : > { %v466_v38 = vmul.f32 %v971_v28, %v455_v29  ;;  %v467_v39 = vmul.f32 %v971_v28, %v456_v30  ;;  %v468_v40 = vmul.f32 %v971_v28, %v457_v31  ;;  %v469_v41 = vmul.f32 %v971_v28, %v458_v32 }
 0x26e   : > { %v470_v42 = vmul.f32 %v971_v28, %v459_v34  ;;  %v471_v43 = vmul.f32 %v971_v28, %v460_v35  ;;  %v472_v44 = vmul.f32 %v971_v28, %v461_v36  ;;  %v473_v45 = vmul.f32 %v971_v28, %v462_v37 }
 0x26f   : > { %v477_v46 = vadd.f32 %v976_v33, %v466_v38  ;;  %v478_v47 = vadd.f32 %v976_v33, %v467_v39  ;;  %v479_v48 = vadd.f32 %v976_v33, %v468_v40  ;;  %v480_v49 = vadd.f32 %v976_v33, %v469_v41 }
 0x270   : > { %v481_v50 = vadd.f32 %v976_v33, %v470_v42  ;;  %v482_v51 = vadd.f32 %v976_v33, %v471_v43  ;;  %v483_v52 = vadd.f32 %v976_v33, %v472_v44  ;;  %v484_v56 = vadd.f32 %v976_v33, %v473_v45 }
 0x271   : > { %v485_v53 = vpack.c.bf16 %v477_v46, %v477_v46  ;;  %v486_v54 = vpack.c.bf16 %v478_v47, %v478_v47  ;;  %v487_v55 = vpack.c.bf16 %v479_v48, %v479_v48  ;;  %v488_v57 = vpack.c.bf16 %v480_v49, %v480_v49 }
 0x272   : > { %v489_v58 = vpack.c.bf16 %v481_v50, %v481_v50  ;;  %v502_v59 = vsel %vm289_vm0, %v477_v46, 0.0  ;;  %v503_v60 = vsel %vm289_vm0, %v478_v47, 0.0  ;;  %v490_v61 = vpack.c.bf16 %v482_v51, %v482_v51 }
 0x273   : > { %494 = vst.msk [vmem:[%s259_s22] sm:$0xf] %vm493_vm5, %v485_v53  ;;  %v504_v62 = vadd.f32 %v503_v60, %v502_v59  ;;  %v491_v63 = vpack.c.bf16 %v483_v52, %v483_v52  ;;  %v505_v0 = vsel %vm289_vm0, %v479_v48, 0.0  ;;  %v492_v1 = vpack.c.bf16 %v484_v56, %v484_v56 }
 0x274   : > { %495 = vst.msk [vmem:[%s259_s22 + $0x4] sm:$0xf] %vm493_vm5, %v486_v54  ;;  %v507_v3 = vsel %vm289_vm0, %v480_v49, 0.0  ;;  %v509_v5 = vsel %vm289_vm0, %v481_v50, 0.0  ;;  %v511_v7 = vsel %vm289_vm0, %v482_v51, 0.0  ;;  %v513_v9 = vsel %vm289_vm0, %v483_v52, 0.0 }
 0x275   : > { %496 = vst.msk [vmem:[%s259_s22 + $0x8] sm:$0xf] %vm493_vm5, %v487_v55  ;;  %v506_v2 = vadd.f32 %v505_v0, %v504_v62  ;;  %v515_v11 = vsel %vm289_vm0, %v484_v56, 0.0 }
 0x276   : > { %497 = vst.msk [vmem:[%s259_s22 + $0xc] sm:$0xf] %vm493_vm5, %v488_v57 }
 0x277   : > { %498 = vst.msk [vmem:[%s259_s22 + $0x10] sm:$0xf] %vm493_vm5, %v489_v58  ;;  %v508_v4 = vadd.f32 %v507_v3, %v506_v2 }
 0x278   : > { %499 = vst.msk [vmem:[%s259_s22 + $0x14] sm:$0xf] %vm493_vm5, %v490_v61 }
 0x279   : > { %500 = vst.msk [vmem:[%s259_s22 + $0x18] sm:$0xf] %vm493_vm5, %v491_v63  ;;  %v510_v6 = vadd.f32 %v509_v5, %v508_v4 }
 0x27a   : > { %501 = vst.msk [vmem:[%s259_s22 + $0x1c] sm:$0xf] %vm493_vm5, %v492_v1 }
 0x27b   : > { %v512_v8 = vadd.f32 %v511_v7, %v510_v6 }
 0x27d   : > { %v514_v10 = vadd.f32 %v513_v9, %v512_v8 }
 0x27f   : > { %v516_v12 = vadd.f32 %v515_v11, %v514_v10 }
 0x281   : > { %v517_v13 = vrot.slane %v516_v12, 4 }
 0x283   : > { %v518_v14 = vadd.f32 %v517_v13, %v516_v12 }
 0x285   : > { %v519_v15 = vrot.slane %v518_v14, 2 }
 0x287   : > { %v520_v16 = vadd.f32 %v519_v15, %v518_v14 }
 0x289   : > { %v521_v17 = vrot.slane %v520_v16, 1 }
 0x28b   : > { %v522_v18 = vadd.f32 %v521_v17, %v520_v16 }
 0x28d   : > { %809 = vmatmul.msk.f32.vlgmr.msrb.gmra.mxu1 %vm289_vm0, %v522_v18 }
 0x30a   : > { %v543_v19 = vpop.f32.mrf.mxu1 }
 0x30b   : > { %v546_v20 = vmul.f32 0.0078125, %v543_v19 }
 0x30d   : > { %810 = vmatmul.msk.f32.vlgmr.msrb.gmra.mxu3 %vm335_vm1, %v546_v20 }
 0x390   : > { %v567_v21 = vpop.f32.mrf.mxu3 }
 0x391   : > { %v570_v22 = vperm.slane %v567_v21, 0 }
 0x393   : > { %v571_v23 = vsub.f32 %v477_v46, %v570_v22  ;;  %v572_v24 = vsub.f32 %v478_v47, %v570_v22  ;;  %v573_v25 = vsub.f32 %v479_v48, %v570_v22  ;;  %v574_v26 = vsub.f32 %v480_v49, %v570_v22 }
 0x394   : > { %v575_v27 = vsub.f32 %v481_v50, %v570_v22  ;;  %v576_v32 = vsub.f32 %v482_v51, %v570_v22  ;;  %v577_v38 = vsub.f32 %v483_v52, %v570_v22  ;;  %v578_v42 = vsub.f32 %v484_v56, %v570_v22 }
 0x395   : > { %v579_v29 = vmul.f32 %v571_v23, %v571_v23  ;;  %v580_v30 = vmul.f32 %v572_v24, %v572_v24  ;;  %v581_v31 = vmul.f32 %v573_v25, %v573_v25  ;;  %v582_v34 = vmul.f32 %v574_v26, %v574_v26 }
 0x396   : > { %v583_v39 = vmul.f32 %v575_v27, %v575_v27  ;;  %v584_v43 = vmul.f32 %v576_v32, %v576_v32  ;;  %v585_v46 = vmul.f32 %v577_v38, %v577_v38  ;;  %v586_v49 = vmul.f32 %v578_v42, %v578_v42 }
 0x397   : > { %v587_v35 = vsel %vm289_vm0, %v579_v29, 0.0  ;;  %v588_v36 = vsel %vm289_vm0, %v580_v30, 0.0  ;;  %v590_v40 = vsel %vm289_vm0, %v581_v31, 0.0  ;;  %v592_v44 = vsel %vm289_vm0, %v582_v34, 0.0 }
 0x398   : > { %v589_v37 = vadd.f32 %v588_v36, %v587_v35  ;;  %v594_v47 = vsel %vm289_vm0, %v583_v39, 0.0  ;;  %v596_v50 = vsel %vm289_vm0, %v584_v43, 0.0  ;;  %v598_v53 = vsel %vm289_vm0, %v585_v46, 0.0 }
 0x399   : > { %v600_v54 = vsel %vm289_vm0, %v586_v49, 0.0 }
 0x39a   : > { %v591_v41 = vadd.f32 %v590_v40, %v589_v37 }
 0x39c   : > { %v593_v45 = vadd.f32 %v592_v44, %v591_v41 }
 0x39e   : > { %v595_v48 = vadd.f32 %v594_v47, %v593_v45 }
 0x3a0   : > { %v597_v51 = vadd.f32 %v596_v50, %v595_v48 }
 0x3a2   : > { %v599_v52 = vadd.f32 %v598_v53, %v597_v51 }
 0x3a4   : > { %v601_v55 = vadd.f32 %v600_v54, %v599_v52 }
 0x3a6   : > { %v602_v57 = vrot.slane %v601_v55, 4 }
 0x3a8   : > { %v603_v56 = vadd.f32 %v602_v57, %v601_v55 }
 0x3aa   : > { %v604_v58 = vrot.slane %v603_v56, 2 }
 0x3ac   : > { %v605_v59 = vadd.f32 %v604_v58, %v603_v56 }
 0x3ae   : > { %v606_v60 = vrot.slane %v605_v59, 1 }
 0x3b0   : > { %v607_v61 = vadd.f32 %v606_v60, %v605_v59 }
 0x3b2   : > { %811 = vmatmul.msk.f32.vlgmr.msrb.gmra.mxu0 %vm289_vm0, %v607_v61 }
 0x42f   : > { %v628_v62 = vpop.f32.mrf.mxu0 }
 0x430   : > { %v631_v63 = vmul.f32 0.0078125, %v628_v62 }
 0x432   : > { %812 = vmatmul.msk.f32.vlgmr.msrb.gmra.mxu2 %vm335_vm1, %v631_v63 }
 0x4b5   : > { %v652_v0 = vpop.f32.mrf.mxu2 }
 0x4b6   : > { %v653_v1 = vadd.f32 1e-05, %v652_v0 }
 0x4b8   : > { %849 = vrsqrt.f32 %v653_v1  ;;  %vm661_vm7 = vweird.f32 %v653_v1 }
 0x4be   : > { %v850_v2 = vpop.eup %849 }
 0x4bf   : > { %v656_v3 = vmul.f32 %v850_v2, %v653_v1  ;;  %vm662_vm6 = vweird.f32 %v850_v2 }
 0x4c0   : > { %vm663_vm8 = vmor %vm661_vm7, %vm662_vm6 }
 0x4c1   : > { %v657_v4 = vmul.f32 %v850_v2, %v656_v3 }
 0x4c3   : > { %v658_v5 = vmul.f32 0.5, %v657_v4 }
 0x4c5   : > { %v659_v6 = vsub.f32 1.5, %v658_v5 }
 0x4c7   : > { %v660_v7 = vmul.f32 %v850_v2, %v659_v6 }
 0x4c9   : > { %v664_v8 = vsel %vm663_vm8, %v850_v2, %v660_v7 }
 0x4ca   : > { %v665_v9 = vperm.slane %v664_v8, 0 }
 0x4cc   : > { %v666_v10 = vmul.f32 %v665_v9, %v571_v23  ;;  %v667_v11 = vmul.f32 %v665_v9, %v572_v24  ;;  %v668_v12 = vmul.f32 %v665_v9, %v573_v25  ;;  %v669_v13 = vmul.f32 %v665_v9, %v574_v26 }
 0x4cd   : > { %v670_v14 = vmul.f32 %v665_v9, %v575_v27  ;;  %v671_v15 = vmul.f32 %v665_v9, %v576_v32  ;;  %v672_v16 = vmul.f32 %v665_v9, %v577_v38  ;;  %v673_v17 = vmul.f32 %v665_v9, %v578_v42 }
 0x4ce   : > { %v674_v18 = vmul.f32 %v971_v28, %v666_v10  ;;  %v675_v19 = vmul.f32 %v971_v28, %v667_v11  ;;  %v676_v20 = vmul.f32 %v971_v28, %v668_v12  ;;  %v677_v21 = vmul.f32 %v971_v28, %v669_v13 }
 0x4cf   : > { %v678_v22 = vmul.f32 %v971_v28, %v670_v14  ;;  %v679_v23 = vmul.f32 %v971_v28, %v671_v15  ;;  %v680_v24 = vmul.f32 %v971_v28, %v672_v16  ;;  %v681_v25 = vmul.f32 %v971_v28, %v673_v17 }
 0x4d0   : > { %v682_v26 = vadd.f32 %v976_v33, %v674_v18  ;;  %v683_v27 = vadd.f32 %v976_v33, %v675_v19  ;;  %v684_v29 = vadd.f32 %v976_v33, %v676_v20  ;;  %v685_v30 = vadd.f32 %v976_v33, %v677_v21 }
 0x4d1   : > { %v686_v31 = vadd.f32 %v976_v33, %v678_v22  ;;  %v687_v32 = vadd.f32 %v976_v33, %v679_v23  ;;  %v688_v34 = vadd.f32 %v976_v33, %v680_v24  ;;  %v689_v37 = vadd.f32 %v976_v33, %v681_v25 }
 0x4d2   : > { %v690_v35 = vpack.c.bf16 %v682_v26, %v682_v26  ;;  %v691_v28 = vpack.c.bf16 %v683_v27, %v683_v27  ;;  %v692_v36 = vpack.c.bf16 %v684_v29, %v684_v29  ;;  %v693_v38 = vpack.c.bf16 %v685_v30, %v685_v30 }
 0x4d3   : > { %v694_v39 = vpack.c.bf16 %v686_v31, %v686_v31  ;;  %v695_v40 = vpack.c.bf16 %v687_v32, %v687_v32  ;;  %v696_v41 = vpack.c.bf16 %v688_v34, %v688_v34  ;;  %v697_v42 = vpack.c.bf16 %v689_v37, %v689_v37 }
 0x4d4   : > { %698 = vst.msk [vmem:[%s264_s25] sm:$0xf] %vm493_vm5, %v690_v35 }
 0x4d5   : > { %699 = vst.msk [vmem:[%s264_s25 + $0x4] sm:$0xf] %vm493_vm5, %v691_v28 }
 0x4d6   : > { %700 = vst.msk [vmem:[%s264_s25 + $0x8] sm:$0xf] %vm493_vm5, %v692_v36 }
 0x4d7   : > { %701 = vst.msk [vmem:[%s264_s25 + $0xc] sm:$0xf] %vm493_vm5, %v693_v38 }
 0x4d8   : > { %702 = vst.msk [vmem:[%s264_s25 + $0x10] sm:$0xf] %vm493_vm5, %v694_v39 }
 0x4d9   : > { %703 = vst.msk [vmem:[%s264_s25 + $0x14] sm:$0xf] %vm493_vm5, %v695_v40 }
 0x4da   : > { %704 = vst.msk [vmem:[%s264_s25 + $0x18] sm:$0xf] %vm493_vm5, %v696_v41 }
 0x4db   : > { %705 = vst.msk [vmem:[%s264_s25 + $0x1c] sm:$0xf] %vm493_vm5, %v697_v42 }
 0x4dc PF: > { %s17_s21 = sadd.s32 1, %s857_s21  }
 0x4dd   : > { %p14_p4 = scmp.ge.s32.totalorder %s17_s21, 4  }
 0x4df   :  { %16 = sbr.rel (!%p14_p4) target bundleno = 1 (0x1), region = 82 }

// kernel: savss_layer_forward.47
= control target key start
LH: loop header
LB: loop body
LE: loop exit
PB: predicated region body
PF: predicated region fallthrough
CT: control target
= control target key end

     0   :  { %vm122_vm0 = vcmask 261120   ;;  %vm397_vm1 = vcmask 130048   ;;  %vm887_vm7 = vcmask 257024   ;;  %s1607_s2 = inlined_call_operand.vmem [shape: bf16[32,16], index: 2, kind: input, shape index: {}]   ;;  %s1608_s4 = inlined_call_operand.vmem [shape: bf16[32,16], index: 4, kind: input, shape index: {}]   ;;  %s1609_s0 = inlined_call_operand.vmem [shape: bf16[128,32], index: 0, kind: input, shape index: {}]   ;;  %s1610_s3 = inlined_call_operand.vmem [shape: f32[1,16], index: 3, kind: input, shape index: {}]   ;;  %s1611_s1 = inlined_call_operand.vmem [shape: bf16[128,32], index: 1, kind: input, shape index: {}]   ;;  %s1612_s5 = inlined_call_operand.vmem [shape: f32[1,16], index: 5, kind: input, shape index: {}]   ;;  %s1613_s6 = inlined_call_operand.vmem [shape: bf16[16,32], index: 6, kind: input, shape index: {}]   ;;  %s1614_s7 = inlined_call_operand.vmem [shape: f32[1,32], index: 7, kind: input, shape index: {}]   ;;  %s1615_s8 = inlined_call_operand.vmem [shape: bf16[128,32], index: 8, kind: output, shape index: {}]  }
   0x1   :  { %v1049_v0 = vld [vmem:[%s1607_s2 + $0x8] sm:$0xff]  ;;  %v1048_v2 = vld [vmem:[%s1607_s2] sm:$0xff]  ;;  %v1038_v5 = vld [vmem:[%s1609_s0 + $0x30] sm:$0xff] }
   0x2   :  { %v1051_v1 = vld [vmem:[%s1608_s4 + $0x8] sm:$0xff]  ;;  %153 = vmatpush.bf16.msra.mxu0 %v1049_v0  ;;  %1053 = vmatpush.bf16.msra.mxu3 %v1049_v0  ;;  %v1050_v3 = vld [vmem:[%s1608_s4] sm:$0xff]  ;;  %v1039_v8 = vld [vmem:[%s1609_s0 + $0x38] sm:$0xff] }
   0x3   :  { %282 = vmatpush.bf16.msra.mxu1 %v1051_v1  ;;  %v1032_v4 = vld [vmem:[%s1609_s0] sm:$0xff]  ;;  %v1033_v7 = vld [vmem:[%s1609_s0 + $0x8] sm:$0xff]  ;;  %v1034_v10 = vld [vmem:[%s1609_s0 + $0x10] sm:$0xff] }
   0x4   :  { %v1040_v6 = vld [vmem:[%s1611_s1] sm:$0xff]  ;;  %v1041_v9 = vld [vmem:[%s1611_s1 + $0x8] sm:$0xff]  ;;  %v1046_v11 = vld [vmem:[%s1611_s1 + $0x30] sm:$0xff] }
   0x5   :  { %v1042_v12 = vld [vmem:[%s1611_s1 + $0x10] sm:$0xff]  ;;  %v1035_v13 = vld [vmem:[%s1609_s0 + $0x18] sm:$0xff]  ;;  %v1036_v16 = vld [vmem:[%s1609_s0 + $0x20] sm:$0xff] }
   0x6   :  { %154 = vmatpush.bf16.msra.mxu0 %v1048_v2  ;;  %1054 = vmatpush.bf16.msra.mxu3 %v1048_v2  ;;  %v1047_v14 = vld [vmem:[%s1611_s1 + $0x38] sm:$0xff]  ;;  %v1044_v17 = vld [vmem:[%s1611_s1 + $0x20] sm:$0xff]  ;;  %v1037_v18 = vld [vmem:[%s1609_s0 + $0x28] sm:$0xff] }
   0x7   :  { %283 = vmatpush.bf16.msra.mxu1 %v1050_v3  ;;  %v1043_v15 = vld [vmem:[%s1611_s1 + $0x18] sm:$0xff]  ;;  %v1045_v19 = vld [vmem:[%s1611_s1 + $0x28] sm:$0xff]  ;;  %v1052_v20 = vld [vmem:[%s1613_s6] sm:$0xff] }
   0x8   :  { %429 = vmatpush.bf16.msra.mxu2 %v1052_v20  ;;  %v1252_v21 = vld [vmem:[%s1610_s3] ss:$0 sm:$0xff] }
   0x9   :  { %948 = vmatmul.msk.bf16.vlgmr.msra.gmra.mxu0 %vm122_vm0, %v1032_v4  ;;  %954 = vmatmul.msk.bf16.vlgmr.msra.gmra.mxu3 %vm122_vm0, %v1038_v5  ;;  %v1258_v27 = vld [vmem:[%s1612_s5] ss:$0 sm:$0xff] }
   0xa   :  { %1055 = vmatpush.bf16.msrb.mxu3 %v1051_v1  ;;  %996 = vmatmul.msk.bf16.vlgmr.msra.gmra.mxu1 %vm122_vm0, %v1040_v6 }
   0xe   :  { %1056 = vmatpush.bf16.msrb.mxu3 %v1050_v3 }
  0x12   :  { %1057 = vmatpush.bf16.msra.mxu3 %v1052_v20 }
  0x19   :  { %949 = vmatmul.msk.bf16.gmra.mxu0 %vm122_vm0, %v1033_v7  ;;  %955 = vmatmul.msk.bf16.gmra.mxu3 %vm122_vm0, %v1039_v8 }
  0x1a   :  { %997 = vmatmul.msk.bf16.gmra.mxu1 %vm122_vm0, %v1041_v9 }
  0x29   :  { %950 = vmatmul.msk.bf16.gmra.mxu0 %vm122_vm0, %v1034_v10  ;;  %1002 = vmatmul.msk.bf16.vlgmr.msrb.gmra.mxu3 %vm122_vm0, %v1046_v11 }
  0x2a   :  { %998 = vmatmul.msk.bf16.gmra.mxu1 %vm122_vm0, %v1042_v12 }
  0x39   :  { %951 = vmatmul.msk.bf16.gmra.mxu0 %vm122_vm0, %v1035_v13  ;;  %1003 = vmatmul.msk.bf16.gmra.mxu3 %vm122_vm0, %v1047_v14 }
  0x3a   :  { %999 = vmatmul.msk.bf16.gmra.mxu1 %vm122_vm0, %v1043_v15 }
  0x49   :  { %952 = vmatmul.msk.bf16.gmra.mxu0 %vm122_vm0, %v1036_v16 }
  0x4a   :  { %1000 = vmatmul.msk.bf16.gmra.mxu1 %vm122_vm0, %v1044_v17 }
  0x59   :  { %953 = vmatmul.msk.bf16.gmra.mxu0 %vm122_vm0, %v1037_v18 }
  0x5a   :  { %1001 = vmatmul.msk.bf16.gmra.mxu1 %vm122_vm0, %v1045_v19 }
  0x86   :  { %v156_v22 = vpop.f32.mrf.mxu0 }
  0x87   :  { %v285_v23 = vpop.f32.mrf.mxu1  ;;  %v157_v24 = vadd.f32 %v1252_v21, %v156_v22 }
  0x89   :  { %v325_v26 = vadd.f32 %v285_v23, %v157_v24 }
  0x8b   :  { %v345_v31 = vadd.f32 %v1258_v27, %v325_v26 }
  0x8c   :  { %v186_v25 = vpop.f32.mrf.mxu3 }
  0x8d   :  { %v361_v35 = vmax.f32 %v345_v31, 0.0  ;;  %v187_v55 = vadd.f32 %v1252_v21, %v186_v25 }
  0x8e   :  { %v158_v28 = vpop.f32.mrf.mxu0 }
  0x8f   :  { %v159_v29 = vadd.f32 %v1252_v21, %v158_v28  ;;  %v287_v30 = vpop.f32.mrf.mxu1 }
  0x91   :  { %v326_v32 = vadd.f32 %v287_v30, %v159_v29 }
  0x93   :  { %v346_v33 = vadd.f32 %v1258_v27, %v326_v32 }
  0x94   :  { %v188_v34 = vpop.f32.mrf.mxu3 }
  0x95   :  { %v362_v36 = vmax.f32 %v346_v33, 0.0  ;;  %v189_v63 = vadd.f32 %v1252_v21, %v188_v34 }
  0x96   :  { %v161_v37 = vpop.f32.mrf.mxu0 }
  0x97   :  { %v290_v38 = vpop.f32.mrf.mxu1  ;;  %v377_v39 = vpack.c.bf16 %v362_v36, %v361_v35  ;;  %v162_v40 = vadd.f32 %v1252_v21, %v161_v37 }
  0x99   :  { %1008 = vmatmul.msk.bf16.vlgmr.msra.gmra.mxu2 %vm397_vm1, %v377_v39  ;;  %v327_v42 = vadd.f32 %v290_v38, %v162_v40 }
  0x9b   :  { %v347_v46 = vadd.f32 %v1258_v27, %v327_v42 }
  0x9c   :  { %v191_v41 = vpop.f32.mrf.mxu3 }
  0x9d   :  { %v363_v50 = vmax.f32 %v347_v46, 0.0  ;;  %v192_v15 = vadd.f32 %v1252_v21, %v191_v41 }
  0x9e   :  { %v163_v43 = vpop.f32.mrf.mxu0 }
  0x9f   :  { %v164_v44 = vadd.f32 %v1252_v21, %v163_v43  ;;  %v292_v45 = vpop.f32.mrf.mxu1 }
  0xa1   :  { %v328_v47 = vadd.f32 %v292_v45, %v164_v44 }
  0xa3   :  { %v348_v48 = vadd.f32 %v1258_v27, %v328_v47 }
  0xa4   :  { %v193_v49 = vpop.f32.mrf.mxu3 }
  0xa5   :  { %v364_v51 = vmax.f32 %v348_v48, 0.0  ;;  %v194_v24 = vadd.f32 %v1252_v21, %v193_v49 }
  0xa6   :  { %v166_v52 = vpop.f32.mrf.mxu0 }
  0xa7   :  { %v295_v53 = vpop.f32.mrf.mxu1  ;;  %v378_v54 = vpack.c.bf16 %v364_v51, %v363_v50  ;;  %v167_v56 = vadd.f32 %v1252_v21, %v166_v52 }
  0xa9   :  { %1009 = vmatmul.msk.bf16.gmra.mxu2 %vm397_vm1, %v378_v54  ;;  %v329_v58 = vadd.f32 %v295_v53, %v167_v56 }
  0xab   :  { %v349_v0 = vadd.f32 %v1258_v27, %v329_v58 }
  0xac   :  { %v315_v57 = vpop.f32.mrf.mxu3 }
  0xad   :  { %v337_v59 = vadd.f32 %v315_v57, %v187_v55  ;;  %v365_v5 = vmax.f32 %v349_v0, 0.0 }
  0xae   :  { %v168_v60 = vpop.f32.mrf.mxu0 }
  0xaf   :  { %v169_v61 = vadd.f32 %v1252_v21, %v168_v60  ;;  %v297_v62 = vpop.f32.mrf.mxu1  ;;  %v357_v2 = vadd.f32 %v1258_v27, %v337_v59 }
  0xb1   :  { %v330_v1 = vadd.f32 %v297_v62, %v169_v61  ;;  %v373_v9 = vmax.f32 %v357_v2, 0.0 }
  0xb3   :  { %v350_v3 = vadd.f32 %v1258_v27, %v330_v1  ;;  %v1302_v1 = vld [vmem:[%s1614_s7] ss:$0 sm:$0xff] }
  0xb4   :  { %v317_v4 = vpop.f32.mrf.mxu3 }
  0xb5   :  { %v366_v6 = vmax.f32 %v350_v3, 0.0  ;;  %v338_v7 = vadd.f32 %v317_v4, %v189_v63 }
  0xb6   :  { %v171_v8 = vpop.f32.mrf.mxu0 }
  0xb7   :  { %v358_v10 = vadd.f32 %v1258_v27, %v338_v7  ;;  %v300_v11 = vpop.f32.mrf.mxu1  ;;  %v379_v12 = vpack.c.bf16 %v366_v6, %v365_v5  ;;  %v172_v14 = vadd.f32 %v1252_v21, %v171_v8 }
  0xb9   :  { %v374_v13 = vmax.f32 %v358_v10, 0.0  ;;  %1010 = vmatmul.msk.bf16.gmra.mxu2 %vm397_vm1, %v379_v12  ;;  %v331_v18 = vadd.f32 %v300_v11, %v172_v14 }
  0xbb   :  { %v383_v16 = vpack.c.bf16 %v374_v13, %v373_v9  ;;  %v351_v25 = vadd.f32 %v1258_v27, %v331_v18  ;;  %v30_v18 = vld [vmem:[%s1609_s0] sm:$0xff]  }
  0xbc   :  { %v320_v17 = vpop.f32.mrf.mxu3 }
  0xbd   :  { %v339_v20 = vadd.f32 %v320_v17, %v192_v15  ;;  %v367_v31 = vmax.f32 %v351_v25, 0.0 }
  0xbe   :  { %v173_v19 = vpop.f32.mrf.mxu0 }
  0xbf   :  { %v174_v22 = vadd.f32 %v1252_v21, %v173_v19  ;;  %v302_v23 = vpop.f32.mrf.mxu1  ;;  %v359_v28 = vadd.f32 %v1258_v27, %v339_v20  ;;  %v46_v19 = vld [vmem:[%s1611_s1] sm:$0xff]  }
  0xc1   :  { %v332_v26 = vadd.f32 %v302_v23, %v174_v22  ;;  %v375_v35 = vmax.f32 %v359_v28, 0.0 }
  0xc3   :  { %v352_v29 = vadd.f32 %v1258_v27, %v332_v26 }
  0xc4   :  { %v322_v30 = vpop.f32.mrf.mxu3 }
  0xc5   :  { %v368_v32 = vmax.f32 %v352_v29, 0.0  ;;  %v340_v33 = vadd.f32 %v322_v30, %v194_v24  ;;  %v775_v30 = vunpack.c.l.bf16 %v30_v18 }
  0xc6   :  { %v176_v34 = vpop.f32.mrf.mxu0 }
  0xc7   :  { %v360_v36 = vadd.f32 %v1258_v27, %v340_v33  ;;  %v305_v37 = vpop.f32.mrf.mxu1  ;;  %v380_v38 = vpack.c.bf16 %v368_v32, %v367_v31  ;;  %v177_v40 = vadd.f32 %v1252_v21, %v176_v34  ;;  %v807_v31 = vunpack.c.l.bf16 %v46_v19 }
  0xc9   :  { %v376_v39 = vmax.f32 %v360_v36, 0.0  ;;  %1011 = vmatmul.msk.bf16.gmra.mxu2 %vm397_vm1, %v380_v38  ;;  %v333_v42 = vadd.f32 %v305_v37, %v177_v40 }
  0xcb   :  { %v384_v41 = vpack.c.bf16 %v376_v39, %v375_v35  ;;  %v353_v46 = vadd.f32 %v1258_v27, %v333_v42 }
  0xcd   :  { %1015 = vmatmul.msk.bf16.vlgmr.msra.gmra.mxu3 %vm397_vm1, %v384_v41  ;;  %v369_v49 = vmax.f32 %v353_v46, 0.0 }
  0xce   :  { %v178_v43 = vpop.f32.mrf.mxu0 }
  0xcf   :  { %v179_v44 = vadd.f32 %v1252_v21, %v178_v43  ;;  %v307_v45 = vpop.f32.mrf.mxu1 }
  0xd1   :  { %v334_v47 = vadd.f32 %v307_v45, %v179_v44 }
  0xd3   :  { %v354_v48 = vadd.f32 %v1258_v27, %v334_v47 }
  0xd5   :  { %v370_v50 = vmax.f32 %v354_v48, 0.0  ;;  %v776_v48 = vunpack.c.h.bf16 %v30_v18 }
  0xd6   :  { %v181_v51 = vpop.f32.mrf.mxu0 }
  0xd7   :  { %v310_v52 = vpop.f32.mrf.mxu1  ;;  %v381_v53 = vpack.c.bf16 %v370_v50, %v369_v49  ;;  %v182_v54 = vadd.f32 %v1252_v21, %v181_v51  ;;  %v808_v51 = vunpack.c.h.bf16 %v46_v19 }
  0xd9   :  { %1012 = vmatmul.msk.bf16.gmra.mxu2 %vm397_vm1, %v381_v53  ;;  %v335_v55 = vadd.f32 %v310_v52, %v182_v54 }
  0xdb   :  { %v355_v59 = vadd.f32 %v1258_v27, %v335_v55 }
  0xdd   :  { %v371_v62 = vmax.f32 %v355_v59, 0.0 }
  0xde   :  { %v183_v56 = vpop.f32.mrf.mxu0 }
  0xdf   :  { %v184_v57 = vadd.f32 %v1252_v21, %v183_v56  ;;  %v312_v58 = vpop.f32.mrf.mxu1 }
  0xe1   :  { %v336_v60 = vadd.f32 %v312_v58, %v184_v57 }
  0xe3   :  { %v356_v61 = vadd.f32 %v1258_v27, %v336_v60 }
  0xe5   :  { %v372_v63 = vmax.f32 %v356_v61, 0.0 }
  0xe7   :  { %v382_v0 = vpack.c.bf16 %v372_v63, %v371_v62 }
  0xe9   :  { %1013 = vmatmul.msk.bf16.gmra.mxu2 %vm397_vm1, %v382_v0 }
  0xf9   :  { %1014 = vmatmul.msk.bf16.gmra.mxu2 %vm397_vm1, %v383_v16 }
 0x11c   :  { %v431_v2 = vpop.f32.mrf.mxu2 }
 0x11d   :  { %v432_v21 = vadd.f32 %v1302_v1, %v431_v2  ;;  %v1323_v2 = vld [vmem:[%s1609_s0 + $0x8] sm:$0xff]  }
 0x11f   :  { %v1016_v3 = vmul.f32 -1.442695, %v432_v21  ;;  %v1328_v21 = vld [vmem:[%s1611_s1 + $0x8] sm:$0xff]  }
 0x121   :  { %1061 = vpow2.f32 %v1016_v3 }
 0x124   :  { %v433_v4 = vpop.f32.mrf.mxu2 }
 0x125   :  { %v434_v27 = vadd.f32 %v1302_v1, %v433_v4 }
 0x127   :  { %v1062_v5 = vpop.eup %1061  ;;  %v1017_v6 = vmul.f32 -1.442695, %v434_v27 }
 0x128   :  { %v519_v7 = vadd.f32 1.0, %v1062_v5 }
 0x129   :  { %1063 = vpow2.f32 %v1017_v6 }
 0x12a   :  { %1065 = vrcp.f32 %v519_v7  ;;  %v546_v16 = vand.u32 2147483648, %v519_v7  ;;  %v544_v22 = vand.u32 2147483647, %v519_v7  ;;  %vm540_vm3 = vweird.f32 %v519_v7 }
 0x12c   :  { %v436_v8 = vpop.f32.mrf.mxu2  ;;  %v547_v29 = vor.u32 1.1754944e-38, %v546_v16  ;;  %vm545_vm5 = vcmp.eq.f32.partialorder %v544_v22, 8.507059e+37 }
 0x12d   :  { %v437_v9 = vadd.f32 %v1302_v1, %v436_v8 }
 0x12f   :  { %v1064_v10 = vpop.eup %1063  ;;  %v1018_v11 = vmul.f32 -1.442695, %v437_v9  ;;  %v777_v9 = vunpack.c.l.bf16 %v1323_v2 }
 0x130   :  { %v1066_v12 = vpop.eup %1065  ;;  %v520_v13 = vadd.f32 1.0, %v1064_v10  ;;  %v809_v10 = vunpack.c.l.bf16 %v1328_v21 }
 0x131   :  { %v536_v14 = vmul.f32 %v1066_v12, %v519_v7  ;;  %1067 = vpow2.f32 %v1018_v11  ;;  %vm541_vm2 = vweird.f32 %v1066_v12 }
 0x132   :  { %1069 = vrcp.f32 %v520_v13  ;;  %vm542_vm4 = vmor %vm540_vm3, %vm541_vm2  ;;  %v559_v38 = vand.u32 2147483647, %v520_v13  ;;  %v561_v39 = vand.u32 2147483648, %v520_v13  ;;  %vm555_vm8 = vweird.f32 %v520_v13 }
 0x133   :  { %v537_v15 = vsub.f32 1.0, %v536_v14 }
 0x134   :  { %v438_v17 = vpop.f32.mrf.mxu2  ;;  %v562_v50 = vor.u32 1.1754944e-38, %v561_v39  ;;  %vm560_vm10 = vcmp.eq.f32.partialorder %v559_v38, 8.507059e+37  ;;  %v1352_v39 = vld [vmem:[%s1611_s1 + $0x10] sm:$0xff]  }
 0x135   :  { %v538_v20 = vmul.f32 %v1066_v12, %v537_v15  ;;  %v439_v23 = vadd.f32 %v1302_v1, %v438_v17 }
 0x137   :  { %v1068_v24 = vpop.eup %1067  ;;  %v539_v25 = vadd.f32 %v1066_v12, %v538_v20  ;;  %v1019_v26 = vmul.f32 -1.442695, %v439_v23 }
 0x138   :  { %v1070_v28 = vpop.eup %1069  ;;  %v521_v32 = vadd.f32 1.0, %v1068_v24 }
 0x139   :  { %v543_v33 = vsel %vm542_vm4, %v1066_v12, %v539_v25  ;;  %v551_v34 = vmul.f32 %v1070_v28, %v520_v13  ;;  %1071 = vpow2.f32 %v1019_v26  ;;  %vm556_vm6 = vweird.f32 %v1070_v28 }
 0x13a   :  { %v548_v35 = vsel %vm545_vm5, %v547_v29, %v543_v33  ;;  %1073 = vrcp.f32 %v521_v32  ;;  %vm557_vm9 = vmor %vm555_vm8, %vm556_vm6  ;;  %v574_v60 = vand.u32 2147483647, %v521_v32  ;;  %v576_v61 = vand.u32 2147483648, %v521_v32 }
 0x13b   :  { %v823_v36 = vsub.f32 1.0, %v548_v35  ;;  %v552_v37 = vsub.f32 1.0, %v551_v34  ;;  %v791_v41 = vmul.f32 %v775_v30, %v548_v35  ;;  %vm570_vm12 = vweird.f32 %v521_v32  ;;  %v1347_v34 = vld [vmem:[%s1609_s0 + $0x10] sm:$0xff]  }
 0x13c   :  { %v441_v40 = vpop.f32.mrf.mxu2  ;;  %v577_v8 = vor.u32 1.1754944e-38, %v576_v61  ;;  %vm575_vm14 = vcmp.eq.f32.partialorder %v574_v60, 8.507059e+37  ;;  %v778_v30 = vunpack.c.h.bf16 %v1323_v2  ;;  %v810_v33 = vunpack.c.h.bf16 %v1328_v21  ;;  %v1379_v60 = vld [vmem:[%s1611_s1 + $0x18] sm:$0xff]  }
 0x13d   :  { %v839_v42 = vmul.f32 %v823_v36, %v807_v31  ;;  %v553_v43 = vmul.f32 %v1070_v28, %v552_v37  ;;  %v442_v44 = vadd.f32 %v1302_v1, %v441_v40 }
 0x13f   :  { %v1072_v45 = vpop.eup %1071  ;;  %v855_v46 = vadd.f32 %v839_v42, %v791_v41  ;;  %v554_v47 = vadd.f32 %v1070_v28, %v553_v43  ;;  %v1020_v53 = vmul.f32 -1.442695, %v442_v44 }
 0x140   :  { %v1074_v49 = vpop.eup %1073  ;;  %v522_v52 = vadd.f32 1.0, %v1072_v45  ;;  %v779_v45 = vunpack.c.l.bf16 %v1347_v34 }
 0x141   :  { %v871_v54 = vpack.c.bf16 %v855_v46, %v855_v46  ;;  %v558_v55 = vsel %vm557_vm9, %v1070_v28, %v554_v47  ;;  %v566_v56 = vmul.f32 %v1074_v49, %v521_v32  ;;  %vm571_vm11 = vweird.f32 %v1074_v49 }
 0x142   :  { %v563_v57 = vsel %vm560_vm10, %v562_v50, %v558_v55  ;;  %1075 = vrcp.f32 %v522_v52  ;;  %vm572_vm13 = vmor %vm570_vm12, %vm571_vm11  ;;  %v589_v19 = vand.u32 2147483647, %v522_v52  ;;  %v591_v20 = vand.u32 2147483648, %v522_v52  ;;  %v1370_v50 = vld [vmem:[%s1609_s0 + $0x18] sm:$0xff]  }
 0x143   :  { %888 = vst.msk [vmem:[%s1615_s8] sm:$0xf] %vm887_vm7, %v871_v54  ;;  %v824_v58 = vsub.f32 1.0, %v563_v57  ;;  %v567_v59 = vsub.f32 1.0, %v566_v56  ;;  %1077 = vpow2.f32 %v1020_v53  ;;  %v792_v63 = vmul.f32 %v776_v48, %v563_v57 }
 0x144   :  { %v443_v62 = vpop.f32.mrf.mxu2  ;;  %vm585_vm0 = vweird.f32 %v522_v52  ;;  %vm590_vm2 = vcmp.eq.f32.partialorder %v589_v19, 8.507059e+37  ;;  %v592_v32 = vor.u32 1.1754944e-38, %v591_v20  ;;  %v811_v47 = vunpack.c.l.bf16 %v1352_v39 }
 0x145   :  { %v840_v0 = vmul.f32 %v824_v58, %v808_v51  ;;  %v568_v3 = vmul.f32 %v1074_v49, %v567_v59  ;;  %v444_v4 = vadd.f32 %v1302_v1, %v443_v62  ;;  %v780_v48 = vunpack.c.h.bf16 %v1347_v34 }
 0x146   :  { %v781_v61 = vunpack.c.l.bf16 %v1370_v50 }
 0x147   :  { %v856_v27 = vadd.f32 %v840_v0, %v792_v63  ;;  %v569_v5 = vadd.f32 %v1074_v49, %v568_v3  ;;  %v1021_v6 = vmul.f32 -1.442695, %v444_v4  ;;  %v1387_v3 = vld [vmem:[%s1609_s0 + $0x38] sm:$0xff]  }
 0x148   :  { %v1076_v7 = vpop.eup %1075 }
 0x149   :  { %v872_v11 = vpack.c.bf16 %v856_v27, %v856_v27  ;;  %v573_v12 = vsel %vm572_vm13, %v1074_v49, %v569_v5  ;;  %v581_v13 = vmul.f32 %v1076_v7, %v522_v52  ;;  %v1078_v14 = vpop.eup %1077  ;;  %1079 = vpow2.f32 %v1021_v6 }
 0x14a   :  { %v578_v15 = vsel %vm575_vm14, %v577_v8, %v573_v12  ;;  %v1338_v18 = vadd.f32 1.0, %v1078_v14  ;;  %vm586_vm15 = vweird.f32 %v1076_v7  ;;  %v812_v49 = vunpack.c.h.bf16 %v1352_v39 }
 0x14b   :  { %889 = vst.msk [vmem:[%s1615_s8 + $0x4] sm:$0xf] %vm887_vm7, %v872_v11  ;;  %v825_v16 = vsub.f32 1.0, %v578_v15  ;;  %v582_v17 = vsub.f32 1.0, %v581_v13  ;;  %v793_v23 = vmul.f32 %v777_v9, %v578_v15  ;;  %vm587_vm1 = vmor %vm585_vm0, %vm586_vm15  ;;  %v813_v11 = vunpack.c.l.bf16 %v1379_v60 }
 0x14c   :  { %v446_v22 = vpop.f32.mrf.mxu2  ;;  %1081 = vrcp.f32 %v1338_v18  ;;  %vm600_vm3 = vweird.f32 %v1338_v18  ;;  %v604_v57 = vand.u32 2147483647, %v1338_v18  ;;  %v606_v58 = vand.u32 2147483648, %v1338_v18 }
 0x14d   :  { %v841_v24 = vmul.f32 %v825_v16, %v809_v10  ;;  %v583_v25 = vmul.f32 %v1076_v7, %v582_v17  ;;  %v447_v26 = vadd.f32 %v1302_v1, %v446_v22  ;;  %v789_v13 = vunpack.c.l.bf16 %v1387_v3 }
 0x14e   :  { %vm605_vm5 = vcmp.eq.f32.partialorder %v604_v57, 8.507059e+37  ;;  %v607_v12 = vor.u32 1.1754944e-38, %v606_v58 }
 0x14f   :  { %v857_v28 = vadd.f32 %v841_v24, %v793_v23  ;;  %v584_v29 = vadd.f32 %v1076_v7, %v583_v25  ;;  %v1080_v31 = vpop.eup %1079  ;;  %v1022_v35 = vmul.f32 -1.442695, %v447_v26 }
 0x150   :  { %v466_v36 = vpop.f32.mrf.mxu3  ;;  %v1354_v40 = vadd.f32 1.0, %v1080_v31  ;;  %v814_v31 = vunpack.c.h.bf16 %v1379_v60 }
 0x151   :  { %v873_v37 = vpack.c.bf16 %v857_v28, %v857_v28  ;;  %v588_v38 = vsel %vm587_vm1, %v1076_v7, %v584_v29  ;;  %v467_v41 = vadd.f32 %v1302_v1, %v466_v36  ;;  %1083 = vpow2.f32 %v1022_v35  ;;  %v1394_v7 = vld [vmem:[%s1611_s1 + $0x38] sm:$0xff]  }
 0x152   :  { %v593_v42 = vsel %vm590_vm2, %v592_v32, %v588_v38  ;;  %v1082_v43 = vpop.eup %1081  ;;  %1085 = vrcp.f32 %v1354_v40  ;;  %v619_v2 = vand.u32 2147483647, %v1354_v40  ;;  %v621_v21 = vand.u32 2147483648, %v1354_v40 }
 0x153   :  { %890 = vst.msk [vmem:[%s1615_s8 + $0x8] sm:$0xf] %vm887_vm7, %v873_v37  ;;  %v826_v44 = vsub.f32 1.0, %v593_v42  ;;  %v596_v46 = vmul.f32 %v1082_v43, %v1338_v18  ;;  %v794_v52 = vmul.f32 %v778_v30, %v593_v42  ;;  %v1030_v54 = vmul.f32 -1.442695, %v467_v41 }
 0x154   :  { %v448_v51 = vpop.f32.mrf.mxu2  ;;  %vm601_vm4 = vweird.f32 %v1082_v43  ;;  %vm615_vm8 = vweird.f32 %v1354_v40  ;;  %v821_v16 = vunpack.c.l.bf16 %v1394_v7  ;;  %vm1410_vm9 = vcmp.eq.f32.partialorder %v619_v2, 8.507059e+37 }
 0x155   :  { %v842_v53 = vmul.f32 %v826_v44, %v810_v33  ;;  %v449_v55 = vadd.f32 %v1302_v1, %v448_v51  ;;  %v597_v56 = vsub.f32 1.0, %v596_v46  ;;  %1087 = vpow2.f32 %v1030_v54  ;;  %vm602_vm6 = vmor %vm600_vm3, %vm601_vm4 }
 0x156   :  { %v622_v18 = vor.u32 1.1754944e-38, %v621_v21  ;;  %v782_v30 = vunpack.c.h.bf16 %v1370_v50 }
 0x157   :  { %v858_v59 = vadd.f32 %v842_v53, %v794_v52  ;;  %v1023_v62 = vmul.f32 -1.442695, %v449_v55  ;;  %v1084_v63 = vpop.eup %1083  ;;  %v598_v0 = vmul.f32 %v1082_v43, %v597_v56  ;;  %v1439_v55 = vld [vmem:[%s1609_s0 + $0x20] sm:$0xff]  }
 0x158   :  { %v468_v4 = vpop.f32.mrf.mxu3  ;;  %v1086_v27 = vpop.eup %1085  ;;  %v1389_v6 = vadd.f32 1.0, %v1084_v63 }
 0x159   :  { %v874_v5 = vpack.c.bf16 %v858_v59, %v858_v59  ;;  %1089 = vpow2.f32 %v1023_v62  ;;  %v469_v8 = vadd.f32 %v1302_v1, %v468_v4  ;;  %v599_v9 = vadd.f32 %v1082_v43, %v598_v0 }
 0x15a   :  { %v611_v10 = vmul.f32 %v1086_v27, %v1354_v40  ;;  %1091 = vrcp.f32 %v1389_v6  ;;  %vm616_vm10 = vweird.f32 %v1086_v27  ;;  %v634_v38 = vand.u32 2147483647, %v1389_v6 }
 0x15b   :  { %891 = vst.msk [vmem:[%s1615_s8 + $0xc] sm:$0xf] %vm887_vm7, %v874_v5  ;;  %v603_v14 = vsel %vm602_vm6, %v1082_v43, %v599_v9  ;;  %v1031_v17 = vmul.f32 -1.442695, %v469_v8  ;;  %v1088_v20 = vpop.eup %1087  ;;  %vm617_vm11 = vmor %vm615_vm8, %vm616_vm10  ;;  %v636_v41 = vand.u32 2147483648, %v1389_v6  ;;  %vm630_vm12 = vweird.f32 %v1389_v6 }
 0x15c   :  { %v612_v15 = vsub.f32 1.0, %v611_v10  ;;  %v451_v19 = vpop.f32.mrf.mxu2  ;;  %v608_v22 = vsel %vm605_vm5, %v607_v12, %v603_v14  ;;  %v1415_v28 = vadd.f32 1.0, %v1088_v20  ;;  %vm1441_vm14 = vcmp.eq.f32.partialorder %v634_v38, 8.507059e+37 }
 0x15d   :  { %v452_v24 = vadd.f32 %v1302_v1, %v451_v19  ;;  %v827_v25 = vsub.f32 1.0, %v608_v22  ;;  %1093 = vpow2.f32 %v1031_v17  ;;  %v795_v33 = vmul.f32 %v779_v45, %v608_v22 }
 0x15e   :  { %v613_v26 = vmul.f32 %v1086_v27, %v612_v15  ;;  %1095 = vrcp.f32 %v1415_v28  ;;  %v790_v45 = vunpack.c.h.bf16 %v1387_v3  ;;  %v754_v40 = vand.u32 2147483647, %v1415_v28 }
 0x15f   :  { %v1090_v29 = vpop.eup %1089  ;;  %v1024_v32 = vmul.f32 -1.442695, %v452_v24  ;;  %v843_v35 = vmul.f32 %v827_v25, %v811_v47  ;;  %v756_v54 = vand.u32 2147483648, %v1415_v28  ;;  %v637_v59 = vor.u32 1.1754944e-38, %v636_v41 }
 0x160   :  { %v614_v36 = vadd.f32 %v1086_v27, %v613_v26  ;;  %v1092_v37 = vpop.eup %1091  ;;  %v1426_v42 = vadd.f32 1.0, %v1090_v29  ;;  %v822_v62 = vunpack.c.h.bf16 %v1394_v7  ;;  %vm750_vm15 = vweird.f32 %v1415_v28 }
 0x161   :  { %1097 = vpow2.f32 %v1024_v32  ;;  %v859_v43 = vadd.f32 %v843_v35, %v795_v33  ;;  %v626_v46 = vmul.f32 %v1092_v37, %v1389_v6  ;;  %vm631_vm13 = vweird.f32 %v1092_v37 }
 0x162   :  { %v618_v44 = vsel %vm617_vm11, %v1086_v27, %v614_v36  ;;  %1099 = vrcp.f32 %v1426_v42  ;;  %vm1458_vm0 = vcmp.eq.f32.partialorder %v754_v40, 8.507059e+37  ;;  %v783_v9 = vunpack.c.l.bf16 %v1439_v55  ;;  %vm632_vm1 = vmor %vm630_vm12, %vm631_vm13 }
 0x163   :  { %v623_v47 = vsel %vm1410_vm9, %v622_v18, %v618_v44  ;;  %v875_v51 = vpack.c.bf16 %v859_v43, %v859_v43  ;;  %v627_v53 = vsub.f32 1.0, %v626_v46  ;;  %v1094_v57 = vpop.eup %1093  ;;  %v649_v12 = vand.u32 2147483647, %v1426_v42 }
 0x164   :  { %v828_v52 = vsub.f32 1.0, %v623_v47  ;;  %v453_v56 = vpop.f32.mrf.mxu2  ;;  %v1096_v63 = vpop.eup %1095  ;;  %v796_v0 = vmul.f32 %v780_v48, %v623_v47  ;;  %v1454_v4 = vadd.f32 1.0, %v1094_v57  ;;  %v757_v48 = vor.u32 1.1754944e-38, %v756_v54 }
 0x165   :  { %892 = vst.msk [vmem:[%s1615_s8 + $0x10] sm:$0xf] %vm887_vm7, %v875_v51  ;;  %v628_v21 = vmul.f32 %v1092_v37, %v627_v53  ;;  %v746_v5 = vmul.f32 %v1096_v63, %v1415_v28  ;;  %v651_v14 = vand.u32 2147483648, %v1426_v42  ;;  %v454_v22 = vadd.f32 %v1302_v1, %v453_v56 }
 0x166   :  { %v844_v2 = vmul.f32 %v828_v52, %v812_v49  ;;  %1101 = vrcp.f32 %v1454_v4  ;;  %vm751_vm2 = vweird.f32 %v1096_v63  ;;  %v769_v6 = vand.u32 2147483647, %v1454_v4 }
 0x167   :  { %v1098_v27 = vpop.eup %1097  ;;  %v629_v34 = vadd.f32 %v1092_v37, %v628_v21  ;;  %v747_v49 = vsub.f32 1.0, %v746_v5  ;;  %vm645_vm3 = vweird.f32 %v1426_v42  ;;  %vm1482_vm5 = vcmp.eq.f32.partialorder %v649_v12, 8.507059e+37  ;;  %vm752_vm6 = vmor %vm750_vm15, %vm751_vm2 }
 0x168   :  { %v860_v10 = vadd.f32 %v844_v2, %v796_v0  ;;  %v1100_v39 = vpop.eup %1099  ;;  %v1469_v15 = vadd.f32 1.0, %v1098_v27  ;;  %v652_v33 = vor.u32 1.1754944e-38, %v651_v14  ;;  %v1025_v41 = vmul.f32 -1.442695, %v454_v22 }
 0x169   :  { %v633_v19 = vsel %vm632_vm1, %v1092_v37, %v629_v34  ;;  %v641_v20 = vmul.f32 %v1100_v39, %v1426_v42  ;;  %v748_v18 = vmul.f32 %v1096_v63, %v747_v49  ;;  %vm646_vm4 = vweird.f32 %v1100_v39 }
 0x16a   :  { %v876_v17 = vpack.c.bf16 %v860_v10, %v860_v10  ;;  %v638_v23 = vsel %vm1441_vm14, %v637_v59, %v633_v19  ;;  %1103 = vrcp.f32 %v1469_v15  ;;  %vm1494_vm8 = vcmp.eq.f32.partialorder %v769_v6, 8.507059e+37  ;;  %vm647_vm9 = vmor %vm645_vm3, %vm646_vm4 }
 0x16b   :  { %v829_v24 = vsub.f32 1.0, %v638_v23  ;;  %v642_v25 = vsub.f32 1.0, %v641_v20  ;;  %v749_v29 = vadd.f32 %v1096_v63, %v748_v18  ;;  %v797_v36 = vmul.f32 %v781_v61, %v638_v23 }
 0x16c   :  { %893 = vst.msk [vmem:[%s1615_s8 + $0x14] sm:$0xf] %vm887_vm7, %v876_v17  ;;  %v456_v26 = vpop.f32.mrf.mxu2  ;;  %v1102_v35 = vpop.eup %1101  ;;  %v771_v47 = vand.u32 2147483648, %v1454_v4  ;;  %v664_v51 = vand.u32 2147483647, %v1469_v15  ;;  %1105 = vpow2.f32 %v1025_v41  ;;  %vm765_vm11 = vweird.f32 %v1454_v4 }
 0x16d   :  { %v845_v37 = vmul.f32 %v829_v24, %v813_v11  ;;  %v643_v38 = vmul.f32 %v1100_v39, %v642_v25  ;;  %v753_v43 = vsel %vm752_vm6, %v1096_v63, %v749_v29  ;;  %v761_v44 = vmul.f32 %v1102_v35, %v1454_v4  ;;  %v1527_v4 = vld [vmem:[%s1611_s1 + $0x20] sm:$0xff]  }
 0x16e   :  { %v758_v61 = vsel %vm1458_vm0, %v757_v48, %v753_v43  ;;  %vm766_vm10 = vweird.f32 %v1102_v35  ;;  %v457_v58 = vadd.f32 %v1302_v1, %v456_v26  ;;  %v666_v10 = vand.u32 2147483648, %v1469_v15 }
 0x16f   :  { %v861_v40 = vadd.f32 %v845_v37, %v797_v36  ;;  %v644_v11 = vadd.f32 %v1100_v39, %v643_v38  ;;  %v837_v28 = vsub.f32 1.0, %v758_v61  ;;  %v762_v52 = vsub.f32 1.0, %v761_v44  ;;  %vm767_vm12 = vmor %vm765_vm11, %vm766_vm10 }
 0x170   :  { %v1104_v53 = vpop.eup %1103  ;;  %v805_v56 = vmul.f32 %v789_v13, %v758_v61  ;;  %v772_v13 = vor.u32 1.1754944e-38, %v771_v47  ;;  %v1026_v21 = vmul.f32 -1.442695, %v457_v58  ;;  %vm660_vm14 = vweird.f32 %v1469_v15 }
 0x171   :  { %v877_v54 = vpack.c.bf16 %v861_v40, %v861_v40  ;;  %v648_v57 = vsel %vm647_vm9, %v1100_v39, %v644_v11  ;;  %v853_v59 = vmul.f32 %v837_v28, %v821_v16  ;;  %v763_v0 = vmul.f32 %v1102_v35, %v762_v52 }
 0x172   :  { %v653_v63 = vsel %vm1482_vm5, %v652_v33, %v648_v57  ;;  %v656_v42 = vmul.f32 %v1104_v53, %v1469_v15  ;;  %1107 = vpow2.f32 %v1026_v21  ;;  %v1106_v49 = vpop.eup %1105  ;;  %vm661_vm13 = vweird.f32 %v1104_v53 }
 0x173   :  { %894 = vst.msk [vmem:[%s1615_s8 + $0x18] sm:$0xf] %vm887_vm7, %v877_v54  ;;  %v830_v2 = vsub.f32 1.0, %v653_v63  ;;  %v869_v5 = vadd.f32 %v853_v59, %v805_v56  ;;  %v764_v8 = vadd.f32 %v1102_v35, %v763_v0  ;;  %v798_v34 = vmul.f32 %v782_v30, %v653_v63  ;;  %vm662_vm15 = vmor %vm660_vm14, %vm661_vm13  ;;  %v40_v0 = vld [vmem:[%s1609_s0 + $0x28] sm:$0xff]  }
 0x174   :  { %v458_v27 = vpop.f32.mrf.mxu2  ;;  %v657_v16 = vsub.f32 1.0, %v656_v42  ;;  %v528_v30 = vadd.f32 1.0, %v1106_v49  ;;  %v815_v22 = vunpack.c.l.bf16 %v1527_v4  ;;  %vm665_vm0 = vcmp.eq.f32.partialorder %v664_v51, 8.507059e+37 }
 0x175   :  { %v846_v48 = vmul.f32 %v830_v2, %v814_v31  ;;  %v459_v39 = vadd.f32 %v1302_v1, %v458_v27  ;;  %v885_v12 = vpack.c.bf16 %v869_v5, %v869_v5  ;;  %v768_v14 = vsel %vm767_vm12, %v1102_v35, %v764_v8 }
 0x176   :  { %v658_v17 = vmul.f32 %v1104_v53, %v657_v16  ;;  %v773_v60 = vsel %vm1494_vm8, %v772_v13, %v768_v14  ;;  %v667_v18 = vor.u32 1.1754944e-38, %v666_v10  ;;  %1109 = vrcp.f32 %v528_v30 }
 0x177   :  { %v862_v50 = vadd.f32 %v846_v48, %v798_v34  ;;  %v1027_v31 = vmul.f32 -1.442695, %v459_v39  ;;  %902 = vst.msk [vmem:[%s1615_s8 + $0x38] sm:$0xf] %vm887_vm7, %v885_v12  ;;  %v838_v19 = vsub.f32 1.0, %v773_v60  ;;  %v806_v6 = vmul.f32 %v790_v45, %v773_v60 }
 0x178   :  { %v659_v20 = vadd.f32 %v1104_v53, %v658_v17  ;;  %v1108_v26 = vpop.eup %1107  ;;  %v681_v40 = vand.u32 2147483648, %v528_v30  ;;  %v679_v11 = vand.u32 2147483647, %v528_v30  ;;  %vm675_vm2 = vweird.f32 %v528_v30 }
 0x179   :  { %v878_v23 = vpack.c.bf16 %v862_v50, %v862_v50  ;;  %v854_v24 = vmul.f32 %v838_v19, %v822_v62  ;;  %1111 = vpow2.f32 %v1027_v31  ;;  %v529_v35 = vadd.f32 1.0, %v1108_v26 }
 0x17a   :  { %v663_v25 = vsel %vm662_vm15, %v1104_v53, %v659_v20  ;;  %v682_v56 = vor.u32 1.1754944e-38, %v681_v40  ;;  %v784_v57 = vunpack.c.h.bf16 %v1439_v55  ;;  %v816_v58 = vunpack.c.h.bf16 %v1527_v4 }
 0x17b   :  { %895 = vst.msk [vmem:[%s1615_s8 + $0x1c] sm:$0xf] %vm887_vm7, %v878_v23  ;;  %v668_v15 = vsel %vm665_vm0, %v667_v18, %v663_v25  ;;  %v870_v32 = vadd.f32 %v854_v24, %v806_v6  ;;  %1113 = vrcp.f32 %v529_v35  ;;  %vm680_vm4 = vcmp.eq.f32.partialorder %v679_v11, 8.507059e+37 }
 0x17c   :  { %v461_v29 = vpop.f32.mrf.mxu2  ;;  %v831_v33 = vsub.f32 1.0, %v668_v15  ;;  %v799_v7 = vmul.f32 %v783_v9, %v668_v15  ;;  %v1110_v62 = vpop.eup %1109  ;;  %v694_v21 = vand.u32 2147483647, %v529_v35  ;;  %v696_v27 = vand.u32 2147483648, %v529_v35 }
 0x17d   :  { %v462_v36 = vadd.f32 %v1302_v1, %v461_v29  ;;  %v886_v3 = vpack.c.bf16 %v870_v32, %v870_v32  ;;  %v671_v41 = vmul.f32 %v1110_v62, %v528_v30  ;;  %vm676_vm1 = vweird.f32 %v1110_v62 }
 0x17e   :  { %v847_v45 = vmul.f32 %v831_v33, %v815_v22  ;;  %vm677_vm3 = vmor %vm675_vm2, %vm676_vm1  ;;  %vm690_vm6 = vweird.f32 %v529_v35  ;;  %v785_v10 = vunpack.c.l.bf16 %v40_v0  ;;  %vm695_vm9 = vcmp.eq.f32.partialorder %v694_v21, 8.507059e+37 }
 0x17f   :  { %v1112_v37 = vpop.eup %1111  ;;  %903 = vst.msk [vmem:[%s1615_s8 + $0x3c] sm:$0xf] %vm887_vm7, %v886_v3  ;;  %v1028_v43 = vmul.f32 -1.442695, %v462_v36  ;;  %v672_v47 = vsub.f32 1.0, %v671_v41  ;;  %v697_v12 = vor.u32 1.1754944e-38, %v696_v27  ;;  %v786_v20 = vunpack.c.h.bf16 %v40_v0 }
 0x180   :  { %v863_v38 = vadd.f32 %v847_v45, %v799_v7  ;;  %v1553_v44 = vadd.f32 1.0, %v1112_v37 }
 0x181   :  { %1115 = vpow2.f32 %v1028_v43  ;;  %v673_v61 = vmul.f32 %v1110_v62, %v672_v47  ;;  %v1114_v28 = vpop.eup %1113  ;;  %v42_v43 = vld [vmem:[%s1609_s0 + $0x30] sm:$0xff]  }
 0x182   :  { %v879_v46 = vpack.c.bf16 %v863_v38, %v863_v38  ;;  %1117 = vrcp.f32 %v1553_v44  ;;  %v686_v53 = vmul.f32 %v1114_v28, %v529_v35  ;;  %vm691_vm5 = vweird.f32 %v1114_v28 }
 0x183   :  { %v674_v52 = vadd.f32 %v1110_v62, %v673_v61  ;;  %vm692_vm8 = vmor %vm690_vm6, %vm691_vm5  ;;  %v709_v14 = vand.u32 2147483647, %v1553_v44  ;;  %v711_v17 = vand.u32 2147483648, %v1553_v44  ;;  %vm705_vm11 = vweird.f32 %v1553_v44 }
 0x184   :  { %v463_v9 = vpop.f32.mrf.mxu2  ;;  %896 = vst.msk [vmem:[%s1615_s8 + $0x20] sm:$0xf] %vm887_vm7, %v879_v46  ;;  %v687_v42 = vsub.f32 1.0, %v686_v53 }
 0x185   :  { %v464_v51 = vadd.f32 %v1302_v1, %v463_v9  ;;  %v678_v63 = vsel %vm677_vm3, %v1110_v62, %v674_v52  ;;  %v56_v1 = vld [vmem:[%s1611_s1 + $0x28] sm:$0xff]   ;;  %vm710_vm13 = vcmp.eq.f32.partialorder %v709_v14, 8.507059e+37  ;;  %v712_v25 = vor.u32 1.1754944e-38, %v711_v17 }
 0x186   :  { %v683_v13 = vsel %vm680_vm4, %v682_v56, %v678_v63  ;;  %v688_v8 = vmul.f32 %v1114_v28, %v687_v42  ;;  %v817_v34 = vunpack.c.l.bf16 %v56_v1  ;;  %v818_v26 = vunpack.c.h.bf16 %v56_v1 }
 0x187   :  { %v1029_v54 = vmul.f32 -1.442695, %v464_v51  ;;  %v1116_v59 = vpop.eup %1115  ;;  %v832_v5 = vsub.f32 1.0, %v683_v13  ;;  %v800_v48 = vmul.f32 %v784_v57, %v683_v13  ;;  %v787_v51 = vunpack.c.l.bf16 %v42_v43 }
 0x188   :  { %v1118_v2 = vpop.eup %1117  ;;  %v1569_v55 = vadd.f32 1.0, %v1116_v59  ;;  %v689_v39 = vadd.f32 %v1114_v28, %v688_v8  ;;  %v788_v13 = vunpack.c.h.bf16 %v42_v43 }
 0x189   :  { %1119 = vpow2.f32 %v1029_v54  ;;  %v701_v16 = vmul.f32 %v1118_v2, %v1553_v44  ;;  %v848_v4 = vmul.f32 %v832_v5, %v816_v58  ;;  %vm706_vm10 = vweird.f32 %v1118_v2  ;;  %v58_v44 = vld [vmem:[%s1611_s1 + $0x30] sm:$0xff]  }
 0x18a   :  { %1121 = vrcp.f32 %v1569_v55  ;;  %v693_v30 = vsel %vm692_vm8, %v1114_v28, %v689_v39  ;;  %vm707_vm12 = vmor %vm705_vm11, %vm706_vm10  ;;  %v724_v45 = vand.u32 2147483647, %v1569_v55  ;;  %v726_v62 = vand.u32 2147483648, %v1569_v55 }
 0x18b   :  { %v702_v49 = vsub.f32 1.0, %v701_v16  ;;  %v864_v60 = vadd.f32 %v848_v4, %v800_v48  ;;  %v698_v19 = vsel %vm695_vm9, %v697_v12, %v693_v30  ;;  %vm720_vm15 = vweird.f32 %v1569_v55 }
 0x18c   :  { %v833_v18 = vsub.f32 1.0, %v698_v19  ;;  %v801_v15 = vmul.f32 %v785_v10, %v698_v19  ;;  %v727_v11 = vor.u32 1.1754944e-38, %v726_v62  ;;  %v819_v28 = vunpack.c.l.bf16 %v58_v44 }
 0x18d   :  { %v703_v31 = vmul.f32 %v1118_v2, %v702_v49  ;;  %v880_v23 = vpack.c.bf16 %v864_v60, %v864_v60  ;;  %vm725_vm1 = vcmp.eq.f32.partialorder %v724_v45, 8.507059e+37 }
 0x18e   :  { %v849_v29 = vmul.f32 %v833_v18, %v817_v34 }
 0x18f   :  { %v1120_v50 = vpop.eup %1119  ;;  %v704_v6 = vadd.f32 %v1118_v2, %v703_v31  ;;  %897 = vst.msk [vmem:[%s1615_s8 + $0x24] sm:$0xf] %vm887_vm7, %v880_v23 }
 0x190   :  { %v532_v22 = vadd.f32 1.0, %v1120_v50  ;;  %v1122_v24 = vpop.eup %1121  ;;  %v865_v36 = vadd.f32 %v849_v29, %v801_v15 }
 0x191   :  { %v708_v32 = vsel %vm707_vm12, %v1118_v2, %v704_v6  ;;  %v716_v33 = vmul.f32 %v1122_v24, %v1569_v55  ;;  %vm721_vm14 = vweird.f32 %v1122_v24  ;;  %v820_v55 = vunpack.c.h.bf16 %v58_v44 }
 0x192   :  { %1123 = vrcp.f32 %v532_v22  ;;  %v713_v35 = vsel %vm710_vm13, %v712_v25, %v708_v32  ;;  %v881_v37 = vpack.c.bf16 %v865_v36, %v865_v36  ;;  %vm722_vm0 = vmor %vm720_vm15, %vm721_vm14  ;;  %v741_v57 = vand.u32 2147483648, %v532_v22 }
 0x193   :  { %v834_v3 = vsub.f32 1.0, %v713_v35  ;;  %v717_v7 = vsub.f32 1.0, %v716_v33  ;;  %v802_v38 = vmul.f32 %v786_v20, %v713_v35  ;;  %v739_v63 = vand.u32 2147483647, %v532_v22 }
 0x194   :  { %898 = vst.msk [vmem:[%s1615_s8 + $0x28] sm:$0xf] %vm887_vm7, %v881_v37  ;;  %vm735_vm3 = vweird.f32 %v532_v22  ;;  %v742_v2 = vor.u32 1.1754944e-38, %v741_v57 }
 0x195   :  { %v850_v41 = vmul.f32 %v834_v3, %v818_v26  ;;  %v718_v46 = vmul.f32 %v1122_v24, %v717_v7  ;;  %vm740_vm5 = vcmp.eq.f32.partialorder %v739_v63, 8.507059e+37 }
 0x197   :  { %v866_v40 = vadd.f32 %v850_v41, %v802_v38  ;;  %v719_v9 = vadd.f32 %v1122_v24, %v718_v46 }
 0x198   :  { %v1124_v47 = vpop.eup %1123 }
 0x199   :  { %v731_v61 = vmul.f32 %v1124_v47, %v532_v22  ;;  %v882_v52 = vpack.c.bf16 %v866_v40, %v866_v40  ;;  %v723_v53 = vsel %vm722_vm0, %v1122_v24, %v719_v9  ;;  %vm736_vm2 = vweird.f32 %v1124_v47 }
 0x19a   :  { %v728_v56 = vsel %vm725_vm1, %v727_v11, %v723_v53  ;;  %vm737_vm4 = vmor %vm735_vm3, %vm736_vm2 }
 0x19b   :  { %v732_v54 = vsub.f32 1.0, %v731_v61  ;;  %899 = vst.msk [vmem:[%s1615_s8 + $0x2c] sm:$0xf] %vm887_vm7, %v882_v52  ;;  %v835_v58 = vsub.f32 1.0, %v728_v56  ;;  %v803_v0 = vmul.f32 %v787_v51, %v728_v56 }
 0x19d   :  { %v733_v59 = vmul.f32 %v1124_v47, %v732_v54  ;;  %v851_v1 = vmul.f32 %v835_v58, %v819_v28 }
 0x19f   :  { %v734_v42 = vadd.f32 %v1124_v47, %v733_v59  ;;  %v867_v21 = vadd.f32 %v851_v1, %v803_v0 }
 0x1a1   :  { %v738_v27 = vsel %vm737_vm4, %v1124_v47, %v734_v42  ;;  %v883_v8 = vpack.c.bf16 %v867_v21, %v867_v21 }
 0x1a2   :  { %v743_v5 = vsel %vm740_vm5, %v742_v2, %v738_v27 }
 0x1a3   :  { %v836_v16 = vsub.f32 1.0, %v743_v5  ;;  %900 = vst.msk [vmem:[%s1615_s8 + $0x30] sm:$0xf] %vm887_vm7, %v883_v8  ;;  %v804_v10 = vmul.f32 %v788_v13, %v743_v5 }
 0x1a5   :  { %v852_v34 = vmul.f32 %v836_v16, %v820_v55 }
 0x1a7   :  { %v868_v48 = vadd.f32 %v852_v34, %v804_v10 }
 0x1a9   :  { %v884_v4 = vpack.c.bf16 %v868_v48, %v868_v48 }
 0x1ab   :  { %901 = vst.msk [vmem:[%s1615_s8 + $0x34] sm:$0xf] %vm887_vm7, %v884_v4 }

// kernel: savss_layer_forward.46
= control target key start
LH: loop header
LB: loop body
LE: loop exit
PB: predicated region body
PF: predicated region fallthrough
CT: control target
= control target key end

     0   :  { %s1347_s1 = inlined_call_operand.vmem [shape: bf16[64,32], index: 1, kind: input, shape index: {}]   ;;  %s1348_s3 = inlined_call_operand.vmem [shape: bf16[128,64], index: 3, kind: input, shape index: {}]   ;;  %s1349_s0 = inlined_call_operand.vmem [shape: bf16[128,64], index: 0, kind: input, shape index: {}]   ;;  %s1350_s2 = inlined_call_operand.vmem [shape: f32[1,32], index: 2, kind: input, shape index: {}]   ;;  %s1351_s4 = inlined_call_operand.vmem [shape: bf16[128,32], index: 4, kind: output, shape index: {}]  }
   0x1   :  { %v616_v0 = vld [vmem:[%s1347_s1 + $0x18] sm:$0xff]  ;;  %v650_v1 = vld [vmem:[%s1348_s3] sm:$0xff]   ;;  %v615_v2 = vld [vmem:[%s1347_s1 + $0x10] sm:$0xff] }
   0x2   :  { %491 = vmatpush.bf16.msra.mxu0 %v616_v0  ;;  %695 = vmatpush.bf16.msra.mxu1 %v616_v0  ;;  %v651_v3 = vunpack.c.l.bf16 %v650_v1  ;;  %v652_v4 = vunpack.c.h.bf16 %v650_v1  ;;  %v689_v5 = vld [vmem:[%s1348_s3 + $0x10] sm:$0xff]   ;;  %v691_v7 = vld [vmem:[%s1348_s3 + $0x20] sm:$0xff]   ;;  %v614_v14 = vld [vmem:[%s1347_s1 + $0x8] sm:$0xff] }
   0x3   :  { %696 = vmatpush.bf16.msra.mxu2 %v616_v0  ;;  %697 = vmatpush.bf16.msra.mxu3 %v616_v0  ;;  %v659_v6 = vunpack.c.l.bf16 %v689_v5  ;;  %v618_v8 = vld [vmem:[%s1349_s0] sm:$0xff]   ;;  %v682_v11 = vld [vmem:[%s1349_s0 + $0x10] sm:$0xff]   ;;  %v660_v12 = vunpack.c.h.bf16 %v689_v5  ;;  %v667_v16 = vunpack.c.l.bf16 %v691_v7  ;;  %v668_v17 = vunpack.c.h.bf16 %v691_v7  ;;  %v843_v33 = vld [vmem:[%s1348_s3 + $0x8] sm:$0xff]  }
   0x4   :  { %v573_v9 = vmul.f32 -1.442695, %v651_v3  ;;  %v574_v10 = vmul.f32 -1.442695, %v652_v4  ;;  %v684_v15 = vld [vmem:[%s1349_s0 + $0x20] sm:$0xff]   ;;  %v827_v18 = vld [vmem:[%s1348_s3 + $0x30] sm:$0xff]   ;;  %v619_v19 = vunpack.c.l.bf16 %v618_v8  ;;  %v620_v20 = vunpack.c.h.bf16 %v618_v8 }
   0x5   :  { %v577_v13 = vmul.f32 -1.442695, %v659_v6  ;;  %v578_v21 = vmul.f32 -1.442695, %v660_v12  ;;  %v627_v22 = vunpack.c.l.bf16 %v682_v11  ;;  %v628_v23 = vunpack.c.h.bf16 %v682_v11  ;;  %v832_v25 = vld [vmem:[%s1349_s0 + $0x30] sm:$0xff]   ;;  %v613_v29 = vld [vmem:[%s1347_s1] sm:$0xff] }
   0x6   :  { %492 = vmatpush.bf16.msra.mxu0 %v615_v2  ;;  %698 = vmatpush.bf16.msra.mxu1 %v615_v2  ;;  %708 = vpow2.f32 %v573_v9  ;;  %v581_v24 = vmul.f32 -1.442695, %v667_v16  ;;  %v635_v26 = vunpack.c.l.bf16 %v684_v15  ;;  %v582_v27 = vmul.f32 -1.442695, %v668_v17  ;;  %v860_v43 = vld [vmem:[%s1348_s3 + $0x18] sm:$0xff]  }
   0x7   :  { %699 = vmatpush.bf16.msra.mxu2 %v615_v2  ;;  %700 = vmatpush.bf16.msra.mxu3 %v615_v2  ;;  %710 = vpow2.f32 %v574_v10  ;;  %v675_v28 = vunpack.c.l.bf16 %v827_v18  ;;  %v636_v30 = vunpack.c.h.bf16 %v684_v15  ;;  %v676_v31 = vunpack.c.h.bf16 %v827_v18 }
   0x8   :  { %712 = vpow2.f32 %v577_v13  ;;  %v643_v32 = vunpack.c.l.bf16 %v832_v25  ;;  %v845_v35 = vmul.f32 %v651_v3, %v619_v19  ;;  %v847_v36 = vmul.f32 %v652_v4, %v620_v20 }
   0x9   :  { %714 = vpow2.f32 %v578_v21  ;;  %v849_v37 = vmul.f32 %v659_v6, %v627_v22  ;;  %v853_v40 = vmul.f32 %v660_v12, %v628_v23  ;;  %v855_v41 = vmul.f32 %v667_v16, %v635_v26 }
   0xa   :  { %493 = vmatpush.bf16.msra.mxu0 %v614_v14  ;;  %701 = vmatpush.bf16.msra.mxu1 %v614_v14  ;;  %716 = vpow2.f32 %v581_v24  ;;  %v585_v42 = vmul.f32 -1.442695, %v675_v28  ;;  %v864_v46 = vmul.f32 %v668_v17, %v636_v30  ;;  %v586_v47 = vmul.f32 -1.442695, %v676_v31 }
   0xb   :  { %702 = vmatpush.bf16.msra.mxu2 %v614_v14  ;;  %703 = vmatpush.bf16.msra.mxu3 %v614_v14  ;;  %718 = vpow2.f32 %v582_v27  ;;  %v655_v48 = vunpack.c.l.bf16 %v843_v33  ;;  %v644_v50 = vunpack.c.h.bf16 %v832_v25  ;;  %v871_v51 = vmul.f32 %v675_v28, %v643_v32 }
   0xc   :  { %v709_v34 = vpop.eup %708  ;;  %v656_v52 = vunpack.c.h.bf16 %v843_v33  ;;  %v663_v56 = vunpack.c.l.bf16 %v860_v43 }
   0xd   :  { %v711_v38 = vpop.eup %710  ;;  %v851_v39 = vadd.f32 1.0, %v709_v34  ;;  %v888_v63 = vmul.f32 -1.442695, %v655_v48 }
   0xe   :  { %v713_v44 = vpop.eup %712  ;;  %494 = vmatpush.bf16.msra.mxu0 %v613_v29  ;;  %704 = vmatpush.bf16.msra.mxu1 %v613_v29  ;;  %v862_v45 = vadd.f32 1.0, %v711_v38 }
   0xf   :  { %v715_v49 = vpop.eup %714  ;;  %705 = vmatpush.bf16.msra.mxu2 %v613_v29  ;;  %706 = vmatpush.bf16.msra.mxu3 %v613_v29  ;;  %720 = vrcp.f32 %v851_v39  ;;  %v171_v54 = vand.u32 2147483647, %v851_v39  ;;  %v173_v55 = vand.u32 2147483648, %v851_v39  ;;  %v879_v59 = vadd.f32 1.0, %v713_v44 }
  0x10   :  { %v717_v53 = vpop.eup %716  ;;  %722 = vrcp.f32 %v862_v45  ;;  %v186_v58 = vand.u32 2147483647, %v862_v45  ;;  %v881_v60 = vadd.f32 1.0, %v715_v49  ;;  %v188_v61 = vand.u32 2147483648, %v862_v45 }
  0x11   :  { %v719_v57 = vpop.eup %718  ;;  %724 = vpow2.f32 %v585_v42  ;;  %v884_v62 = vadd.f32 1.0, %v717_v53  ;;  %vm167_vm0 = vweird.f32 %v851_v39  ;;  %vm182_vm1 = vweird.f32 %v862_v45 }
  0x12   :  { %726 = vpow2.f32 %v586_v47  ;;  %v233_v0 = vand.u32 2147483648, %v879_v59  ;;  %vm894_vm2 = vcmp.eq.f32.partialorder %v171_v54, 8.507059e+37  ;;  %v174_v2 = vor.u32 1.1754944e-38, %v173_v55 }
  0x13   :  { %728 = vrcp.f32 %v879_v59  ;;  %v231_v3 = vand.u32 2147483647, %v879_v59  ;;  %v900_v4 = vadd.f32 1.0, %v719_v57  ;;  %vm902_vm3 = vcmp.eq.f32.partialorder %v186_v58, 8.507059e+37 }
  0x14   :  { %730 = vrcp.f32 %v881_v60  ;;  %v246_v7 = vand.u32 2147483647, %v881_v60  ;;  %v248_v8 = vand.u32 2147483648, %v881_v60  ;;  %v189_v11 = vor.u32 1.1754944e-38, %v188_v61 }
  0x15   :  { %v721_v5 = vpop.eup %720  ;;  %732 = vrcp.f32 %v884_v62  ;;  %vm227_vm4 = vweird.f32 %v879_v59  ;;  %vm242_vm5 = vweird.f32 %v881_v60  ;;  %v234_v14 = vor.u32 1.1754944e-38, %v233_v0 }
  0x16   :  { %v723_v9 = vpop.eup %722  ;;  %v163_v10 = vmul.f32 %v721_v5, %v851_v39  ;;  %v291_v15 = vand.u32 2147483647, %v884_v62  ;;  %v293_v16 = vand.u32 2147483648, %v884_v62  ;;  %vm168_vm6 = vweird.f32 %v721_v5 }
  0x17   :  { %v725_v12 = vpop.eup %724  ;;  %v178_v13 = vmul.f32 %v723_v9, %v862_v45  ;;  %vm915_vm7 = vcmp.eq.f32.partialorder %v231_v3, 8.507059e+37  ;;  %vm287_vm8 = vweird.f32 %v884_v62  ;;  %734 = vrcp.f32 %v900_v4  ;;  %vm935_vm14 = vmor %vm167_vm0, %vm168_vm6 }
  0x18   :  { %v727_v17 = vpop.eup %726  ;;  %v164_v19 = vsub.f32 1.0, %v163_v10  ;;  %vm183_vm9 = vweird.f32 %v723_v9  ;;  %vm921_vm10 = vcmp.eq.f32.partialorder %v246_v7, 8.507059e+37  ;;  %v249_v24 = vor.u32 1.1754944e-38, %v248_v8  ;;  %v1059_v10 = vld [vmem:[%s1349_s0 + $0x38] sm:$0xff]  }
  0x19   :  { %v729_v21 = vpop.eup %728  ;;  %v179_v22 = vsub.f32 1.0, %v178_v13  ;;  %vm302_vm11 = vweird.f32 %v900_v4  ;;  %vm927_vm13 = vcmp.eq.f32.partialorder %v291_v15, 8.507059e+37  ;;  %v306_v30 = vand.u32 2147483647, %v900_v4  ;;  %vm944_vm15 = vmor %vm182_vm1, %vm183_vm9 }
  0x1a   :  { %v731_v26 = vpop.eup %730  ;;  %v165_v27 = vmul.f32 %v721_v5, %v164_v19  ;;  %v223_v28 = vmul.f32 %v729_v21, %v879_v59  ;;  %v294_v44 = vor.u32 1.1754944e-38, %v293_v16  ;;  %v308_v47 = vand.u32 2147483648, %v900_v4 }
  0x1b   :  { %v733_v32 = vpop.eup %732  ;;  %v180_v38 = vmul.f32 %v723_v9, %v179_v22  ;;  %v238_v42 = vmul.f32 %v731_v26, %v881_v60  ;;  %vm228_vm12 = vweird.f32 %v729_v21  ;;  %vm243_vm0 = vweird.f32 %v731_v26 }
  0x1c   :  { %v166_v49 = vadd.f32 %v721_v5, %v165_v27  ;;  %v224_v54 = vsub.f32 1.0, %v223_v28  ;;  %v283_v39 = vmul.f32 %v733_v32, %v884_v62  ;;  %vm288_vm6 = vweird.f32 %v733_v32  ;;  %vm959_vm1 = vmor %vm227_vm4, %vm228_vm12 }
  0x1d   :  { %v181_v55 = vadd.f32 %v723_v9, %v180_v38  ;;  %v239_v57 = vsub.f32 1.0, %v238_v42  ;;  %v735_v58 = vpop.eup %734  ;;  %v951_v7 = vadd.f32 1.0, %v725_v12  ;;  %vm978_vm4 = vmor %vm287_vm8, %vm288_vm6  ;;  %v984_v19 = vadd.f32 1.0, %v727_v17 }
  0x1e   :  { %v170_v61 = vsel %vm935_vm14, %v721_v5, %v166_v49  ;;  %v225_v0 = vmul.f32 %v729_v21, %v224_v54  ;;  %v284_v3 = vsub.f32 1.0, %v283_v39  ;;  %v298_v15 = vmul.f32 %v735_v58, %v900_v4 }
  0x1f   :  { %v175_v45 = vsel %vm894_vm2, %v174_v2, %v170_v61  ;;  %v185_v8 = vsel %vm944_vm15, %v723_v9, %v181_v55  ;;  %v240_v13 = vmul.f32 %v731_v26, %v239_v57  ;;  %vm970_vm2 = vmor %vm242_vm5, %vm243_vm0  ;;  %736 = vrcp.f32 %v951_v7 }
  0x20   :  { %v190_v5 = vsel %vm902_vm3, %v189_v11, %v185_v8  ;;  %v402_v12 = vmul.f32 %v175_v45, %v845_v35  ;;  %v226_v16 = vadd.f32 %v729_v21, %v225_v0  ;;  %v285_v59 = vmul.f32 %v733_v32, %v284_v3  ;;  %v683_v8 = vld [vmem:[%s1349_s0 + $0x18] sm:$0xff]  }
  0x21   :  { %v403_v2 = vmul.f32 %v190_v5, %v847_v36  ;;  %v241_v9 = vadd.f32 %v731_v26, %v240_v13  ;;  %v299_v35 = vsub.f32 1.0, %v298_v15  ;;  %vm303_vm3 = vweird.f32 %v735_v58  ;;  %v1064_v13 = vld [vmem:[%s1348_s3 + $0x38] sm:$0xff]  }
  0x22   :  { %v230_v60 = vsel %vm959_vm1, %v729_v21, %v226_v16  ;;  %v286_v11 = vadd.f32 %v733_v32, %v285_v59  ;;  %vm998_vm5 = vmor %vm302_vm11, %vm303_vm3  ;;  %v309_v20 = vor.u32 1.1754944e-38, %v308_v47  ;;  %vm307_vm8 = vcmp.eq.f32.partialorder %v306_v30, 8.507059e+37 }
  0x23   :  { %v418_v22 = vpack.c.bf16 %v403_v2, %v402_v12  ;;  %v235_v36 = vsel %vm915_vm7, %v234_v14, %v230_v60  ;;  %v245_v62 = vsel %vm970_vm2, %v731_v26, %v241_v9  ;;  %v300_v27 = vmul.f32 %v735_v58, %v299_v35 }
  0x24   :  { %v250_v28 = vsel %vm921_vm10, %v249_v24, %v245_v62  ;;  %v406_v34 = vmul.f32 %v235_v36, %v849_v37  ;;  %v290_v21 = vsel %vm978_vm4, %v733_v32, %v286_v11  ;;  %vm1374_vm7 = vcmask 523264   ;;  %v1009_v37 = vld [vmem:[%s1348_s3 + $0x28] sm:$0xff]  }
  0x25   :  { %605 = vmatmul.msk.bf16.vlgmr.msra.gmra.mxu0 %vm1374_vm7, %v418_v22  ;;  %v407_v14 = vmul.f32 %v250_v28, %v853_v40  ;;  %v295_v23 = vsel %vm927_vm13, %v294_v44, %v290_v21  ;;  %v301_v24 = vadd.f32 %v735_v58, %v300_v27  ;;  %v1015_v4 = vmul.f32 %v676_v31, %v644_v50  ;;  %v1022_v40 = vld [vmem:[%s1349_s0 + $0x8] sm:$0xff]   ;;  %v737_v50 = vpop.eup %736  ;;  %vm1375_vm9 = vmmov %vm1374_vm7 }
  0x26   :  { %v351_v26 = vand.u32 2147483647, %v951_v7  ;;  %738 = vrcp.f32 %v984_v19  ;;  %v576_v29 = vmul.f32 -1.442695, %v656_v52  ;;  %v410_v18 = vmul.f32 %v295_v23, %v855_v41  ;;  %vm1378_vm14 = vmmov %vm1374_vm7  ;;  %v1094_v62 = vld [vmem:[%s1349_s0 + $0x28] sm:$0xff]  }
  0x27   :  { %v420_v30 = vpack.c.bf16 %v407_v14, %v406_v34  ;;  %v305_v25 = vsel %vm998_vm5, %v735_v58, %v301_v24  ;;  %v664_v31 = vunpack.c.h.bf16 %v860_v43  ;;  %v579_v38 = vmul.f32 -1.442695, %v663_v56 }
  0x28   :  { %v310_v32 = vsel %vm307_vm8, %v309_v20, %v305_v25  ;;  %v671_v42 = vunpack.c.l.bf16 %v1009_v37  ;;  %v672_v44 = vunpack.c.h.bf16 %v1009_v37  ;;  %v343_v49 = vmul.f32 %v737_v50, %v951_v7  ;;  %vm1389_vm8 = vmmov %vm1375_vm9 }
  0x29   :  { %607 = vmatmul.msk.bf16.vlgmr.msra.gmra.mxu1 %vm1375_vm9, %v420_v30  ;;  %v411_v47 = vmul.f32 %v310_v32, %v864_v46  ;;  %v353_v53 = vand.u32 2147483648, %v951_v7  ;;  %v623_v41 = vunpack.c.l.bf16 %v1022_v40  ;;  %vm347_vm10 = vweird.f32 %v951_v7 }
  0x2a   :  { %vm1040_vm11 = vcmp.eq.f32.partialorder %v351_v26, 8.507059e+37  ;;  %vm362_vm12 = vweird.f32 %v984_v19  ;;  %740 = vpow2.f32 %v888_v63  ;;  %v344_v55 = vsub.f32 1.0, %v343_v49 }
  0x2b   :  { %v422_v39 = vpack.c.bf16 %v411_v47, %v410_v18  ;;  %vm348_vm13 = vweird.f32 %v737_v50  ;;  %742 = vpow2.f32 %v576_v29  ;;  %v366_v57 = vand.u32 2147483647, %v984_v19 }
  0x2c   :  { %v739_v46 = vpop.eup %738  ;;  %v368_v58 = vand.u32 2147483648, %v984_v19  ;;  %744 = vpow2.f32 %v579_v38  ;;  %v580_v61 = vmul.f32 -1.442695, %v664_v31  ;;  %v345_v0 = vmul.f32 %v737_v50, %v344_v55  ;;  %vm1069_vm15 = vmor %vm347_vm10, %vm348_vm13 }
  0x2d   :  { %609 = vmatmul.msk.bf16.vlgmr.msra.gmra.mxu2 %vm1378_vm14, %v422_v39  ;;  %v354_v3 = vor.u32 1.1754944e-38, %v353_v53  ;;  %v358_v45 = vmul.f32 %v739_v46, %v984_v19  ;;  %v624_v63 = vunpack.c.h.bf16 %v1022_v40  ;;  %vm363_vm0 = vweird.f32 %v739_v46 }
  0x2e   :  { %v1075_v5 = vmul.f32 %v655_v48, %v623_v41  ;;  %746 = vpow2.f32 %v580_v61  ;;  %v583_v12 = vmul.f32 -1.442695, %v671_v42  ;;  %v346_v16 = vadd.f32 %v737_v50, %v345_v0  ;;  %vm1101_vm1 = vmor %vm362_vm12, %vm363_vm0 }
  0x2f   :  { %v359_v1 = vsub.f32 1.0, %v358_v45  ;;  %v584_v59 = vmul.f32 -1.442695, %v672_v44  ;;  %v647_v7 = vunpack.c.l.bf16 %v1059_v10  ;;  %vm1082_vm6 = vcmp.eq.f32.partialorder %v366_v57, 8.507059e+37 }
  0x30   :  { %v741_v2 = vpop.eup %740  ;;  %v369_v6 = vor.u32 1.1754944e-38, %v368_v58  ;;  %v631_v35 = vunpack.c.l.bf16 %v683_v8  ;;  %v679_v48 = vunpack.c.l.bf16 %v1064_v13  ;;  %v350_v11 = vsel %vm1069_vm15, %v737_v50, %v346_v16 }
  0x31   :  { %v743_v60 = vpop.eup %742  ;;  %v360_v22 = vmul.f32 %v739_v46, %v359_v1  ;;  %v1089_v36 = vadd.f32 1.0, %v741_v2  ;;  %748 = vpow2.f32 %v583_v12  ;;  %v355_v28 = vsel %vm1040_vm11, %v354_v3, %v350_v11 }
  0x32   :  { %v745_v27 = vpop.eup %744  ;;  %v1105_v21 = vadd.f32 1.0, %v743_v60  ;;  %750 = vpow2.f32 %v584_v59  ;;  %v1109_v17 = vmul.f32 %v679_v48, %v647_v7  ;;  %v1113_v14 = vmul.f32 %v656_v52, %v624_v63 }
  0x33   :  { %v361_v20 = vadd.f32 %v739_v46, %v360_v22  ;;  %752 = vrcp.f32 %v1089_v36  ;;  %v632_v23 = vunpack.c.h.bf16 %v683_v8  ;;  %v414_v24 = vmul.f32 %v355_v28, %v871_v51 }
  0x34   :  { %v747_v19 = vpop.eup %746  ;;  %754 = vrcp.f32 %v1105_v21  ;;  %v1120_v26 = vmul.f32 %v663_v56, %v631_v35  ;;  %v639_v40 = vunpack.c.l.bf16 %v1094_v62  ;;  %v201_v33 = vand.u32 2147483647, %v1089_v36 }
  0x35   :  { %v365_v29 = vsel %vm1101_vm1, %v739_v46, %v361_v20  ;;  %v203_v52 = vand.u32 2147483648, %v1089_v36  ;;  %v1127_v30 = vadd.f32 1.0, %v745_v27  ;;  %v216_v25 = vand.u32 2147483647, %v1105_v21 }
  0x36   :  { %v370_v51 = vsel %vm1082_vm6, %v369_v6, %v365_v29  ;;  %v218_v18 = vand.u32 2147483648, %v1105_v21  ;;  %v1133_v56 = vadd.f32 1.0, %v747_v19  ;;  %v1138_v38 = vmul.f32 %v664_v31, %v632_v23 }
  0x37   :  { %v749_v50 = vpop.eup %748  ;;  %v415_v32 = vmul.f32 %v370_v51, %v1015_v4  ;;  %756 = vrcp.f32 %v1127_v30  ;;  %v640_v47 = vunpack.c.h.bf16 %v1094_v62  ;;  %vm197_vm2 = vweird.f32 %v1089_v36 }
  0x38   :  { %v751_v49 = vpop.eup %750  ;;  %758 = vrcp.f32 %v1133_v56  ;;  %v648_v53 = vunpack.c.h.bf16 %v1059_v10  ;;  %v680_v41 = vunpack.c.h.bf16 %v1064_v13  ;;  %vm1146_vm4 = vcmp.eq.f32.partialorder %v201_v33, 8.507059e+37 }
  0x39   :  { %v753_v54 = vpop.eup %752  ;;  %v424_v39 = vpack.c.bf16 %v415_v32, %v414_v24  ;;  %v204_v43 = vor.u32 1.1754944e-38, %v203_v52  ;;  %vm212_vm3 = vweird.f32 %v1105_v21  ;;  %vm1152_vm5 = vcmp.eq.f32.partialorder %v216_v25, 8.507059e+37 }
  0x3a   :  { %v755_v31 = vpop.eup %754  ;;  %v193_v55 = vmul.f32 %v753_v54, %v1089_v36  ;;  %v219_v57 = vor.u32 1.1754944e-38, %v218_v18  ;;  %vm257_vm7 = vweird.f32 %v1127_v30  ;;  %v261_v61 = vand.u32 2147483647, %v1127_v30 }
  0x3b   :  { %611 = vmatmul.msk.bf16.vlgmr.msra.gmra.mxu3 %vm1389_vm8, %v424_v39  ;;  %v208_v58 = vmul.f32 %v755_v31, %v1105_v21  ;;  %v263_v0 = vand.u32 2147483648, %v1127_v30  ;;  %v276_v3 = vand.u32 2147483647, %v1133_v56  ;;  %vm198_vm9 = vweird.f32 %v753_v54 }
  0x3c   :  { %v194_v45 = vsub.f32 1.0, %v193_v55  ;;  %v1162_v63 = vadd.f32 1.0, %v749_v50  ;;  %v1164_v8 = vmul.f32 %v680_v41, %v648_v53  ;;  %vm213_vm10 = vweird.f32 %v755_v31  ;;  %vm1174_vm12 = vmor %vm197_vm2, %vm198_vm9 }
  0x3d   :  { %v757_v10 = vpop.eup %756  ;;  %v209_v15 = vsub.f32 1.0, %v208_v58  ;;  %vm272_vm11 = vweird.f32 %v1133_v56  ;;  %v1167_v12 = vadd.f32 1.0, %v751_v49  ;;  %v278_v7 = vand.u32 2147483648, %v1133_v56  ;;  %vm1185_vm14 = vmor %vm212_vm3, %vm213_vm10 }
  0x3e   :  { %v759_v16 = vpop.eup %758  ;;  %v195_v1 = vmul.f32 %v753_v54, %v194_v45  ;;  %v253_v59 = vmul.f32 %v757_v10, %v1127_v30  ;;  %760 = vrcp.f32 %v1162_v63  ;;  %vm1178_vm13 = vcmp.eq.f32.partialorder %v261_v61, 8.507059e+37 }
  0x3f   :  { %v210_v9 = vmul.f32 %v755_v31, %v209_v15  ;;  %v264_v35 = vor.u32 1.1754944e-38, %v263_v0  ;;  %v268_v60 = vmul.f32 %v759_v16, %v1133_v56  ;;  %vm258_vm15 = vweird.f32 %v757_v10 }
  0x40   :  { %v196_v11 = vadd.f32 %v753_v54, %v195_v1  ;;  %v254_v36 = vsub.f32 1.0, %v253_v59  ;;  %vm1189_vm0 = vcmp.eq.f32.partialorder %v276_v3, 8.507059e+37  ;;  %vm273_vm6 = vweird.f32 %v759_v16  ;;  %vm1204_vm1 = vmor %vm257_vm7, %vm258_vm15 }
  0x41   :  { %v211_v28 = vadd.f32 %v755_v31, %v210_v9  ;;  %v269_v34 = vsub.f32 1.0, %v268_v60  ;;  %762 = vrcp.f32 %v1167_v12  ;;  %v279_v21 = vor.u32 1.1754944e-38, %v278_v7  ;;  %vm1214_vm2 = vmor %vm272_vm11, %vm273_vm6 }
  0x42   :  { %v200_v20 = vsel %vm1174_vm12, %v753_v54, %v196_v11  ;;  %v255_v23 = vmul.f32 %v757_v10, %v254_v36  ;;  %v587_v19 = vmul.f32 -1.442695, %v679_v48  ;;  %v588_v51 = vmul.f32 -1.442695, %v680_v41  ;;  %vm1402_vm7 = vmmov %vm1389_vm8 }
  0x43   :  { %v205_v24 = vsel %vm1146_vm4, %v204_v43, %v200_v20  ;;  %v215_v29 = vsel %vm1185_vm14, %v755_v31, %v211_v28  ;;  %v270_v52 = vmul.f32 %v759_v16, %v269_v34  ;;  %vm317_vm4 = vweird.f32 %v1162_v63  ;;  %vm1405_vm11 = vmmov %vm1402_vm7 }
  0x44   :  { %v761_v25 = vpop.eup %760  ;;  %v220_v18 = vsel %vm1152_vm5, %v219_v57, %v215_v29  ;;  %v404_v13 = vmul.f32 %v205_v24, %v1075_v5  ;;  %v256_v48 = vadd.f32 %v757_v10, %v255_v23  ;;  %v321_v53 = vand.u32 2147483647, %v1162_v63  ;;  %vm1406_vm14 = vmmov %vm1402_vm7 }
  0x45   :  { %v405_v30 = vmul.f32 %v220_v18, %v1113_v14  ;;  %v271_v32 = vadd.f32 %v759_v16, %v270_v52  ;;  %v313_v49 = vmul.f32 %v761_v25, %v1162_v63  ;;  %vm318_vm3 = vweird.f32 %v761_v25 }
  0x46   :  { %v260_v5 = vsel %vm1204_vm1, %v757_v10, %v256_v48  ;;  %v323_v41 = vand.u32 2147483648, %v1162_v63  ;;  %764 = vpow2.f32 %v587_v19  ;;  %vm332_vm5 = vweird.f32 %v1167_v12  ;;  %vm1240_vm8 = vmor %vm317_vm4, %vm318_vm3 }
  0x47   :  { %v763_v56 = vpop.eup %762  ;;  %v419_v54 = vpack.c.bf16 %v405_v30, %v404_v13  ;;  %v265_v39 = vsel %vm1178_vm13, %v264_v35, %v260_v5  ;;  %v275_v14 = vsel %vm1214_vm2, %v759_v16, %v271_v32  ;;  %v314_v4 = vsub.f32 1.0, %v313_v49  ;;  %v1265_v30 = vld [vmem:[%s1350_s2] ss:$0 sm:$0xff] }
  0x48   :  { %v280_v43 = vsel %vm1189_vm0, %v279_v21, %v275_v14  ;;  %v408_v31 = vmul.f32 %v265_v39, %v1120_v26  ;;  %v328_v55 = vmul.f32 %v763_v56, %v1167_v12  ;;  %v338_v58 = vand.u32 2147483648, %v1167_v12 }
  0x49   :  { %606 = vmatmul.msk.bf16.gmra.mxu0 %vm1402_vm7, %v419_v54  ;;  %v409_v46 = vmul.f32 %v280_v43, %v1138_v38  ;;  %v315_v57 = vmul.f32 %v761_v25, %v314_v4  ;;  %766 = vpow2.f32 %v588_v51  ;;  %v324_v26 = vor.u32 1.1754944e-38, %v323_v41 }
  0x4a   :  { %v329_v0 = vsub.f32 1.0, %v328_v55  ;;  %vm333_vm9 = vweird.f32 %v763_v56  ;;  %v336_v3 = vand.u32 2147483647, %v1167_v12  ;;  %vm322_vm10 = vcmp.eq.f32.partialorder %v321_v53, 8.507059e+37 }
  0x4b   :  { %v421_v45 = vpack.c.bf16 %v409_v46, %v408_v31  ;;  %v316_v10 = vadd.f32 %v761_v25, %v315_v57  ;;  %v92_v15 = vmul.f32 %v671_v42, %v639_v40  ;;  %vm334_vm12 = vmor %vm332_vm5, %vm333_vm9  ;;  %v339_v1 = vor.u32 1.1754944e-38, %v338_v58 }
  0x4c   :  { %v765_v38 = vpop.eup %764  ;;  %v330_v16 = vmul.f32 %v763_v56, %v329_v0  ;;  %v93_v7 = vmul.f32 %v672_v44, %v640_v47  ;;  %vm337_vm13 = vcmp.eq.f32.partialorder %v336_v3, 8.507059e+37 }
  0x4d   :  { %608 = vmatmul.msk.bf16.gmra.mxu1 %vm1405_vm11, %v421_v45  ;;  %v320_v63 = vsel %vm1240_vm8, %v761_v25, %v316_v10  ;;  %v160_v59 = vadd.f32 1.0, %v765_v38  ;;  %vm552_vm8 = vcmask 257024  }
  0x4e   :  { %v325_v2 = vsel %vm322_vm10, %v324_v26, %v320_v63  ;;  %v331_v9 = vadd.f32 %v763_v56, %v330_v16 }
  0x4f   :  { %v767_v42 = vpop.eup %766  ;;  %768 = vrcp.f32 %v160_v59  ;;  %v412_v6 = vmul.f32 %v325_v2, %v92_v15  ;;  %v383_v62 = vand.u32 2147483648, %v160_v59  ;;  %vm377_vm15 = vweird.f32 %v160_v59 }
  0x50   :  { %v335_v40 = vsel %vm334_vm12, %v763_v56, %v331_v9  ;;  %v161_v35 = vadd.f32 1.0, %v767_v42  ;;  %v381_v44 = vand.u32 2147483647, %v160_v59 }
  0x51   :  { %v340_v60 = vsel %vm337_vm13, %v339_v1, %v335_v40  ;;  %v384_v34 = vor.u32 1.1754944e-38, %v383_v62 }
  0x52   :  { %v413_v11 = vmul.f32 %v340_v60, %v93_v7  ;;  %770 = vrcp.f32 %v161_v35  ;;  %v398_v20 = vand.u32 2147483648, %v161_v35  ;;  %vm392_vm1 = vweird.f32 %v161_v35 }
  0x53   :  { %v396_v21 = vand.u32 2147483647, %v161_v35  ;;  %vm382_vm4 = vcmp.eq.f32.partialorder %v381_v44, 8.507059e+37 }
  0x54   :  { %v423_v12 = vpack.c.bf16 %v413_v11, %v412_v6  ;;  %v399_v33 = vor.u32 1.1754944e-38, %v398_v20 }
  0x55   :  { %v769_v22 = vpop.eup %768  ;;  %vm397_vm5 = vcmp.eq.f32.partialorder %v396_v21, 8.507059e+37 }
  0x56   :  { %610 = vmatmul.msk.bf16.gmra.mxu2 %vm1406_vm14, %v423_v12  ;;  %v373_v36 = vmul.f32 %v769_v22, %v160_v59  ;;  %vm378_vm0 = vweird.f32 %v769_v22 }
  0x57   :  { %vm379_vm6 = vmor %vm377_vm15, %vm378_vm0 }
  0x58   :  { %v771_v27 = vpop.eup %770  ;;  %v374_v37 = vsub.f32 1.0, %v373_v36 }
  0x59   :  { %v388_v47 = vmul.f32 %v771_v27, %v161_v35  ;;  %vm393_vm2 = vweird.f32 %v771_v27 }
  0x5a   :  { %v375_v28 = vmul.f32 %v769_v22, %v374_v37  ;;  %vm394_vm3 = vmor %vm392_vm1, %vm393_vm2 }
  0x5b   :  { %v389_v23 = vsub.f32 1.0, %v388_v47 }
  0x5c   :  { %v376_v19 = vadd.f32 %v769_v22, %v375_v28 }
  0x5d   :  { %v390_v24 = vmul.f32 %v771_v27, %v389_v23 }
  0x5e   :  { %v380_v29 = vsel %vm379_vm6, %v769_v22, %v376_v19 }
  0x5f   :  { %v385_v52 = vsel %vm382_vm4, %v384_v34, %v380_v29  ;;  %v391_v51 = vadd.f32 %v771_v27, %v390_v24 }
  0x60   :  { %v416_v25 = vmul.f32 %v385_v52, %v1109_v17 }
  0x61   :  { %v395_v18 = vsel %vm394_vm3, %v771_v27, %v391_v51 }
  0x62   :  { %v400_v13 = vsel %vm397_vm5, %v399_v33, %v395_v18 }
  0x63   :  { %v417_v48 = vmul.f32 %v400_v13, %v1164_v8 }
  0x65   :  { %v425_v50 = vpack.c.bf16 %v417_v48, %v416_v25 }
  0x67   :  { %612 = vmatmul.msk.bf16.gmra.mxu3 %vm1402_vm7, %v425_v50 }
  0xa2   :  { %v496_v32 = vpop.f32.mrf.mxu0 }
  0xa3   :  { %v497_v49 = vadd.f32 %v1265_v30, %v496_v32 }
  0xa5   :  { %v536_v53 = vpack.c.bf16 %v497_v49, %v497_v49 }
  0xa6   :  { %v506_v5 = vpop.f32.mrf.mxu1 }
  0xa7   :  { %553 = vst.msk [vmem:[%s1351_s4] sm:$0xf] %vm552_vm8, %v536_v53  ;;  %v507_v17 = vadd.f32 %v1265_v30, %v506_v5 }
  0xa9   :  { %v540_v8 = vpack.c.bf16 %v507_v17, %v507_v17 }
  0xaa   :  { %v498_v41 = vpop.f32.mrf.mxu0 }
  0xab   :  { %557 = vst.msk [vmem:[%s1351_s4 + $0x10] sm:$0xf] %vm552_vm8, %v540_v8  ;;  %v499_v56 = vadd.f32 %v1265_v30, %v498_v41 }
  0xad   :  { %v537_v54 = vpack.c.bf16 %v499_v56, %v499_v56 }
  0xae   :  { %v508_v39 = vpop.f32.mrf.mxu1 }
  0xaf   :  { %554 = vst.msk [vmem:[%s1351_s4 + $0x4] sm:$0xf] %vm552_vm8, %v537_v54  ;;  %v509_v14 = vadd.f32 %v1265_v30, %v508_v39 }
  0xb0   :  { %v516_v4 = vpop.f32.mrf.mxu2 }
  0xb1   :  { %v517_v43 = vadd.f32 %v1265_v30, %v516_v4  ;;  %v541_v31 = vpack.c.bf16 %v509_v14, %v509_v14 }
  0xb3   :  { %v544_v55 = vpack.c.bf16 %v517_v43, %v517_v43  ;;  %558 = vst.msk [vmem:[%s1351_s4 + $0x14] sm:$0xf] %vm552_vm8, %v541_v31 }
  0xb5   :  { %561 = vst.msk [vmem:[%s1351_s4 + $0x20] sm:$0xf] %vm552_vm8, %v544_v55 }
  0xb8   :  { %v518_v46 = vpop.f32.mrf.mxu2 }
  0xb9   :  { %v519_v57 = vadd.f32 %v1265_v30, %v518_v46 }
  0xbb   :  { %v545_v58 = vpack.c.bf16 %v519_v57, %v519_v57 }
  0xbd   :  { %562 = vst.msk [vmem:[%s1351_s4 + $0x24] sm:$0xf] %vm552_vm8, %v545_v58 }
  0xbe   :  { %v526_v61 = vpop.f32.mrf.mxu3 }
  0xbf   :  { %v527_v26 = vadd.f32 %v1265_v30, %v526_v61 }
  0xc1   :  { %v548_v0 = vpack.c.bf16 %v527_v26, %v527_v26 }
  0xc3   :  { %565 = vst.msk [vmem:[%s1351_s4 + $0x30] sm:$0xf] %vm552_vm8, %v548_v0 }
  0xc6   :  { %v528_v3 = vpop.f32.mrf.mxu3  ;;  %v501_v45 = vpop.f32.mrf.mxu0 }
  0xc7   :  { %v529_v10 = vadd.f32 %v1265_v30, %v528_v3  ;;  %v502_v38 = vadd.f32 %v1265_v30, %v501_v45 }
  0xc9   :  { %v549_v15 = vpack.c.bf16 %v529_v10, %v529_v10  ;;  %v538_v16 = vpack.c.bf16 %v502_v38, %v502_v38 }
  0xca   :  { %v511_v63 = vpop.f32.mrf.mxu1 }
  0xcb   :  { %566 = vst.msk [vmem:[%s1351_s4 + $0x34] sm:$0xf] %vm552_vm8, %v549_v15  ;;  %v512_v1 = vadd.f32 %v1265_v30, %v511_v63 }
  0xcc   :  { %555 = vst.msk [vmem:[%s1351_s4 + $0x8] sm:$0xf] %vm552_vm8, %v538_v16 }
  0xcd   :  { %v542_v59 = vpack.c.bf16 %v512_v1, %v512_v1 }
  0xce   :  { %v503_v7 = vpop.f32.mrf.mxu0 }
  0xcf   :  { %559 = vst.msk [vmem:[%s1351_s4 + $0x18] sm:$0xf] %vm552_vm8, %v542_v59  ;;  %v504_v2 = vadd.f32 %v1265_v30, %v503_v7 }
  0xd1   :  { %v539_v9 = vpack.c.bf16 %v504_v2, %v504_v2 }
  0xd2   :  { %v513_v42 = vpop.f32.mrf.mxu1 }
  0xd3   :  { %556 = vst.msk [vmem:[%s1351_s4 + $0xc] sm:$0xf] %vm552_vm8, %v539_v9  ;;  %v514_v40 = vadd.f32 %v1265_v30, %v513_v42 }
  0xd5   :  { %v543_v6 = vpack.c.bf16 %v514_v40, %v514_v40 }
  0xd7   :  { %560 = vst.msk [vmem:[%s1351_s4 + $0x1c] sm:$0xf] %vm552_vm8, %v543_v6 }
  0xd9   :  { %v521_v35 = vpop.f32.mrf.mxu2 }
  0xda   :  { %v522_v60 = vadd.f32 %v1265_v30, %v521_v35 }
  0xdc   :  { %v546_v11 = vpack.c.bf16 %v522_v60, %v522_v60 }
  0xde   :  { %563 = vst.msk [vmem:[%s1351_s4 + $0x28] sm:$0xf] %vm552_vm8, %v546_v11 }
  0xe1   :  { %v523_v12 = vpop.f32.mrf.mxu2 }
  0xe2   :  { %v524_v22 = vadd.f32 %v1265_v30, %v523_v12 }
  0xe4   :  { %v547_v36 = vpack.c.bf16 %v524_v22, %v524_v22 }
  0xe6   :  { %564 = vst.msk [vmem:[%s1351_s4 + $0x2c] sm:$0xf] %vm552_vm8, %v547_v36 }
  0xea   :  { %v531_v62 = vpop.f32.mrf.mxu3 }
  0xeb   :  { %v532_v27 = vadd.f32 %v1265_v30, %v531_v62 }
  0xed   :  { %v550_v37 = vpack.c.bf16 %v532_v27, %v532_v27 }
  0xef   :  { %567 = vst.msk [vmem:[%s1351_s4 + $0x38] sm:$0xf] %vm552_vm8, %v550_v37 }
  0xf2   :  { %v533_v44 = vpop.f32.mrf.mxu3 }
  0xf3   :  { %v534_v47 = vadd.f32 %v1265_v30, %v533_v44 }
  0xf5   :  { %v551_v28 = vpack.c.bf16 %v534_v47, %v534_v47 }
  0xf7   :  { %568 = vst.msk [vmem:[%s1351_s4 + $0x3c] sm:$0xf] %vm552_vm8, %v551_v28 }

// kernel: savss_layer_forward.49
= control target key start
LH: loop header
LB: loop body
LE: loop exit
PB: predicated region body
PF: predicated region fallthrough
CT: control target
= control target key end

     0   :  { %vm94_vm0 = vcmask 261120   ;;  %s512_s1 = inlined_call_operand.vmem [shape: bf16[32,32], index: 1, kind: input, shape index: {}]   ;;  %s513_s0 = inlined_call_operand.vmem [shape: bf16[128,32], index: 0, kind: input, shape index: {}]   ;;  %s514_s2 = inlined_call_operand.vmem [shape: f32[1,32], index: 2, kind: input, shape index: {}]   ;;  %s515_s3 = inlined_call_operand.vmem [shape: bf16[128,32], index: 3, kind: input, shape index: {}]   ;;  %s516_s4 = inlined_call_operand.vmem [shape: f32[128,32], index: 4, kind: output, shape index: {}]  }
   0x1   :  { %v293_v0 = vld [vmem:[%s512_s1 + $0x8] sm:$0xff]  ;;  %v292_v1 = vld [vmem:[%s512_s1] sm:$0xff]  ;;  %v286_v3 = vld [vmem:[%s513_s0 + $0x10] sm:$0xff] }
   0x2   :  { %125 = vmatpush.bf16.msra.mxu0 %v293_v0  ;;  %333 = vmatpush.bf16.msra.mxu1 %v293_v0  ;;  %v284_v2 = vld [vmem:[%s513_s0] sm:$0xff]  ;;  %v290_v5 = vld [vmem:[%s513_s0 + $0x30] sm:$0xff]  ;;  %v285_v6 = vld [vmem:[%s513_s0 + $0x8] sm:$0xff] }
   0x3   :  { %334 = vmatpush.bf16.msra.mxu2 %v293_v0  ;;  %335 = vmatpush.bf16.msra.mxu3 %v293_v0  ;;  %v288_v4 = vld [vmem:[%s513_s0 + $0x20] sm:$0xff]  ;;  %v287_v7 = vld [vmem:[%s513_s0 + $0x18] sm:$0xff]  ;;  %v289_v8 = vld [vmem:[%s513_s0 + $0x28] sm:$0xff] }
   0x4   :  { %v291_v9 = vld [vmem:[%s513_s0 + $0x38] sm:$0xff]  ;;  %v295_v10 = vld [vmem:[%s515_s3] sm:$0xff]   ;;  %v327_v11 = vld [vmem:[%s515_s3 + $0x10] sm:$0xff]  }
   0x5   :  { %v412_v12 = vld [vmem:[%s514_s2] ss:$0 sm:$0xff]  ;;  %v296_v13 = vunpack.c.l.bf16 %v295_v10  ;;  %v304_v14 = vunpack.c.l.bf16 %v327_v11  ;;  %v331_v22 = vld [vmem:[%s515_s3 + $0x30] sm:$0xff]   ;;  %v297_v27 = vunpack.c.h.bf16 %v295_v10  ;;  %v305_v28 = vunpack.c.h.bf16 %v327_v11  ;;  %v326_v39 = vld [vmem:[%s515_s3 + $0x8] sm:$0xff]  }
   0x6   :  { %126 = vmatpush.bf16.msra.mxu0 %v292_v1  ;;  %336 = vmatpush.bf16.msra.mxu1 %v292_v1  ;;  %v329_v21 = vld [vmem:[%s515_s3 + $0x20] sm:$0xff]   ;;  %v320_v24 = vunpack.c.l.bf16 %v331_v22  ;;  %v328_v40 = vld [vmem:[%s515_s3 + $0x18] sm:$0xff]   ;;  %v321_v42 = vunpack.c.h.bf16 %v331_v22  ;;  %v300_v45 = vunpack.c.l.bf16 %v326_v39  ;;  %v330_v57 = vld [vmem:[%s515_s3 + $0x28] sm:$0xff]   ;;  %v301_v63 = vunpack.c.h.bf16 %v326_v39 }
   0x7   :  { %337 = vmatpush.bf16.msra.mxu2 %v292_v1  ;;  %338 = vmatpush.bf16.msra.mxu3 %v292_v1  ;;  %v312_v23 = vunpack.c.l.bf16 %v329_v21  ;;  %v313_v41 = vunpack.c.h.bf16 %v329_v21  ;;  %v308_v46 = vunpack.c.l.bf16 %v328_v40  ;;  %v332_v58 = vld [vmem:[%s515_s3 + $0x38] sm:$0xff]   ;;  %v316_v59 = vunpack.c.l.bf16 %v330_v57 }
   0x8   :  { %v324_v60 = vunpack.c.l.bf16 %v332_v58  ;;  %v309_v0 = vunpack.c.h.bf16 %v328_v40  ;;  %v317_v11 = vunpack.c.h.bf16 %v330_v57 }
   0x9   :  { %276 = vmatmul.msk.bf16.vlgmr.msra.gmra.mxu0 %vm94_vm0, %v284_v2  ;;  %278 = vmatmul.msk.bf16.vlgmr.msra.gmra.mxu1 %vm94_vm0, %v286_v3 }
   0xa   :  { %280 = vmatmul.msk.bf16.vlgmr.msra.gmra.mxu2 %vm94_vm0, %v288_v4  ;;  %282 = vmatmul.msk.bf16.vlgmr.msra.gmra.mxu3 %vm94_vm0, %v290_v5 }
  0x19   :  { %277 = vmatmul.msk.bf16.gmra.mxu0 %vm94_vm0, %v285_v6  ;;  %279 = vmatmul.msk.bf16.gmra.mxu1 %vm94_vm0, %v287_v7 }
  0x1a   :  { %281 = vmatmul.msk.bf16.gmra.mxu2 %vm94_vm0, %v289_v8  ;;  %283 = vmatmul.msk.bf16.gmra.mxu3 %vm94_vm0, %v291_v9 }
  0x86   :  { %v128_v15 = vpop.f32.mrf.mxu0  ;;  %v138_v16 = vpop.f32.mrf.mxu1 }
  0x87   :  { %v129_v17 = vadd.f32 %v412_v12, %v128_v15  ;;  %v139_v18 = vadd.f32 %v412_v12, %v138_v16 }
  0x89   :  { %v200_v19 = vadd.f32 %v296_v13, %v129_v17  ;;  %v204_v20 = vadd.f32 %v304_v14, %v139_v18  ;;  %v325_v13 = vunpack.c.h.bf16 %v332_v58 }
  0x8b   :  { %216 = vst.msk [vmem:[%s516_s4] sm:$0xff] %vm94_vm0, %v200_v19 }
  0x8c   :  { %220 = vst.msk [vmem:[%s516_s4 + $0x20] sm:$0xff] %vm94_vm0, %v204_v20 }
  0x8d   :  { %v148_v25 = vpop.f32.mrf.mxu2  ;;  %v158_v26 = vpop.f32.mrf.mxu3 }
  0x8e   :  { %v149_v29 = vadd.f32 %v412_v12, %v148_v25  ;;  %v159_v30 = vadd.f32 %v412_v12, %v158_v26  ;;  %v130_v31 = vpop.f32.mrf.mxu0  ;;  %v140_v32 = vpop.f32.mrf.mxu1 }
  0x8f   :  { %v131_v33 = vadd.f32 %v412_v12, %v130_v31  ;;  %v141_v34 = vadd.f32 %v412_v12, %v140_v32 }
  0x90   :  { %v208_v35 = vadd.f32 %v312_v23, %v149_v29  ;;  %v212_v36 = vadd.f32 %v320_v24, %v159_v30 }
  0x91   :  { %v201_v37 = vadd.f32 %v297_v27, %v131_v33  ;;  %v205_v38 = vadd.f32 %v305_v28, %v141_v34 }
  0x92   :  { %224 = vst.msk [vmem:[%s516_s4 + $0x40] sm:$0xff] %vm94_vm0, %v208_v35 }
  0x93   :  { %228 = vst.msk [vmem:[%s516_s4 + $0x60] sm:$0xff] %vm94_vm0, %v212_v36 }
  0x94   :  { %217 = vst.msk [vmem:[%s516_s4 + $0x8] sm:$0xff] %vm94_vm0, %v201_v37 }
  0x95   :  { %221 = vst.msk [vmem:[%s516_s4 + $0x28] sm:$0xff] %vm94_vm0, %v205_v38  ;;  %v150_v43 = vpop.f32.mrf.mxu2  ;;  %v160_v44 = vpop.f32.mrf.mxu3 }
  0x96   :  { %v151_v47 = vadd.f32 %v412_v12, %v150_v43  ;;  %v161_v48 = vadd.f32 %v412_v12, %v160_v44  ;;  %v133_v49 = vpop.f32.mrf.mxu0  ;;  %v143_v50 = vpop.f32.mrf.mxu1 }
  0x97   :  { %v134_v51 = vadd.f32 %v412_v12, %v133_v49  ;;  %v144_v52 = vadd.f32 %v412_v12, %v143_v50 }
  0x98   :  { %v209_v53 = vadd.f32 %v313_v41, %v151_v47  ;;  %v213_v54 = vadd.f32 %v321_v42, %v161_v48 }
  0x99   :  { %v202_v55 = vadd.f32 %v300_v45, %v134_v51  ;;  %v206_v56 = vadd.f32 %v308_v46, %v144_v52 }
  0x9a   :  { %225 = vst.msk [vmem:[%s516_s4 + $0x48] sm:$0xff] %vm94_vm0, %v209_v53 }
  0x9b   :  { %229 = vst.msk [vmem:[%s516_s4 + $0x68] sm:$0xff] %vm94_vm0, %v213_v54 }
  0x9c   :  { %218 = vst.msk [vmem:[%s516_s4 + $0x10] sm:$0xff] %vm94_vm0, %v202_v55 }
  0x9d   :  { %222 = vst.msk [vmem:[%s516_s4 + $0x30] sm:$0xff] %vm94_vm0, %v206_v56  ;;  %v153_v61 = vpop.f32.mrf.mxu2  ;;  %v163_v62 = vpop.f32.mrf.mxu3 }
  0x9e   :  { %v154_v1 = vadd.f32 %v412_v12, %v153_v61  ;;  %v164_v2 = vadd.f32 %v412_v12, %v163_v62  ;;  %v135_v3 = vpop.f32.mrf.mxu0  ;;  %v145_v4 = vpop.f32.mrf.mxu1 }
  0x9f   :  { %v136_v5 = vadd.f32 %v412_v12, %v135_v3  ;;  %v146_v6 = vadd.f32 %v412_v12, %v145_v4 }
  0xa0   :  { %v210_v7 = vadd.f32 %v316_v59, %v154_v1  ;;  %v214_v8 = vadd.f32 %v324_v60, %v164_v2 }
  0xa1   :  { %v203_v9 = vadd.f32 %v301_v63, %v136_v5  ;;  %v207_v10 = vadd.f32 %v309_v0, %v146_v6 }
  0xa2   :  { %226 = vst.msk [vmem:[%s516_s4 + $0x50] sm:$0xff] %vm94_vm0, %v210_v7 }
  0xa3   :  { %230 = vst.msk [vmem:[%s516_s4 + $0x70] sm:$0xff] %vm94_vm0, %v214_v8 }
  0xa4   :  { %219 = vst.msk [vmem:[%s516_s4 + $0x18] sm:$0xff] %vm94_vm0, %v203_v9 }
  0xa5   :  { %223 = vst.msk [vmem:[%s516_s4 + $0x38] sm:$0xff] %vm94_vm0, %v207_v10  ;;  %v155_v14 = vpop.f32.mrf.mxu2  ;;  %v165_v15 = vpop.f32.mrf.mxu3 }
  0xa6   :  { %v156_v16 = vadd.f32 %v412_v12, %v155_v14  ;;  %v166_v17 = vadd.f32 %v412_v12, %v165_v15 }
  0xa8   :  { %v211_v18 = vadd.f32 %v317_v11, %v156_v16  ;;  %v215_v19 = vadd.f32 %v325_v13, %v166_v17 }
  0xaa   :  { %227 = vst.msk [vmem:[%s516_s4 + $0x58] sm:$0xff] %vm94_vm0, %v211_v18 }
  0xab   :  { %231 = vst.msk [vmem:[%s516_s4 + $0x78] sm:$0xff] %vm94_vm0, %v215_v19 }

</bundles_post_ra>
